<compile_context>
chip_gen: v7x
topology: tpu7x:2x2x1
jax: 0.10.0
libtpu: 0.0.40
codegen_flags: <defaults>
</compile_context>

<pallas_src>
import jax
import jax.numpy as jnp
from jax.experimental import pallas as pl
from jax.experimental.pallas import tpu as pltpu

# ----------------------------- model configuration ---------------------------
ELEM_TO_ID_LEN = 3                      # len(elem_to_id) -> residual slice x[:, 3:7]
INPUT_DIM = ELEM_TO_ID_LEN + 4 + 1      # 8
HIDDEN_DIM = 32
EMBED_DIM = 32
EDGE_HIDDEN = 32
NUM_EDGE_FEAT = 2                       # num_node_features_edgecls
OUT_ID = 6                              # len(class_to_id)
OUT_P4 = 4

LANES = 128

# ----------------------------- batching / blocking ---------------------------
GRAPHS_PER_BLOCK = 8                    # graphs per grid step
NMAX = 16                               # nodes per graph
E_PER_GRAPH = 16                        # edges per graph
NUM_BLOCKS = 2                          # grid size (graph blocks)
NUM_GRAPHS = NUM_BLOCKS * GRAPHS_PER_BLOCK
N_BLK = GRAPHS_PER_BLOCK * NMAX         # 128 nodes per block
E_BLK = GRAPHS_PER_BLOCK * E_PER_GRAPH  # 128 edges per block
N_TOTAL = NUM_BLOCKS * N_BLK            # 256
E_TOTAL = NUM_BLOCKS * E_BLK            # 256


def _pad8(n):
    return (n + 7) // 8 * 8


# ----------------------------- output layout ---------------------------------
O_IDS = 0                               # cand_ids      cols [0, 6)
O_P4 = OUT_ID                           # cand_p4       cols [6, 10)
O_EW = OUT_ID + OUT_P4                  # edge_weight2  col  10
R_OUT = _pad8(max(N_BLK, E_BLK))        # 128 rows per output block

# --------------------------- graph slab layout --------------------------------
# Per block: (R_G, 128).  Node features are packed at lane offset C_X so that
# features [3,7) land exactly on the output p4 lanes [6,10) (residual add
# needs no lane shift).  src/dst/edge_attr are per-edge scalar columns; the
# dst indices are duplicated as a row so T^T can be built without a transpose.
C_X = O_P4 - ELEM_TO_ID_LEN             # 3 : x features at lanes [3, 11)
C_SRC = 16                              # src node index (block-local) as float
C_DST = 17                              # dst node index (block-local) as float
C_EW = 18                               # edge_attr
R_DST_ROW = max(N_BLK, E_BLK)           # row 128: dst indices along lanes
R_G = _pad8(R_DST_ROW + 1)              # 136 rows per graph block

assert N_BLK == E_BLK == R_OUT, "single packed output slab assumes equal node/edge rows"
assert E_BLK <= LANES, "dst row-vector must fit in one 128-lane row"
assert C_SRC >= C_X + INPUT_DIM and C_EW < LANES
assert O_P4 - ELEM_TO_ID_LEN == C_X

# ------------------------- parameter slab layout -----------------------------
# Each linear layer occupies pad8(fan_in + 1) rows of a (PARAM_ROWS, 128) slab:
#   W at rows [off, off+fan_in), bias at row off+fan_in.  Columns beyond fan_out
# are zero, so full-128-lane weight reads produce exactly-zero padded output
# lanes.  The terminal layers nn2_4 / edge2 are packed at their OUTPUT lane
# offsets so the final slab assembly needs no lane shifts.
LAYER_DEFS = (
    ("inp0", INPUT_DIM, HIDDEN_DIM),
    ("inp1", HIDDEN_DIM, HIDDEN_DIM),
    ("inp2", HIDDEN_DIM, HIDDEN_DIM),
    ("inp3", HIDDEN_DIM, EMBED_DIM),
    ("conv1", EMBED_DIM, EMBED_DIM),
    ("edge0", 2 * NUM_EDGE_FEAT + 1, EDGE_HIDDEN),
    ("edge1", EDGE_HIDDEN, EDGE_HIDDEN),
    ("edge2", EDGE_HIDDEN, 1),
    ("conv2", EMBED_DIM, EMBED_DIM),
    ("nn1_0", EMBED_DIM, HIDDEN_DIM),
    ("nn1_1", HIDDEN_DIM, HIDDEN_DIM),
    ("nn1_2", HIDDEN_DIM, HIDDEN_DIM),
    ("nn1_3", HIDDEN_DIM, HIDDEN_DIM),
    ("nn1_4", HIDDEN_DIM, OUT_ID),
    ("nn2_0", OUT_ID + EMBED_DIM, HIDDEN_DIM),
    ("nn2_1", HIDDEN_DIM, HIDDEN_DIM),
    ("nn2_2", HIDDEN_DIM, HIDDEN_DIM),
    ("nn2_3", HIDDEN_DIM, HIDDEN_DIM),
    ("nn2_4", HIDDEN_DIM, OUT_P4),
)


def _build_param_layout():
    layout, off = {}, 0
    for name, fi, fo in LAYER_DEFS:
        layout[name] = (off, fi, fo)
        off += _pad8(fi + 1)
    return layout, off


PARAM_LAYOUT, PARAM_ROWS = _build_param_layout()          # PARAM_ROWS == 704
PARAM_COL_OFFSET = {"nn2_4": O_P4, "edge2": O_EW}          # outputs land on final lanes


def _selu(x):
    alpha = 1.6732632423543772
    scale = 1.0507009873554805
    return scale * jnp.where(x > 0, x, alpha * (jnp.exp(x) - 1.0))


# ------------------------------- the kernel -----------------------------------
def pfnet6_kernel(g_ref, p_ref, out_ref):
    # full-128-lane weight reads; zero pad columns keep padded lanes exactly 0
    def linear(x, name):
        off, fi, _ = PARAM_LAYOUT[name]
        w = p_ref[off:off + fi, :]                     # (fi, 128)
        b = p_ref[off + fi:off + fi + 1, :]            # (1, 128)
        return jnp.dot(x[:, :fi], w, preferred_element_type=jnp.float32) + b

    # ---- unpack the per-block graph slab ----
    x_in = g_ref[0:N_BLK, C_X:C_X + INPUT_DIM]                         # (N, 8)
    src_col = g_ref[0:E_BLK, C_SRC:C_SRC + 1].astype(jnp.int32)        # (E, 1)
    dst_col = g_ref[0:E_BLK, C_DST:C_DST + 1].astype(jnp.int32)        # (E, 1)
    ew_col = g_ref[0:E_BLK, C_EW:C_EW + 1]                             # (E, 1)
    dst_row = g_ref[R_DST_ROW:R_DST_ROW + 1, 0:E_BLK].astype(jnp.int32)  # (1, E)

    # one-hot incidence rebuilt in-register (block-local indices, VPU iota)
    lane_n = jax.lax.broadcasted_iota(jnp.int32, (E_BLK, N_BLK), 1)
    s_mat = (lane_n == src_col).astype(jnp.float32)                    # (E, N)
    t_mat = (lane_n == dst_col).astype(jnp.float32)                    # (E, N)
    sub_n = jax.lax.broadcasted_iota(jnp.int32, (N_BLK, E_BLK), 0)
    tt_mat = (sub_n == dst_row).astype(jnp.float32)                    # (N, E) == T^T

    # float identity (self loops), built once, reused by both convs
    eye_f = (jax.lax.broadcasted_iota(jnp.int32, (N_BLK, N_BLK), 0)
             == jax.lax.broadcasted_iota(jnp.int32, (N_BLK, N_BLK), 1)
             ).astype(jnp.float32)

    # ---- self.inp : 4 x (Linear + SELU) ----
    h = x_in
    for name in ("inp0", "inp1", "inp2", "inp3"):
        h = _selu(linear(h, name))                                     # (N, 128)

    # SGConv(K=2) with reassociated normalization (row scalings only):
    #   xk = d^-1/2 * (Ah @ (d^-1 * (Ah @ (d^-1/2 * x))))
    def sgconv_k2(x, adj, name):
        ah = adj + eye_f                                               # A + I
        deg = jnp.sum(ah, axis=-1, keepdims=True)                      # (N, 1) >= 1
        dis = jax.lax.rsqrt(deg)                                       # d^-1/2 (EUP)
        dinv = dis * dis                                               # d^-1
        y = jnp.dot(ah, dis * x, preferred_element_type=jnp.float32)
        y = jnp.dot(ah, dinv * y, preferred_element_type=jnp.float32)
        return linear(dis * y, name)

    # conv1 over the full edge set: A1[dst, src] = T^T @ S (block-diagonal)
    a1 = jnp.dot(tt_mat, s_mat, preferred_element_type=jnp.float32)
    x1 = _selu(sgconv_k2(h, a1, "conv1"))                              # (N, 128)

    # ---- edgenet: fused gather + first layer (no per-edge concat) ----
    e0, e0_fi, _ = PARAM_LAYOUT["edge0"]
    w_src = p_ref[e0 + 0:e0 + 2, :]                                    # x[src, :2] rows
    w_dst = p_ref[e0 + 2:e0 + 4, :]                                    # x[dst, :2] rows
    w_ew = p_ref[e0 + 4:e0 + 5, :]                                     # edge_weight row
    b_e0 = p_ref[e0 + e0_fi:e0 + e0_fi + 1, :]
    x1f2 = x1[:, 0:NUM_EDGE_FEAT]                                      # (N, 2)
    w_pre = jnp.concatenate(
        [jnp.dot(x1f2, w_src, preferred_element_type=jnp.float32),
         jnp.dot(x1f2, w_dst, preferred_element_type=jnp.float32)],
        axis=0)                                                        # (2N, 128)
    st = jnp.concatenate([s_mat, t_mat], axis=-1)                      # (E, 2N)
    he = (jnp.dot(st, w_pre, preferred_element_type=jnp.float32)
          + ew_col * w_ew + b_e0)
    he = _selu(he)
    he = _selu(linear(he, "edge1"))
    ew2 = jax.nn.sigmoid(linear(he, "edge2"))          # (E, 128): lane O_EW meaningful
    ew2_col = ew2[:, O_EW:O_EW + 1]                    # (E, 1)

    # ---- conv2 over kept edges (edge_weight2 > 0.5) as a masked adjacency ----
    keep = (ew2_col > 0.5).astype(jnp.float32)                         # (E, 1)
    a2 = jnp.dot(tt_mat, s_mat * keep, preferred_element_type=jnp.float32)
    x2 = _selu(sgconv_k2(x1, a2, "conv2"))                             # (N, 128)

    # ---- self.nn1 : 4 x (Linear + SELU) + Linear ----
    h1 = x2
    for name in ("nn1_0", "nn1_1", "nn1_2", "nn1_3"):
        h1 = _selu(linear(h1, name))
    cand_ids = linear(h1, "nn1_4")                     # (N, 128): lanes [0, 6)

    # ---- self.nn2 on cat([cand_ids, x2]) via split weights (no concat) ----
    n0, n0_fi, _ = PARAM_LAYOUT["nn2_0"]
    w_ids = p_ref[n0:n0 + OUT_ID, :]
    w_x2 = p_ref[n0 + OUT_ID:n0 + n0_fi, :]
    b_n0 = p_ref[n0 + n0_fi:n0 + n0_fi + 1, :]
    h2 = (jnp.dot(cand_ids[:, :OUT_ID], w_ids, preferred_element_type=jnp.float32)
          + jnp.dot(x2[:, :EMBED_DIM], w_x2, preferred_element_type=jnp.float32)
          + b_n0)
    h2 = _selu(h2)
    for name in ("nn2_1", "nn2_2", "nn2_3"):
        h2 = _selu(linear(h2, name))
    p4_dense = linear(h2, "nn2_4")                     # (N, 128): lanes [6, 10)

    # ---- single unmasked full-width output store ----
    # cand_ids lives on lanes [0,6), p4_dense on [6,10); the x[:,3:7] residual
    # already sits at lanes [6,10) of the graph slab rows; ew2 is masked onto
    # lane 10.  Pure adds + iota masks -> one lane-dense vst, no vst.msk.
    lane = jax.lax.broadcasted_iota(jnp.int32, (R_OUT, LANES), 1)
    g_rows = g_ref[0:N_BLK, :]
    xp4_part = jnp.where((lane >= O_P4) & (lane < O_P4 + OUT_P4), g_rows, 0.0)
    ew_part = jnp.where(lane == O_EW, ew2, 0.0)
    out_ref[...] = cand_ids + (p4_dense + xp4_part) + ew_part


# ------------------------------ host wrapper ----------------------------------
_FLOPS_PER_BLOCK = (
    2 * 2 * N_BLK * E_BLK * N_BLK            # adjacency builds a1, a2
    + 2 * 2 * 2 * N_BLK * N_BLK * LANES      # 2 convs x 2 propagation matmuls
    + 2 * E_BLK * 2 * N_BLK * LANES          # fused edgenet gather matmul
    + 19 * 2 * N_BLK * 40 * LANES            # dense layers (rough)
)
_TRANS_PER_BLOCK = 16 * N_BLK * LANES        # SELU/sigmoid exps + rsqrt (rough)
_BYTES_ACCESSED = (PARAM_ROWS * LANES * 4
                   + NUM_BLOCKS * (R_G + R_OUT) * LANES * 4)


@jax.jit
def pfnet6_forward(graph_slab, param_slab):
    out = pl.pallas_call(
        pfnet6_kernel,
        out_shape=jax.ShapeDtypeStruct((NUM_BLOCKS * R_OUT, LANES), jnp.float32),
        grid_spec=pltpu.PrefetchScalarGridSpec(
            num_scalar_prefetch=0,
            grid=(NUM_BLOCKS,),
            in_specs=[
                pl.BlockSpec((R_G, LANES), lambda i: (i, 0)),         # per-block graph
                pl.BlockSpec((PARAM_ROWS, LANES), lambda i: (0, 0)),  # resident params
            ],
            out_specs=pl.BlockSpec((R_OUT, LANES), lambda i: (i, 0)),
        ),
        compiler_params=pltpu.CompilerParams(
            dimension_semantics=("parallel",)),
        cost_estimate=pl.CostEstimate(
            flops=NUM_BLOCKS * _FLOPS_PER_BLOCK,
            transcendentals=NUM_BLOCKS * _TRANS_PER_BLOCK,
            bytes_accessed=_BYTES_ACCESSED),
    )(graph_slab, param_slab)
    out = out.reshape(NUM_BLOCKS, R_OUT, LANES)
    cand_ids = out[:, :N_BLK, O_IDS:O_IDS + OUT_ID].reshape(N_TOTAL, OUT_ID)
    cand_p4 = out[:, :N_BLK, O_P4:O_P4 + OUT_P4].reshape(N_TOTAL, OUT_P4)
    edge_weight2 = out[:, :E_BLK, O_EW].reshape(E_TOTAL)
    return edge_weight2, cand_ids, cand_p4


# ------------------------- host-side packing helpers --------------------------
def build_params(key):
    keys = jax.random.split(key, len(LAYER_DEFS))
    by_name = {}
    for k, (name, fi, fo) in zip(keys, LAYER_DEFS):
        lim = 1.0 / (float(fi) ** 0.5)
        kw, kb = jax.random.split(k)
        w = jax.random.uniform(kw, (fi, fo), jnp.float32, -lim, lim)
        b = jax.random.uniform(kb, (fo,), jnp.float32, -lim, lim)
        by_name[name] = (w, b)
    structured = (
        [by_name[n] for n in ("inp0", "inp1", "inp2", "inp3")],
        by_name["conv1"],
        [by_name[n] for n in ("edge0", "edge1", "edge2")],
        by_name["conv2"],
        [by_name[n] for n in ("nn1_0", "nn1_1", "nn1_2", "nn1_3", "nn1_4")],
        [by_name[n] for n in ("nn2_0", "nn2_1", "nn2_2", "nn2_3", "nn2_4")],
    )
    return by_name, structured


def pack_params(by_name):
    slab = jnp.zeros((PARAM_ROWS, LANES), jnp.float32)
    for name, (w, b) in by_name.items():
        off, fi, fo = PARAM_LAYOUT[name]
        c0 = PARAM_COL_OFFSET.get(name, 0)
        slab = slab.at[off:off + fi, c0:c0 + fo].set(w)
        slab = slab.at[off + fi, c0:c0 + fo].set(b)
    return slab


def pack_graph(xraw, src, dst, edge_attr):
    g = jnp.zeros((NUM_BLOCKS * R_G, LANES), jnp.float32)
    for b in range(NUM_BLOCKS):
        r0 = b * R_G
        nsl = slice(b * N_BLK, (b + 1) * N_BLK)
        esl = slice(b * E_BLK, (b + 1) * E_BLK)
        src_l = (src[esl] - b * N_BLK).astype(jnp.float32)
        dst_l = (dst[esl] - b * N_BLK).astype(jnp.float32)
        g = g.at[r0:r0 + N_BLK, C_X:C_X + INPUT_DIM].set(xraw[nsl])
        g = g.at[r0:r0 + E_BLK, C_SRC].set(src_l)
        g = g.at[r0:r0 + E_BLK, C_DST].set(dst_l)
        g = g.at[r0:r0 + E_BLK, C_EW].set(edge_attr[esl])
        g = g.at[r0 + R_DST_ROW, 0:E_BLK].set(dst_l)
    return g


# ------------------------------ pure-JAX reference ----------------------------
def reference(xraw, src, dst, edge_attr, params):
    inp_p, conv1_p, edge_p, conv2_p, nn1_p, nn2_p = params
    n = xraw.shape[0]

    h = xraw
    for w, b in inp_p:
        h = _selu(h @ w + b)

    def sgconv(x, a, wb):
        w, b = wb
        ah = a + jnp.eye(n, dtype=jnp.float32)
        deg = ah.sum(-1)
        dinv = deg ** -0.5
        an = dinv[:, None] * ah * dinv[None, :]
        return (an @ (an @ x)) @ w + b

    a1 = jnp.zeros((n, n), jnp.float32).at[dst, src].add(1.0)
    x1 = _selu(sgconv(h, a1, conv1_p))

    xp = jnp.concatenate(
        [x1[src, :NUM_EDGE_FEAT], x1[dst, :NUM_EDGE_FEAT], edge_attr[:, None]], axis=-1)
    he = xp
    for i, (w, b) in enumerate(edge_p):
        he = he @ w + b
        he = _selu(he) if i < len(edge_p) - 1 else jax.nn.sigmoid(he)
    ew2 = he[:, 0]

    maskf = (ew2 > 0.5).astype(jnp.float32)
    a2 = jnp.zeros((n, n), jnp.float32).at[dst, src].add(maskf)
    x2 = _selu(sgconv(x1, a2, conv2_p))

    h1 = x2
    for i, (w, b) in enumerate(nn1_p):
        h1 = h1 @ w + b
        if i < len(nn1_p) - 1:
            h1 = _selu(h1)
    cand_ids = h1

    h2 = jnp.concatenate([cand_ids, x2], axis=-1)
    for i, (w, b) in enumerate(nn2_p):
        h2 = h2 @ w + b
        if i < len(nn2_p) - 1:
            h2 = _selu(h2)
    cand_p4 = xraw[:, ELEM_TO_ID_LEN:ELEM_TO_ID_LEN + 4] + h2
    return ew2, cand_ids, cand_p4


# ----------------------------------- main --------------------------------------
if __name__ == "__main__":
    key = jax.random.PRNGKey(0)
    k_x, k_e, k_p = jax.random.split(key, 3)

    # node features (data.x)
    xraw = jax.random.normal(k_x, (N_TOTAL, INPUT_DIM), jnp.float32)

    # deterministic per-graph edge_index: half ring edges + half skip edges
    src_l, dst_l = [], []
    for g in range(NUM_GRAPHS):
        off = g * NMAX
        for i in range(NMAX // 2):
            src_l.append(off + i)
            dst_l.append(off + (i + 1) % NMAX)
        for i in range(NMAX // 2):
            src_l.append(off + i)
            dst_l.append(off + (i * 5 + 2) % NMAX)
    src = jnp.array(src_l, jnp.int32)
    dst = jnp.array(dst_l, jnp.int32)
    assert src.shape[0] == E_TOTAL
    edge_attr = jax.random.uniform(k_e, (E_TOTAL,), jnp.float32)

    by_name, structured = build_params(k_p)
    param_slab = pack_params(by_name)
    graph_slab = pack_graph(xraw, src, dst, edge_attr)

    ew2, cand_ids, cand_p4 = pfnet6_forward(graph_slab, param_slab)
    jax.block_until_ready((ew2, cand_ids, cand_p4))

    ew2_r, ids_r, p4_r = reference(xraw, src, dst, edge_attr, structured)

    assert ew2.shape == (E_TOTAL,)
    assert cand_ids.shape == (N_TOTAL, OUT_ID)
    assert cand_p4.shape == (N_TOTAL, OUT_P4)
    assert bool(jnp.all(jnp.isfinite(ew2)))
    assert bool(jnp.all(jnp.isfinite(cand_ids))) and bool(jnp.all(jnp.isfinite(cand_p4)))
    assert float(jnp.max(jnp.abs(ew2 - ew2_r))) < 1e-3
    assert float(jnp.max(jnp.abs(cand_ids - ids_r))) < 1e-3
    assert float(jnp.max(jnp.abs(cand_p4 - p4_r))) < 1e-3

    print("KERNEL_OK")
</pallas_src>

<mosaic_0001>
module attributes {stable_mosaic.version = 11 : i64} {
  func.func @pfnet6_kernel(%arg0: i32, %arg1: memref<136x128xf32, #tpu.memory_space<vmem>>, %arg2: memref<704x128xf32, #tpu.memory_space<vmem>>, %arg3: memref<128x128xf32, #tpu.memory_space<vmem>>) attributes {dimension_semantics = [#tpu.dimension_semantics<parallel>], iteration_bounds = array<i64: 2>, scalar_prefetch = 0 : i64, scratch_operands = 0 : i64, tpu.core_type = #tpu.core_type<tc>, window_params = [{transform_indices = @transform_0, window_bounds = array<i64: 136, 128>}, {pipeline_mode = #tpu.pipeline_mode<synchronous>, transform_indices = @transform_1, window_bounds = array<i64: 704, 128>}, {transform_indices = @transform_2, window_bounds = array<i64: 128, 128>}]} {
    %c0 = arith.constant 0 : index
    %c3 = arith.constant 3 : index
    %0 = vector.load %arg1[%c0, %c3] : memref<136x128xf32, #tpu.memory_space<vmem>>, vector<128x8xf32>
    %c0_0 = arith.constant 0 : index
    %c16 = arith.constant 16 : index
    %1 = vector.load %arg1[%c0_0, %c16] : memref<136x128xf32, #tpu.memory_space<vmem>>, vector<128x1xf32>
    %2 = arith.fptosi %1 : vector<128x1xf32> to vector<128x1xi32>
    %c0_1 = arith.constant 0 : index
    %c17 = arith.constant 17 : index
    %3 = vector.load %arg1[%c0_1, %c17] : memref<136x128xf32, #tpu.memory_space<vmem>>, vector<128x1xf32>
    %4 = arith.fptosi %3 : vector<128x1xf32> to vector<128x1xi32>
    %c0_2 = arith.constant 0 : index
    %c18 = arith.constant 18 : index
    %5 = vector.load %arg1[%c0_2, %c18] : memref<136x128xf32, #tpu.memory_space<vmem>>, vector<128x1xf32>
    %c128 = arith.constant 128 : index
    %c0_3 = arith.constant 0 : index
    %6 = vector.load %arg1[%c128, %c0_3] : memref<136x128xf32, #tpu.memory_space<vmem>>, vector<1x128xf32>
    %7 = arith.fptosi %6 : vector<1x128xf32> to vector<1x128xi32>
    %8 = tpu.iota {dimensions = array<i32: 1>} : vector<128x128xi32>
    %9 = vector.broadcast %2 : vector<128x1xi32> to vector<128x128xi32>
    %10 = arith.cmpi eq, %8, %9 : vector<128x128xi32>
    %11 = arith.extui %10 : vector<128x128xi1> to vector<128x128xi32>
    %12 = arith.sitofp %11 : vector<128x128xi32> to vector<128x128xf32>
    %13 = vector.broadcast %4 : vector<128x1xi32> to vector<128x128xi32>
    %14 = arith.cmpi eq, %8, %13 : vector<128x128xi32>
    %15 = arith.extui %14 : vector<128x128xi1> to vector<128x128xi32>
    %16 = arith.sitofp %15 : vector<128x128xi32> to vector<128x128xf32>
    %17 = tpu.iota {dimensions = array<i32: 0>} : vector<128x128xi32>
    %18 = vector.broadcast %7 : vector<1x128xi32> to vector<128x128xi32>
    %19 = arith.cmpi eq, %17, %18 : vector<128x128xi32>
    %20 = arith.extui %19 : vector<128x128xi1> to vector<128x128xi32>
    %21 = arith.sitofp %20 : vector<128x128xi32> to vector<128x128xf32>
    %22 = tpu.iota {dimensions = array<i32: 0>} : vector<128x128xi32>
    %23 = tpu.iota {dimensions = array<i32: 1>} : vector<128x128xi32>
    %24 = arith.cmpi eq, %22, %23 : vector<128x128xi32>
    %25 = arith.extui %24 : vector<128x128xi1> to vector<128x128xi32>
    %26 = arith.sitofp %25 : vector<128x128xi32> to vector<128x128xf32>
    %c0_4 = arith.constant 0 : index
    %c0_5 = arith.constant 0 : index
    %27 = vector.load %arg2[%c0_4, %c0_5] : memref<704x128xf32, #tpu.memory_space<vmem>>, vector<8x128xf32>
    %c8 = arith.constant 8 : index
    %c0_6 = arith.constant 0 : index
    %28 = vector.load %arg2[%c8, %c0_6] : memref<704x128xf32, #tpu.memory_space<vmem>>, vector<1x128xf32>
    %cst = arith.constant dense<0.000000e+00> : vector<128x128xf32>
    %29 = tpu.matmul %0, %27, %cst {dimension_numbers = #tpu.dot_dimension_numbers<[1], [0], [0], [1], [0, 0, 1, 1], [], []>} : vector<128x8xf32>, vector<8x128xf32>, vector<128x128xf32> -> vector<128x128xf32>
    %30 = vector.broadcast %28 : vector<1x128xf32> to vector<128x128xf32>
    %31 = arith.addf %29, %30 : vector<128x128xf32>
    %cst_7 = arith.constant 0.000000e+00 : f32
    %32 = vector.broadcast %cst_7 : f32 to vector<128x128xf32>
    %33 = arith.cmpf ogt, %31, %32 : vector<128x128xf32>
    %34 = math.exp %31 : vector<128x128xf32>
    %cst_8 = arith.constant 1.000000e+00 : f32
    %35 = vector.broadcast %cst_8 : f32 to vector<128x128xf32>
    %36 = arith.subf %34, %35 : vector<128x128xf32>
    %cst_9 = arith.constant 1.67326319 : f32
    %37 = vector.broadcast %cst_9 : f32 to vector<128x128xf32>
    %38 = arith.mulf %37, %36 : vector<128x128xf32>
    %39 = arith.select %33, %31, %38 : vector<128x128xi1>, vector<128x128xf32>
    %cst_10 = arith.constant 1.05070102 : f32
    %40 = vector.broadcast %cst_10 : f32 to vector<128x128xf32>
    %41 = arith.mulf %40, %39 : vector<128x128xf32>
    %c16_11 = arith.constant 16 : index
    %c0_12 = arith.constant 0 : index
    %42 = vector.load %arg2[%c16_11, %c0_12] : memref<704x128xf32, #tpu.memory_space<vmem>>, vector<32x128xf32>
    %c48 = arith.constant 48 : index
    %c0_13 = arith.constant 0 : index
    %43 = vector.load %arg2[%c48, %c0_13] : memref<704x128xf32, #tpu.memory_space<vmem>>, vector<1x128xf32>
    %44 = vector.extract_strided_slice %41 {offsets = [0, 0], sizes = [128, 32], strides = [1, 1]} : vector<128x128xf32> to vector<128x32xf32>
    %cst_14 = arith.constant dense<0.000000e+00> : vector<128x128xf32>
    %45 = tpu.matmul %44, %42, %cst_14 {dimension_numbers = #tpu.dot_dimension_numbers<[1], [0], [0], [1], [0, 0, 1, 1], [], []>} : vector<128x32xf32>, vector<32x128xf32>, vector<128x128xf32> -> vector<128x128xf32>
    %46 = vector.broadcast %43 : vector<1x128xf32> to vector<128x128xf32>
    %47 = arith.addf %45, %46 : vector<128x128xf32>
    %cst_15 = arith.constant 0.000000e+00 : f32
    %48 = vector.broadcast %cst_15 : f32 to vector<128x128xf32>
    %49 = arith.cmpf ogt, %47, %48 : vector<128x128xf32>
    %50 = math.exp %47 : vector<128x128xf32>
    %cst_16 = arith.constant 1.000000e+00 : f32
    %51 = vector.broadcast %cst_16 : f32 to vector<128x128xf32>
    %52 = arith.subf %50, %51 : vector<128x128xf32>
    %cst_17 = arith.constant 1.67326319 : f32
    %53 = vector.broadcast %cst_17 : f32 to vector<128x128xf32>
    %54 = arith.mulf %53, %52 : vector<128x128xf32>
    %55 = arith.select %49, %47, %54 : vector<128x128xi1>, vector<128x128xf32>
    %cst_18 = arith.constant 1.05070102 : f32
    %56 = vector.broadcast %cst_18 : f32 to vector<128x128xf32>
    %57 = arith.mulf %56, %55 : vector<128x128xf32>
    %c56 = arith.constant 56 : index
    %c0_19 = arith.constant 0 : index
    %58 = vector.load %arg2[%c56, %c0_19] : memref<704x128xf32, #tpu.memory_space<vmem>>, vector<32x128xf32>
    %c88 = arith.constant 88 : index
    %c0_20 = arith.constant 0 : index
    %59 = vector.load %arg2[%c88, %c0_20] : memref<704x128xf32, #tpu.memory_space<vmem>>, vector<1x128xf32>
    %60 = vector.extract_strided_slice %57 {offsets = [0, 0], sizes = [128, 32], strides = [1, 1]} : vector<128x128xf32> to vector<128x32xf32>
    %cst_21 = arith.constant dense<0.000000e+00> : vector<128x128xf32>
    %61 = tpu.matmul %60, %58, %cst_21 {dimension_numbers = #tpu.dot_dimension_numbers<[1], [0], [0], [1], [0, 0, 1, 1], [], []>} : vector<128x32xf32>, vector<32x128xf32>, vector<128x128xf32> -> vector<128x128xf32>
    %62 = vector.broadcast %59 : vector<1x128xf32> to vector<128x128xf32>
    %63 = arith.addf %61, %62 : vector<128x128xf32>
    %cst_22 = arith.constant 0.000000e+00 : f32
    %64 = vector.broadcast %cst_22 : f32 to vector<128x128xf32>
    %65 = arith.cmpf ogt, %63, %64 : vector<128x128xf32>
    %66 = math.exp %63 : vector<128x128xf32>
    %cst_23 = arith.constant 1.000000e+00 : f32
    %67 = vector.broadcast %cst_23 : f32 to vector<128x128xf32>
    %68 = arith.subf %66, %67 : vector<128x128xf32>
    %cst_24 = arith.constant 1.67326319 : f32
    %69 = vector.broadcast %cst_24 : f32 to vector<128x128xf32>
    %70 = arith.mulf %69, %68 : vector<128x128xf32>
    %71 = arith.select %65, %63, %70 : vector<128x128xi1>, vector<128x128xf32>
    %cst_25 = arith.constant 1.05070102 : f32
    %72 = vector.broadcast %cst_25 : f32 to vector<128x128xf32>
    %73 = arith.mulf %72, %71 : vector<128x128xf32>
    %c96 = arith.constant 96 : index
    %c0_26 = arith.constant 0 : index
    %74 = vector.load %arg2[%c96, %c0_26] : memref<704x128xf32, #tpu.memory_space<vmem>>, vector<32x128xf32>
    %c128_27 = arith.constant 128 : index
    %c0_28 = arith.constant 0 : index
    %75 = vector.load %arg2[%c128_27, %c0_28] : memref<704x128xf32, #tpu.memory_space<vmem>>, vector<1x128xf32>
    %76 = vector.extract_strided_slice %73 {offsets = [0, 0], sizes = [128, 32], strides = [1, 1]} : vector<128x128xf32> to vector<128x32xf32>
    %cst_29 = arith.constant dense<0.000000e+00> : vector<128x128xf32>
    %77 = tpu.matmul %76, %74, %cst_29 {dimension_numbers = #tpu.dot_dimension_numbers<[1], [0], [0], [1], [0, 0, 1, 1], [], []>} : vector<128x32xf32>, vector<32x128xf32>, vector<128x128xf32> -> vector<128x128xf32>
    %78 = vector.broadcast %75 : vector<1x128xf32> to vector<128x128xf32>
    %79 = arith.addf %77, %78 : vector<128x128xf32>
    %cst_30 = arith.constant 0.000000e+00 : f32
    %80 = vector.broadcast %cst_30 : f32 to vector<128x128xf32>
    %81 = arith.cmpf ogt, %79, %80 : vector<128x128xf32>
    %82 = math.exp %79 : vector<128x128xf32>
    %cst_31 = arith.constant 1.000000e+00 : f32
    %83 = vector.broadcast %cst_31 : f32 to vector<128x128xf32>
    %84 = arith.subf %82, %83 : vector<128x128xf32>
    %cst_32 = arith.constant 1.67326319 : f32
    %85 = vector.broadcast %cst_32 : f32 to vector<128x128xf32>
    %86 = arith.mulf %85, %84 : vector<128x128xf32>
    %87 = arith.select %81, %79, %86 : vector<128x128xi1>, vector<128x128xf32>
    %cst_33 = arith.constant 1.05070102 : f32
    %88 = vector.broadcast %cst_33 : f32 to vector<128x128xf32>
    %89 = arith.mulf %88, %87 : vector<128x128xf32>
    %cst_34 = arith.constant dense<0.000000e+00> : vector<128x128xf32>
    %90 = tpu.matmul %21, %12, %cst_34 {dimension_numbers = #tpu.dot_dimension_numbers<[1], [0], [0], [1], [0, 0, 1, 1], [], []>} : vector<128x128xf32>, vector<128x128xf32>, vector<128x128xf32> -> vector<128x128xf32>
    %91 = arith.addf %90, %26 : vector<128x128xf32>
    %cst_35 = arith.constant dense<0.000000e+00> : vector<128xf32>
    %92 = vector.multi_reduction <add>, %91, %cst_35 [1] : vector<128x128xf32> to vector<128xf32>
    %93 = vector.shape_cast %92 : vector<128xf32> to vector<128x1xf32>
    %94 = math.rsqrt %93 : vector<128x1xf32>
    %95 = arith.mulf %94, %94 : vector<128x1xf32>
    %96 = vector.broadcast %94 : vector<128x1xf32> to vector<128x128xf32>
    %97 = arith.mulf %96, %89 : vector<128x128xf32>
    %cst_36 = arith.constant dense<0.000000e+00> : vector<128x128xf32>
    %98 = tpu.matmul %91, %97, %cst_36 {dimension_numbers = #tpu.dot_dimension_numbers<[1], [0], [0], [1], [0, 0, 1, 1], [], []>} : vector<128x128xf32>, vector<128x128xf32>, vector<128x128xf32> -> vector<128x128xf32>
    %99 = vector.broadcast %95 : vector<128x1xf32> to vector<128x128xf32>
    %100 = arith.mulf %99, %98 : vector<128x128xf32>
    %cst_37 = arith.constant dense<0.000000e+00> : vector<128x128xf32>
    %101 = tpu.matmul %91, %100, %cst_37 {dimension_numbers = #tpu.dot_dimension_numbers<[1], [0], [0], [1], [0, 0, 1, 1], [], []>} : vector<128x128xf32>, vector<128x128xf32>, vector<128x128xf32> -> vector<128x128xf32>
    %102 = vector.broadcast %94 : vector<128x1xf32> to vector<128x128xf32>
    %103 = arith.mulf %102, %101 : vector<128x128xf32>
    %c136 = arith.constant 136 : index
    %c0_38 = arith.constant 0 : index
    %104 = vector.load %arg2[%c136, %c0_38] : memref<704x128xf32, #tpu.memory_space<vmem>>, vector<32x128xf32>
    %c168 = arith.constant 168 : index
    %c0_39 = arith.constant 0 : index
    %105 = vector.load %arg2[%c168, %c0_39] : memref<704x128xf32, #tpu.memory_space<vmem>>, vector<1x128xf32>
    %106 = vector.extract_strided_slice %103 {offsets = [0, 0], sizes = [128, 32], strides = [1, 1]} : vector<128x128xf32> to vector<128x32xf32>
    %cst_40 = arith.constant dense<0.000000e+00> : vector<128x128xf32>
    %107 = tpu.matmul %106, %104, %cst_40 {dimension_numbers = #tpu.dot_dimension_numbers<[1], [0], [0], [1], [0, 0, 1, 1], [], []>} : vector<128x32xf32>, vector<32x128xf32>, vector<128x128xf32> -> vector<128x128xf32>
    %108 = vector.broadcast %105 : vector<1x128xf32> to vector<128x128xf32>
    %109 = arith.addf %107, %108 : vector<128x128xf32>
    %cst_41 = arith.constant 0.000000e+00 : f32
    %110 = vector.broadcast %cst_41 : f32 to vector<128x128xf32>
    %111 = arith.cmpf ogt, %109, %110 : vector<128x128xf32>
    %112 = math.exp %109 : vector<128x128xf32>
    %cst_42 = arith.constant 1.000000e+00 : f32
    %113 = vector.broadcast %cst_42 : f32 to vector<128x128xf32>
    %114 = arith.subf %112, %113 : vector<128x128xf32>
    %cst_43 = arith.constant 1.67326319 : f32
    %115 = vector.broadcast %cst_43 : f32 to vector<128x128xf32>
    %116 = arith.mulf %115, %114 : vector<128x128xf32>
    %117 = arith.select %111, %109, %116 : vector<128x128xi1>, vector<128x128xf32>
    %cst_44 = arith.constant 1.05070102 : f32
    %118 = vector.broadcast %cst_44 : f32 to vector<128x128xf32>
    %119 = arith.mulf %118, %117 : vector<128x128xf32>
    %c176 = arith.constant 176 : index
    %c0_45 = arith.constant 0 : index
    %120 = vector.load %arg2[%c176, %c0_45] : memref<704x128xf32, #tpu.memory_space<vmem>>, vector<2x128xf32>
    %c178 = arith.constant 178 : index
    %c0_46 = arith.constant 0 : index
    %121 = vector.load %arg2[%c178, %c0_46] : memref<704x128xf32, #tpu.memory_space<vmem>>, vector<2x128xf32>
    %c180 = arith.constant 180 : index
    %c0_47 = arith.constant 0 : index
    %122 = vector.load %arg2[%c180, %c0_47] : memref<704x128xf32, #tpu.memory_space<vmem>>, vector<1x128xf32>
    %c181 = arith.constant 181 : index
    %c0_48 = arith.constant 0 : index
    %123 = vector.load %arg2[%c181, %c0_48] : memref<704x128xf32, #tpu.memory_space<vmem>>, vector<1x128xf32>
    %124 = vector.extract_strided_slice %119 {offsets = [0, 0], sizes = [128, 2], strides = [1, 1]} : vector<128x128xf32> to vector<128x2xf32>
    %cst_49 = arith.constant dense<0.000000e+00> : vector<128x128xf32>
    %125 = tpu.matmul %124, %120, %cst_49 {dimension_numbers = #tpu.dot_dimension_numbers<[1], [0], [0], [1], [0, 0, 1, 1], [], []>} : vector<128x2xf32>, vector<2x128xf32>, vector<128x128xf32> -> vector<128x128xf32>
    %cst_50 = arith.constant dense<0.000000e+00> : vector<128x128xf32>
    %126 = tpu.matmul %124, %121, %cst_50 {dimension_numbers = #tpu.dot_dimension_numbers<[1], [0], [0], [1], [0, 0, 1, 1], [], []>} : vector<128x2xf32>, vector<2x128xf32>, vector<128x128xf32> -> vector<128x128xf32>
    %127 = tpu.concatenate %125, %126 in 0 : vector<128x128xf32>, vector<128x128xf32> -> vector<256x128xf32>
    %128 = tpu.concatenate %12, %16 in 1 : vector<128x128xf32>, vector<128x128xf32> -> vector<128x256xf32>
    %cst_51 = arith.constant dense<0.000000e+00> : vector<128x128xf32>
    %129 = tpu.matmul %128, %127, %cst_51 {dimension_numbers = #tpu.dot_dimension_numbers<[1], [0], [0], [1], [0, 0, 1, 1], [], []>} : vector<128x256xf32>, vector<256x128xf32>, vector<128x128xf32> -> vector<128x128xf32>
    %130 = vector.broadcast %5 : vector<128x1xf32> to vector<128x128xf32>
    %131 = vector.broadcast %122 : vector<1x128xf32> to vector<128x128xf32>
    %132 = arith.mulf %130, %131 : vector<128x128xf32>
    %133 = arith.addf %129, %132 : vector<128x128xf32>
    %134 = vector.broadcast %123 : vector<1x128xf32> to vector<128x128xf32>
    %135 = arith.addf %133, %134 : vector<128x128xf32>
    %cst_52 = arith.constant 0.000000e+00 : f32
    %136 = vector.broadcast %cst_52 : f32 to vector<128x128xf32>
    %137 = arith.cmpf ogt, %135, %136 : vector<128x128xf32>
    %138 = math.exp %135 : vector<128x128xf32>
    %cst_53 = arith.constant 1.000000e+00 : f32
    %139 = vector.broadcast %cst_53 : f32 to vector<128x128xf32>
    %140 = arith.subf %138, %139 : vector<128x128xf32>
    %cst_54 = arith.constant 1.67326319 : f32
    %141 = vector.broadcast %cst_54 : f32 to vector<128x128xf32>
    %142 = arith.mulf %141, %140 : vector<128x128xf32>
    %143 = arith.select %137, %135, %142 : vector<128x128xi1>, vector<128x128xf32>
    %cst_55 = arith.constant 1.05070102 : f32
    %144 = vector.broadcast %cst_55 : f32 to vector<128x128xf32>
    %145 = arith.mulf %144, %143 : vector<128x128xf32>
    %c184 = arith.constant 184 : index
    %c0_56 = arith.constant 0 : index
    %146 = vector.load %arg2[%c184, %c0_56] : memref<704x128xf32, #tpu.memory_space<vmem>>, vector<32x128xf32>
    %c216 = arith.constant 216 : index
    %c0_57 = arith.constant 0 : index
    %147 = vector.load %arg2[%c216, %c0_57] : memref<704x128xf32, #tpu.memory_space<vmem>>, vector<1x128xf32>
    %148 = vector.extract_strided_slice %145 {offsets = [0, 0], sizes = [128, 32], strides = [1, 1]} : vector<128x128xf32> to vector<128x32xf32>
    %cst_58 = arith.constant dense<0.000000e+00> : vector<128x128xf32>
    %149 = tpu.matmul %148, %146, %cst_58 {dimension_numbers = #tpu.dot_dimension_numbers<[1], [0], [0], [1], [0, 0, 1, 1], [], []>} : vector<128x32xf32>, vector<32x128xf32>, vector<128x128xf32> -> vector<128x128xf32>
    %150 = vector.broadcast %147 : vector<1x128xf32> to vector<128x128xf32>
    %151 = arith.addf %149, %150 : vector<128x128xf32>
    %cst_59 = arith.constant 0.000000e+00 : f32
    %152 = vector.broadcast %cst_59 : f32 to vector<128x128xf32>
    %153 = arith.cmpf ogt, %151, %152 : vector<128x128xf32>
    %154 = math.exp %151 : vector<128x128xf32>
    %cst_60 = arith.constant 1.000000e+00 : f32
    %155 = vector.broadcast %cst_60 : f32 to vector<128x128xf32>
    %156 = arith.subf %154, %155 : vector<128x128xf32>
    %cst_61 = arith.constant 1.67326319 : f32
    %157 = vector.broadcast %cst_61 : f32 to vector<128x128xf32>
    %158 = arith.mulf %157, %156 : vector<128x128xf32>
    %159 = arith.select %153, %151, %158 : vector<128x128xi1>, vector<128x128xf32>
    %cst_62 = arith.constant 1.05070102 : f32
    %160 = vector.broadcast %cst_62 : f32 to vector<128x128xf32>
    %161 = arith.mulf %160, %159 : vector<128x128xf32>
    %c224 = arith.constant 224 : index
    %c0_63 = arith.constant 0 : index
    %162 = vector.load %arg2[%c224, %c0_63] : memref<704x128xf32, #tpu.memory_space<vmem>>, vector<32x128xf32>
    %c256 = arith.constant 256 : index
    %c0_64 = arith.constant 0 : index
    %163 = vector.load %arg2[%c256, %c0_64] : memref<704x128xf32, #tpu.memory_space<vmem>>, vector<1x128xf32>
    %164 = vector.extract_strided_slice %161 {offsets = [0, 0], sizes = [128, 32], strides = [1, 1]} : vector<128x128xf32> to vector<128x32xf32>
    %cst_65 = arith.constant dense<0.000000e+00> : vector<128x128xf32>
    %165 = tpu.matmul %164, %162, %cst_65 {dimension_numbers = #tpu.dot_dimension_numbers<[1], [0], [0], [1], [0, 0, 1, 1], [], []>} : vector<128x32xf32>, vector<32x128xf32>, vector<128x128xf32> -> vector<128x128xf32>
    %166 = vector.broadcast %163 : vector<1x128xf32> to vector<128x128xf32>
    %167 = arith.addf %165, %166 : vector<128x128xf32>
    %168 = arith.negf %167 : vector<128x128xf32>
    %169 = math.exp %168 : vector<128x128xf32>
    %cst_66 = arith.constant 1.000000e+00 : f32
    %170 = vector.broadcast %cst_66 : f32 to vector<128x128xf32>
    %171 = arith.addf %170, %169 : vector<128x128xf32>
    %172 = arith.divf %170, %171 : vector<128x128xf32>
    %173 = vector.extract_strided_slice %172 {offsets = [0, 10], sizes = [128, 1], strides = [1, 1]} : vector<128x128xf32> to vector<128x1xf32>
    %cst_67 = arith.constant 5.000000e-01 : f32
    %174 = vector.broadcast %cst_67 : f32 to vector<128x1xf32>
    %175 = arith.cmpf ogt, %173, %174 : vector<128x1xf32>
    %176 = arith.extui %175 : vector<128x1xi1> to vector<128x1xi32>
    %177 = arith.sitofp %176 : vector<128x1xi32> to vector<128x1xf32>
    %178 = vector.broadcast %177 : vector<128x1xf32> to vector<128x128xf32>
    %179 = arith.mulf %12, %178 : vector<128x128xf32>
    %cst_68 = arith.constant dense<0.000000e+00> : vector<128x128xf32>
    %180 = tpu.matmul %21, %179, %cst_68 {dimension_numbers = #tpu.dot_dimension_numbers<[1], [0], [0], [1], [0, 0, 1, 1], [], []>} : vector<128x128xf32>, vector<128x128xf32>, vector<128x128xf32> -> vector<128x128xf32>
    %181 = arith.addf %180, %26 : vector<128x128xf32>
    %cst_69 = arith.constant dense<0.000000e+00> : vector<128xf32>
    %182 = vector.multi_reduction <add>, %181, %cst_69 [1] : vector<128x128xf32> to vector<128xf32>
    %183 = vector.shape_cast %182 : vector<128xf32> to vector<128x1xf32>
    %184 = math.rsqrt %183 : vector<128x1xf32>
    %185 = arith.mulf %184, %184 : vector<128x1xf32>
    %186 = vector.broadcast %184 : vector<128x1xf32> to vector<128x128xf32>
    %187 = arith.mulf %186, %119 : vector<128x128xf32>
    %cst_70 = arith.constant dense<0.000000e+00> : vector<128x128xf32>
    %188 = tpu.matmul %181, %187, %cst_70 {dimension_numbers = #tpu.dot_dimension_numbers<[1], [0], [0], [1], [0, 0, 1, 1], [], []>} : vector<128x128xf32>, vector<128x128xf32>, vector<128x128xf32> -> vector<128x128xf32>
    %189 = vector.broadcast %185 : vector<128x1xf32> to vector<128x128xf32>
    %190 = arith.mulf %189, %188 : vector<128x128xf32>
    %cst_71 = arith.constant dense<0.000000e+00> : vector<128x128xf32>
    %191 = tpu.matmul %181, %190, %cst_71 {dimension_numbers = #tpu.dot_dimension_numbers<[1], [0], [0], [1], [0, 0, 1, 1], [], []>} : vector<128x128xf32>, vector<128x128xf32>, vector<128x128xf32> -> vector<128x128xf32>
    %192 = vector.broadcast %184 : vector<128x1xf32> to vector<128x128xf32>
    %193 = arith.mulf %192, %191 : vector<128x128xf32>
    %c264 = arith.constant 264 : index
    %c0_72 = arith.constant 0 : index
    %194 = vector.load %arg2[%c264, %c0_72] : memref<704x128xf32, #tpu.memory_space<vmem>>, vector<32x128xf32>
    %c296 = arith.constant 296 : index
    %c0_73 = arith.constant 0 : index
    %195 = vector.load %arg2[%c296, %c0_73] : memref<704x128xf32, #tpu.memory_space<vmem>>, vector<1x128xf32>
    %196 = vector.extract_strided_slice %193 {offsets = [0, 0], sizes = [128, 32], strides = [1, 1]} : vector<128x128xf32> to vector<128x32xf32>
    %cst_74 = arith.constant dense<0.000000e+00> : vector<128x128xf32>
    %197 = tpu.matmul %196, %194, %cst_74 {dimension_numbers = #tpu.dot_dimension_numbers<[1], [0], [0], [1], [0, 0, 1, 1], [], []>} : vector<128x32xf32>, vector<32x128xf32>, vector<128x128xf32> -> vector<128x128xf32>
    %198 = vector.broadcast %195 : vector<1x128xf32> to vector<128x128xf32>
    %199 = arith.addf %197, %198 : vector<128x128xf32>
    %cst_75 = arith.constant 0.000000e+00 : f32
    %200 = vector.broadcast %cst_75 : f32 to vector<128x128xf32>
    %201 = arith.cmpf ogt, %199, %200 : vector<128x128xf32>
    %202 = math.exp %199 : vector<128x128xf32>
    %cst_76 = arith.constant 1.000000e+00 : f32
    %203 = vector.broadcast %cst_76 : f32 to vector<128x128xf32>
    %204 = arith.subf %202, %203 : vector<128x128xf32>
    %cst_77 = arith.constant 1.67326319 : f32
    %205 = vector.broadcast %cst_77 : f32 to vector<128x128xf32>
    %206 = arith.mulf %205, %204 : vector<128x128xf32>
    %207 = arith.select %201, %199, %206 : vector<128x128xi1>, vector<128x128xf32>
    %cst_78 = arith.constant 1.05070102 : f32
    %208 = vector.broadcast %cst_78 : f32 to vector<128x128xf32>
    %209 = arith.mulf %208, %207 : vector<128x128xf32>
    %c304 = arith.constant 304 : index
    %c0_79 = arith.constant 0 : index
    %210 = vector.load %arg2[%c304, %c0_79] : memref<704x128xf32, #tpu.memory_space<vmem>>, vector<32x128xf32>
    %c336 = arith.constant 336 : index
    %c0_80 = arith.constant 0 : index
    %211 = vector.load %arg2[%c336, %c0_80] : memref<704x128xf32, #tpu.memory_space<vmem>>, vector<1x128xf32>
    %212 = vector.extract_strided_slice %209 {offsets = [0, 0], sizes = [128, 32], strides = [1, 1]} : vector<128x128xf32> to vector<128x32xf32>
    %cst_81 = arith.constant dense<0.000000e+00> : vector<128x128xf32>
    %213 = tpu.matmul %212, %210, %cst_81 {dimension_numbers = #tpu.dot_dimension_numbers<[1], [0], [0], [1], [0, 0, 1, 1], [], []>} : vector<128x32xf32>, vector<32x128xf32>, vector<128x128xf32> -> vector<128x128xf32>
    %214 = vector.broadcast %211 : vector<1x128xf32> to vector<128x128xf32>
    %215 = arith.addf %213, %214 : vector<128x128xf32>
    %cst_82 = arith.constant 0.000000e+00 : f32
    %216 = vector.broadcast %cst_82 : f32 to vector<128x128xf32>
    %217 = arith.cmpf ogt, %215, %216 : vector<128x128xf32>
    %218 = math.exp %215 : vector<128x128xf32>
    %cst_83 = arith.constant 1.000000e+00 : f32
    %219 = vector.broadcast %cst_83 : f32 to vector<128x128xf32>
    %220 = arith.subf %218, %219 : vector<128x128xf32>
    %cst_84 = arith.constant 1.67326319 : f32
    %221 = vector.broadcast %cst_84 : f32 to vector<128x128xf32>
    %222 = arith.mulf %221, %220 : vector<128x128xf32>
    %223 = arith.select %217, %215, %222 : vector<128x128xi1>, vector<128x128xf32>
    %cst_85 = arith.constant 1.05070102 : f32
    %224 = vector.broadcast %cst_85 : f32 to vector<128x128xf32>
    %225 = arith.mulf %224, %223 : vector<128x128xf32>
    %c344 = arith.constant 344 : index
    %c0_86 = arith.constant 0 : index
    %226 = vector.load %arg2[%c344, %c0_86] : memref<704x128xf32, #tpu.memory_space<vmem>>, vector<32x128xf32>
    %c376 = arith.constant 376 : index
    %c0_87 = arith.constant 0 : index
    %227 = vector.load %arg2[%c376, %c0_87] : memref<704x128xf32, #tpu.memory_space<vmem>>, vector<1x128xf32>
    %228 = vector.extract_strided_slice %225 {offsets = [0, 0], sizes = [128, 32], strides = [1, 1]} : vector<128x128xf32> to vector<128x32xf32>
    %cst_88 = arith.constant dense<0.000000e+00> : vector<128x128xf32>
    %229 = tpu.matmul %228, %226, %cst_88 {dimension_numbers = #tpu.dot_dimension_numbers<[1], [0], [0], [1], [0, 0, 1, 1], [], []>} : vector<128x32xf32>, vector<32x128xf32>, vector<128x128xf32> -> vector<128x128xf32>
    %230 = vector.broadcast %227 : vector<1x128xf32> to vector<128x128xf32>
    %231 = arith.addf %229, %230 : vector<128x128xf32>
    %cst_89 = arith.constant 0.000000e+00 : f32
    %232 = vector.broadcast %cst_89 : f32 to vector<128x128xf32>
    %233 = arith.cmpf ogt, %231, %232 : vector<128x128xf32>
    %234 = math.exp %231 : vector<128x128xf32>
    %cst_90 = arith.constant 1.000000e+00 : f32
    %235 = vector.broadcast %cst_90 : f32 to vector<128x128xf32>
    %236 = arith.subf %234, %235 : vector<128x128xf32>
    %cst_91 = arith.constant 1.67326319 : f32
    %237 = vector.broadcast %cst_91 : f32 to vector<128x128xf32>
    %238 = arith.mulf %237, %236 : vector<128x128xf32>
    %239 = arith.select %233, %231, %238 : vector<128x128xi1>, vector<128x128xf32>
    %cst_92 = arith.constant 1.05070102 : f32
    %240 = vector.broadcast %cst_92 : f32 to vector<128x128xf32>
    %241 = arith.mulf %240, %239 : vector<128x128xf32>
    %c384 = arith.constant 384 : index
    %c0_93 = arith.constant 0 : index
    %242 = vector.load %arg2[%c384, %c0_93] : memref<704x128xf32, #tpu.memory_space<vmem>>, vector<32x128xf32>
    %c416 = arith.constant 416 : index
    %c0_94 = arith.constant 0 : index
    %243 = vector.load %arg2[%c416, %c0_94] : memref<704x128xf32, #tpu.memory_space<vmem>>, vector<1x128xf32>
    %244 = vector.extract_strided_slice %241 {offsets = [0, 0], sizes = [128, 32], strides = [1, 1]} : vector<128x128xf32> to vector<128x32xf32>
    %cst_95 = arith.constant dense<0.000000e+00> : vector<128x128xf32>
    %245 = tpu.matmul %244, %242, %cst_95 {dimension_numbers = #tpu.dot_dimension_numbers<[1], [0], [0], [1], [0, 0, 1, 1], [], []>} : vector<128x32xf32>, vector<32x128xf32>, vector<128x128xf32> -> vector<128x128xf32>
    %246 = vector.broadcast %243 : vector<1x128xf32> to vector<128x128xf32>
    %247 = arith.addf %245, %246 : vector<128x128xf32>
    %cst_96 = arith.constant 0.000000e+00 : f32
    %248 = vector.broadcast %cst_96 : f32 to vector<128x128xf32>
    %249 = arith.cmpf ogt, %247, %248 : vector<128x128xf32>
    %250 = math.exp %247 : vector<128x128xf32>
    %cst_97 = arith.constant 1.000000e+00 : f32
    %251 = vector.broadcast %cst_97 : f32 to vector<128x128xf32>
    %252 = arith.subf %250, %251 : vector<128x128xf32>
    %cst_98 = arith.constant 1.67326319 : f32
    %253 = vector.broadcast %cst_98 : f32 to vector<128x128xf32>
    %254 = arith.mulf %253, %252 : vector<128x128xf32>
    %255 = arith.select %249, %247, %254 : vector<128x128xi1>, vector<128x128xf32>
    %cst_99 = arith.constant 1.05070102 : f32
    %256 = vector.broadcast %cst_99 : f32 to vector<128x128xf32>
    %257 = arith.mulf %256, %255 : vector<128x128xf32>
    %c424 = arith.constant 424 : index
    %c0_100 = arith.constant 0 : index
    %258 = vector.load %arg2[%c424, %c0_100] : memref<704x128xf32, #tpu.memory_space<vmem>>, vector<32x128xf32>
    %c456 = arith.constant 456 : index
    %c0_101 = arith.constant 0 : index
    %259 = vector.load %arg2[%c456, %c0_101] : memref<704x128xf32, #tpu.memory_space<vmem>>, vector<1x128xf32>
    %260 = vector.extract_strided_slice %257 {offsets = [0, 0], sizes = [128, 32], strides = [1, 1]} : vector<128x128xf32> to vector<128x32xf32>
    %cst_102 = arith.constant dense<0.000000e+00> : vector<128x128xf32>
    %261 = tpu.matmul %260, %258, %cst_102 {dimension_numbers = #tpu.dot_dimension_numbers<[1], [0], [0], [1], [0, 0, 1, 1], [], []>} : vector<128x32xf32>, vector<32x128xf32>, vector<128x128xf32> -> vector<128x128xf32>
    %262 = vector.broadcast %259 : vector<1x128xf32> to vector<128x128xf32>
    %263 = arith.addf %261, %262 : vector<128x128xf32>
    %cst_103 = arith.constant 0.000000e+00 : f32
    %264 = vector.broadcast %cst_103 : f32 to vector<128x128xf32>
    %265 = arith.cmpf ogt, %263, %264 : vector<128x128xf32>
    %266 = math.exp %263 : vector<128x128xf32>
    %cst_104 = arith.constant 1.000000e+00 : f32
    %267 = vector.broadcast %cst_104 : f32 to vector<128x128xf32>
    %268 = arith.subf %266, %267 : vector<128x128xf32>
    %cst_105 = arith.constant 1.67326319 : f32
    %269 = vector.broadcast %cst_105 : f32 to vector<128x128xf32>
    %270 = arith.mulf %269, %268 : vector<128x128xf32>
    %271 = arith.select %265, %263, %270 : vector<128x128xi1>, vector<128x128xf32>
    %cst_106 = arith.constant 1.05070102 : f32
    %272 = vector.broadcast %cst_106 : f32 to vector<128x128xf32>
    %273 = arith.mulf %272, %271 : vector<128x128xf32>
    %c464 = arith.constant 464 : index
    %c0_107 = arith.constant 0 : index
    %274 = vector.load %arg2[%c464, %c0_107] : memref<704x128xf32, #tpu.memory_space<vmem>>, vector<32x128xf32>
    %c496 = arith.constant 496 : index
    %c0_108 = arith.constant 0 : index
    %275 = vector.load %arg2[%c496, %c0_108] : memref<704x128xf32, #tpu.memory_space<vmem>>, vector<1x128xf32>
    %276 = vector.extract_strided_slice %273 {offsets = [0, 0], sizes = [128, 32], strides = [1, 1]} : vector<128x128xf32> to vector<128x32xf32>
    %cst_109 = arith.constant dense<0.000000e+00> : vector<128x128xf32>
    %277 = tpu.matmul %276, %274, %cst_109 {dimension_numbers = #tpu.dot_dimension_numbers<[1], [0], [0], [1], [0, 0, 1, 1], [], []>} : vector<128x32xf32>, vector<32x128xf32>, vector<128x128xf32> -> vector<128x128xf32>
    %278 = vector.broadcast %275 : vector<1x128xf32> to vector<128x128xf32>
    %279 = arith.addf %277, %278 : vector<128x128xf32>
    %c504 = arith.constant 504 : index
    %c0_110 = arith.constant 0 : index
    %280 = vector.load %arg2[%c504, %c0_110] : memref<704x128xf32, #tpu.memory_space<vmem>>, vector<6x128xf32>
    %c510 = arith.constant 510 : index
    %c0_111 = arith.constant 0 : index
    %281 = vector.load %arg2[%c510, %c0_111] : memref<704x128xf32, #tpu.memory_space<vmem>>, vector<32x128xf32>
    %c542 = arith.constant 542 : index
    %c0_112 = arith.constant 0 : index
    %282 = vector.load %arg2[%c542, %c0_112] : memref<704x128xf32, #tpu.memory_space<vmem>>, vector<1x128xf32>
    %283 = vector.extract_strided_slice %279 {offsets = [0, 0], sizes = [128, 6], strides = [1, 1]} : vector<128x128xf32> to vector<128x6xf32>
    %cst_113 = arith.constant dense<0.000000e+00> : vector<128x128xf32>
    %284 = tpu.matmul %283, %280, %cst_113 {dimension_numbers = #tpu.dot_dimension_numbers<[1], [0], [0], [1], [0, 0, 1, 1], [], []>} : vector<128x6xf32>, vector<6x128xf32>, vector<128x128xf32> -> vector<128x128xf32>
    %285 = vector.extract_strided_slice %209 {offsets = [0, 0], sizes = [128, 32], strides = [1, 1]} : vector<128x128xf32> to vector<128x32xf32>
    %cst_114 = arith.constant dense<0.000000e+00> : vector<128x128xf32>
    %286 = tpu.matmul %285, %281, %cst_114 {dimension_numbers = #tpu.dot_dimension_numbers<[1], [0], [0], [1], [0, 0, 1, 1], [], []>} : vector<128x32xf32>, vector<32x128xf32>, vector<128x128xf32> -> vector<128x128xf32>
    %287 = arith.addf %284, %286 : vector<128x128xf32>
    %288 = vector.broadcast %282 : vector<1x128xf32> to vector<128x128xf32>
    %289 = arith.addf %287, %288 : vector<128x128xf32>
    %cst_115 = arith.constant 0.000000e+00 : f32
    %290 = vector.broadcast %cst_115 : f32 to vector<128x128xf32>
    %291 = arith.cmpf ogt, %289, %290 : vector<128x128xf32>
    %292 = math.exp %289 : vector<128x128xf32>
    %cst_116 = arith.constant 1.000000e+00 : f32
    %293 = vector.broadcast %cst_116 : f32 to vector<128x128xf32>
    %294 = arith.subf %292, %293 : vector<128x128xf32>
    %cst_117 = arith.constant 1.67326319 : f32
    %295 = vector.broadcast %cst_117 : f32 to vector<128x128xf32>
    %296 = arith.mulf %295, %294 : vector<128x128xf32>
    %297 = arith.select %291, %289, %296 : vector<128x128xi1>, vector<128x128xf32>
    %cst_118 = arith.constant 1.05070102 : f32
    %298 = vector.broadcast %cst_118 : f32 to vector<128x128xf32>
    %299 = arith.mulf %298, %297 : vector<128x128xf32>
    %c544 = arith.constant 544 : index
    %c0_119 = arith.constant 0 : index
    %300 = vector.load %arg2[%c544, %c0_119] : memref<704x128xf32, #tpu.memory_space<vmem>>, vector<32x128xf32>
    %c576 = arith.constant 576 : index
    %c0_120 = arith.constant 0 : index
    %301 = vector.load %arg2[%c576, %c0_120] : memref<704x128xf32, #tpu.memory_space<vmem>>, vector<1x128xf32>
    %302 = vector.extract_strided_slice %299 {offsets = [0, 0], sizes = [128, 32], strides = [1, 1]} : vector<128x128xf32> to vector<128x32xf32>
    %cst_121 = arith.constant dense<0.000000e+00> : vector<128x128xf32>
    %303 = tpu.matmul %302, %300, %cst_121 {dimension_numbers = #tpu.dot_dimension_numbers<[1], [0], [0], [1], [0, 0, 1, 1], [], []>} : vector<128x32xf32>, vector<32x128xf32>, vector<128x128xf32> -> vector<128x128xf32>
    %304 = vector.broadcast %301 : vector<1x128xf32> to vector<128x128xf32>
    %305 = arith.addf %303, %304 : vector<128x128xf32>
    %cst_122 = arith.constant 0.000000e+00 : f32
    %306 = vector.broadcast %cst_122 : f32 to vector<128x128xf32>
    %307 = arith.cmpf ogt, %305, %306 : vector<128x128xf32>
    %308 = math.exp %305 : vector<128x128xf32>
    %cst_123 = arith.constant 1.000000e+00 : f32
    %309 = vector.broadcast %cst_123 : f32 to vector<128x128xf32>
    %310 = arith.subf %308, %309 : vector<128x128xf32>
    %cst_124 = arith.constant 1.67326319 : f32
    %311 = vector.broadcast %cst_124 : f32 to vector<128x128xf32>
    %312 = arith.mulf %311, %310 : vector<128x128xf32>
    %313 = arith.select %307, %305, %312 : vector<128x128xi1>, vector<128x128xf32>
    %cst_125 = arith.constant 1.05070102 : f32
    %314 = vector.broadcast %cst_125 : f32 to vector<128x128xf32>
    %315 = arith.mulf %314, %313 : vector<128x128xf32>
    %c584 = arith.constant 584 : index
    %c0_126 = arith.constant 0 : index
    %316 = vector.load %arg2[%c584, %c0_126] : memref<704x128xf32, #tpu.memory_space<vmem>>, vector<32x128xf32>
    %c616 = arith.constant 616 : index
    %c0_127 = arith.constant 0 : index
    %317 = vector.load %arg2[%c616, %c0_127] : memref<704x128xf32, #tpu.memory_space<vmem>>, vector<1x128xf32>
    %318 = vector.extract_strided_slice %315 {offsets = [0, 0], sizes = [128, 32], strides = [1, 1]} : vector<128x128xf32> to vector<128x32xf32>
    %cst_128 = arith.constant dense<0.000000e+00> : vector<128x128xf32>
    %319 = tpu.matmul %318, %316, %cst_128 {dimension_numbers = #tpu.dot_dimension_numbers<[1], [0], [0], [1], [0, 0, 1, 1], [], []>} : vector<128x32xf32>, vector<32x128xf32>, vector<128x128xf32> -> vector<128x128xf32>
    %320 = vector.broadcast %317 : vector<1x128xf32> to vector<128x128xf32>
    %321 = arith.addf %319, %320 : vector<128x128xf32>
    %cst_129 = arith.constant 0.000000e+00 : f32
    %322 = vector.broadcast %cst_129 : f32 to vector<128x128xf32>
    %323 = arith.cmpf ogt, %321, %322 : vector<128x128xf32>
    %324 = math.exp %321 : vector<128x128xf32>
    %cst_130 = arith.constant 1.000000e+00 : f32
    %325 = vector.broadcast %cst_130 : f32 to vector<128x128xf32>
    %326 = arith.subf %324, %325 : vector<128x128xf32>
    %cst_131 = arith.constant 1.67326319 : f32
    %327 = vector.broadcast %cst_131 : f32 to vector<128x128xf32>
    %328 = arith.mulf %327, %326 : vector<128x128xf32>
    %329 = arith.select %323, %321, %328 : vector<128x128xi1>, vector<128x128xf32>
    %cst_132 = arith.constant 1.05070102 : f32
    %330 = vector.broadcast %cst_132 : f32 to vector<128x128xf32>
    %331 = arith.mulf %330, %329 : vector<128x128xf32>
    %c624 = arith.constant 624 : index
    %c0_133 = arith.constant 0 : index
    %332 = vector.load %arg2[%c624, %c0_133] : memref<704x128xf32, #tpu.memory_space<vmem>>, vector<32x128xf32>
    %c656 = arith.constant 656 : index
    %c0_134 = arith.constant 0 : index
    %333 = vector.load %arg2[%c656, %c0_134] : memref<704x128xf32, #tpu.memory_space<vmem>>, vector<1x128xf32>
    %334 = vector.extract_strided_slice %331 {offsets = [0, 0], sizes = [128, 32], strides = [1, 1]} : vector<128x128xf32> to vector<128x32xf32>
    %cst_135 = arith.constant dense<0.000000e+00> : vector<128x128xf32>
    %335 = tpu.matmul %334, %332, %cst_135 {dimension_numbers = #tpu.dot_dimension_numbers<[1], [0], [0], [1], [0, 0, 1, 1], [], []>} : vector<128x32xf32>, vector<32x128xf32>, vector<128x128xf32> -> vector<128x128xf32>
    %336 = vector.broadcast %333 : vector<1x128xf32> to vector<128x128xf32>
    %337 = arith.addf %335, %336 : vector<128x128xf32>
    %cst_136 = arith.constant 0.000000e+00 : f32
    %338 = vector.broadcast %cst_136 : f32 to vector<128x128xf32>
    %339 = arith.cmpf ogt, %337, %338 : vector<128x128xf32>
    %340 = math.exp %337 : vector<128x128xf32>
    %cst_137 = arith.constant 1.000000e+00 : f32
    %341 = vector.broadcast %cst_137 : f32 to vector<128x128xf32>
    %342 = arith.subf %340, %341 : vector<128x128xf32>
    %cst_138 = arith.constant 1.67326319 : f32
    %343 = vector.broadcast %cst_138 : f32 to vector<128x128xf32>
    %344 = arith.mulf %343, %342 : vector<128x128xf32>
    %345 = arith.select %339, %337, %344 : vector<128x128xi1>, vector<128x128xf32>
    %cst_139 = arith.constant 1.05070102 : f32
    %346 = vector.broadcast %cst_139 : f32 to vector<128x128xf32>
    %347 = arith.mulf %346, %345 : vector<128x128xf32>
    %c664 = arith.constant 664 : index
    %c0_140 = arith.constant 0 : index
    %348 = vector.load %arg2[%c664, %c0_140] : memref<704x128xf32, #tpu.memory_space<vmem>>, vector<32x128xf32>
    %c696 = arith.constant 696 : index
    %c0_141 = arith.constant 0 : index
    %349 = vector.load %arg2[%c696, %c0_141] : memref<704x128xf32, #tpu.memory_space<vmem>>, vector<1x128xf32>
    %350 = vector.extract_strided_slice %347 {offsets = [0, 0], sizes = [128, 32], strides = [1, 1]} : vector<128x128xf32> to vector<128x32xf32>
    %cst_142 = arith.constant dense<0.000000e+00> : vector<128x128xf32>
    %351 = tpu.matmul %350, %348, %cst_142 {dimension_numbers = #tpu.dot_dimension_numbers<[1], [0], [0], [1], [0, 0, 1, 1], [], []>} : vector<128x32xf32>, vector<32x128xf32>, vector<128x128xf32> -> vector<128x128xf32>
    %352 = vector.broadcast %349 : vector<1x128xf32> to vector<128x128xf32>
    %353 = arith.addf %351, %352 : vector<128x128xf32>
    %354 = tpu.iota {dimensions = array<i32: 1>} : vector<128x128xi32>
    %c0_143 = arith.constant 0 : index
    %c0_144 = arith.constant 0 : index
    %355 = vector.load %arg1[%c0_143, %c0_144] : memref<136x128xf32, #tpu.memory_space<vmem>>, vector<128x128xf32>
    %c6_i32 = arith.constant 6 : i32
    %356 = vector.broadcast %c6_i32 : i32 to vector<128x128xi32>
    %357 = arith.cmpi sge, %354, %356 : vector<128x128xi32>
    %c10_i32 = arith.constant 10 : i32
    %358 = vector.broadcast %c10_i32 : i32 to vector<128x128xi32>
    %359 = arith.cmpi slt, %354, %358 : vector<128x128xi32>
    %360 = arith.andi %357, %359 : vector<128x128xi1>
    %cst_145 = arith.constant 0.000000e+00 : f32
    %361 = vector.broadcast %cst_145 : f32 to vector<128x128xf32>
    %362 = arith.select %360, %355, %361 : vector<128x128xi1>, vector<128x128xf32>
    %c10_i32_146 = arith.constant 10 : i32
    %363 = vector.broadcast %c10_i32_146 : i32 to vector<128x128xi32>
    %364 = arith.cmpi eq, %354, %363 : vector<128x128xi32>
    %cst_147 = arith.constant 0.000000e+00 : f32
    %365 = vector.broadcast %cst_147 : f32 to vector<128x128xf32>
    %366 = arith.select %364, %172, %365 : vector<128x128xi1>, vector<128x128xf32>
    %367 = arith.addf %353, %362 : vector<128x128xf32>
    %368 = arith.addf %279, %367 : vector<128x128xf32>
    %369 = arith.addf %368, %366 : vector<128x128xf32>
    %c0_148 = arith.constant 0 : index
    %c0_149 = arith.constant 0 : index
    %370 = vector.load %arg3[%c0_148, %c0_149] : memref<128x128xf32, #tpu.memory_space<vmem>>, vector<128x128xf32>
    tpu.vector_store %arg3[%c0_148, %c0_149], %369 {strides = array<i32>} : memref<128x128xf32, #tpu.memory_space<vmem>>, vector<128x128xf32>,
    return
  }
  func.func @transform_0(%arg0: i32) -> (i32, i32) {
    %c0_i32 = arith.constant 0 : i32
    %c0_i32_0 = arith.constant 0 : i32
    return %arg0, %c0_i32 : i32, i32
  }
  func.func @transform_1(%arg0: i32) -> (i32, i32) {
    %c0_i32 = arith.constant 0 : i32
    %c0_i32_0 = arith.constant 0 : i32
    %c0_i32_1 = arith.constant 0 : i32
    return %c0_i32, %c0_i32_0 : i32, i32
  }
  func.func @transform_2(%arg0: i32) -> (i32, i32) {
    %c0_i32 = arith.constant 0 : i32
    %c0_i32_0 = arith.constant 0 : i32
    return %arg0, %c0_i32 : i32, i32
  }
}

</mosaic_0001>

<bundles_post_ra>
// kernel: pfnet6_forward.1
= control target key start
LH: loop header
LB: loop body
LE: loop exit
PB: predicated region body
PF: predicated region fallthrough
CT: control target
= control target key end

     0   :  { %7 = vsyncpa [#allocation3], 0  ;;  %s15319_s0 = inlined_call_operand.hbm [shape: f32[272,128], index: 0, kind: input, shape index: {}]   ;;  %s15320_s1 = inlined_call_operand.hbm [shape: f32[704,128], index: 1, kind: input, shape index: {}]   ;;  %s15321_s2 = inlined_call_operand.vmem [shape: f32[256,128], index: 2, kind: output, shape index: {}]  }
   0x1   :  { %9 = vsyncpa [#allocation3 + $0x1], 0 }
   0x2   :  { %10 = vsyncpa [#allocation5], 0  ;;  %s12049_s9 = smov 0   ;;  %s12051_s10 = smov 0  }
   0x3   :  { %s12053_s11 = smov 0   ;;  %s12055_s12 = smov 0  }
   0x4 LB: > { %s8262_s13 = sadd.s32 4294967295, %s12020_s12   ;;  %p36_p0 = scmp.ne.s32.totalorder %s12012_s10, %s12008_s9  ;;  %s12020_s12 = sphi %s12055_s12, %s15613_s12   ;;  %s12016_s11 = sphi %s12053_s11, %s15612_s11   ;;  %s12012_s10 = sphi %s12051_s10, %s15611_s10   ;;  %s12008_s9 = sphi %s12049_s9, %s15610_s9  }
   0x5   : > { %p12071_p1 = scmp.eq.s32.totalorder %s8262_s13, 0  ;;  %p8264_p2 = scmp.ge.s32.totalorder %s12020_s12, 1 }
   0x6   : > { %p94_p3 = scmp.lt.s32.totalorder %s12020_s12, 3  ;;  %s12022_s17 = smov [#allocation4]  }
   0x7   : > { %s15432_s14 = scalar_select %p12071_p1, 1, 0 }
   0x8   : > { %p12079_p4 = por %p12071_p1, %p36_p0  ;;  %p12083_p5 = pnand %p8264_p2, %p94_p3 }
   0x9   : > { %s106_s18 = sshll.u32 %s12022_s17, 4  ;;  %s12096_s20 = sadd.s32 1, %s12020_s12   ;;  %s107_s18 = int_to_ptr.vmem [resolvable:$true] %s106_s18 }
   0xa   : > { %s15433_s15 = scalar_select %p12079_p4, 1, 0 }
   0xb   : > { %s15434_s16 = scalar_select %p12083_p5, 1, 0 }
   0xc   : > { %p11150_p6 = pneg %p12083_p5  ;;  %s23_s21 = sadd.s32 1, %s12016_s11 }
   0xd   : > { %s20_s22 = ssub.s32 %s12020_s12, %s12096_s20  ;;  %s11924_s25 = scalar_lea.hbm %s15320_s1, 11264 }
   0xe   : > { %p12091_p7 = pnand %p11150_p6, %p12071_p1  ;;  %p11925_p8 = scmp.ne.s32.totalorder %s15320_s1, %s11924_s25 }
   0xf   : > { %p11931_p12 = scmp.lt.u32.totalorder %s11924_s25, %s15320_s1 }
  0x10   : > { %p11926_p9 = pneg %p12091_p7 }
  0x12   : > { %p11927_p10 = pnand %p11926_p9, %p11925_p8 }
  0x14   : > { %p11928_p11 = pneg %p11927_p10 }
  0x16   : > { %p11933_p13 = pnand %p11931_p12, %p11928_p11 }
  0x18   : > { %11936 = shalt.err (!%p11933_p13)
}
  0x19   : > { %s11937_s30 = scalar_lea.vmem %s107_s18, 11264  ;;  %p11945_p6 = scmp.lt.s32.totalorder %s107_s18, %s107_s18 }
  0x1a   : > { %p11938_p0 = scmp.ne.s32.totalorder %s107_s18, %s11937_s30  ;;  %p11946_p1 = scmp.lt.s32.totalorder %s11937_s30, %s11937_s30 }
  0x1c   : > { %p11940_p2 = pnand %p11938_p0, %p11926_p9  ;;  %p11947_p4 = por %p11946_p1, %p11945_p6 }
  0x1e   : > { %p11941_p3 = pneg %p11940_p2 }
  0x20   : > { %p11948_p5 = pnand %p11947_p4, %p11941_p3 }
  0x22   : > { %11951 = shalt.err (!%p11948_p5)
}
  0x23   : > { %s12023_s3 = smov 128   ;;  %s12024_s4 = smov 8  }
  0x24   : > { %11153 = dma.hbm_to_vmem [thread:$0]  (!%p12091_p7), %s15320_s1, 11264, %s107_s18, [#allocation5], %s12023_s3, %s12023_s3, %s12024_s4  }
  0x25   : > { %p21_p1 = scmp.eq.s32.totalorder %s20_s22, 0  ;;  %p30_p4 = scmp.ne.s32.totalorder %s12016_s11, %s12012_s10 }
  0x26   : > { %p31_p5 = scmp.eq.s32.totalorder %s12020_s12, 0  ;;  %p11159_p8 = scmp.lt.s32.totalorder %s12020_s12, 2 }
  0x27   : > { %s12125_s7 = scalar_select %p21_p1, %s12016_s11, %s23_s21  }
  0x28   : > { %p32_p9 = por %p31_p5, %p30_p4  ;;  %s120_s8 = sand.u32 1, %s12016_s11  }
  0x29   : > { %s11108_s9 = smul.u32 136, %s120_s8  ;;  %s12140_s25 = scalar_lea.sflag [#allocation3], %s120_s8 }
  0x2a   : > { %s9065_s17 = smul.u32 2176, %s12020_s12  ;;  %p12129_p10 = pnand %p11159_p8, %p32_p9 }
  0x2b   : > { %s124_s21 = scalar_lea.vmem [#allocation2], %s11108_s9  ;;  %s11957_s29 = scalar_lea.hbm %s15319_s0, 4352 }
  0x2c   : > { %s12136_s18 = scalar_lea.hbm %s15319_s0, %s9065_s17  ;;  %s131_s22 = sshll.u32 %s124_s21, 4  ;;  %s12138_s22 = int_to_ptr.vmem [resolvable:$true] %s131_s22 }
  0x2d   : > { %s11952_s26 = scalar_lea.hbm %s12136_s18, 2176  ;;  %p11954_p11 = pneg %p12129_p10 }
  0x2e   : > { %p11953_p7 = scmp.ne.s32.totalorder %s12136_s18, %s11952_s26  ;;  %p11958_p0 = scmp.lt.u32.totalorder %s12136_s18, %s15319_s0 }
  0x2f   : > { %p11959_p2 = scmp.lt.u32.totalorder %s11957_s29, %s11952_s26  ;;  %p11961_p6 = scmp.lt.u32.totalorder %s11952_s26, %s12136_s18 }
  0x30   : > { %p11955_p12 = pnand %p11954_p11, %p11953_p7 }
  0x31   : > { %p11960_p3 = por %p11959_p2, %p11958_p0 }
  0x32   : > { %p11956_p13 = pneg %p11955_p12 }
  0x33   : > { %p11962_p1 = por %p11961_p6, %p11960_p3 }
  0x35   : > { %p11963_p4 = pnand %p11962_p1, %p11956_p13 }
  0x37   : > { %11966 = shalt.err (!%p11963_p4)
}
  0x38   : > { %s11967_s6 = scalar_lea.vmem %s12138_s22, 2176  ;;  %s12025_s8 = smov [#allocation2]  }
  0x39   : > { %p11968_p5 = scmp.ne.s32.totalorder %s12138_s22, %s11967_s6  ;;  %s11972_s9 = sshll.u32 %s12025_s8, 4  ;;  %s11973_s9 = int_to_ptr.vmem [resolvable:$false] %s11972_s9 }
  0x3a   : > { %s11974_s17 = scalar_lea.vmem %s11973_s9, 4352  ;;  %p11975_p7 = scmp.lt.s32.totalorder %s12138_s22, %s11973_s9 }
  0x3b   : > { %p11970_p8 = pnand %p11968_p5, %p11954_p11  ;;  %p11976_p12 = scmp.lt.s32.totalorder %s11974_s17, %s11967_s6 }
  0x3d   : > { %p11971_p9 = pneg %p11970_p8  ;;  %p11977_p0 = por %p11976_p12, %p11975_p7 }
  0x3f   : > { %p11978_p2 = pnand %p11977_p0, %p11971_p9 }
  0x41   : > { %11981 = shalt.err (!%p11978_p2)
}
  0x42   : > { %11157 = dma.hbm_to_vmem [thread:$0]  (!%p12129_p10), %s12136_s18, 2176, %s12138_s22, %s12140_s25, %s12023_s3, %s12023_s3, %s12024_s4  }
  0x43   : > { %p15437_p11 = scmp.ne.s32.totalorder %s15434_s16, 0 }
  0x45   : > { %143 = sbr.rel (%p15437_p11) target bundleno = 6523 (0x197b), region = 28 }
  0x4c   : > { %s145_s19 = sand.u32 1, %s12012_s10   ;;  %p15438_p13 = scmp.ne.s32.totalorder %s15433_s15, 0 }
  0x4d   : > { %s11109_s24 = smul.u32 136, %s145_s19  ;;  %s146_s21 = scalar_lea.sflag [#allocation3], %s145_s19 }
  0x4f   : > { %s12174_s26 = scalar_lea.vmem [#allocation2], %s11109_s24 }
  0x50   : > { %11999 = dma.done.wait (%p15438_p13), %s146_s21, 2176  }
  0x51   : > { %12001 = vsyncadd (%p15438_p13), %s146_s21, 4294965120  ;;  %p15439_p3 = scmp.ne.s32.totalorder %s15432_s14, 0 }
  0x53   : > { %12003 = dma.done.wait (%p15439_p3), [#allocation5], 11264  }
  0x54   : > { %12005 = vsyncadd (%p15439_p3), [#allocation5], 4294956032  ;;  %v12185_v0 = vld [vmem:[%s12174_s26] sm:$0xff]  ;;  %v12188_v1 = vld [vmem:[%s12174_s26 + $0x10] sm:$0xff]  ;;  %s12026_s16 = smov 125   ;;  %vm580_vm0 = vcmask 64512  }
  0x55   : > { %548 = vrot.lane.b32.xlu0 %v12185_v0, %s12026_s16  ;;  %552 = vrot.lane.b32.xlu1 %v12188_v1, %s12026_s16  ;;  %v526_v2 = vld [vmem:[#allocation4] sm:$0xff]  ;;  %v12198_v4 = vld [vmem:[%s12174_s26 + $0x18] sm:$0xff]  ;;  %v12205_v5 = vld [vmem:[%s12174_s26 + $0x20] sm:$0xff]  ;;  %v11110_v40 = vtrunc.f32 %v12185_v0  ;;  %v11114_v41 = vtrunc.f32 %v12188_v1  ;;  %v12027_v42 = vmov 16   ;;  %vm879_vm1 = vcmask 261120   ;;  %s8270_s14 = sshll.u32 %s8262_s13, 4 }
  0x56   : > { %v12195_v3 = vld [vmem:[%s12174_s26 + $0x8] sm:$0xff]  ;;  %9746 = vmatprep.subr.mxu0 %v526_v2  ;;  %11090 = vmatprep.subr.mxu1 %v526_v2  ;;  %v12215_v7 = vld [vmem:[%s12174_s26 + $0x30] sm:$0xff]  ;;  %v12218_v8 = vld [vmem:[%s12174_s26 + $0x38] sm:$0xff]  ;;  %v11116_v43 = vtrunc.f32 %v12198_v4  ;;  %v11118_v48 = vtrunc.f32 %v12205_v5  ;;  %p176_p10 = scmp.lt.s32.totalorder %s8270_s14, 31 }
  0x57   : > { %9747 = vmatpush3.msra.mxu0 %v526_v2  ;;  %11091 = vmatpush3.msra.mxu1 %v526_v2  ;;  %v12208_v6 = vld [vmem:[%s12174_s26 + $0x28] sm:$0xff]  ;;  %v12225_v9 = vld [vmem:[%s12174_s26 + $0x40] sm:$0xff]  ;;  %v12235_v11 = vld [vmem:[%s12174_s26 + $0x50] sm:$0xff]  ;;  %v11112_v39 = vtrunc.f32 %v12195_v3  ;;  %v12286_v45 = vcvt.f32.s32 %v11110_v40  ;;  %v12290_v46 = vcvt.f32.s32 %v11114_v41  ;;  %v11122_v52 = vtrunc.f32 %v12215_v7 }
  0x58   : > { %v12228_v10 = vld [vmem:[%s12174_s26 + $0x48] sm:$0xff]  ;;  %v12238_v12 = vld [vmem:[%s12174_s26 + $0x58] sm:$0xff]  ;;  %v12245_v13 = vld [vmem:[%s12174_s26 + $0x60] sm:$0xff]  ;;  %11205 = vset.pattern.permute.xlu1 %v12027_v42  ;;  %11204 = vset.pattern.permute.xlu0 %v12027_v42  ;;  %v12292_v47 = vcvt.f32.s32 %v11116_v43  ;;  %v11120_v49 = vtrunc.f32 %v12208_v6  ;;  %v12298_v50 = vcvt.f32.s32 %v11118_v48  ;;  %v11124_v53 = vtrunc.f32 %v12218_v8  ;;  %s15615_s14 = smov (!%p176_p10, %s8270_s14), 31 }
  0x59   : > { %550 = vrot.lane.b32.xlu0 %v12195_v3, %s12026_s16  ;;  %554 = vrot.lane.b32.xlu1 %v12198_v4, %s12026_s16  ;;  %v12248_v14 = vld [vmem:[%s12174_s26 + $0x68] sm:$0xff]  ;;  %v12255_v15 = vld [vmem:[%s12174_s26 + $0x70] sm:$0xff]  ;;  %v870_v33 = vld [vmem:[#allocation4 + $0x10] sm:$0xff]  ;;  %v12284_v44 = vcvt.f32.s32 %v11112_v39  ;;  %v12306_v54 = vcvt.f32.s32 %v11122_v52  ;;  %v11126_v56 = vtrunc.f32 %v12225_v9  ;;  %v11128_v57 = vtrunc.f32 %v12228_v10  ;;  %s8271_s12 = sshll.u32 %s15615_s14, 3 }
  0x5a   : > { %v12258_v16 = vld [vmem:[%s12174_s26 + $0x78] sm:$0xff]  ;;  %v871_v34 = vld [vmem:[#allocation4 + $0x18] sm:$0xff]  ;;  %v872_v36 = vld [vmem:[#allocation4 + $0x20] sm:$0xff]  ;;  %v12300_v51 = vcvt.f32.s32 %v11120_v49  ;;  %v12308_v55 = vcvt.f32.s32 %v11124_v53  ;;  %v11130_v60 = vtrunc.f32 %v12235_v11  ;;  %v11132_v61 = vtrunc.f32 %v12238_v12  ;;  %s15176_s3 = scalar_lea.vmem %s15321_s2, %s8271_s12 }
  0x5b   : > { %v10730_v35 = vpack.c.bf16 %v871_v34, %v870_v33  ;;  %v873_v37 = vld [vmem:[#allocation4 + $0x28] sm:$0xff]  ;;  %15441 = vst [vmem:[#allocation9_spill] sm:$0xff] %v12306_v54  ;;  %v12314_v58 = vcvt.f32.s32 %v11126_v56  ;;  %v12316_v59 = vcvt.f32.s32 %v11128_v57  ;;  %v11134_v0 = vtrunc.f32 %v12245_v13 }
  0x5c   : > { %v10734_v38 = vpack.c.bf16 %v873_v37, %v872_v36  ;;  %15440 = vst [vmem:[#allocation8_spill] sm:$0xff] %v12300_v51  ;;  %15442 = vst [vmem:[#allocation10_spill] sm:$0xff] %v12308_v55  ;;  %v12322_v62 = vcvt.f32.s32 %v11130_v60  ;;  %v12324_v63 = vcvt.f32.s32 %v11132_v61  ;;  %v11136_v1 = vtrunc.f32 %v12248_v14 }
  0x5d   : > { %556 = vrot.lane.b32.xlu0 %v12205_v5, %s12026_s16  ;;  %558 = vrot.lane.b32.xlu1 %v12208_v6, %s12026_s16  ;;  %15443 = vst [vmem:[#allocation11_spill] sm:$0xff] %v12314_v58  ;;  %v12330_v2 = vcvt.f32.s32 %v11134_v0  ;;  %v11138_v4 = vtrunc.f32 %v12255_v15  ;;  %v11140_v5 = vtrunc.f32 %v12258_v16 }
  0x5e   : > { %10731 = vmatprep.subr.bf16.mxu1 %v10730_v35  ;;  %15444 = vst [vmem:[#allocation12_spill] sm:$0xff] %v12322_v62  ;;  %v12332_v3 = vcvt.f32.s32 %v11136_v1 }
  0x5f   : > { %15445 = vst [vmem:[#allocation13_spill] sm:$0xff] %v12330_v2  ;;  %v12338_v6 = vcvt.f32.s32 %v11138_v4 }
  0x61   : > { %560 = vrot.lane.b32.xlu0 %v12215_v7, %s12026_s16  ;;  %562 = vrot.lane.b32.xlu1 %v12218_v8, %s12026_s16  ;;  %15446 = vst [vmem:[#allocation14_spill] sm:$0xff] %v12338_v6  ;;  %v12340_v7 = vcvt.f32.s32 %v11140_v5  ;;  %v12344_v8 = vld [vmem:[#allocation4 + $0x8] ss:$0 sm:$0xff] }
  0x63   : > { %15447 = vst [vmem:[#allocation15_spill] sm:$0xff] %v12340_v7 }
  0x65   : > { %564 = vrot.lane.b32.xlu0 %v12225_v9, %s12026_s16  ;;  %566 = vrot.lane.b32.xlu1 %v12228_v10, %s12026_s16 }
  0x69   : > { %568 = vrot.lane.b32.xlu0 %v12235_v11, %s12026_s16  ;;  %570 = vrot.lane.b32.xlu1 %v12238_v12, %s12026_s16 }
  0x6d   : > { %572 = vrot.lane.b32.xlu0 %v12245_v13, %s12026_s16  ;;  %574 = vrot.lane.b32.xlu1 %v12248_v14, %s12026_s16 }
  0x71   : > { %576 = vrot.lane.b32.xlu0 %v12255_v15, %s12026_s16  ;;  %578 = vrot.lane.b32.xlu1 %v12258_v16, %s12026_s16 }
  0x75   : > { %221 = vperm.xlu1 %11205, %v12284_v44   ;;  %218 = vperm.xlu0 %11204, %v12286_v45  }
  0x79   : > { %224 = vperm.xlu1 %11205, %v12290_v46   ;;  %227 = vperm.xlu0 %11204, %v12292_v47  }
  0x7d   : > { %230 = vperm.xlu1 %11205, %v12298_v50   ;;  %233 = vperm.xlu0 %11204, %v12300_v51  }
  0x81   : > { %236 = vperm.xlu1 %11205, %v12306_v54   ;;  %239 = vperm.xlu0 %11204, %v12308_v55  }
  0x85   : > { %242 = vperm.xlu1 %11205, %v12314_v58   ;;  %245 = vperm.xlu0 %11204, %v12316_v59  }
  0x89   : > { %248 = vperm.xlu1 %11205, %v12322_v62   ;;  %251 = vperm.xlu0 %11204, %v12324_v63  }
  0x8d   : > { %254 = vperm.xlu1 %11205, %v12330_v2   ;;  %257 = vperm.xlu0 %11204, %v12332_v3  }
  0x91   : > { %260 = vperm.xlu1 %11205, %v12338_v6   ;;  %263 = vperm.xlu0 %11204, %v12340_v7  }
  0xc7   : > { %v549_v17 = vpop.permute.xlu0 %548  ;;  %v553_v18 = vpop.permute.xlu1 %552 }
  0xc8   : > { %9748 = vmatprep.mubr.msk.f32.mxu0 %vm580_vm0, %v549_v17 }
  0xcb   : > { %v551_v19 = vpop.permute.xlu0 %550  ;;  %v555_v20 = vpop.permute.xlu1 %554 }
  0xcc   : > { %9749 = vmatmul.mubr.msk.f32.vlgmr.msra.gmra.mrb[0].mxu0 %vm580_vm0, %v551_v19 }
  0xcd   : > { %9751 = vmatprep.mubr.msk.f32.mxu0 %vm580_vm0, %v553_v18 }
  0xcf   : > { %v557_v21 = vpop.permute.xlu0 %556  ;;  %v559_v22 = vpop.permute.xlu1 %558 }
  0xd0   : > { %9752 = vmatmul.mubr.msk.f32.gmra.mrb[2].mxu0 %vm580_vm0, %v555_v20 }
  0xd1   : > { %9754 = vmatprep.mubr.msk.f32.mxu0 %vm580_vm0, %v557_v21 }
  0xd3   : > { %v561_v23 = vpop.permute.xlu0 %560  ;;  %v563_v24 = vpop.permute.xlu1 %562 }
  0xd4   : > { %9755 = vmatmul.mubr.msk.f32.gmra.mrb[4].mxu0 %vm580_vm0, %v559_v22 }
  0xd5   : > { %9757 = vmatprep.mubr.msk.f32.mxu0 %vm580_vm0, %v561_v23 }
  0xd7   : > { %v565_v25 = vpop.permute.xlu0 %564  ;;  %v567_v26 = vpop.permute.xlu1 %566 }
  0xd8   : > { %9758 = vmatmul.mubr.msk.f32.gmra.mrb[6].mxu0 %vm580_vm0, %v563_v24  ;;  %9760 = vmatprep.mubr.msk.f32.mxu1 %vm580_vm0, %v565_v25 }
  0xd9   : > { %9761 = vmatmul.mubr.msk.f32.vlgmr.msra.gmra.mrb[0].mxu1 %vm580_vm0, %v567_v26 }
  0xda   : > { %10733 = vmatpush3.bf16.msra.mxu1 %v10730_v35 }
  0xdb   : > { %v569_v27 = vpop.permute.xlu0 %568  ;;  %v571_v28 = vpop.permute.xlu1 %570  ;;  %10735 = vmatprep.subr.bf16.mxu1 %v10734_v38 }
  0xdc   : > { %9763 = vmatprep.mubr.msk.f32.mxu1 %vm580_vm0, %v569_v27 }
  0xdd   : > { %9764 = vmatmul.mubr.msk.f32.gmra.mrb[2].mxu1 %vm580_vm0, %v571_v28 }
  0xde   : > { %10737 = vmatpush3.bf16.msra.mxu1 %v10734_v38 }
  0xdf   : > { %v573_v29 = vpop.permute.xlu0 %572  ;;  %v575_v30 = vpop.permute.xlu1 %574 }
  0xe0   : > { %9766 = vmatprep.mubr.msk.f32.mxu1 %vm580_vm0, %v573_v29 }
  0xe1   : > { %9767 = vmatmul.mubr.msk.f32.gmra.mrb[4].mxu1 %vm580_vm0, %v575_v30 }
  0xe3   : > { %v577_v31 = vpop.permute.xlu0 %576  ;;  %v579_v32 = vpop.permute.xlu1 %578 }
  0xe4   : > { %9769 = vmatprep.mubr.msk.f32.mxu1 %vm580_vm0, %v577_v31 }
  0xe5   : > { %9770 = vmatmul.mubr.msk.f32.gmra.mrb[6].mxu1 %vm580_vm0, %v579_v32 }
 0x19f   : > { %v9750_v9 = vpop.f32.mrb[0].mxu0 }
 0x1a0   : > { %v685_v10 = vadd.f32 %v9750_v9, %v12344_v8  ;;  %v679_v11 = vpop.f32.mrb[1].mxu0 }
 0x1a1   : > { %v680_v12 = vadd.f32 %v12344_v8, %v679_v11 }
 0x1a2   : > { %v776_v13 = vmul.f32 1.442695, %v685_v10  ;;  %vm759_vm2 = vcmp.gt.f32.partialorder %v685_v10, 0.0 }
 0x1a3   : > { %v774_v14 = vmul.f32 1.442695, %v680_v12  ;;  %v9753_v15 = vpop.f32.mrb[2].mxu0  ;;  %vm758_vm3 = vcmp.gt.f32.partialorder %v680_v12, 0.0 }
 0x1a4   : > { %11252 = vpow2.f32 %v776_v13  ;;  %v12349_v16 = vadd.f32 %v9753_v15, %v12344_v8  ;;  %v689_v17 = vpop.f32.mrb[3].mxu0 }
 0x1a5   : > { %11254 = vpow2.f32 %v774_v14  ;;  %v12352_v18 = vadd.f32 %v12344_v8, %v689_v17 }
 0x1a6   : > { %v780_v19 = vmul.f32 1.442695, %v12349_v16  ;;  %vm761_vm4 = vcmp.gt.f32.partialorder %v12349_v16, 0.0 }
 0x1a7   : > { %v778_v20 = vmul.f32 1.442695, %v12352_v18  ;;  %v9756_v21 = vpop.f32.mrb[4].mxu0  ;;  %vm760_vm5 = vcmp.gt.f32.partialorder %v12352_v18, 0.0 }
 0x1a8   : > { %11256 = vpow2.f32 %v780_v19  ;;  %v12357_v22 = vadd.f32 %v9756_v21, %v12344_v8  ;;  %v699_v23 = vpop.f32.mrb[5].mxu0 }
 0x1a9   : > { %11258 = vpow2.f32 %v778_v20  ;;  %v12360_v24 = vadd.f32 %v12344_v8, %v699_v23 }
 0x1aa   : > { %v784_v25 = vmul.f32 1.442695, %v12357_v22  ;;  %vm763_vm6 = vcmp.gt.f32.partialorder %v12357_v22, 0.0 }
 0x1ab   : > { %v782_v26 = vmul.f32 1.442695, %v12360_v24  ;;  %v9759_v27 = vpop.f32.mrb[6].mxu0  ;;  %vm762_vm7 = vcmp.gt.f32.partialorder %v12360_v24, 0.0 }
 0x1ac   : > { %11260 = vpow2.f32 %v784_v25  ;;  %v12365_v28 = vadd.f32 %v9759_v27, %v12344_v8  ;;  %v709_v29 = vpop.f32.mrb[7].mxu0  ;;  %v9762_v30 = vpop.f32.mrb[0].mxu1 }
 0x1ad   : > { %11262 = vpow2.f32 %v782_v26  ;;  %v12368_v31 = vadd.f32 %v12344_v8, %v709_v29  ;;  %v12371_v32 = vadd.f32 %v9762_v30, %v12344_v8  ;;  %v719_v33 = vpop.f32.mrb[1].mxu1 }
 0x1ae   : > { %v11253_v34 = vpop.eup %11252  ;;  %v788_v35 = vmul.f32 1.442695, %v12365_v28  ;;  %v12375_v36 = vadd.f32 %v12344_v8, %v719_v33  ;;  %vm765_vm8 = vcmp.gt.f32.partialorder %v12365_v28, 0.0 }
 0x1af   : > { %v11255_v37 = vpop.eup %11254  ;;  %v8354_v38 = vadd.f32 -1.0, %v11253_v34  ;;  %v786_v39 = vmul.f32 1.442695, %v12368_v31  ;;  %v792_v41 = vmul.f32 1.442695, %v12371_v32  ;;  %vm764_vm9 = vcmp.gt.f32.partialorder %v12368_v31, 0.0 }
 0x1b0   : > { %v8353_v40 = vadd.f32 -1.0, %v11255_v37  ;;  %11264 = vpow2.f32 %v788_v35  ;;  %v9765_v42 = vpop.f32.mrb[2].mxu1  ;;  %v790_v48 = vmul.f32 1.442695, %v12375_v36  ;;  %vm766_vm10 = vcmp.gt.f32.partialorder %v12375_v36, 0.0 }
 0x1b1   : > { %v823_v43 = vmul.f32 1.6732632, %v8354_v38  ;;  %11266 = vpow2.f32 %v786_v39  ;;  %v12381_v49 = vadd.f32 %v9765_v42, %v12344_v8  ;;  %v729_v52 = vpop.f32.mrb[3].mxu1  ;;  %vm767_vm11 = vcmp.gt.f32.partialorder %v12371_v32, 0.0 }
 0x1b2   : > { %v11257_v53 = vpop.eup %11256  ;;  %v822_v56 = vmul.f32 1.6732632, %v8353_v40  ;;  %11268 = vpow2.f32 %v792_v41  ;;  %v12384_v57 = vadd.f32 %v12344_v8, %v729_v52 }
 0x1b3   : > { %v11259_v60 = vpop.eup %11258  ;;  %v839_v61 = vsel %vm759_vm2, %v685_v10, %v823_v43  ;;  %v8356_v0 = vadd.f32 -1.0, %v11257_v53  ;;  %11270 = vpow2.f32 %v790_v48  ;;  %v796_v9 = vmul.f32 1.442695, %v12381_v49 }
 0x1b4   : > { %v855_v1 = vmul.f32 1.050701, %v839_v61  ;;  %v838_v4 = vsel %vm758_vm3, %v680_v12, %v822_v56  ;;  %v8355_v5 = vadd.f32 -1.0, %v11259_v60  ;;  %v9768_v11 = vpop.f32.mrb[4].mxu1  ;;  %v794_v10 = vmul.f32 1.442695, %v12384_v57 }
 0x1b5   : > { %v854_v13 = vmul.f32 1.050701, %v838_v4  ;;  %v825_v14 = vmul.f32 1.6732632, %v8356_v0  ;;  %v12389_v15 = vadd.f32 %v9768_v11, %v12344_v8  ;;  %v739_v17 = vpop.f32.mrb[5].mxu1  ;;  %11272 = vpow2.f32 %v796_v9 }
 0x1b6   : > { %v11261_v19 = vpop.eup %11260  ;;  %v824_v20 = vmul.f32 1.6732632, %v8355_v5  ;;  %v12393_v21 = vadd.f32 %v12344_v8, %v739_v17  ;;  %11274 = vpow2.f32 %v794_v10  ;;  %vm769_vm12 = vcmp.gt.f32.partialorder %v12381_v49, 0.0 }
 0x1b7   : > { %v11263_v12 = vpop.eup %11262  ;;  %v841_v23 = vsel %vm761_vm4, %v12349_v16, %v825_v14  ;;  %v8358_v25 = vadd.f32 -1.0, %v11261_v19  ;;  %v800_v26 = vmul.f32 1.442695, %v12389_v15  ;;  %9780 = vmatprep.mubr.msk.f32.mxu1 %vm879_vm1, %v854_v13  ;;  %vm768_vm13 = vcmp.gt.f32.partialorder %v12384_v57, 0.0 }
 0x1b8   : > { %v840_v27 = vsel %vm760_vm5, %v12352_v18, %v824_v20  ;;  %v8357_v29 = vadd.f32 -1.0, %v11263_v12  ;;  %v9771_v30 = vpop.f32.mrb[6].mxu1  ;;  %9781 = vmatmul.mubr.msk.f32.vlgmr.msra.gmra.mrb[8].mxu1 %vm879_vm1, %v855_v1  ;;  %v857_v37 = vmul.f32 1.050701, %v841_v23  ;;  %v798_v39 = vmul.f32 1.442695, %v12393_v21 }
 0x1b9   : > { %v856_v33 = vmul.f32 1.050701, %v840_v27  ;;  %v827_v34 = vmul.f32 1.6732632, %v8358_v25  ;;  %11276 = vpow2.f32 %v800_v26  ;;  %v749_v16 = vpop.f32.mrb[7].mxu1  ;;  %v12404_v40 = vadd.f32 %v9771_v30, %v12344_v8 }
 0x1ba   : > { %v11265_v35 = vpop.eup %11264  ;;  %v826_v38 = vmul.f32 1.6732632, %v8357_v29  ;;  %v12409_v43 = vadd.f32 %v12344_v8, %v749_v16  ;;  %11278 = vpow2.f32 %v798_v39  ;;  %vm771_vm14 = vcmp.gt.f32.partialorder %v12389_v15, 0.0 }
 0x1bb   : > { %v11267_v18 = vpop.eup %11266  ;;  %v843_v41 = vsel %vm763_vm6, %v12357_v22, %v827_v34  ;;  %v8360_v42 = vadd.f32 -1.0, %v11265_v35  ;;  %9783 = vmatprep.mubr.msk.f32.mxu1 %vm879_vm1, %v856_v33  ;;  %v804_v8 = vmul.f32 1.442695, %v12404_v40  ;;  %vm770_vm15 = vcmp.gt.f32.partialorder %v12393_v21, 0.0 }
 0x1bc   : > { %v11269_v48 = vpop.eup %11268  ;;  %v859_v52 = vmul.f32 1.050701, %v843_v41  ;;  %v842_v53 = vsel %vm762_vm7, %v12360_v24, %v826_v38  ;;  %v8359_v56 = vadd.f32 -1.0, %v11267_v18  ;;  %9784 = vmatmul.mubr.msk.f32.gmra.mrb[10].mxu1 %vm879_vm1, %v857_v37  ;;  %v802_v24 = vmul.f32 1.442695, %v12409_v43 }
 0x1bd   : > { %v11271_v60 = vpop.eup %11270  ;;  %v858_v61 = vmul.f32 1.050701, %v842_v53  ;;  %v829_v0 = vmul.f32 1.6732632, %v8360_v42  ;;  %v8362_v22 = vadd.f32 -1.0, %v11269_v48  ;;  %11280 = vpow2.f32 %v804_v8  ;;  %v1188_v8 = vld [vmem:[#allocation4 + $0x50] sm:$0xff] }
 0x1be   : > { %v828_v1 = vmul.f32 1.6732632, %v8359_v56  ;;  %v8361_v4 = vadd.f32 -1.0, %v11271_v60  ;;  %11282 = vpow2.f32 %v802_v24  ;;  %vm773_vm0 = vcmp.gt.f32.partialorder %v12404_v40, 0.0 }
 0x1bf   : > { %v845_v5 = vsel %vm765_vm8, %v12365_v28, %v829_v0  ;;  %v831_v9 = vmul.f32 1.6732632, %v8362_v22  ;;  %9786 = vmatprep.mubr.msk.f32.mxu1 %vm879_vm1, %v858_v61  ;;  %v11273_v11 = vpop.eup %11272  ;;  %vm772_vm2 = vcmp.gt.f32.partialorder %v12409_v43, 0.0  ;;  %v1185_v0 = vld [vmem:[#allocation4 + $0x38] sm:$0xff]  ;;  %v1186_v22 = vld [vmem:[#allocation4 + $0x40] sm:$0xff] }
 0x1c0   : > { %v844_v13 = vsel %vm764_vm9, %v12368_v31, %v828_v1  ;;  %v830_v14 = vmul.f32 1.6732632, %v8361_v4  ;;  %9787 = vmatmul.mubr.msk.f32.gmra.mrb[12].mxu1 %vm879_vm1, %v859_v52  ;;  %v8364_v19 = vadd.f32 -1.0, %v11273_v11  ;;  %v11275_v28 = vpop.eup %11274  ;;  %v861_v20 = vmul.f32 1.050701, %v845_v5  ;;  %v1187_v4 = vld [vmem:[#allocation4 + $0x48] sm:$0xff] }
 0x1c1   : > { %v860_v17 = vmul.f32 1.050701, %v844_v13  ;;  %v847_v23 = vsel %vm767_vm11, %v12371_v32, %v831_v9  ;;  %v8363_v26 = vadd.f32 -1.0, %v11275_v28  ;;  %v10738_v1 = vpack.c.bf16 %v1186_v22, %v1185_v0  ;;  %v12450_v9 = vpop.permute.xlu0 %218  ;;  %v12472_v28 = vld [vmem:[#allocation4 + $0x30] ss:$0 sm:$0xff] }
 0x1c2   : > { %v846_v10 = vsel %vm766_vm10, %v12375_v36, %v830_v14  ;;  %v833_v31 = vmul.f32 1.6732632, %v8364_v19  ;;  %v863_v33 = vmul.f32 1.050701, %v847_v23  ;;  %v215_v5 = vlaneseq  ;;  %15449 = vst [vmem:[#allocation17_spill] sm:$0xff] %v12450_v9  ;;  %v1499_v14 = vld [vmem:[#allocation4 + $0x60] sm:$0xff] }
 0x1c3   : > { %v11277_v12 = vpop.eup %11276  ;;  %v862_v25 = vmul.f32 1.050701, %v846_v10  ;;  %9789 = vmatprep.mubr.msk.f32.mxu1 %vm879_vm1, %v860_v17  ;;  %v832_v29 = vmul.f32 1.6732632, %v8363_v26  ;;  %10739 = vmatprep.subr.bf16.mxu0 %v10738_v1  ;;  %v12028_v13 = vmov 1.0|1.0  }
 0x1c4   : > { %v8366_v27 = vadd.f32 -1.0, %v11277_v12  ;;  %9790 = vmatmul.mubr.msk.f32.gmra.mrb[14].mxu1 %vm879_vm1, %v861_v20  ;;  %v11279_v30 = vpop.eup %11278  ;;  %v849_v36 = vsel %vm769_vm12, %v12381_v49, %v833_v31  ;;  %10741 = vmatpush3.bf16.msra.mxu0 %v10738_v1  ;;  %v12453_v24 = vand.u32 127, %v215_v5  ;;  %v1500_v17 = vld [vmem:[#allocation4 + $0x68] sm:$0xff] }
 0x1c5   : > { %9792 = vmatprep.mubr.msk.f32.mxu1 %vm879_vm1, %v862_v25  ;;  %v848_v32 = vsel %vm768_vm13, %v12384_v57, %v832_v29  ;;  %v8365_v16 = vadd.f32 -1.0, %v11279_v30  ;;  %v865_v39 = vmul.f32 1.050701, %v849_v36  ;;  %v10746_v19 = vpack.c.bf16 %v1500_v17, %v1499_v14  ;;  %v12484_v36 = vpop.permute.xlu0 %227 }
 0x1c6   : > { %v835_v34 = vmul.f32 1.6732632, %v8366_v27  ;;  %v864_v35 = vmul.f32 1.050701, %v848_v32  ;;  %15450 = vst [vmem:[#allocation18_spill] sm:$0xff] %v12453_v24  ;;  %vm265_vm4 = vcmp.eq.s32.totalorder %v12453_v24, %v12450_v9  ;;  %15454 = vst [vmem:[#allocation20_spill] sm:$0xff] %v12484_v36  ;;  %vm268_vm7 = vcmp.eq.s32.totalorder %v12453_v24, %v12484_v36 }
 0x1c7   : > { %v834_v37 = vmul.f32 1.6732632, %v8365_v16  ;;  %v11281_v38 = vpop.eup %11280  ;;  %10747 = vmatprep.subr.bf16.mxu1 %v10746_v19 }
 0x1c8   : > { %9793 = vmatmul.mubr.msk.f32.gmra.mrb[16].mxu1 %vm879_vm1, %v863_v33  ;;  %v11283_v18 = vpop.eup %11282  ;;  %v851_v41 = vsel %vm771_vm14, %v12389_v15, %v835_v34  ;;  %v8368_v57 = vadd.f32 -1.0, %v11281_v38 }
 0x1c9   : > { %9795 = vmatprep.mubr.msk.f32.mxu1 %vm879_vm1, %v864_v35  ;;  %v850_v49 = vsel %vm770_vm15, %v12393_v21, %v834_v37  ;;  %v8367_v48 = vadd.f32 -1.0, %v11283_v18  ;;  %v867_v53 = vmul.f32 1.050701, %v851_v41  ;;  %10749 = vmatpush3.bf16.msra.mxu1 %v10746_v19 }
 0x1ca   : > { %v866_v42 = vmul.f32 1.050701, %v850_v49  ;;  %v837_v52 = vmul.f32 1.6732632, %v8368_v57  ;;  %v12498_v57 = vpop.permute.xlu0 %233 }
 0x1cb   : > { %v836_v56 = vmul.f32 1.6732632, %v8367_v48  ;;  %15456 = vst [vmem:[#allocation22_spill] sm:$0xff] %v12498_v57  ;;  %vm270_vm10 = vcmp.eq.s32.totalorder %v12453_v24, %v12498_v57  ;;  %v15380_v57 = vmov 0.0  }
 0x1cc   : > { %9796 = vmatmul.mubr.msk.f32.gmra.mrb[18].mxu1 %vm879_vm1, %v865_v39  ;;  %v853_v60 = vsel %vm773_vm0, %v12404_v40, %v837_v52  ;;  %v10742_v40 = vpack.c.bf16 %v1188_v8, %v1187_v4 }
 0x1cd   : > { %9798 = vmatprep.mubr.msk.f32.mxu1 %vm879_vm1, %v866_v42  ;;  %v852_v15 = vsel %vm772_vm2, %v12409_v43, %v836_v56  ;;  %v869_v61 = vmul.f32 1.050701, %v853_v60  ;;  %v12448_v43 = vpop.permute.xlu1 %221 }
 0x1ce   : > { %v868_v21 = vmul.f32 1.050701, %v852_v15  ;;  %10743 = vmatprep.subr.bf16.mxu0 %v10742_v40  ;;  %15448 = vst [vmem:[#allocation16_spill] sm:$0xff] %v12448_v43  ;;  %vm266_vm3 = vcmp.eq.s32.totalorder %v12453_v24, %v12448_v43  ;;  %v12522_v14 = vpop.permute.xlu0 %239 }
 0x1cf   : > { %10745 = vmatpush3.bf16.msra.mxu0 %v10742_v40  ;;  %vm12465_vm5 = vmpackc.low %vm266_vm3, %vm265_vm4  ;;  %15458 = vst [vmem:[#allocation24_spill] sm:$0xff] %v12522_v14  ;;  %vm15328_vm13 = vcmp.eq.s32.totalorder %v12453_v24, %v12522_v14 }
 0x1d0   : > { %9799 = vmatmul.mubr.msk.f32.gmra.mrb[20].mxu1 %vm879_vm1, %v867_v53  ;;  %10755 = vmatprep.subr.msk.bf16.mxu0 %vm12465_vm5, %v12028_v13 }
 0x1d1   : > { %9801 = vmatprep.mubr.msk.f32.mxu1 %vm879_vm1, %v868_v21  ;;  %v12476_v27 = vpop.permute.xlu1 %224 }
 0x1d2   : > { %15453 = vst [vmem:[#allocation19_spill] sm:$0xff] %v12476_v27  ;;  %vm267_vm6 = vcmp.eq.s32.totalorder %v12453_v24, %v12476_v27 }
 0x1d3   : > { %vm12551_vm0 = vmpackc.low %vm268_vm7, %vm267_vm6 }
 0x1d4   : > { %9802 = vmatmul.mubr.msk.f32.gmra.mrb[22].mxu1 %vm879_vm1, %v869_v61 }
 0x1d5   : > { %v12494_v39 = vpop.permute.xlu1 %230 }
 0x1d6   : > { %15455 = vst [vmem:[#allocation21_spill] sm:$0xff] %v12494_v39  ;;  %vm269_vm8 = vcmp.eq.s32.totalorder %v12453_v24, %v12494_v39 }
 0x1d9   : > { %v12510_v0 = vpop.permute.xlu1 %236 }
 0x1da   : > { %15457 = vst [vmem:[#allocation23_spill] sm:$0xff] %v12510_v0  ;;  %vm15429_vm12 = vcmp.eq.s32.totalorder %v12453_v24, %v12510_v0 }
 0x28b   : > { %v9782_v20 = vpop.f32.mrb[8].mxu1 }
 0x28c   : > { %v1000_v10 = vadd.f32 %v9782_v20, %v12472_v28  ;;  %v994_v12 = vpop.f32.mrb[9].mxu1 }
 0x28d   : > { %v995_v23 = vadd.f32 %v12472_v28, %v994_v12 }
 0x28e   : > { %v1091_v25 = vmul.f32 1.442695, %v1000_v10  ;;  %vm1074_vm9 = vcmp.gt.f32.partialorder %v1000_v10, 0.0 }
 0x28f   : > { %v1089_v31 = vmul.f32 1.442695, %v995_v23  ;;  %v9785_v26 = vpop.f32.mrb[10].mxu1  ;;  %vm1073_vm11 = vcmp.gt.f32.partialorder %v995_v23, 0.0 }
 0x290   : > { %11284 = vpow2.f32 %v1091_v25  ;;  %v12479_v29 = vadd.f32 %v9785_v26, %v12472_v28  ;;  %v1004_v30 = vpop.f32.mrb[11].mxu1 }
 0x291   : > { %11286 = vpow2.f32 %v1089_v31  ;;  %v12482_v33 = vadd.f32 %v12472_v28, %v1004_v30 }
 0x292   : > { %v1095_v32 = vmul.f32 1.442695, %v12479_v29  ;;  %vm1076_vm14 = vcmp.gt.f32.partialorder %v12479_v29, 0.0 }
 0x293   : > { %v1093_v34 = vmul.f32 1.442695, %v12482_v33  ;;  %v9788_v16 = vpop.f32.mrb[12].mxu1  ;;  %vm1075_vm15 = vcmp.gt.f32.partialorder %v12482_v33, 0.0 }
 0x294   : > { %11288 = vpow2.f32 %v1095_v32  ;;  %v12489_v35 = vadd.f32 %v9788_v16, %v12472_v28  ;;  %v1014_v37 = vpop.f32.mrb[13].mxu1 }
 0x295   : > { %11290 = vpow2.f32 %v1093_v34  ;;  %v12492_v38 = vadd.f32 %v12472_v28, %v1014_v37 }
 0x296   : > { %v1099_v18 = vmul.f32 1.442695, %v12489_v35  ;;  %vm1078_vm2 = vcmp.gt.f32.partialorder %v12489_v35, 0.0 }
 0x297   : > { %v1097_v41 = vmul.f32 1.442695, %v12492_v38  ;;  %v9791_v49 = vpop.f32.mrb[14].mxu1 }
 0x298   : > { %11292 = vpow2.f32 %v1099_v18  ;;  %v12501_v42 = vadd.f32 %v9791_v49, %v12472_v28  ;;  %v1024_v48 = vpop.f32.mrb[15].mxu1 }
 0x299   : > { %11294 = vpow2.f32 %v1097_v41  ;;  %v12504_v52 = vadd.f32 %v12472_v28, %v1024_v48  ;;  %v12535_v41 = vpop.permute.xlu1 %242 }
 0x29a   : > { %v11285_v53 = vpop.eup %11284  ;;  %v1103_v56 = vmul.f32 1.442695, %v12501_v42  ;;  %15459 = vst [vmem:[#allocation25_spill] sm:$0xff] %v12535_v41 }
 0x29b   : > { %v11287_v60 = vpop.eup %11286  ;;  %v8387_v15 = vadd.f32 -1.0, %v11285_v53  ;;  %v1101_v21 = vmul.f32 1.442695, %v12504_v52  ;;  %v9794_v61 = vpop.f32.mrb[16].mxu1 }
 0x29c   : > { %v8386_v22 = vadd.f32 -1.0, %v11287_v60  ;;  %11296 = vpow2.f32 %v1103_v56  ;;  %v12513_v1 = vadd.f32 %v9794_v61, %v12472_v28  ;;  %v1034_v4 = vpop.f32.mrb[17].mxu1 }
 0x29d   : > { %v1138_v8 = vmul.f32 1.6732632, %v8387_v15  ;;  %11298 = vpow2.f32 %v1101_v21  ;;  %v12518_v40 = vadd.f32 %v12472_v28, %v1034_v4  ;;  %v12555_v4 = vpop.permute.xlu0 %245 }
 0x29e   : > { %v11289_v17 = vpop.eup %11288  ;;  %v1137_v19 = vmul.f32 1.6732632, %v8386_v22  ;;  %v1107_v20 = vmul.f32 1.442695, %v12513_v1  ;;  %15462 = vst [vmem:[#allocation26_spill] sm:$0xff] %v12555_v4 }
 0x29f   : > { %v11291_v12 = vpop.eup %11290  ;;  %v1154_v25 = vsel %vm1074_vm9, %v1000_v10, %v1138_v8  ;;  %v8389_v31 = vadd.f32 -1.0, %v11289_v17  ;;  %v1105_v26 = vmul.f32 1.442695, %v12518_v40  ;;  %v9797_v30 = vpop.f32.mrb[18].mxu1  ;;  %vm15327_vm9 = vcmp.eq.s32.totalorder %v12453_v24, %v12535_v41 }
 0x2a0   : > { %v1153_v32 = vsel %vm1073_vm11, %v995_v23, %v1137_v19  ;;  %v8388_v34 = vadd.f32 -1.0, %v11291_v12  ;;  %11300 = vpow2.f32 %v1107_v20  ;;  %v1044_v16 = vpop.f32.mrb[19].mxu1  ;;  %v12533_v10 = vadd.f32 %v9797_v30, %v12472_v28  ;;  %vm12586_vm11 = vmpackc.low %vm270_vm10, %vm269_vm8 }
 0x2a1   : > { %v1169_v37 = vmul.f32 1.050701, %v1153_v32  ;;  %v1140_v18 = vmul.f32 1.6732632, %v8389_v31  ;;  %11302 = vpow2.f32 %v1105_v26  ;;  %v1170_v48 = vmul.f32 1.050701, %v1154_v25 }
 0x2a2   : > { %v11293_v49 = vpop.eup %11292  ;;  %v1139_v23 = vmul.f32 1.6732632, %v8388_v34  ;;  %v12539_v53 = vadd.f32 %v12472_v28, %v1044_v16  ;;  %v1111_v21 = vmul.f32 1.442695, %v12533_v10 }
 0x2a3   : > { %v11295_v56 = vpop.eup %11294  ;;  %v1156_v60 = vsel %vm1076_vm14, %v12479_v29, %v1140_v18  ;;  %v8391_v15 = vadd.f32 -1.0, %v11293_v49  ;;  %v9800_v61 = vpop.f32.mrb[20].mxu1  ;;  %9812 = vmatprep.mubr.msk.f32.mxu0 %vm879_vm1, %v1169_v37  ;;  %vm1080_vm14 = vcmp.gt.f32.partialorder %v12501_v42, 0.0 }
 0x2a4   : > { %v1155_v29 = vsel %vm1075_vm15, %v12482_v33, %v1139_v23  ;;  %v8390_v8 = vadd.f32 -1.0, %v11295_v56  ;;  %v1054_v17 = vpop.f32.mrb[21].mxu1  ;;  %9813 = vmatmul.mubr.msk.f32.vlgmr.msra.gmra.mrb[8].mxu0 %vm879_vm1, %v1170_v48  ;;  %11304 = vpow2.f32 %v1111_v21  ;;  %v1109_v12 = vmul.f32 1.442695, %v12539_v53 }
 0x2a5   : > { %v1171_v19 = vmul.f32 1.050701, %v1155_v29  ;;  %v1142_v20 = vmul.f32 1.6732632, %v8391_v15  ;;  %10757 = vmatpush3.bf16.msk.msra.mxu0 %vm12465_vm5, %v12028_v13  ;;  %v1172_v33 = vmul.f32 1.050701, %v1156_v60  ;;  %v12567_v26 = vadd.f32 %v9800_v61, %v12472_v28  ;;  %v12604_v15 = vpop.permute.xlu0 %251 }
 0x2a6   : > { %v11297_v25 = vpop.eup %11296  ;;  %v1141_v31 = vmul.f32 1.6732632, %v8390_v8  ;;  %v12570_v30 = vadd.f32 %v12472_v28, %v1054_v17  ;;  %10759 = vmatprep.subr.msk.bf16.mxu0 %vm12551_vm0, %v12028_v13  ;;  %vm1077_vm5 = vcmp.gt.f32.partialorder %v12492_v38, 0.0  ;;  %11306 = vpow2.f32 %v1109_v12  ;;  %15466 = vst [vmem:[#allocation28_spill] sm:$0xff] %v12604_v15 }
 0x2a7   : > { %v11299_v32 = vpop.eup %11298  ;;  %v1158_v34 = vsel %vm1078_vm2, %v12489_v35, %v1142_v20  ;;  %v8393_v11 = vadd.f32 -1.0, %v11297_v25  ;;  %v9803_v16 = vpop.f32.mrb[22].mxu1  ;;  %9815 = vmatprep.mubr.msk.f32.mxu0 %vm879_vm1, %v1171_v19  ;;  %vm15326_vm15 = vcmp.eq.s32.totalorder %v12453_v24, %v12555_v4  ;;  %v1115_v56 = vmul.f32 1.442695, %v12567_v26  ;;  %vm12624_vm2 = vmpackc.low %vm15328_vm13, %vm15429_vm12 }
 0x2a8   : > { %v1157_v18 = vsel %vm1077_vm5, %v12492_v38, %v1141_v31  ;;  %v8392_v35 = vadd.f32 -1.0, %v11299_v32  ;;  %v1064_v49 = vpop.f32.mrb[23].mxu1  ;;  %9816 = vmatmul.mubr.msk.f32.gmra.mrb[10].mxu0 %vm879_vm1, %v1172_v33  ;;  %v12597_v60 = vadd.f32 %v9803_v16, %v12472_v28  ;;  %v12602_v38 = vpop.permute.xlu1 %248  ;;  %v1174_v61 = vmul.f32 1.050701, %v1158_v34 }
 0x2a9   : > { %v1173_v48 = vmul.f32 1.050701, %v1157_v18  ;;  %v1144_v23 = vmul.f32 1.6732632, %v8393_v11  ;;  %10761 = vmatpush3.bf16.msk.msra.mxu0 %vm12551_vm0, %v12028_v13  ;;  %15465 = vst [vmem:[#allocation27_spill] sm:$0xff] %v12602_v38  ;;  %v12608_v17 = vadd.f32 %v12472_v28, %v1064_v49  ;;  %vm1079_vm0 = vcmp.gt.f32.partialorder %v12504_v52, 0.0  ;;  %v12656_v18 = vpop.permute.xlu0 %257 }
 0x2aa   : > { %v11301_v21 = vpop.eup %11300  ;;  %v1143_v29 = vmul.f32 1.6732632, %v8392_v35  ;;  %v1113_v8 = vmul.f32 1.442695, %v12570_v30  ;;  %10763 = vmatprep.subr.msk.bf16.mxu0 %vm12586_vm11, %v12028_v13  ;;  %11308 = vpow2.f32 %v1115_v56  ;;  %vm1082_vm5 = vcmp.gt.f32.partialorder %v12513_v1, 0.0  ;;  %15472 = vst [vmem:[#allocation30_spill] sm:$0xff] %v12656_v18 }
 0x2ab   : > { %v11303_v19 = vpop.eup %11302  ;;  %v1160_v22 = vsel %vm1080_vm14, %v12501_v42, %v1144_v23  ;;  %v8395_v20 = vadd.f32 -1.0, %v11301_v21  ;;  %9818 = vmatprep.mubr.msk.f32.mxu0 %vm879_vm1, %v1173_v48  ;;  %v1119_v31 = vmul.f32 1.442695, %v12597_v60  ;;  %v1117_v11 = vmul.f32 1.442695, %v12608_v17 }
 0x2ac   : > { %v1159_v12 = vsel %vm1079_vm0, %v12504_v52, %v1143_v29  ;;  %v8394_v42 = vadd.f32 -1.0, %v11303_v19  ;;  %11310 = vpow2.f32 %v1113_v8  ;;  %9819 = vmatmul.mubr.msk.f32.gmra.mrb[12].mxu0 %vm879_vm1, %v1174_v61  ;;  %v1176_v32 = vmul.f32 1.050701, %v1160_v22  ;;  %v213_v56 = vld [vmem:[%s12174_s26 + $0x80] sm:$0x1] }
 0x2ad   : > { %v1175_v25 = vmul.f32 1.050701, %v1159_v12  ;;  %v1146_v33 = vmul.f32 1.6732632, %v8395_v20  ;;  %10765 = vmatpush3.bf16.msk.msra.mxu0 %vm12586_vm11, %v12028_v13  ;;  %vm1081_vm14 = vcmp.gt.f32.partialorder %v12518_v40, 0.0  ;;  %11312 = vpow2.f32 %v1119_v31  ;;  %vm12648_vm11 = vmpackc.low %vm15326_vm15, %vm15327_vm9  ;;  %v12693_v28 = vpop.permute.xlu0 %263 }
 0x2ae   : > { %v1145_v34 = vmul.f32 1.6732632, %v8394_v42  ;;  %10767 = vmatprep.subr.msk.bf16.mxu0 %vm12624_vm2, %v12028_v13  ;;  %v11305_v52 = vpop.eup %11304  ;;  %vm275_vm0 = vcmp.eq.s32.totalorder %v12453_v24, %v12602_v38  ;;  %11314 = vpow2.f32 %v1117_v11  ;;  %vm15330_vm9 = vcmp.eq.s32.totalorder %v12453_v24, %v12656_v18  ;;  %15476 = vst [vmem:[#allocation32_spill] sm:$0xff] %v12693_v28 }
 0x2af   : > { %v1162_v16 = vsel %vm1082_vm5, %v12513_v1, %v1146_v33  ;;  %9821 = vmatprep.mubr.msk.f32.mxu0 %vm879_vm1, %v1175_v25  ;;  %v12654_v1 = vpop.permute.xlu1 %254  ;;  %v8397_v49 = vadd.f32 -1.0, %v11305_v52  ;;  %vm15329_vm5 = vcmp.eq.s32.totalorder %v12453_v24, %v12604_v15  ;;  %vm1083_vm13 = vcmp.gt.f32.partialorder %v12539_v53, 0.0 }
 0x2b0   : > { %15471 = vst [vmem:[#allocation29_spill] sm:$0xff] %v12654_v1  ;;  %v1161_v35 = vsel %vm1081_vm14, %v12518_v40, %v1145_v34  ;;  %9822 = vmatmul.mubr.msk.f32.gmra.mrb[14].mxu0 %vm879_vm1, %v1176_v32  ;;  %v11307_v48 = vpop.eup %11306  ;;  %v1178_v21 = vmul.f32 1.050701, %v1162_v16  ;;  %vm12676_vm14 = vmpackc.low %vm15329_vm5, %vm275_vm0  ;;  %vm277_vm15 = vcmp.eq.s32.totalorder %v12453_v24, %v12654_v1  ;;  %v11142_v12 = vtrunc.f32 %v213_v56 }
 0x2b1   : > { %v1177_v23 = vmul.f32 1.050701, %v1161_v35  ;;  %10769 = vmatpush3.bf16.msk.msra.mxu0 %vm12624_vm2, %v12028_v13  ;;  %v1148_v61 = vmul.f32 1.6732632, %v8397_v49  ;;  %v8396_v29 = vadd.f32 -1.0, %v11307_v48  ;;  %vm1084_vm2 = vcmp.gt.f32.partialorder %v12533_v10, 0.0 }
 0x2b2   : > { %10771 = vmatprep.subr.msk.bf16.mxu0 %vm12648_vm11, %v12028_v13  ;;  %v12696_v42 = vshrl.u32 %v215_v5, 7  ;;  %vm1086_vm5 = vcmp.gt.f32.partialorder %v12567_v26, 0.0  ;;  %v11143_v16 = vcvt.f32.s32 %v11142_v12 }
 0x2b3   : > { %9824 = vmatprep.mubr.msk.f32.mxu0 %vm879_vm1, %v1177_v23  ;;  %v1147_v8 = vmul.f32 1.6732632, %v8396_v29  ;;  %v1164_v22 = vsel %vm1084_vm2, %v12533_v10, %v1148_v61  ;;  %v12691_v20 = vpop.permute.xlu1 %260  ;;  %vm15378_vm2 = vcmp.eq.s32.totalorder %v12453_v24, %v12693_v28 }
 0x2b4   : > { %9825 = vmatmul.mubr.msk.f32.gmra.mrb[16].mxu0 %vm879_vm1, %v1178_v21  ;;  %v11309_v19 = vpop.eup %11308  ;;  %15475 = vst [vmem:[#allocation31_spill] sm:$0xff] %v12691_v20  ;;  %15477 = vst [vmem:[#allocation33_spill] sm:$0xff] %v12696_v42  ;;  %v1180_v5 = vmul.f32 1.050701, %v1164_v22  ;;  %v428_v37 = vsub.s32 0, %v12696_v42  ;;  %v12754_v12 = vadd.s32 8, %v12696_v42 }
 0x2b5   : > { %10773 = vmatpush3.bf16.msk.msra.mxu0 %vm12648_vm11, %v12028_v13  ;;  %v1163_v33 = vsel %vm1083_vm13, %v12539_v53, %v1147_v8  ;;  %v8399_v31 = vadd.f32 -1.0, %v11309_v19  ;;  %vm12708_vm11 = vmpackc.low %vm15330_vm9, %vm277_vm15  ;;  %vm279_vm13 = vcmp.eq.s32.totalorder %v12453_v24, %v12691_v20  ;;  %vm1085_vm9 = vcmp.gt.f32.partialorder %v12570_v30, 0.0 }
 0x2b6   : > { %v11311_v25 = vpop.eup %11310  ;;  %10775 = vmatprep.subr.msk.bf16.mxu0 %vm12676_vm14, %v12028_v13  ;;  %v1179_v10 = vmul.f32 1.050701, %v1163_v33  ;;  %15483 = vst [vmem:[#allocation35_spill] sm:$0xff] %v12754_v12  ;;  %v12778_v33 = vadd.s32 32, %v12696_v42  ;;  %v12814_v34 = vadd.s32 64, %v12696_v42 }
 0x2b7   : > { %v8398_v32 = vadd.f32 -1.0, %v11311_v25  ;;  %v1150_v11 = vmul.f32 1.6732632, %v8399_v31  ;;  %v11313_v53 = vpop.eup %11312  ;;  %v12791_v31 = vadd.s32 40, %v12696_v42 }
 0x2b8   : > { %9827 = vmatprep.mubr.msk.f32.mxu0 %vm879_vm1, %v1179_v10  ;;  %v11315_v35 = vpop.eup %11314  ;;  %v8401_v48 = vadd.f32 -1.0, %v11313_v53  ;;  %15486 = vst [vmem:[#allocation38_spill] sm:$0xff] %v12778_v33  ;;  %v12796_v10 = vadd.s32 48, %v12696_v42  ;;  %15490 = vst [vmem:[#allocation42_spill] sm:$0xff] %v12814_v34  ;;  %v12845_v53 = vadd.s32 88, %v12696_v42 }
 0x2b9   : > { %v1149_v52 = vmul.f32 1.6732632, %v8398_v32  ;;  %10777 = vmatpush3.bf16.msk.msra.mxu0 %vm12676_vm14, %v12028_v13  ;;  %v1166_v49 = vsel %vm1086_vm5, %v12567_v26, %v1150_v11  ;;  %v8400_v56 = vadd.f32 -1.0, %v11315_v35  ;;  %vm12735_vm14 = vmpackc.low %vm15378_vm2, %vm279_vm13  ;;  %vm1088_vm5 = vcmp.gt.f32.partialorder %v12597_v60, 0.0  ;;  %15487 = vst [vmem:[#allocation39_spill] sm:$0xff] %v12791_v31 }
 0x2ba   : > { %9828 = vmatmul.mubr.msk.f32.gmra.mrb[18].mxu0 %vm879_vm1, %v1180_v5  ;;  %10779 = vmatprep.subr.msk.bf16.mxu0 %vm12708_vm11, %v12028_v13  ;;  %v1152_v61 = vmul.f32 1.6732632, %v8401_v48  ;;  %v1182_v29 = vmul.f32 1.050701, %v1166_v49  ;;  %15488 = vst [vmem:[#allocation40_spill] sm:$0xff] %v12796_v10  ;;  %v12809_v32 = vadd.s32 56, %v12696_v42 }
 0x2bb   : > { %v1165_v23 = vsel %vm1085_vm9, %v12570_v30, %v1149_v52  ;;  %v1151_v40 = vmul.f32 1.6732632, %v8400_v56  ;;  %v12743_v30 = vrot.slane %v11143_v16, %v428_v37  ;;  %vm1087_vm9 = vcmp.gt.f32.partialorder %v12608_v17, 0.0  ;;  %15493 = vst [vmem:[#allocation45_spill] sm:$0xff] %v12845_v53  ;;  %v1501_v49 = vld [vmem:[#allocation4 + $0x70] sm:$0xff]  ;;  %v1502_v48 = vld [vmem:[#allocation4 + $0x78] sm:$0xff] }
 0x2bc   : > { %v1181_v21 = vmul.f32 1.050701, %v1165_v23  ;;  %v1168_v8 = vsel %vm1088_vm5, %v12597_v60, %v1152_v61  ;;  %v12762_v60 = vadd.s32 16, %v12696_v42  ;;  %15489 = vst [vmem:[#allocation41_spill] sm:$0xff] %v12809_v32  ;;  %v12827_v5 = vadd.s32 72, %v12696_v42 }
 0x2bd   : > { %10781 = vmatpush3.bf16.msk.msra.mxu0 %vm12708_vm11, %v12028_v13  ;;  %15482 = vst [vmem:[#allocation34_spill] sm:$0xff] %v12743_v30  ;;  %v1167_v19 = vsel %vm1087_vm9, %v12608_v17, %v1151_v40  ;;  %v1184_v25 = vmul.f32 1.050701, %v1168_v8  ;;  %vm15331_vm11 = vcmp.eq.s32.totalorder %v12696_v42, %v12743_v30  ;;  %v15343_v17 = vmov 1.0   ;;  %v12899_v56 = vld [vmem:[#allocation4 + $0x58] ss:$0 sm:$0xff] }
 0x2be   : > { %9830 = vmatprep.mubr.msk.f32.mxu0 %vm879_vm1, %v1181_v21  ;;  %10783 = vmatprep.subr.msk.bf16.mxu0 %vm12735_vm14, %v12028_v13  ;;  %v1183_v22 = vmul.f32 1.050701, %v1167_v19  ;;  %15484 = vst [vmem:[#allocation36_spill] sm:$0xff] %v12762_v60  ;;  %vm15333_vm5 = vcmp.eq.s32.totalorder %v12754_v12, %v12743_v30  ;;  %15491 = vst [vmem:[#allocation43_spill] sm:$0xff] %v12827_v5  ;;  %v12832_v11 = vadd.s32 80, %v12696_v42  ;;  %v12850_v52 = vadd.s32 96, %v12696_v42 }
 0x2bf   : > { %9831 = vmatmul.mubr.msk.f32.gmra.mrb[20].mxu0 %vm879_vm1, %v1182_v29  ;;  %v12863_v16 = vadd.s32 104, %v12696_v42  ;;  %v12868_v37 = vadd.s32 112, %v12696_v42  ;;  %v12881_v35 = vadd.s32 120, %v12696_v42  ;;  %v10750_v23 = vpack.c.bf16 %v1502_v48, %v1501_v49 }
 0x2c0   : > { %9833 = vmatprep.mubr.msk.f32.mxu0 %vm879_vm1, %v1183_v22  ;;  %15492 = vst [vmem:[#allocation44_spill] sm:$0xff] %v12832_v11  ;;  %15494 = vst [vmem:[#allocation46_spill] sm:$0xff] %v12850_v52 }
 0x2c1   : > { %10785 = vmatpush3.bf16.msk.msra.mxu0 %vm12735_vm14, %v12028_v13  ;;  %v12773_v13 = vadd.s32 24, %v12696_v42  ;;  %vm15332_vm14 = vcmp.eq.s32.totalorder %v12762_v60, %v12743_v30  ;;  %15495 = vst [vmem:[#allocation47_spill] sm:$0xff] %v12863_v16  ;;  %15496 = vst [vmem:[#allocation48_spill] sm:$0xff] %v12868_v37  ;;  %10751 = vmatprep.subr.bf16.mxu1 %v10750_v23 }
 0x2c2   : > { %15497 = vst [vmem:[#allocation49_spill] sm:$0xff] %v12881_v35  ;;  %10753 = vmatpush3.bf16.msra.mxu1 %v10750_v23 }
 0x2c3   : > { %9834 = vmatmul.mubr.msk.f32.gmra.mrb[22].mxu0 %vm879_vm1, %v1184_v25  ;;  %15485 = vst [vmem:[#allocation37_spill] sm:$0xff] %v12773_v13  ;;  %vm15335_vm9 = vcmp.eq.s32.totalorder %v12773_v13, %v12743_v30 }
 0x2c4   : > { %9900 = vmatprep.mubr.msk.f32.mxu0 %vm15331_vm11, %v15343_v17  ;;  %vm15334_vm11 = vcmp.eq.s32.totalorder %v12778_v33, %v12743_v30 }
 0x2c7   : > { %9901 = vmatmul.mubr.msk.f32.vlgmr.msra.gmra.mrb[24].mxu0 %vm15333_vm5, %v15343_v17  ;;  %vm15336_vm5 = vcmp.eq.s32.totalorder %v12796_v10, %v12743_v30 }
 0x2c8   : > { %9903 = vmatprep.mubr.msk.f32.mxu0 %vm15332_vm14, %v15343_v17  ;;  %vm15337_vm14 = vcmp.eq.s32.totalorder %v12791_v31, %v12743_v30 }
 0x2cb   : > { %9904 = vmatmul.mubr.msk.f32.gmra.mrb[26].mxu0 %vm15335_vm9, %v15343_v17  ;;  %vm15338_vm9 = vcmp.eq.s32.totalorder %v12814_v34, %v12743_v30 }
 0x2cc   : > { %9906 = vmatprep.mubr.msk.f32.mxu0 %vm15334_vm11, %v15343_v17  ;;  %vm15339_vm11 = vcmp.eq.s32.totalorder %v12809_v32, %v12743_v30 }
 0x2cf   : > { %9907 = vmatmul.mubr.msk.f32.gmra.mrb[28].mxu0 %vm15337_vm14, %v15343_v17  ;;  %vm15340_vm14 = vcmp.eq.s32.totalorder %v12832_v11, %v12743_v30 }
 0x2d0   : > { %9909 = vmatprep.mubr.msk.f32.mxu0 %vm15336_vm5, %v15343_v17  ;;  %vm15341_vm5 = vcmp.eq.s32.totalorder %v12827_v5, %v12743_v30 }
 0x2d3   : > { %9910 = vmatmul.mubr.msk.f32.gmra.mrb[30].mxu0 %vm15339_vm11, %v15343_v17  ;;  %vm15342_vm11 = vcmp.eq.s32.totalorder %v12850_v52, %v12743_v30 }
 0x2d4   : > { %9912 = vmatprep.mubr.msk.f32.mxu0 %vm15338_vm9, %v15343_v17  ;;  %vm15376_vm9 = vcmp.eq.s32.totalorder %v12845_v53, %v12743_v30 }
 0x2d7   : > { %9913 = vmatmul.mubr.msk.f32.gmra.mrb[32].mxu0 %vm15341_vm5, %v15343_v17  ;;  %vm15364_vm5 = vcmp.eq.s32.totalorder %v12868_v37, %v12743_v30 }
 0x2d8   : > { %9915 = vmatprep.mubr.msk.f32.mxu0 %vm15340_vm14, %v15343_v17  ;;  %vm15365_vm14 = vcmp.eq.s32.totalorder %v12863_v16, %v12743_v30 }
 0x2db   : > { %9916 = vmatmul.mubr.msk.f32.gmra.mrb[34].mxu0 %vm15376_vm9, %v15343_v17 }
 0x2dc   : > { %9918 = vmatprep.mubr.msk.f32.mxu0 %vm15342_vm11, %v15343_v17  ;;  %vm15359_vm11 = vcmp.eq.s32.totalorder %v12881_v35, %v12743_v30 }
 0x2df   : > { %9919 = vmatmul.mubr.msk.f32.gmra.mrb[36].mxu0 %vm15365_vm14, %v15343_v17 }
 0x2e0   : > { %9921 = vmatprep.mubr.msk.f32.mxu0 %vm15364_vm5, %v15343_v17  ;;  %vm479_vm5 = vcmp.eq.s32.totalorder %v12754_v12, %v12453_v24 }
 0x2e3   : > { %9922 = vmatmul.mubr.msk.f32.gmra.mrb[38].mxu0 %vm15359_vm11, %v15343_v17 }
 0x377   : > { %v9814_v26 = vpop.f32.mrb[8].mxu0 }
 0x378   : > { %v1314_v21 = vadd.f32 %v9814_v26, %v12899_v56  ;;  %v1308_v61 = vpop.f32.mrb[9].mxu0 }
 0x379   : > { %v1309_v29 = vadd.f32 %v12899_v56, %v1308_v61 }
 0x37a   : > { %v1405_v40 = vmul.f32 1.442695, %v1314_v21  ;;  %vm1388_vm11 = vcmp.gt.f32.partialorder %v1314_v21, 0.0 }
 0x37b   : > { %v1403_v8 = vmul.f32 1.442695, %v1309_v29  ;;  %v9817_v19 = vpop.f32.mrb[10].mxu0  ;;  %vm1387_vm14 = vcmp.gt.f32.partialorder %v1309_v29, 0.0 }
 0x37c   : > { %11316 = vpow2.f32 %v1405_v40  ;;  %v1324_v22 = vadd.f32 %v9817_v19, %v12899_v56  ;;  %v1318_v25 = vpop.f32.mrb[11].mxu0 }
 0x37d   : > { %11318 = vpow2.f32 %v1403_v8  ;;  %v12905_v49 = vadd.f32 %v12899_v56, %v1318_v25 }
 0x37e   : > { %v1409_v48 = vmul.f32 1.442695, %v1324_v22  ;;  %vm1390_vm9 = vcmp.gt.f32.partialorder %v1324_v22, 0.0 }
 0x37f   : > { %v1407_v23 = vmul.f32 1.442695, %v12905_v49  ;;  %v9820_v17 = vpop.f32.mrb[12].mxu0 }
 0x380   : > { %11320 = vpow2.f32 %v1409_v48  ;;  %v12909_v26 = vadd.f32 %v9820_v17, %v12899_v56  ;;  %v1328_v61 = vpop.f32.mrb[13].mxu0 }
 0x381   : > { %11322 = vpow2.f32 %v1407_v23  ;;  %v12912_v30 = vadd.f32 %v12899_v56, %v1328_v61 }
 0x382   : > { %v1413_v40 = vmul.f32 1.442695, %v12909_v26 }
 0x383   : > { %v1411_v8 = vmul.f32 1.442695, %v12912_v30  ;;  %v9823_v19 = vpop.f32.mrb[14].mxu0 }
 0x384   : > { %11324 = vpow2.f32 %v1413_v40  ;;  %v12917_v25 = vadd.f32 %v9823_v19, %v12899_v56  ;;  %v1338_v28 = vpop.f32.mrb[15].mxu0 }
 0x385   : > { %11326 = vpow2.f32 %v1411_v8  ;;  %v12920_v48 = vadd.f32 %v12899_v56, %v1338_v28 }
 0x386   : > { %v11317_v17 = vpop.eup %11316  ;;  %v1417_v23 = vmul.f32 1.442695, %v12917_v25 }
 0x387   : > { %v11319_v20 = vpop.eup %11318  ;;  %v8420_v61 = vadd.f32 -1.0, %v11317_v17  ;;  %v1415_v18 = vmul.f32 1.442695, %v12920_v48  ;;  %v9826_v1 = vpop.f32.mrb[16].mxu0 }
 0x388   : > { %v8419_v15 = vadd.f32 -1.0, %v11319_v20  ;;  %11328 = vpow2.f32 %v1417_v23  ;;  %v12925_v40 = vadd.f32 %v9826_v1, %v12899_v56  ;;  %v1348_v19 = vpop.f32.mrb[17].mxu0 }
 0x389   : > { %v1452_v38 = vmul.f32 1.6732632, %v8420_v61  ;;  %11330 = vpow2.f32 %v1415_v18  ;;  %v12928_v8 = vadd.f32 %v12899_v56, %v1348_v19 }
 0x38a   : > { %v11321_v28 = vpop.eup %11320  ;;  %v1451_v4 = vmul.f32 1.6732632, %v8419_v15  ;;  %v1421_v41 = vmul.f32 1.442695, %v12925_v40  ;;  %v12935_v15 = vsel %vm479_vm5, 1.0, %v15380_v57  ;;  %vm1392_vm5 = vcmp.gt.f32.partialorder %v12909_v26, 0.0 }
 0x38b   : > { %v11323_v17 = vpop.eup %11322  ;;  %v1468_v20 = vsel %vm1388_vm11, %v1314_v21, %v1452_v38  ;;  %v8422_v23 = vadd.f32 -1.0, %v11321_v28  ;;  %v1419_v1 = vmul.f32 1.442695, %v12928_v8  ;;  %15498 = vst [vmem:[#allocation50_spill] sm:$0xff] %v12935_v15  ;;  %vm1389_vm11 = vcmp.gt.f32.partialorder %v12905_v49, 0.0 }
 0x38c   : > { %v1467_v14 = vsel %vm1387_vm14, %v1309_v29, %v1451_v4  ;;  %v8421_v61 = vadd.f32 -1.0, %v11323_v17  ;;  %11332 = vpow2.f32 %v1421_v41  ;;  %v1484_v36 = vmul.f32 1.050701, %v1468_v20 }
 0x38d   : > { %v1483_v18 = vmul.f32 1.050701, %v1467_v14  ;;  %v1454_v19 = vmul.f32 1.6732632, %v8422_v23  ;;  %11334 = vpow2.f32 %v1419_v1  ;;  %v9829_v0 = vpop.f32.mrb[18].mxu0  ;;  %vm478_vm14 = vcmp.eq.s32.totalorder %v12696_v42, %v12453_v24 }
 0x38e   : > { %v11325_v39 = vpop.eup %11324  ;;  %v1453_v12 = vmul.f32 1.6732632, %v8421_v61  ;;  %v12938_v38 = vadd.f32 %v9829_v0, %v12899_v56  ;;  %v1358_v21 = vpop.f32.mrb[19].mxu0 }
 0x38f   : > { %v11327_v28 = vpop.eup %11326  ;;  %v1470_v4 = vsel %vm1390_vm9, %v1324_v22, %v1454_v19  ;;  %v8424_v14 = vadd.f32 -1.0, %v11325_v39  ;;  %v12942_v41 = vadd.f32 %v12899_v56, %v1358_v21  ;;  %9844 = vmatprep.mubr.msk.f32.mxu1 %vm879_vm1, %v1483_v18  ;;  %vm1391_vm9 = vcmp.gt.f32.partialorder %v12912_v30, 0.0 }
 0x390   : > { %v1486_v29 = vmul.f32 1.050701, %v1470_v4  ;;  %v1469_v17 = vsel %vm1389_vm11, %v12905_v49, %v1453_v12  ;;  %v8423_v20 = vadd.f32 -1.0, %v11327_v28  ;;  %9845 = vmatmul.mubr.msk.f32.vlgmr.msra.gmra.mrb[24].mxu1 %vm879_vm1, %v1484_v36  ;;  %v1425_v22 = vmul.f32 1.442695, %v12938_v38 }
 0x391   : > { %v1485_v0 = vmul.f32 1.050701, %v1469_v17  ;;  %v1456_v23 = vmul.f32 1.6732632, %v8424_v14  ;;  %v1423_v61 = vmul.f32 1.442695, %v12942_v41 }
 0x392   : > { %v11329_v39 = vpop.eup %11328  ;;  %v1455_v1 = vmul.f32 1.6732632, %v8423_v20  ;;  %v9832_v18 = vpop.f32.mrb[20].mxu0  ;;  %11336 = vpow2.f32 %v1425_v22  ;;  %v12964_v14 = vsel %vm478_vm14, 1.0, %v15380_v57  ;;  %vm1394_vm11 = vcmp.gt.f32.partialorder %v12917_v25, 0.0 }
 0x393   : > { %v11331_v12 = vpop.eup %11330  ;;  %v1472_v49 = vsel %vm1392_vm5, %v12909_v26, %v1456_v23  ;;  %v8426_v19 = vadd.f32 -1.0, %v11329_v39  ;;  %v12955_v36 = vadd.f32 %v9832_v18, %v12899_v56  ;;  %v1368_v21 = vpop.f32.mrb[21].mxu0  ;;  %9847 = vmatprep.mubr.msk.f32.mxu1 %vm879_vm1, %v1485_v0  ;;  %11338 = vpow2.f32 %v1423_v61  ;;  %15499 = vst [vmem:[#allocation51_spill] sm:$0xff] %v12964_v14 }
 0x394   : > { %v1471_v28 = vsel %vm1391_vm9, %v12912_v30, %v1455_v1  ;;  %v8425_v4 = vadd.f32 -1.0, %v11331_v12  ;;  %9848 = vmatmul.mubr.msk.f32.gmra.mrb[26].mxu1 %vm879_vm1, %v1486_v29  ;;  %v1488_v26 = vmul.f32 1.050701, %v1472_v49  ;;  %v12967_v23 = vadd.f32 %v12899_v56, %v1368_v21 }
 0x395   : > { %v1487_v17 = vmul.f32 1.050701, %v1471_v28  ;;  %v1458_v20 = vmul.f32 1.6732632, %v8426_v19  ;;  %v1429_v0 = vmul.f32 1.442695, %v12955_v36  ;;  %vm481_vm5 = vcmp.eq.s32.totalorder %v12773_v13, %v12453_v24 }
 0x396   : > { %v11333_v22 = vpop.eup %11332  ;;  %v1457_v30 = vmul.f32 1.6732632, %v8425_v4  ;;  %v9835_v39 = vpop.f32.mrb[22].mxu0  ;;  %vm1393_vm14 = vcmp.gt.f32.partialorder %v12920_v48, 0.0  ;;  %v1427_v18 = vmul.f32 1.442695, %v12967_v23  ;;  %vm480_vm9 = vcmp.eq.s32.totalorder %v12762_v60, %v12453_v24 }
 0x397   : > { %v11335_v29 = vpop.eup %11334  ;;  %v1474_v1 = vsel %vm1394_vm11, %v12917_v25, %v1458_v20  ;;  %v8428_v61 = vadd.f32 -1.0, %v11333_v22  ;;  %v1378_v12 = vpop.f32.mrb[23].mxu0  ;;  %9850 = vmatprep.mubr.msk.f32.mxu1 %vm879_vm1, %v1487_v17  ;;  %11340 = vpow2.f32 %v1429_v0  ;;  %v12982_v25 = vadd.f32 %v9835_v39, %v12899_v56 }
 0x398   : > { %v1473_v49 = vsel %vm1393_vm14, %v12920_v48, %v1457_v30  ;;  %v8427_v19 = vadd.f32 -1.0, %v11335_v29  ;;  %9851 = vmatmul.mubr.msk.f32.gmra.mrb[28].mxu1 %vm879_vm1, %v1488_v26  ;;  %11342 = vpow2.f32 %v1427_v18  ;;  %v1490_v4 = vmul.f32 1.050701, %v1474_v1 }
 0x399   : > { %v1489_v21 = vmul.f32 1.050701, %v1473_v49  ;;  %v1460_v28 = vmul.f32 1.6732632, %v8428_v61  ;;  %vm1396_vm11 = vcmp.gt.f32.partialorder %v12925_v40, 0.0  ;;  %v12986_v17 = vadd.f32 %v12899_v56, %v1378_v12 }
 0x39a   : > { %v1459_v20 = vmul.f32 1.6732632, %v8427_v19  ;;  %v9902_v48 = vpop.f32.mrb[24].mxu0  ;;  %vm1395_vm14 = vcmp.gt.f32.partialorder %v12928_v8, 0.0  ;;  %v1433_v26 = vmul.f32 1.442695, %v12982_v25 }
 0x39b   : > { %v1476_v22 = vsel %vm1396_vm11, %v12925_v40, %v1460_v28  ;;  %9853 = vmatprep.mubr.msk.f32.mxu1 %vm879_vm1, %v1489_v21  ;;  %v12993_v30 = vadd.f32 %v9902_v48, %v12935_v15  ;;  %v1879_v0 = vpop.f32.mrb[25].mxu0  ;;  %v1431_v29 = vmul.f32 1.442695, %v12986_v17  ;;  %v13002_v56 = vsel %vm481_vm5, 1.0, %v15380_v57 }
 0x39c   : > { %v1475_v39 = vsel %vm1395_vm14, %v12928_v8, %v1459_v20  ;;  %9854 = vmatmul.mubr.msk.f32.gmra.mrb[30].mxu1 %vm879_vm1, %v1490_v4  ;;  %15500 = vst [vmem:[#allocation52_spill] sm:$0xff] %v13002_v56  ;;  %v13008_v40 = vsel %vm480_vm9, 1.0, %v15380_v57  ;;  %v11337_v1 = vpop.eup %11336  ;;  %11344 = vpow2.f32 %v1433_v26  ;;  %v13011_v8 = vadd.f32 %v12964_v14, %v1879_v0 }
 0x39d   : > { %15501 = vst [vmem:[#allocation53_spill] sm:$0xff] %v13008_v40  ;;  %v1491_v61 = vmul.f32 1.050701, %v1475_v39  ;;  %1960 = vadd.xlane.f32.xlu0 %v12993_v30  ;;  %vm483_vm11 = vcmp.eq.s32.totalorder %v12791_v31, %v12453_v24  ;;  %v11339_v18 = vpop.eup %11338  ;;  %v1492_v12 = vmul.f32 1.050701, %v1476_v22  ;;  %v8430_v49 = vadd.f32 -1.0, %v11337_v1 }
 0x39e   : > { %11346 = vpow2.f32 %v1431_v29  ;;  %v9905_v19 = vpop.f32.mrb[26].mxu0  ;;  %vm482_vm5 = vcmp.eq.s32.totalorder %v12778_v33, %v12453_v24  ;;  %v8429_v21 = vadd.f32 -1.0, %v11339_v18  ;;  %1958 = vadd.xlane.f32.xlu1 %v13011_v8  ;;  %10012 = vmatprep.mubr.f32.mxu0 %v13011_v8  ;;  %v13032_v22 = vsel %vm483_vm11, 1.0, %v15380_v57 }
 0x39f   : > { %9856 = vmatprep.mubr.msk.f32.mxu1 %vm879_vm1, %v1491_v61  ;;  %v13020_v28 = vadd.f32 %v9905_v19, %v13002_v56  ;;  %v1889_v4 = vpop.f32.mrb[27].mxu0  ;;  %v1462_v20 = vmul.f32 1.6732632, %v8430_v49  ;;  %15502 = vst [vmem:[#allocation54_spill] sm:$0xff] %v13032_v22  ;;  %vm1398_vm9 = vcmp.gt.f32.partialorder %v12938_v38, 0.0  ;;  %v13036_v0 = vsel %vm482_vm5, 1.0, %v15380_v57 }
 0x3a0   : > { %9857 = vmatmul.mubr.msk.f32.gmra.mrb[32].mxu1 %vm879_vm1, %v1492_v12  ;;  %v13026_v48 = vadd.f32 %v13008_v40, %v1889_v4  ;;  %v1461_v26 = vmul.f32 1.6732632, %v8429_v21  ;;  %15503 = vst [vmem:[#allocation55_spill] sm:$0xff] %v13036_v0  ;;  %vm485_vm14 = vcmp.eq.s32.totalorder %v12809_v32, %v12453_v24  ;;  %vm1397_vm2 = vcmp.gt.f32.partialorder %v12942_v41, 0.0  ;;  %v13165_v56 = vld [vmem:[#allocation4 + $0x80] ss:$0 sm:$0xff] }
 0x3a1   : > { %v11341_v39 = vpop.eup %11340  ;;  %v1478_v29 = vsel %vm1398_vm9, %v12938_v38, %v1462_v20  ;;  %vm484_vm11 = vcmp.eq.s32.totalorder %v12796_v10, %v12453_v24  ;;  %v13057_v20 = vsel %vm485_vm14, 1.0, %v15380_v57  ;;  %vm1400_vm5 = vcmp.gt.f32.partialorder %v12955_v36, 0.0 }
 0x3a2   : > { %v9908_v1 = vpop.f32.mrb[28].mxu0  ;;  %1962 = vadd.xlane.f32.xlu0 %v13026_v48  ;;  %v11343_v61 = vpop.eup %11342  ;;  %v1477_v18 = vsel %vm1397_vm2, %v12942_v41, %v1461_v26  ;;  %v8432_v12 = vadd.f32 -1.0, %v11341_v39  ;;  %1964 = vadd.xlane.f32.xlu1 %v13020_v28  ;;  %15504 = vst [vmem:[#allocation56_spill] sm:$0xff] %v13057_v20  ;;  %v1494_v40 = vmul.f32 1.050701, %v1478_v29  ;;  %v13060_v26 = vsel %vm484_vm11, 1.0, %v15380_v57 }
 0x3a3   : > { %v13047_v49 = vadd.f32 %v9908_v1, %v13032_v22  ;;  %v1899_v19 = vpop.f32.mrb[29].mxu0  ;;  %v1493_v21 = vmul.f32 1.050701, %v1477_v18  ;;  %v8431_v38 = vadd.f32 -1.0, %v11343_v61  ;;  %15505 = vst [vmem:[#allocation57_spill] sm:$0xff] %v13060_v26  ;;  %vm487_vm2 = vcmp.eq.s32.totalorder %v12827_v5, %v12453_v24 }
 0x3a4   : > { %v13051_v4 = vadd.f32 %v13036_v0, %v1899_v19  ;;  %v1464_v41 = vmul.f32 1.6732632, %v8432_v12  ;;  %vm486_vm9 = vcmp.eq.s32.totalorder %v12814_v34, %v12453_v24  ;;  %vm1399_vm14 = vcmp.gt.f32.partialorder %v12967_v23, 0.0 }
 0x3a5   : > { %v1463_v39 = vmul.f32 1.6732632, %v8431_v38  ;;  %9859 = vmatprep.mubr.msk.f32.mxu1 %vm879_vm1, %v1493_v21  ;;  %v15506_v0 = vmov 0.0   ;;  %vm489_vm11 = vcmp.eq.s32.totalorder %v12845_v53, %v12453_v24 }
 0x3a6   : > { %v9911_v1 = vpop.f32.mrb[30].mxu0  ;;  %1966 = vadd.xlane.f32.xlu0 %v13051_v4  ;;  %v11345_v61 = vpop.eup %11344  ;;  %v1480_v29 = vsel %vm1400_vm5, %v12955_v36, %v1464_v41  ;;  %9860 = vmatmul.mubr.msk.f32.gmra.mrb[34].mxu1 %vm879_vm1, %v1494_v40  ;;  %v13084_v36 = vsel %vm487_vm2, 1.0, %v15506_v0  ;;  %vm488_vm5 = vcmp.eq.s32.totalorder %v12832_v11, %v12453_v24  ;;  %vm1401_vm2 = vcmp.gt.f32.partialorder %v12986_v17, 0.0 }
 0x3a7   : > { %v13073_v18 = vadd.f32 %v9911_v1, %v13057_v20  ;;  %1968 = vadd.xlane.f32.xlu1 %v13047_v49  ;;  %v1909_v12 = vpop.f32.mrb[31].mxu0  ;;  %v1479_v21 = vsel %vm1399_vm14, %v12967_v23, %v1463_v39  ;;  %v8434_v38 = vadd.f32 -1.0, %v11345_v61  ;;  %15507 = vst [vmem:[#allocation58_spill] sm:$0xff] %v13084_v36  ;;  %v13087_v1 = vsel %vm486_vm9, 1.0, %v15506_v0 }
 0x3a8   : > { %v11347_v19 = vpop.eup %11346  ;;  %v13078_v57 = vadd.f32 %v13060_v26, %v1909_v12  ;;  %v1495_v40 = vmul.f32 1.050701, %v1479_v21  ;;  %15508 = vst [vmem:[#allocation59_spill] sm:$0xff] %v13087_v1  ;;  %v1496_v20 = vmul.f32 1.050701, %v1480_v29  ;;  %vm1402_vm14 = vcmp.gt.f32.partialorder %v12982_v25, 0.0 }
 0x3a9   : > { %v8433_v41 = vadd.f32 -1.0, %v11347_v19  ;;  %v1466_v23 = vmul.f32 1.6732632, %v8434_v38  ;;  %v13110_v38 = vsel %vm489_vm11, 1.0, %v15506_v0  ;;  %vm491_vm9 = vcmp.eq.s32.totalorder %v12863_v16, %v12453_v24 }
 0x3aa   : > { %v9914_v39 = vpop.f32.mrb[32].mxu0  ;;  %1970 = vadd.xlane.f32.xlu0 %v13078_v57  ;;  %9862 = vmatprep.mubr.msk.f32.mxu1 %vm879_vm1, %v1495_v40  ;;  %15509 = vst [vmem:[#allocation60_spill] sm:$0xff] %v13110_v38  ;;  %vm493_vm11 = vcmp.eq.s32.totalorder %v12881_v35, %v12453_v24 }
 0x3ab   : > { %v1465_v61 = vmul.f32 1.6732632, %v8433_v41  ;;  %v13097_v12 = vadd.f32 %v9914_v39, %v13084_v36  ;;  %1972 = vadd.xlane.f32.xlu1 %v13073_v18  ;;  %v1919_v19 = vpop.f32.mrb[33].mxu0  ;;  %v1482_v29 = vsel %vm1402_vm14, %v12982_v25, %v1466_v23  ;;  %9863 = vmatmul.mubr.msk.f32.gmra.mrb[36].mxu1 %vm879_vm1, %v1496_v20  ;;  %v13114_v41 = vsel %vm488_vm5, 1.0, %v15506_v0 }
 0x3ac   : > { %v13104_v21 = vadd.f32 %v13087_v1, %v1919_v19  ;;  %15510 = vst [vmem:[#allocation61_spill] sm:$0xff] %v13114_v41  ;;  %vm490_vm14 = vcmp.eq.s32.totalorder %v12850_v52, %v12453_v24  ;;  %v1498_v20 = vmul.f32 1.050701, %v1482_v29  ;;  %v13130_v19 = vsel %vm491_vm9, 1.0, %v15506_v0 }
 0x3ad   : > { %v1481_v40 = vsel %vm1401_vm2, %v12986_v17, %v1465_v61  ;;  %15511 = vst [vmem:[#allocation62_spill] sm:$0xff] %v13130_v19  ;;  %vm492_vm5 = vcmp.eq.s32.totalorder %v12868_v37, %v12453_v24 }
 0x3ae   : > { %v1497_v25 = vmul.f32 1.050701, %v1481_v40  ;;  %v9917_v23 = vpop.f32.mrb[34].mxu0  ;;  %1974 = vadd.xlane.f32.xlu0 %v13104_v21  ;;  %v13134_v40 = vsel %vm490_vm14, 1.0, %v15506_v0 }
 0x3af   : > { %v13122_v39 = vadd.f32 %v9917_v23, %v13110_v38  ;;  %1976 = vadd.xlane.f32.xlu1 %v13097_v12  ;;  %v1929_v17 = vpop.f32.mrb[35].mxu0  ;;  %15512 = vst [vmem:[#allocation63_spill] sm:$0xff] %v13134_v40 }
 0x3b0   : > { %9865 = vmatprep.mubr.msk.f32.mxu1 %vm879_vm1, %v1497_v25  ;;  %v13127_v61 = vadd.f32 %v13114_v41, %v1929_v17  ;;  %v13150_v17 = vsel %vm493_vm11, 1.0, %v15506_v0 }
 0x3b1   : > { %9866 = vmatmul.mubr.msk.f32.gmra.mrb[38].mxu1 %vm879_vm1, %v1498_v20  ;;  %15513 = vst [vmem:[#allocation64_spill] sm:$0xff] %v13150_v17 }
 0x3b2   : > { %9956 = vmatprep.mubr.f32.mxu1 %v13011_v8  ;;  %v9920_v29 = vpop.f32.mrb[36].mxu0  ;;  %1978 = vadd.xlane.f32.xlu0 %v13127_v61  ;;  %v13153_v8 = vsel %vm492_vm5, 1.0, %v15506_v0 }
 0x3b3   : > { %v13143_v25 = vadd.f32 %v9920_v29, %v13130_v19  ;;  %1980 = vadd.xlane.f32.xlu1 %v13122_v39  ;;  %v1939_v23 = vpop.f32.mrb[37].mxu0  ;;  %15514 = vst [vmem:[#allocation65_spill] sm:$0xff] %v13153_v8 }
 0x3b4   : > { %v13147_v20 = vadd.f32 %v13134_v40, %v1939_v23 }
 0x3b6   : > { %v9923_v41 = vpop.f32.mrb[38].mxu0  ;;  %1982 = vadd.xlane.f32.xlu0 %v13147_v20 }
 0x3b7   : > { %v13157_v38 = vadd.f32 %v9923_v41, %v13150_v17  ;;  %1984 = vadd.xlane.f32.xlu1 %v13143_v25  ;;  %v1949_v29 = vpop.f32.mrb[39].mxu0 }
 0x3b8   : > { %v13161_v19 = vadd.f32 %v13153_v8, %v1949_v29 }
 0x3ba   : > { %1986 = vadd.xlane.f32.xlu0 %v13161_v19 }
 0x3bb   : > { %1988 = vadd.xlane.f32.xlu1 %v13157_v38 }
 0x42a   : > { %v1961_v23 = vpop.xlane.xlu0 %1960 }
 0x42b   : > { %v1959_v40 = vpop.xlane.xlu1 %1958  ;;  %11348 = vrsqrt.f32 %v1961_v23 }
 0x42c   : > { %11350 = vrsqrt.f32 %v1959_v40 }
 0x42f   : > { %v1963_v1 = vpop.xlane.xlu0 %1962  ;;  %v1965_v36 = vpop.xlane.xlu1 %1964 }
 0x430   : > { %11352 = vrsqrt.f32 %v1963_v1 }
 0x431   : > { %11354 = vrsqrt.f32 %v1965_v36 }
 0x433   : > { %v1967_v26 = vpop.xlane.xlu0 %1966 }
 0x434   : > { %v1969_v22 = vpop.xlane.xlu1 %1968  ;;  %11356 = vrsqrt.f32 %v1967_v26 }
 0x435   : > { %11358 = vrsqrt.f32 %v1969_v22  ;;  %v13183_v53 = vpop.eup %11348 }
 0x437   : > { %v1971_v17 = vpop.xlane.xlu0 %1970 }
 0x438   : > { %v1973_v8 = vpop.xlane.xlu1 %1972 }
 0x43c   : > { %v1977_v36 = vpop.xlane.xlu1 %1976 }
 0x440   : > { %v1981_v34 = vpop.xlane.xlu1 %1980 }
 0x463   : > { %v9846_v41 = vpop.f32.mrb[24].mxu1 }
 0x464   : > { %v13168_v14 = vadd.f32 %v9846_v41, %v13165_v56  ;;  %v1622_v29 = vpop.f32.mrb[25].mxu1  ;;  %v1975_v41 = vpop.xlane.xlu0 %1974 }
 0x465   : > { %v13171_v15 = vadd.f32 %v13165_v56, %v1622_v29 }
 0x466   : > { %v1719_v35 = vmul.f32 1.442695, %v13168_v14  ;;  %vm1702_vm2 = vcmp.gt.f32.partialorder %v13168_v14, 0.0 }
 0x467   : > { %v1717_v37 = vmul.f32 1.442695, %v13171_v15  ;;  %v9849_v16 = vpop.f32.mrb[26].mxu1  ;;  %vm1701_vm9 = vcmp.gt.f32.partialorder %v13171_v15, 0.0 }
 0x468   : > { %11360 = vpow2.f32 %v1719_v35  ;;  %v13176_v40 = vadd.f32 %v9849_v16, %v13165_v56  ;;  %v1632_v23 = vpop.f32.mrb[27].mxu1 }
 0x469   : > { %11362 = vpow2.f32 %v1717_v37  ;;  %v13179_v1 = vadd.f32 %v13165_v56, %v1632_v23  ;;  %v13188_v37 = vpop.eup %11350 }
 0x46a   : > { %v1723_v29 = vmul.f32 1.442695, %v13176_v40  ;;  %11364 = vrsqrt.f32 %v1971_v17  ;;  %v13193_v23 = vpop.eup %11352  ;;  %vm1704_vm14 = vcmp.gt.f32.partialorder %v13176_v40, 0.0 }
 0x46b   : > { %v1721_v26 = vmul.f32 1.442695, %v13179_v1  ;;  %v9852_v52 = vpop.f32.mrb[28].mxu1  ;;  %11366 = vrsqrt.f32 %v1973_v8  ;;  %v13196_v11 = vpop.eup %11354  ;;  %vm1703_vm11 = vcmp.gt.f32.partialorder %v13179_v1, 0.0 }
 0x46c   : > { %11368 = vpow2.f32 %v1723_v29  ;;  %v13186_v16 = vadd.f32 %v9852_v52, %v13165_v56  ;;  %v1642_v35 = vpop.f32.mrb[29].mxu1  ;;  %v1979_v52 = vpop.xlane.xlu0 %1978 }
 0x46d   : > { %11370 = vpow2.f32 %v1721_v26  ;;  %v13191_v22 = vadd.f32 %v13165_v56, %v1642_v35  ;;  %v13199_v5 = vpop.eup %11356 }
 0x46e   : > { %v1727_v17 = vmul.f32 1.442695, %v13186_v16  ;;  %11372 = vrsqrt.f32 %v1975_v41  ;;  %v13204_v32 = vpop.eup %11358  ;;  %vm1706_vm5 = vcmp.gt.f32.partialorder %v13186_v16, 0.0 }
 0x46f   : > { %v1725_v8 = vmul.f32 1.442695, %v13191_v22  ;;  %v9855_v29 = vpop.f32.mrb[30].mxu1  ;;  %11374 = vrsqrt.f32 %v1977_v36 }
 0x470   : > { %11376 = vpow2.f32 %v1727_v17  ;;  %v13202_v26 = vadd.f32 %v9855_v29, %v13165_v56  ;;  %v1652_v35 = vpop.f32.mrb[31].mxu1 }
 0x471   : > { %11378 = vpow2.f32 %v1725_v8  ;;  %v13207_v41 = vadd.f32 %v13165_v56, %v1652_v35 }
 0x472   : > { %v11361_v10 = vpop.eup %11360  ;;  %v1731_v31 = vmul.f32 1.442695, %v13202_v26  ;;  %11380 = vrsqrt.f32 %v1979_v52 }
 0x473   : > { %v11363_v36 = vpop.eup %11362  ;;  %v8453_v33 = vadd.f32 -1.0, %v11361_v10  ;;  %v1729_v13 = vmul.f32 1.442695, %v13207_v41  ;;  %v9858_v17 = vpop.f32.mrb[32].mxu1  ;;  %11382 = vrsqrt.f32 %v1981_v34 }
 0x474   : > { %v13211_v29 = vpop.eup %11364  ;;  %v8452_v60 = vadd.f32 -1.0, %v11363_v36  ;;  %11384 = vpow2.f32 %v1731_v31  ;;  %v13214_v0 = vadd.f32 %v9858_v17, %v13165_v56  ;;  %v1662_v8 = vpop.f32.mrb[33].mxu1 }
 0x475   : > { %v13216_v35 = vpop.eup %11366  ;;  %v1766_v42 = vmul.f32 1.6732632, %v8453_v33  ;;  %11386 = vpow2.f32 %v1729_v13  ;;  %v13219_v52 = vadd.f32 %v13165_v56, %v1662_v8 }
 0x476   : > { %v11369_v10 = vpop.eup %11368  ;;  %v1765_v34 = vmul.f32 1.6732632, %v8452_v60  ;;  %v1735_v36 = vmul.f32 1.442695, %v13214_v0 }
 0x477   : > { %v11371_v31 = vpop.eup %11370  ;;  %v1782_v17 = vsel %vm1702_vm2, %v13168_v14, %v1766_v42  ;;  %v8455_v27 = vadd.f32 -1.0, %v11369_v10  ;;  %v1733_v33 = vmul.f32 1.442695, %v13219_v52  ;;  %vm1705_vm2 = vcmp.gt.f32.partialorder %v13191_v22, 0.0 }
 0x478   : > { %v13227_v13 = vpop.eup %11372  ;;  %v1798_v8 = vmul.f32 1.050701, %v1782_v17  ;;  %v1781_v43 = vsel %vm1701_vm9, %v13171_v15, %v1765_v34  ;;  %v8454_v9 = vadd.f32 -1.0, %v11371_v31  ;;  %11388 = vpow2.f32 %v1735_v36 }
 0x479   : > { %v13230_v24 = vpop.eup %11374  ;;  %v1797_v60 = vmul.f32 1.050701, %v1781_v43  ;;  %v1768_v6 = vmul.f32 1.6732632, %v8455_v27  ;;  %11390 = vpow2.f32 %v1733_v33  ;;  %v9861_v10 = vpop.f32.mrb[34].mxu1  ;;  %vm1708_vm9 = vcmp.gt.f32.partialorder %v13202_v26, 0.0 }
 0x47a   : > { %v11377_v42 = vpop.eup %11376  ;;  %v1767_v14 = vmul.f32 1.6732632, %v8454_v9  ;;  %v2023_v17 = vmul.f32 %v13183_v53, %v1798_v8  ;;  %v13240_v43 = vadd.f32 %v9861_v10, %v13165_v56  ;;  %v1672_v27 = vpop.f32.mrb[35].mxu1 }
 0x47b   : > { %v11379_v2 = vpop.eup %11378  ;;  %v1784_v15 = vsel %vm1704_vm14, %v13176_v40, %v1768_v6  ;;  %v8457_v34 = vadd.f32 -1.0, %v11377_v42  ;;  %v2022_v36 = vmul.f32 %v13188_v37, %v1797_v60  ;;  %v13249_v62 = vadd.f32 %v13165_v56, %v1672_v27 }
 0x47c   : > { %v13243_v9 = vpop.eup %11380  ;;  %v1800_v31 = vmul.f32 1.050701, %v1784_v15  ;;  %v1783_v33 = vsel %vm1703_vm11, %v13179_v1, %v1767_v14  ;;  %v8456_v8 = vadd.f32 -1.0, %v11379_v2  ;;  %vm1707_vm14 = vcmp.gt.f32.partialorder %v13207_v41, 0.0 }
 0x47d   : > { %v13251_v58 = vpop.eup %11382  ;;  %v1799_v6 = vmul.f32 1.050701, %v1783_v33  ;;  %v1770_v40 = vmul.f32 1.6732632, %v8457_v34  ;;  %v10786_v42 = vpack.c.bf16 %v2023_v17, %v2022_v36  ;;  %v1739_v15 = vmul.f32 1.442695, %v13240_v43 }
 0x47e   : > { %v11385_v10 = vpop.eup %11384  ;;  %v1769_v60 = vmul.f32 1.6732632, %v8456_v8  ;;  %v2025_v55 = vmul.f32 %v13196_v11, %v1800_v31  ;;  %v1737_v27 = vmul.f32 1.442695, %v13249_v62  ;;  %v9864_v34 = vpop.f32.mrb[36].mxu1  ;;  %vm1710_vm11 = vcmp.gt.f32.partialorder %v13214_v0, 0.0 }
 0x47f   : > { %v11387_v1 = vpop.eup %11386  ;;  %v1786_v2 = vsel %vm1706_vm5, %v13186_v16, %v1770_v40  ;;  %v8459_v14 = vadd.f32 -1.0, %v11385_v10  ;;  %10787 = vmatprep.subr.bf16.mxu1 %v10786_v42  ;;  %v2024_v17 = vmul.f32 %v13193_v23, %v1799_v6  ;;  %11392 = vpow2.f32 %v1739_v15  ;;  %v1682_v31 = vpop.f32.mrb[37].mxu1 }
 0x480   : > { %v1802_v36 = vmul.f32 1.050701, %v1786_v2  ;;  %v1785_v33 = vsel %vm1705_vm2, %v13191_v22, %v1769_v60  ;;  %v8458_v8 = vadd.f32 -1.0, %v11387_v1  ;;  %10789 = vmatpush3.bf16.msra.mxu1 %v10786_v42  ;;  %11394 = vpow2.f32 %v1737_v27 }
 0x481   : > { %v1772_v54 = vmul.f32 1.6732632, %v8459_v14  ;;  %v13267_v16 = vadd.f32 %v9864_v34, %v13165_v56  ;;  %v1801_v10 = vmul.f32 1.050701, %v1785_v33  ;;  %v13270_v6 = vadd.f32 %v13165_v56, %v1682_v31  ;;  %v1985_v31 = vpop.xlane.xlu1 %1984 }
 0x482   : > { %v11389_v40 = vpop.eup %11388  ;;  %v1771_v7 = vmul.f32 1.6732632, %v8458_v8  ;;  %v10790_v2 = vpack.c.bf16 %v2025_v55, %v2024_v17  ;;  %vm1709_vm5 = vcmp.gt.f32.partialorder %v13219_v52, 0.0  ;;  %v2027_v55 = vmul.f32 %v13204_v32, %v1802_v36  ;;  %v1983_v36 = vpop.xlane.xlu0 %1982 }
 0x483   : > { %v11391_v51 = vpop.eup %11390  ;;  %v1788_v22 = vsel %vm1708_vm9, %v13202_v26, %v1772_v54  ;;  %v8461_v42 = vadd.f32 -1.0, %v11389_v40  ;;  %v1743_v60 = vmul.f32 1.442695, %v13267_v16  ;;  %v1741_v54 = vmul.f32 1.442695, %v13270_v6 }
 0x484   : > { %v1804_v15 = vmul.f32 1.050701, %v1788_v22  ;;  %v1787_v1 = vsel %vm1707_vm14, %v13207_v41, %v1771_v7  ;;  %v8460_v14 = vadd.f32 -1.0, %v11391_v51  ;;  %v9867_v27 = vpop.f32.mrb[38].mxu1  ;;  %10791 = vmatprep.subr.bf16.mxu1 %v10790_v2  ;;  %v2026_v40 = vmul.f32 %v13199_v5, %v1801_v10 }
 0x485   : > { %v1803_v34 = vmul.f32 1.050701, %v1787_v1  ;;  %v1774_v17 = vmul.f32 1.6732632, %v8461_v42  ;;  %11396 = vpow2.f32 %v1743_v60  ;;  %10793 = vmatpush3.bf16.msra.mxu1 %v10790_v2  ;;  %v13283_v33 = vadd.f32 %v9867_v27, %v13165_v56  ;;  %v1692_v8 = vpop.f32.mrb[39].mxu1 }
 0x486   : > { %v1773_v26 = vmul.f32 1.6732632, %v8460_v14  ;;  %v2029_v51 = vmul.f32 %v13216_v35, %v1804_v15  ;;  %11398 = vpow2.f32 %v1741_v54  ;;  %v13291_v41 = vadd.f32 %v13165_v56, %v1692_v8  ;;  %v1987_v8 = vpop.xlane.xlu0 %1986 }
 0x487   : > { %v1790_v7 = vsel %vm1710_vm11, %v13214_v0, %v1774_v17  ;;  %v2028_v2 = vmul.f32 %v13211_v29, %v1803_v34  ;;  %v1747_v10 = vmul.f32 1.442695, %v13283_v33  ;;  %11400 = vrsqrt.f32 %v1985_v31 }
 0x488   : > { %v1806_v22 = vmul.f32 1.050701, %v1790_v7  ;;  %v1789_v42 = vsel %vm1709_vm5, %v13219_v52, %v1773_v26  ;;  %v1745_v15 = vmul.f32 1.442695, %v13291_v41  ;;  %v10794_v1 = vpack.c.bf16 %v2027_v55, %v2026_v40  ;;  %v1989_v52 = vpop.xlane.xlu1 %1988 }
 0x489   : > { %v1805_v60 = vmul.f32 1.050701, %v1789_v42  ;;  %v11393_v0 = vpop.eup %11392  ;;  %11402 = vpow2.f32 %v1747_v10  ;;  %v10798_v14 = vpack.c.bf16 %v2029_v51, %v2028_v2  ;;  %vm1712_vm2 = vcmp.gt.f32.partialorder %v13240_v43, 0.0 }
 0x48a   : > { %v2031_v56 = vmul.f32 %v13230_v24, %v1806_v22  ;;  %v11395_v27 = vpop.eup %11394  ;;  %v8463_v17 = vadd.f32 -1.0, %v11393_v0  ;;  %11404 = vpow2.f32 %v1745_v15  ;;  %10795 = vmatprep.subr.bf16.mxu1 %v10794_v1  ;;  %vm1711_vm9 = vcmp.gt.f32.partialorder %v13249_v62, 0.0 }
 0x48b   : > { %v2030_v34 = vmul.f32 %v13227_v13, %v1805_v60  ;;  %v8462_v54 = vadd.f32 -1.0, %v11395_v27  ;;  %11406 = vrsqrt.f32 %v1983_v36  ;;  %10797 = vmatpush3.bf16.msra.mxu1 %v10794_v1  ;;  %vm1714_vm14 = vcmp.gt.f32.partialorder %v13267_v16, 0.0 }
 0x48c   : > { %v1776_v26 = vmul.f32 1.6732632, %v8463_v17  ;;  %10799 = vmatprep.subr.bf16.mxu1 %v10798_v14  ;;  %11408 = vrsqrt.f32 %v1989_v52  ;;  %vm1713_vm11 = vcmp.gt.f32.partialorder %v13270_v6, 0.0  ;;  %vm1716_vm5 = vcmp.gt.f32.partialorder %v13283_v33, 0.0 }
 0x48d   : > { %v10802_v31 = vpack.c.bf16 %v2031_v56, %v2030_v34  ;;  %v1775_v55 = vmul.f32 1.6732632, %v8462_v54  ;;  %11410 = vrsqrt.f32 %v1987_v8 }
 0x48e   : > { %v1792_v51 = vsel %vm1712_vm2, %v13240_v43, %v1776_v26  ;;  %vm1715_vm2 = vcmp.gt.f32.partialorder %v13291_v41, 0.0 }
 0x48f   : > { %v11397_v40 = vpop.eup %11396  ;;  %v1808_v7 = vmul.f32 1.050701, %v1792_v51  ;;  %v1791_v2 = vsel %vm1711_vm9, %v13249_v62, %v1775_v55  ;;  %10801 = vmatpush3.bf16.msra.mxu1 %v10798_v14  ;;  %vm2727_vm9 = vcmask 1041408  }
 0x490   : > { %v8465_v22 = vadd.f32 -1.0, %v11397_v40  ;;  %v11399_v36 = vpop.eup %11398  ;;  %v1807_v42 = vmul.f32 1.050701, %v1791_v2  ;;  %10803 = vmatprep.subr.bf16.mxu1 %v10802_v31 }
 0x491   : > { %v8464_v60 = vadd.f32 -1.0, %v11399_v36  ;;  %v2033_v15 = vmul.f32 %v13251_v58, %v1808_v7  ;;  %v13306_v1 = vpop.eup %11400 }
 0x492   : > { %v1778_v10 = vmul.f32 1.6732632, %v8465_v22  ;;  %v2032_v43 = vmul.f32 %v13243_v9, %v1807_v42 }
 0x493   : > { %v11403_v0 = vpop.eup %11402  ;;  %v1777_v62 = vmul.f32 1.6732632, %v8464_v60  ;;  %10805 = vmatpush3.bf16.msra.mxu1 %v10802_v31 }
 0x494   : > { %v1794_v56 = vsel %vm1714_vm14, %v13267_v16, %v1778_v10  ;;  %v11405_v27 = vpop.eup %11404  ;;  %v8467_v17 = vadd.f32 -1.0, %v11403_v0  ;;  %v10806_v34 = vpack.c.bf16 %v2033_v15, %v2032_v43  ;;  %v2362_v43 = vld [vmem:[#allocation4 + $0x98] sm:$0xff] }
 0x495   : > { %v1810_v14 = vmul.f32 1.050701, %v1794_v56  ;;  %v13312_v54 = vpop.eup %11406  ;;  %v1793_v52 = vsel %vm1713_vm11, %v13270_v6, %v1777_v62  ;;  %v8466_v26 = vadd.f32 -1.0, %v11405_v27  ;;  %v2363_v56 = vld [vmem:[#allocation4 + $0xa0] sm:$0xff]  ;;  %v2007_v27 = vmul.f32 %v13183_v53, %v13183_v53 }
 0x496   : > { %v1809_v8 = vmul.f32 1.050701, %v1793_v52  ;;  %v1780_v55 = vmul.f32 1.6732632, %v8467_v17  ;;  %10807 = vmatprep.subr.bf16.mxu1 %v10806_v34  ;;  %v13317_v31 = vpop.eup %11408  ;;  %v10854_v62 = vpack.c.bf16 %v2363_v56, %v2362_v43  ;;  %v2006_v17 = vmul.f32 %v13188_v37, %v13188_v37 }
 0x497   : > { %v2035_v40 = vmul.f32 %v13306_v1, %v1810_v14  ;;  %v1779_v16 = vmul.f32 1.6732632, %v8466_v26  ;;  %10809 = vmatpush3.bf16.msra.mxu1 %v10806_v34  ;;  %v13322_v2 = vpop.eup %11410  ;;  %v2012_v56 = vmul.f32 %v13211_v29, %v13211_v29 }
 0x498   : > { %v1796_v51 = vsel %vm1716_vm5, %v13283_v33, %v1780_v55  ;;  %v2034_v7 = vmul.f32 %v13312_v54, %v1809_v8  ;;  %v2360_v33 = vld [vmem:[#allocation4 + $0x88] sm:$0xff]  ;;  %v2009_v8 = vmul.f32 %v13196_v11, %v13196_v11  ;;  %vm2678_vm5 = vcmask 15360  }
 0x499   : > { %v1812_v6 = vmul.f32 1.050701, %v1796_v51  ;;  %v1795_v22 = vsel %vm1715_vm2, %v13291_v41, %v1779_v16  ;;  %v2361_v41 = vld [vmem:[#allocation4 + $0x90] sm:$0xff]  ;;  %v2008_v16 = vmul.f32 %v13193_v23, %v13193_v23 }
 0x49a   : > { %v1811_v36 = vmul.f32 1.050701, %v1795_v22  ;;  %v10810_v42 = vpack.c.bf16 %v2035_v40, %v2034_v7  ;;  %v10850_v0 = vpack.c.bf16 %v2361_v41, %v2360_v33  ;;  %v2011_v22 = vmul.f32 %v13204_v32, %v13204_v32 }
 0x49b   : > { %v2037_v10 = vmul.f32 %v13317_v31, %v1812_v6  ;;  %v2013_v41 = vmul.f32 %v13216_v35, %v13216_v35 }
 0x49c   : > { %10811 = vmatprep.subr.bf16.mxu1 %v10810_v42  ;;  %v2036_v60 = vmul.f32 %v13322_v2, %v1811_v36 }
 0x49d   : > { %10813 = vmatpush3.bf16.msra.mxu1 %v10810_v42 }
 0x49e   : > { %v10814_v15 = vpack.c.bf16 %v2037_v10, %v2036_v60  ;;  %v2010_v10 = vmul.f32 %v13199_v5, %v13199_v5 }
 0x4a0   : > { %10815 = vmatprep.subr.bf16.mxu1 %v10814_v15 }
 0x4a1   : > { %10817 = vmatpush3.bf16.msra.mxu1 %v10814_v15 }
 0x4a2   : > { %10851 = vmatprep.subr.bf16.mxu1 %v10850_v0 }
 0x4a4   : > { %9957 = vmatmul.mubr.f32.vlgmr.msra.gmra.mrb[40].mxu1 %v12993_v30 }
 0x4a5   : > { %9959 = vmatprep.mubr.f32.mxu1 %v13026_v48  ;;  %10853 = vmatpush3.bf16.msra.mxu1 %v10850_v0 }
 0x4a6   : > { %10855 = vmatprep.subr.bf16.mxu1 %v10854_v62 }
 0x4a8   : > { %9960 = vmatmul.mubr.f32.gmra.mrb[42].mxu1 %v13020_v28 }
 0x4a9   : > { %9962 = vmatprep.mubr.f32.mxu1 %v13051_v4  ;;  %10857 = vmatpush3.bf16.msra.mxu1 %v10854_v62 }
 0x4ac   : > { %9963 = vmatmul.mubr.f32.gmra.mrb[44].mxu1 %v13047_v49 }
 0x4ad   : > { %9965 = vmatprep.mubr.f32.mxu1 %v13078_v57 }
 0x4b0   : > { %9966 = vmatmul.mubr.f32.gmra.mrb[46].mxu1 %v13073_v18 }
 0x4b1   : > { %9968 = vmatprep.mubr.f32.mxu1 %v13104_v21 }
 0x4b4   : > { %9969 = vmatmul.mubr.f32.gmra.mrb[48].mxu1 %v13097_v12 }
 0x4b5   : > { %9971 = vmatprep.mubr.f32.mxu1 %v13127_v61 }
 0x4b8   : > { %9972 = vmatmul.mubr.f32.gmra.mrb[50].mxu1 %v13122_v39 }
 0x4b9   : > { %9974 = vmatprep.mubr.f32.mxu1 %v13147_v20 }
 0x4bc   : > { %9975 = vmatmul.mubr.f32.gmra.mrb[52].mxu1 %v13143_v25 }
 0x4bd   : > { %9977 = vmatprep.mubr.f32.mxu1 %v13161_v19 }
 0x4c0   : > { %9978 = vmatmul.mubr.f32.gmra.mrb[54].mxu1 %v13157_v38 }
 0x577   : > { %v9958_v14 = vpop.f32.mrb[40].mxu1 }
 0x578   : > { %v2184_v34 = vmul.f32 %v9958_v14, %v2007_v27  ;;  %v2104_v52 = vpop.f32.mrb[41].mxu1 }
 0x579   : > { %v2183_v26 = vmul.f32 %v2104_v52, %v2006_v17  ;;  %v2015_v17 = vmul.f32 %v13230_v24, %v13230_v24 }
 0x57b   : > { %v10818_v55 = vpack.c.bf16 %v2184_v34, %v2183_v26  ;;  %v9961_v40 = vpop.f32.mrb[42].mxu1  ;;  %v2014_v26 = vmul.f32 %v13227_v13, %v13227_v13 }
 0x57c   : > { %v2186_v51 = vmul.f32 %v9961_v40, %v2009_v8  ;;  %v2114_v7 = vpop.f32.mrb[43].mxu1 }
 0x57d   : > { %v2185_v6 = vmul.f32 %v2114_v7, %v2008_v16  ;;  %10819 = vmatprep.subr.bf16.mxu0 %v10818_v55  ;;  %v2017_v16 = vmul.f32 %v13251_v58, %v13251_v58 }
 0x57e   : > { %10821 = vmatpush3.bf16.msra.mxu0 %v10818_v55 }
 0x57f   : > { %v10822_v36 = vpack.c.bf16 %v2186_v51, %v2185_v6  ;;  %v9964_v42 = vpop.f32.mrb[44].mxu1  ;;  %v2016_v6 = vmul.f32 %v13243_v9, %v13243_v9 }
 0x580   : > { %v2188_v60 = vmul.f32 %v9964_v42, %v2011_v22  ;;  %v2124_v15 = vpop.f32.mrb[45].mxu1 }
 0x581   : > { %v2187_v33 = vmul.f32 %v2124_v15, %v2010_v10  ;;  %10823 = vmatprep.subr.bf16.mxu0 %v10822_v36  ;;  %v2019_v10 = vmul.f32 %v13306_v1, %v13306_v1 }
 0x582   : > { %10825 = vmatpush3.bf16.msra.mxu0 %v10822_v36 }
 0x583   : > { %v10826_v43 = vpack.c.bf16 %v2188_v60, %v2187_v33  ;;  %v9967_v0 = vpop.f32.mrb[46].mxu1  ;;  %v2018_v33 = vmul.f32 %v13312_v54, %v13312_v54 }
 0x584   : > { %v2190_v62 = vmul.f32 %v9967_v0, %v2013_v41  ;;  %v2134_v27 = vpop.f32.mrb[47].mxu1 }
 0x585   : > { %v2189_v14 = vmul.f32 %v2134_v27, %v2012_v56  ;;  %10827 = vmatprep.subr.bf16.mxu0 %v10826_v43  ;;  %v2021_v56 = vmul.f32 %v13317_v31, %v13317_v31 }
 0x586   : > { %10829 = vmatpush3.bf16.msra.mxu0 %v10826_v43 }
 0x587   : > { %v10830_v34 = vpack.c.bf16 %v2190_v62, %v2189_v14  ;;  %v9970_v52 = vpop.f32.mrb[48].mxu1  ;;  %v2020_v14 = vmul.f32 %v13322_v2, %v13322_v2 }
 0x588   : > { %v2192_v8 = vmul.f32 %v9970_v52, %v2015_v17  ;;  %v2144_v55 = vpop.f32.mrb[49].mxu1 }
 0x589   : > { %v2191_v40 = vmul.f32 %v2144_v55, %v2014_v26  ;;  %10831 = vmatprep.subr.bf16.mxu0 %v10830_v34 }
 0x58a   : > { %10833 = vmatpush3.bf16.msra.mxu0 %v10830_v34 }
 0x58b   : > { %v10834_v51 = vpack.c.bf16 %v2192_v8, %v2191_v40  ;;  %v9973_v7 = vpop.f32.mrb[50].mxu1 }
 0x58c   : > { %v2194_v22 = vmul.f32 %v9973_v7, %v2017_v16  ;;  %v2154_v36 = vpop.f32.mrb[51].mxu1 }
 0x58d   : > { %v2193_v42 = vmul.f32 %v2154_v36, %v2016_v6  ;;  %10835 = vmatprep.subr.bf16.mxu0 %v10834_v51 }
 0x58e   : > { %10837 = vmatpush3.bf16.msra.mxu0 %v10834_v51 }
 0x58f   : > { %v10838_v60 = vpack.c.bf16 %v2194_v22, %v2193_v42  ;;  %v9976_v15 = vpop.f32.mrb[52].mxu1  ;;  %v12031_v22 = vmov 17  }
 0x590   : > { %v2196_v41 = vmul.f32 %v9976_v15, %v2019_v10  ;;  %v2164_v43 = vpop.f32.mrb[53].mxu1  ;;  %11207 = vset.pattern.permute.xlu1 %v12031_v22  ;;  %11206 = vset.pattern.permute.xlu0 %v12031_v22 }
 0x591   : > { %v2195_v0 = vmul.f32 %v2164_v43, %v2018_v33  ;;  %10839 = vmatprep.subr.bf16.mxu0 %v10838_v60  ;;  %317 = vperm.xlu1 %11207, %v12284_v44   ;;  %v15518_v44 = vld [vmem:[#allocation10_spill] sm:$0xff] }
 0x592   : > { %10841 = vmatpush3.bf16.msra.mxu0 %v10838_v60  ;;  %314 = vperm.xlu0 %11206, %v12286_v45   ;;  %v15519_v45 = vld [vmem:[#allocation11_spill] sm:$0xff] }
 0x593   : > { %v10842_v62 = vpack.c.bf16 %v2196_v41, %v2195_v0  ;;  %v9979_v27 = vpop.f32.mrb[54].mxu1 }
 0x594   : > { %v2198_v17 = vmul.f32 %v9979_v27, %v2021_v56  ;;  %v2174_v34 = vpop.f32.mrb[55].mxu1 }
 0x595   : > { %v2197_v52 = vmul.f32 %v2174_v34, %v2020_v14  ;;  %10843 = vmatprep.subr.bf16.mxu0 %v10842_v62  ;;  %320 = vperm.xlu1 %11207, %v12290_v46   ;;  %v15520_v46 = vld [vmem:[#allocation12_spill] sm:$0xff] }
 0x596   : > { %10845 = vmatpush3.bf16.msra.mxu0 %v10842_v62  ;;  %341 = vperm.xlu0 %11206, %v12316_v59   ;;  %v15521_v59 = vld [vmem:[#allocation13_spill] sm:$0xff] }
 0x597   : > { %v10846_v26 = vpack.c.bf16 %v2198_v17, %v2197_v52 }
 0x599   : > { %10847 = vmatprep.subr.bf16.mxu0 %v10846_v26  ;;  %323 = vperm.xlu1 %11207, %v12292_v47   ;;  %v15522_v47 = vld [vmem:[#allocation14_spill] sm:$0xff] }
 0x59a   : > { %10849 = vmatpush3.bf16.msra.mxu0 %v10846_v26  ;;  %347 = vperm.xlu0 %11206, %v12324_v63   ;;  %v13437_v63 = vld [vmem:[#allocation4 + $0xa8] ss:$0 sm:$0xff] }
 0x59d   : > { %10013 = vmatmul.mubr.f32.vlgmr.msra.gmra.mrb[40].mxu0 %v12993_v30  ;;  %v2675_v30 = vld [vmem:[#allocation4 + $0xb2] sm:$0x3]  ;;  %326 = vperm.xlu1 %11207, %v12298_v50  }
 0x59e   : > { %10015 = vmatprep.mubr.f32.mxu0 %v13026_v48  ;;  %10094 = vmatprep.subr.msk.mxu1 %vm2727_vm9, %v2675_v30 }
 0x59f   : > { %353 = vperm.xlu0 %11206, %v12332_v3  }
 0x5a1   : > { %10016 = vmatmul.mubr.f32.gmra.mrb[42].mxu0 %v13020_v28 }
 0x5a2   : > { %10018 = vmatprep.mubr.f32.mxu0 %v13051_v4 }
 0x5a5   : > { %10019 = vmatmul.mubr.f32.gmra.mrb[44].mxu0 %v13047_v49 }
 0x5a6   : > { %10021 = vmatprep.mubr.f32.mxu0 %v13078_v57  ;;  %v2674_v57 = vld [vmem:[#allocation4 + $0xb0] sm:$0x3] }
 0x5a7   : > { %10068 = vmatprep.subr.msk.mxu0 %vm2727_vm9, %v2674_v57 }
 0x5a8   : > { %10069 = vmatpush3.msk.msra.mxu0 %vm2727_vm9, %v2674_v57 }
 0x5a9   : > { %10022 = vmatmul.mubr.f32.gmra.mrb[46].mxu0 %v13073_v18 }
 0x5aa   : > { %10024 = vmatprep.mubr.f32.mxu0 %v13104_v21 }
 0x5ad   : > { %10025 = vmatmul.mubr.f32.gmra.mrb[48].mxu0 %v13097_v12 }
 0x5ae   : > { %10027 = vmatprep.mubr.f32.mxu0 %v13127_v61 }
 0x5b1   : > { %10028 = vmatmul.mubr.f32.gmra.mrb[50].mxu0 %v13122_v39 }
 0x5b2   : > { %10030 = vmatprep.mubr.f32.mxu0 %v13147_v20 }
 0x5b5   : > { %10031 = vmatmul.mubr.f32.gmra.mrb[52].mxu0 %v13143_v25 }
 0x5b6   : > { %10033 = vmatprep.mubr.f32.mxu0 %v13161_v19 }
 0x5b9   : > { %10034 = vmatmul.mubr.f32.gmra.mrb[54].mxu0 %v13157_v38 }
 0x670   : > { %v10014_v28 = vpop.f32.mrb[40].mxu0 }
 0x671   : > { %v2265_v48 = vpop.f32.mrb[41].mxu0  ;;  %v2345_v4 = vmul.f32 %v13183_v53, %v10014_v28 }
 0x672   : > { %v2344_v49 = vmul.f32 %v13188_v37, %v2265_v48 }
 0x674   : > { %v10017_v18 = vpop.f32.mrb[42].mxu0  ;;  %10044 = vmatprep.mubr.msk.f32.mxu1 %vm879_vm1, %v2344_v49 }
 0x675   : > { %v2275_v12 = vpop.f32.mrb[43].mxu0  ;;  %10045 = vmatmul.mubr.msk.f32.vlgmr.msra.gmra.mrb[56].mxu1 %vm879_vm1, %v2345_v4  ;;  %v2347_v38 = vmul.f32 %v13196_v11, %v10017_v18 }
 0x676   : > { %v2346_v21 = vmul.f32 %v13193_v23, %v2275_v12  ;;  %10095 = vmatpush3.msk.msra.mxu1 %vm2727_vm9, %v2675_v30 }
 0x678   : > { %v10020_v39 = vpop.f32.mrb[44].mxu0  ;;  %10047 = vmatprep.mubr.msk.f32.mxu1 %vm879_vm1, %v2346_v21 }
 0x679   : > { %v2285_v61 = vpop.f32.mrb[45].mxu0  ;;  %10048 = vmatmul.mubr.msk.f32.gmra.mrb[58].mxu1 %vm879_vm1, %v2347_v38  ;;  %v2349_v53 = vmul.f32 %v13204_v32, %v10020_v39 }
 0x67a   : > { %v2348_v19 = vmul.f32 %v13199_v5, %v2285_v61 }
 0x67c   : > { %v10023_v25 = vpop.f32.mrb[46].mxu0  ;;  %10050 = vmatprep.mubr.msk.f32.mxu1 %vm879_vm1, %v2348_v19 }
 0x67d   : > { %v2295_v20 = vpop.f32.mrb[47].mxu0  ;;  %10051 = vmatmul.mubr.msk.f32.gmra.mrb[60].mxu1 %vm879_vm1, %v2349_v53  ;;  %v2351_v11 = vmul.f32 %v13216_v35, %v10023_v25 }
 0x67e   : > { %v2350_v37 = vmul.f32 %v13211_v29, %v2295_v20 }
 0x680   : > { %v10026_v23 = vpop.f32.mrb[48].mxu0  ;;  %10053 = vmatprep.mubr.msk.f32.mxu1 %vm879_vm1, %v2350_v37 }
 0x681   : > { %v2305_v8 = vpop.f32.mrb[49].mxu0  ;;  %10054 = vmatmul.mubr.msk.f32.gmra.mrb[62].mxu1 %vm879_vm1, %v2351_v11  ;;  %v2353_v32 = vmul.f32 %v13230_v24, %v10026_v23 }
 0x682   : > { %v2352_v5 = vmul.f32 %v13227_v13, %v2305_v8 }
 0x684   : > { %v10029_v55 = vpop.f32.mrb[50].mxu0  ;;  %10056 = vmatprep.mubr.msk.f32.mxu1 %vm879_vm1, %v2352_v5 }
 0x685   : > { %v2315_v40 = vpop.f32.mrb[51].mxu0  ;;  %10057 = vmatmul.mubr.msk.f32.gmra.mrb[64].mxu1 %vm879_vm1, %v2353_v32  ;;  %v2355_v35 = vmul.f32 %v13251_v58, %v10029_v55 }
 0x686   : > { %v2354_v29 = vmul.f32 %v13243_v9, %v2315_v40 }
 0x688   : > { %v10032_v16 = vpop.f32.mrb[52].mxu0  ;;  %10059 = vmatprep.mubr.msk.f32.mxu1 %vm879_vm1, %v2354_v29 }
 0x689   : > { %v2325_v51 = vpop.f32.mrb[53].mxu0  ;;  %10060 = vmatmul.mubr.msk.f32.gmra.mrb[66].mxu1 %vm879_vm1, %v2355_v35  ;;  %v2357_v24 = vmul.f32 %v13306_v1, %v10032_v16  ;;  %v15515_v1 = vld [vmem:[#allocation8_spill] sm:$0xff] }
 0x68a   : > { %v2356_v13 = vmul.f32 %v13312_v54, %v2325_v51  ;;  %329 = vperm.xlu1 %11207, %v15515_v1   ;;  %v15516_v54 = vld [vmem:[#allocation15_spill] sm:$0xff] }
 0x68b   : > { %359 = vperm.xlu0 %11206, %v15516_v54  }
 0x68c   : > { %v10035_v7 = vpop.f32.mrb[54].mxu0  ;;  %10062 = vmatprep.mubr.msk.f32.mxu1 %vm879_vm1, %v2356_v13 }
 0x68d   : > { %v2335_v6 = vpop.f32.mrb[55].mxu0  ;;  %10063 = vmatmul.mubr.msk.f32.gmra.mrb[68].mxu1 %vm879_vm1, %v2357_v24  ;;  %v2359_v58 = vmul.f32 %v13317_v31, %v10035_v7  ;;  %v15517_v31 = vld [vmem:[#allocation9_spill] sm:$0xff] }
 0x68e   : > { %v2358_v9 = vmul.f32 %v13322_v2, %v2335_v6  ;;  %332 = vperm.xlu1 %11207, %v15517_v31  }
 0x690   : > { %10065 = vmatprep.mubr.msk.f32.mxu1 %vm879_vm1, %v2358_v9 }
 0x691   : > { %10066 = vmatmul.mubr.msk.f32.gmra.mrb[70].mxu1 %vm879_vm1, %v2359_v58 }
 0x692   : > { %335 = vperm.xlu1 %11207, %v15518_v44  }
 0x696   : > { %338 = vperm.xlu1 %11207, %v15519_v45  }
 0x69a   : > { %344 = vperm.xlu1 %11207, %v15520_v46  }
 0x69e   : > { %350 = vperm.xlu1 %11207, %v15521_v59  }
 0x6a2   : > { %356 = vperm.xlu1 %11207, %v15522_v47  }
 0x748   : > { %v10046_v50 = vpop.f32.mrb[56].mxu1 }
 0x749   : > { %v2489_v3 = vadd.f32 %v10046_v50, %v13437_v63  ;;  %v2483_v2 = vpop.f32.mrb[57].mxu1 }
 0x74a   : > { %v2484_v36 = vadd.f32 %v13437_v63, %v2483_v2 }
 0x74b   : > { %v2580_v42 = vmul.f32 1.442695, %v2489_v3  ;;  %vm2563_vm14 = vcmp.gt.f32.partialorder %v2489_v3, 0.0 }
 0x74c   : > { %v2578_v10 = vmul.f32 1.442695, %v2484_v36  ;;  %v10049_v60 = vpop.f32.mrb[58].mxu1  ;;  %vm2562_vm11 = vcmp.gt.f32.partialorder %v2484_v36, 0.0 }
 0x74d   : > { %11412 = vpow2.f32 %v2580_v42  ;;  %v2499_v15 = vadd.f32 %v10049_v60, %v13437_v63  ;;  %v2493_v33 = vpop.f32.mrb[59].mxu1 }
 0x74e   : > { %11414 = vpow2.f32 %v2578_v10  ;;  %v13443_v41 = vadd.f32 %v13437_v63, %v2493_v33 }
 0x74f   : > { %v2584_v43 = vmul.f32 1.442695, %v2499_v15  ;;  %vm2565_vm2 = vcmp.gt.f32.partialorder %v2499_v15, 0.0 }
 0x750   : > { %v2582_v0 = vmul.f32 1.442695, %v13443_v41  ;;  %v10052_v56 = vpop.f32.mrb[60].mxu1  ;;  %vm2564_vm9 = vcmp.gt.f32.partialorder %v13443_v41, 0.0 }
 0x751   : > { %11416 = vpow2.f32 %v2584_v43  ;;  %v13447_v62 = vadd.f32 %v10052_v56, %v13437_v63  ;;  %v2503_v27 = vpop.f32.mrb[61].mxu1 }
 0x752   : > { %11418 = vpow2.f32 %v2582_v0  ;;  %v13450_v14 = vadd.f32 %v13437_v63, %v2503_v27 }
 0x753   : > { %v2588_v17 = vmul.f32 1.442695, %v13447_v62 }
 0x754   : > { %v2586_v34 = vmul.f32 1.442695, %v13450_v14  ;;  %v10055_v52 = vpop.f32.mrb[62].mxu1 }
 0x755   : > { %11420 = vpow2.f32 %v2588_v17  ;;  %v13455_v26 = vadd.f32 %v10055_v52, %v13437_v63  ;;  %v2513_v30 = vpop.f32.mrb[63].mxu1 }
 0x756   : > { %11422 = vpow2.f32 %v2586_v34  ;;  %v13458_v57 = vadd.f32 %v13437_v63, %v2513_v30 }
 0x757   : > { %v11413_v28 = vpop.eup %11412  ;;  %v2592_v48 = vmul.f32 1.442695, %v13455_v26 }
 0x758   : > { %v11415_v49 = vpop.eup %11414  ;;  %v8518_v4 = vadd.f32 -1.0, %v11413_v28  ;;  %v2590_v18 = vmul.f32 1.442695, %v13458_v57  ;;  %v10058_v12 = vpop.f32.mrb[64].mxu1 }
 0x759   : > { %v8517_v21 = vadd.f32 -1.0, %v11415_v49  ;;  %11424 = vpow2.f32 %v2592_v48  ;;  %v13463_v38 = vadd.f32 %v10058_v12, %v13437_v63  ;;  %v2523_v39 = vpop.f32.mrb[65].mxu1 }
 0x75a   : > { %v2627_v61 = vmul.f32 1.6732632, %v8518_v4  ;;  %11426 = vpow2.f32 %v2590_v18  ;;  %v13466_v19 = vadd.f32 %v13437_v63, %v2523_v39 }
 0x75b   : > { %v11417_v53 = vpop.eup %11416  ;;  %v2626_v25 = vmul.f32 1.6732632, %v8517_v21  ;;  %v2596_v20 = vmul.f32 1.442695, %v13463_v38 }
 0x75c   : > { %v11419_v37 = vpop.eup %11418  ;;  %v2643_v11 = vsel %vm2563_vm14, %v2489_v3, %v2627_v61  ;;  %v8520_v23 = vadd.f32 -1.0, %v11417_v53  ;;  %v2594_v8 = vmul.f32 1.442695, %v13466_v19  ;;  %v10061_v5 = vpop.f32.mrb[66].mxu1  ;;  %vm2567_vm14 = vcmp.gt.f32.partialorder %v13447_v62, 0.0 }
 0x75d   : > { %v2642_v32 = vsel %vm2562_vm11, %v2484_v36, %v2626_v25  ;;  %v8519_v55 = vadd.f32 -1.0, %v11419_v37  ;;  %11428 = vpow2.f32 %v2596_v20  ;;  %v2533_v40 = vpop.f32.mrb[67].mxu1  ;;  %v13473_v16 = vadd.f32 %v10061_v5, %v13437_v63 }
 0x75e   : > { %v13470_v29 = vmul.f32 1.050701, %v2642_v32  ;;  %v2629_v35 = vmul.f32 1.6732632, %v8520_v23  ;;  %11430 = vpow2.f32 %v2594_v8  ;;  %v13475_v13 = vmul.f32 1.050701, %v2643_v11 }
 0x75f   : > { %v11421_v51 = vpop.eup %11420  ;;  %v2628_v24 = vmul.f32 1.6732632, %v8519_v55  ;;  %v13478_v7 = vadd.f32 %v13437_v63, %v2533_v40  ;;  %v2600_v22 = vmul.f32 1.442695, %v13473_v16  ;;  %vm2566_vm11 = vcmp.gt.f32.partialorder %v13450_v14, 0.0 }
 0x760   : > { %v11423_v6 = vpop.eup %11422  ;;  %v2645_v9 = vsel %vm2565_vm2, %v2499_v15, %v2629_v35  ;;  %v8522_v58 = vadd.f32 -1.0, %v11421_v51  ;;  %v10064_v1 = vpop.f32.mrb[68].mxu1  ;;  %10070 = vmatprep.mubr.msk.f32.mxu0 %vm2678_vm5, %v13470_v29  ;;  %10096 = vmatprep.mubr.msk.f32.mxu1 %vm2678_vm5, %v13470_v29  ;;  %vm2569_vm2 = vcmp.gt.f32.partialorder %v13455_v26, 0.0 }
 0x761   : > { %v2644_v54 = vsel %vm2564_vm9, %v13443_v41, %v2628_v24  ;;  %v8521_v31 = vadd.f32 -1.0, %v11423_v6  ;;  %v2543_v44 = vpop.f32.mrb[69].mxu1  ;;  %10071 = vmatmul.mubr.msk.f32.vlgmr.msra.gmra.mrb[56].mxu0 %vm2678_vm5, %v13475_v13  ;;  %10097 = vmatmul.mubr.msk.f32.vlgmr.msra.gmra.mrb[72].mxu1 %vm2678_vm5, %v13475_v13  ;;  %11432 = vpow2.f32 %v2600_v22  ;;  %v2598_v59 = vmul.f32 1.442695, %v13478_v7 }
 0x762   : > { %v13492_v45 = vmul.f32 1.050701, %v2644_v54  ;;  %v2631_v46 = vmul.f32 1.6732632, %v8522_v58  ;;  %v13495_v50 = vmul.f32 1.050701, %v2645_v9  ;;  %v13498_v2 = vadd.f32 %v10064_v1, %v13437_v63 }
 0x763   : > { %v11425_v47 = vpop.eup %11424  ;;  %v2630_v3 = vmul.f32 1.6732632, %v8521_v31  ;;  %v13501_v36 = vadd.f32 %v13437_v63, %v2543_v44  ;;  %11434 = vpow2.f32 %v2598_v59  ;;  %vm2568_vm9 = vcmp.gt.f32.partialorder %v13458_v57, 0.0 }
 0x764   : > { %v11427_v42 = vpop.eup %11426  ;;  %v2647_v10 = vsel %vm2567_vm14, %v13447_v62, %v2631_v46  ;;  %v8524_v60 = vadd.f32 -1.0, %v11425_v47  ;;  %v10067_v15 = vpop.f32.mrb[70].mxu1  ;;  %10073 = vmatprep.mubr.msk.f32.mxu0 %vm2678_vm5, %v13492_v45  ;;  %10099 = vmatprep.mubr.msk.f32.mxu1 %vm2678_vm5, %v13492_v45  ;;  %v2604_v62 = vmul.f32 1.442695, %v13498_v2  ;;  %vm2571_vm14 = vcmp.gt.f32.partialorder %v13463_v38, 0.0 }
 0x765   : > { %v2646_v33 = vsel %vm2566_vm11, %v13450_v14, %v2630_v3  ;;  %v8523_v41 = vadd.f32 -1.0, %v11427_v42  ;;  %v2553_v43 = vpop.f32.mrb[71].mxu1  ;;  %10074 = vmatmul.mubr.msk.f32.gmra.mrb[58].mxu0 %vm2678_vm5, %v13495_v50  ;;  %10100 = vmatmul.mubr.msk.f32.gmra.mrb[74].mxu1 %vm2678_vm5, %v13495_v50  ;;  %v13519_v27 = vadd.f32 %v10067_v15, %v13437_v63  ;;  %v13521_v14 = vmul.f32 1.050701, %v2647_v10  ;;  %v315_v10 = vpop.permute.xlu0 %314 }
 0x766   : > { %v13515_v0 = vmul.f32 1.050701, %v2646_v33  ;;  %v2633_v56 = vmul.f32 1.6732632, %v8524_v60  ;;  %v2602_v52 = vmul.f32 1.442695, %v13501_v36  ;;  %v13525_v30 = vadd.f32 %v13437_v63, %v2553_v43 }
 0x767   : > { %v11429_v17 = vpop.eup %11428  ;;  %v2632_v34 = vmul.f32 1.6732632, %v8523_v41  ;;  %11436 = vpow2.f32 %v2604_v62  ;;  %v2608_v12 = vmul.f32 1.442695, %v13519_v27  ;;  %vm2570_vm11 = vcmp.gt.f32.partialorder %v13466_v19, 0.0  ;;  %v15523_v60 = vld [vmem:[#allocation18_spill] sm:$0xff] }
 0x768   : > { %v11431_v28 = vpop.eup %11430  ;;  %v2649_v48 = vsel %vm2569_vm2, %v13455_v26, %v2633_v56  ;;  %v8526_v49 = vadd.f32 -1.0, %v11429_v17  ;;  %10076 = vmatprep.mubr.msk.f32.mxu0 %vm2678_vm5, %v13515_v0  ;;  %10102 = vmatprep.mubr.msk.f32.mxu1 %vm2678_vm5, %v13515_v0  ;;  %11438 = vpow2.f32 %v2602_v52  ;;  %vm2573_vm2 = vcmp.gt.f32.partialorder %v13473_v16, 0.0  ;;  %v11892_v41 = vld [vmem:[%s12174_s26] sm:$0xff]  ;;  %v11893_v43 = vld [vmem:[%s12174_s26 + $0x8] sm:$0xff]  ;;  %v11894_v56 = vld [vmem:[%s12174_s26 + $0x10] sm:$0xff] }
 0x769   : > { %v2648_v4 = vsel %vm2568_vm9, %v13458_v57, %v2632_v34  ;;  %v8525_v18 = vadd.f32 -1.0, %v11431_v28  ;;  %10077 = vmatmul.mubr.msk.f32.gmra.mrb[60].mxu0 %vm2678_vm5, %v13521_v14  ;;  %10103 = vmatmul.mubr.msk.f32.gmra.mrb[76].mxu1 %vm2678_vm5, %v13521_v14  ;;  %v13542_v21 = vmul.f32 1.050701, %v2649_v48  ;;  %v2606_v57 = vmul.f32 1.442695, %v13525_v30  ;;  %v11895_v62 = vld [vmem:[%s12174_s26 + $0x20] sm:$0xff] }
 0x76a   : > { %v13539_v63 = vmul.f32 1.050701, %v2648_v4  ;;  %v2635_v26 = vmul.f32 1.6732632, %v8526_v49  ;;  %11440 = vpow2.f32 %v2608_v12  ;;  %vm2572_vm9 = vcmp.gt.f32.partialorder %v13478_v7, 0.0  ;;  %v11897_v17 = vld [vmem:[%s12174_s26 + $0x30] sm:$0xff] }
 0x76b   : > { %v2634_v39 = vmul.f32 1.6732632, %v8525_v18  ;;  %v11433_v61 = vpop.eup %11432  ;;  %11442 = vpow2.f32 %v2606_v57  ;;  %v15524_v15 = vmov 1.0   ;;  %v12032_v33 = vmov 18   ;;  %v11898_v34 = vld [vmem:[%s12174_s26 + $0x28] sm:$0xff]  ;;  %v11899_v52 = vld [vmem:[%s12174_s26 + $0x40] sm:$0xff] }
 0x76c   : > { %v2651_v53 = vsel %vm2571_vm14, %v13463_v38, %v2635_v26  ;;  %10079 = vmatprep.mubr.msk.f32.mxu0 %vm2678_vm5, %v13539_v63  ;;  %10105 = vmatprep.mubr.msk.f32.mxu1 %vm2678_vm5, %v13539_v63  ;;  %v8528_v20 = vadd.f32 -1.0, %v11433_v61  ;;  %vm2575_vm14 = vcmp.gt.f32.partialorder %v13498_v2, 0.0  ;;  %v11901_v28 = vld [vmem:[%s12174_s26 + $0x50] sm:$0xff]  ;;  %v11902_v48 = vld [vmem:[%s12174_s26 + $0x48] sm:$0xff]  ;;  %v11903_v49 = vld [vmem:[%s12174_s26 + $0x60] sm:$0xff] }
 0x76d   : > { %v2650_v25 = vsel %vm2570_vm11, %v13466_v19, %v2634_v39  ;;  %10080 = vmatmul.mubr.msk.f32.gmra.mrb[62].mxu0 %vm2678_vm5, %v13542_v21  ;;  %10106 = vmatmul.mubr.msk.f32.gmra.mrb[78].mxu1 %vm2678_vm5, %v13542_v21  ;;  %v11435_v38 = vpop.eup %11434  ;;  %v13558_v11 = vmul.f32 1.050701, %v2651_v53  ;;  %vm2574_vm11 = vcmp.gt.f32.partialorder %v13501_v36, 0.0  ;;  %v11904_v4 = vld [vmem:[%s12174_s26 + $0x58] sm:$0xff]  ;;  %v11905_v18 = vld [vmem:[%s12174_s26 + $0x70] sm:$0xff]  ;;  %v11906_v26 = vld [vmem:[%s12174_s26 + $0x68] sm:$0xff] }
 0x76e   : > { %v13556_v37 = vmul.f32 1.050701, %v2650_v25  ;;  %v2637_v23 = vmul.f32 1.6732632, %v8528_v20  ;;  %v8527_v8 = vadd.f32 -1.0, %v11435_v38  ;;  %11208 = vset.pattern.permute.xlu1 %v12032_v33  ;;  %11209 = vset.pattern.permute.xlu0 %v12032_v33  ;;  %v11907_v12 = vld [vmem:[%s12174_s26 + $0x78] sm:$0xff] }
 0x76f   : > { %3025 = vperm.xlu1 %11208, %v11892_v41   ;;  %3029 = vperm.xlu0 %11209, %v11893_v43  }
 0x770   : > { %10082 = vmatprep.mubr.msk.f32.mxu0 %vm2678_vm5, %v13556_v37  ;;  %10108 = vmatprep.mubr.msk.f32.mxu1 %vm2678_vm5, %v13556_v37  ;;  %v2636_v19 = vmul.f32 1.6732632, %v8527_v8  ;;  %v2653_v32 = vsel %vm2573_vm2, %v13473_v16, %v2637_v23  ;;  %vm2577_vm2 = vcmp.gt.f32.partialorder %v13519_v27, 0.0 }
 0x771   : > { %10083 = vmatmul.mubr.msk.f32.gmra.mrb[64].mxu0 %vm2678_vm5, %v13558_v11  ;;  %10109 = vmatmul.mubr.msk.f32.gmra.mrb[80].mxu1 %vm2678_vm5, %v13558_v11  ;;  %v11437_v5 = vpop.eup %11436  ;;  %v13574_v6 = vmul.f32 1.050701, %v2653_v32 }
 0x772   : > { %v11439_v55 = vpop.eup %11438  ;;  %v2652_v40 = vsel %vm2572_vm9, %v13478_v7, %v2636_v19  ;;  %v8530_v35 = vadd.f32 -1.0, %v11437_v5  ;;  %vm2576_vm9 = vcmp.gt.f32.partialorder %v13525_v30, 0.0 }
 0x773   : > { %v13572_v51 = vmul.f32 1.050701, %v2652_v40  ;;  %v8529_v24 = vadd.f32 -1.0, %v11439_v55  ;;  %3033 = vperm.xlu1 %11208, %v11894_v56   ;;  %3041 = vperm.xlu0 %11209, %v11895_v62  }
 0x774   : > { %v2639_v9 = vmul.f32 1.6732632, %v8530_v35  ;;  %v11441_v58 = vpop.eup %11440 }
 0x775   : > { %v2638_v22 = vmul.f32 1.6732632, %v8529_v24  ;;  %10085 = vmatprep.mubr.msk.f32.mxu0 %vm2678_vm5, %v13572_v51  ;;  %10111 = vmatprep.mubr.msk.f32.mxu1 %vm2678_vm5, %v13572_v51  ;;  %v11443_v16 = vpop.eup %11442  ;;  %v8532_v1 = vadd.f32 -1.0, %v11441_v58 }
 0x776   : > { %v2655_v7 = vsel %vm2575_vm14, %v13498_v2, %v2639_v9  ;;  %10086 = vmatmul.mubr.msk.f32.gmra.mrb[66].mxu0 %vm2678_vm5, %v13574_v6  ;;  %10112 = vmatmul.mubr.msk.f32.gmra.mrb[82].mxu1 %vm2678_vm5, %v13574_v6  ;;  %v8531_v31 = vadd.f32 -1.0, %v11443_v16  ;;  %vm361_vm14 = vcmp.eq.s32.totalorder %v15523_v60, %v315_v10 }
 0x777   : > { %v2654_v54 = vsel %vm2574_vm11, %v13501_v36, %v2638_v22  ;;  %v2641_v46 = vmul.f32 1.6732632, %v8532_v1  ;;  %v13590_v59 = vmul.f32 1.050701, %v2655_v7  ;;  %3049 = vperm.xlu0 %11209, %v11897_v17  }
 0x778   : > { %v13588_v44 = vmul.f32 1.050701, %v2654_v54  ;;  %v2640_v47 = vmul.f32 1.6732632, %v8531_v31 }
 0x779   : > { %v2657_v3 = vsel %vm2577_vm2, %v13519_v27, %v2641_v46  ;;  %v11896_v27 = vld [vmem:[%s12174_s26 + $0x18] sm:$0xff] }
 0x77a   : > { %10088 = vmatprep.mubr.msk.f32.mxu0 %vm2678_vm5, %v13588_v44  ;;  %10114 = vmatprep.mubr.msk.f32.mxu1 %vm2678_vm5, %v13588_v44  ;;  %v2656_v2 = vsel %vm2576_vm9, %v13525_v30, %v2640_v47  ;;  %v13606_v42 = vmul.f32 1.050701, %v2657_v3  ;;  %v11900_v30 = vld [vmem:[%s12174_s26 + $0x38] sm:$0xff] }
 0x77b   : > { %10089 = vmatmul.mubr.msk.f32.gmra.mrb[68].mxu0 %vm2678_vm5, %v13590_v59  ;;  %10115 = vmatmul.mubr.msk.f32.gmra.mrb[84].mxu1 %vm2678_vm5, %v13590_v59  ;;  %v13604_v36 = vmul.f32 1.050701, %v2656_v2 }
 0x77c   : > { %3037 = vperm.xlu1 %11208, %v11896_v27   ;;  %3057 = vperm.xlu0 %11209, %v11899_v52   ;;  %v318_v27 = vpop.permute.xlu1 %317 }
 0x77d   : > { %10091 = vmatprep.mubr.msk.f32.mxu0 %vm2678_vm5, %v13604_v36  ;;  %10117 = vmatprep.mubr.msk.f32.mxu1 %vm2678_vm5, %v13604_v36 }
 0x77f   : > { %10092 = vmatmul.mubr.msk.f32.gmra.mrb[70].mxu0 %vm2678_vm5, %v13606_v42  ;;  %10118 = vmatmul.mubr.msk.f32.gmra.mrb[86].mxu1 %vm2678_vm5, %v13606_v42  ;;  %vm362_vm5 = vcmp.eq.s32.totalorder %v15523_v60, %v318_v27  ;;  %v15548_v27 = vld [vmem:[#allocation34_spill] sm:$0xff] }
 0x780   : > { %8568 = vmatprep.mubr.msk.f32.mxu0 %vm361_vm14, %v15524_v15  ;;  %3045 = vperm.xlu1 %11208, %v11898_v34  }
 0x781   : > { %3065 = vperm.xlu0 %11209, %v11901_v28  }
 0x784   : > { %3053 = vperm.xlu1 %11208, %v11900_v30  }
 0x785   : > { %3073 = vperm.xlu0 %11209, %v11903_v49  }
 0x788   : > { %3061 = vperm.xlu1 %11208, %v11902_v48  }
 0x789   : > { %3081 = vperm.xlu0 %11209, %v11905_v18   ;;  %v321_v18 = vpop.permute.xlu1 %320 }
 0x78a   : > { %vm363_vm11 = vcmp.eq.s32.totalorder %v15523_v60, %v321_v18 }
 0x78c   : > { %3069 = vperm.xlu1 %11208, %v11904_v4  }
 0x790   : > { %3077 = vperm.xlu1 %11208, %v11906_v26  }
 0x794   : > { %3085 = vperm.xlu1 %11208, %v11907_v12  }
 0x834   : > { %v10072_v39 = vpop.f32.mrb[56].mxu0  ;;  %v10098_v57 = vpop.f32.mrb[72].mxu1 }
 0x835   : > { %v2797_v61 = vpop.f32.mrb[57].mxu0  ;;  %v2945_v53 = vpop.f32.mrb[73].mxu1 }
 0x836   : > { %v10860_v25 = vpack.c.bf16 %v10072_v39, %v2797_v61  ;;  %v10858_v20 = vpack.c.bf16 %v10098_v57, %v2945_v53 }
 0x838   : > { %v10075_v38 = vpop.f32.mrb[58].mxu0  ;;  %v10101_v23 = vpop.f32.mrb[74].mxu1  ;;  %10859 = vmatprep.subr.bf16.mxu0 %v10858_v20 }
 0x839   : > { %v2807_v8 = vpop.f32.mrb[59].mxu0  ;;  %v2955_v19 = vpop.f32.mrb[75].mxu1  ;;  %10861 = vmatpush3.bf16.msra.mxu0 %v10860_v25 }
 0x83a   : > { %v10864_v5 = vpack.c.bf16 %v10075_v38, %v2807_v8  ;;  %v10862_v32 = vpack.c.bf16 %v10101_v23, %v2955_v19  ;;  %v324_v25 = vpop.permute.xlu1 %323 }
 0x83b   : > { %vm364_vm2 = vcmp.eq.s32.totalorder %v15523_v60, %v324_v25 }
 0x83c   : > { %v10078_v55 = vpop.f32.mrb[60].mxu0  ;;  %v10104_v40 = vpop.f32.mrb[76].mxu1  ;;  %10863 = vmatprep.subr.bf16.mxu0 %v10862_v32 }
 0x83d   : > { %v2817_v35 = vpop.f32.mrb[61].mxu0  ;;  %v2965_v24 = vpop.f32.mrb[77].mxu1  ;;  %10865 = vmatpush3.bf16.msra.mxu0 %v10864_v5 }
 0x83e   : > { %v10868_v9 = vpack.c.bf16 %v10078_v55, %v2817_v35  ;;  %v10866_v58 = vpack.c.bf16 %v10104_v40, %v2965_v24  ;;  %v327_v38 = vpop.permute.xlu1 %326  ;;  %v15531_v24 = vld [vmem:[#allocation23_spill] sm:$0xff] }
 0x83f   : > { %vm365_vm9 = vcmp.eq.s32.totalorder %v15523_v60, %v327_v38 }
 0x840   : > { %v10081_v22 = vpop.f32.mrb[62].mxu0  ;;  %v10107_v16 = vpop.f32.mrb[78].mxu1  ;;  %10867 = vmatprep.subr.bf16.mxu0 %v10866_v58  ;;  %v15532_v58 = vld [vmem:[#allocation24_spill] sm:$0xff] }
 0x841   : > { %v2827_v7 = vpop.f32.mrb[63].mxu0  ;;  %v2975_v1 = vpop.f32.mrb[79].mxu1  ;;  %10869 = vmatpush3.bf16.msra.mxu0 %v10868_v9 }
 0x842   : > { %v10872_v54 = vpack.c.bf16 %v10081_v22, %v2827_v7  ;;  %v10870_v31 = vpack.c.bf16 %v10107_v16, %v2975_v1  ;;  %v330_v19 = vpop.permute.xlu1 %329  ;;  %v342_v22 = vpop.permute.xlu0 %341  ;;  %v15534_v16 = vld [vmem:[#allocation25_spill] sm:$0xff]  ;;  %v15536_v1 = vld [vmem:[#allocation26_spill] sm:$0xff] }
 0x843   : > { %vm366_vm14 = vcmp.eq.s32.totalorder %v15523_v60, %v330_v19 }
 0x844   : > { %v10084_v46 = vpop.f32.mrb[64].mxu0  ;;  %v10110_v47 = vpop.f32.mrb[80].mxu1  ;;  %10871 = vmatprep.subr.bf16.mxu0 %v10870_v31 }
 0x845   : > { %v2837_v3 = vpop.f32.mrb[65].mxu0  ;;  %v2985_v2 = vpop.f32.mrb[81].mxu1  ;;  %10873 = vmatpush3.bf16.msra.mxu0 %v10872_v54 }
 0x846   : > { %v10876_v10 = vpack.c.bf16 %v10084_v46, %v2837_v3  ;;  %v10874_v33 = vpack.c.bf16 %v10110_v47, %v2985_v2  ;;  %v333_v32 = vpop.permute.xlu1 %332  ;;  %v348_v54 = vpop.permute.xlu0 %347  ;;  %v15539_v47 = vld [vmem:[#allocation28_spill] sm:$0xff] }
 0x848   : > { %10875 = vmatprep.subr.bf16.mxu0 %v10874_v33  ;;  %v15542_v33 = vld [vmem:[#allocation30_spill] sm:$0xff] }
 0x849   : > { %10877 = vmatpush3.bf16.msra.mxu0 %v10876_v10  ;;  %v10087_v41 = vpop.f32.mrb[66].mxu0  ;;  %v10113_v43 = vpop.f32.mrb[82].mxu1 }
 0x84a   : > { %v2847_v56 = vpop.f32.mrb[67].mxu0  ;;  %v2995_v62 = vpop.f32.mrb[83].mxu1 }
 0x84b   : > { %v10880_v17 = vpack.c.bf16 %v10087_v41, %v2847_v56  ;;  %v10878_v34 = vpack.c.bf16 %v10113_v43, %v2995_v62  ;;  %v336_v35 = vpop.permute.xlu1 %335  ;;  %v354_v3 = vpop.permute.xlu0 %353  ;;  %v15545_v56 = vld [vmem:[#allocation32_spill] sm:$0xff]  ;;  %v15547_v62 = vld [vmem:[#allocation33_spill] sm:$0xff] }
 0x84c   : > { %v15564_v43 = vld [vmem:[#allocation37_spill] sm:$0xff] }
 0x84d   : > { %10879 = vmatprep.subr.bf16.mxu0 %v10878_v34  ;;  %v3386_v34 = vld [vmem:[#allocation4 + $0xc0] sm:$0xff] }
 0x84e   : > { %v10090_v52 = vpop.f32.mrb[68].mxu0  ;;  %v10116_v30 = vpop.f32.mrb[84].mxu1  ;;  %10881 = vmatpush3.bf16.msra.mxu0 %v10880_v17  ;;  %v3385_v17 = vld [vmem:[#allocation4 + $0xb8] sm:$0xff] }
 0x84f   : > { %v2857_v28 = vpop.f32.mrb[69].mxu0  ;;  %v3005_v48 = vpop.f32.mrb[85].mxu1 }
 0x850   : > { %v10884_v49 = vpack.c.bf16 %v10090_v52, %v2857_v28  ;;  %v10882_v4 = vpack.c.bf16 %v10116_v30, %v3005_v48  ;;  %v339_v9 = vpop.permute.xlu1 %338  ;;  %v360_v41 = vpop.permute.xlu0 %359  ;;  %v10890_v52 = vpack.c.bf16 %v3386_v34, %v3385_v17  ;;  %v3387_v30 = vld [vmem:[#allocation4 + $0xc8] sm:$0xff]  ;;  %v3388_v28 = vld [vmem:[#allocation4 + $0xd0] sm:$0xff] }
 0x851   : > { %v10894_v48 = vpack.c.bf16 %v3388_v28, %v3387_v30 }
 0x852   : > { %v10093_v26 = vpop.f32.mrb[70].mxu0  ;;  %v10119_v12 = vpop.f32.mrb[86].mxu1  ;;  %10883 = vmatprep.subr.bf16.mxu0 %v10882_v4  ;;  %10891 = vmatprep.subr.bf16.mxu1 %v10890_v52 }
 0x853   : > { %v2867_v39 = vpop.f32.mrb[71].mxu0  ;;  %v3015_v57 = vpop.f32.mrb[87].mxu1  ;;  %10885 = vmatpush3.bf16.msra.mxu0 %v10884_v49  ;;  %10893 = vmatpush3.bf16.msra.mxu1 %v10890_v52  ;;  %v13732_v49 = vld [vmem:[#allocation4 + $0xb4] ss:$0 sm:$0xff] }
 0x854   : > { %v10888_v61 = vpack.c.bf16 %v10093_v26, %v2867_v39  ;;  %v10886_v53 = vpack.c.bf16 %v10119_v12, %v3015_v57  ;;  %v345_v7 = vpop.permute.xlu1 %344  ;;  %10895 = vmatprep.subr.bf16.mxu1 %v10894_v48  ;;  %v3030_v12 = vpop.permute.xlu0 %3029 }
 0x856   : > { %10887 = vmatprep.subr.bf16.mxu0 %v10886_v53  ;;  %v3093_v53 = vmul.f32 %v13732_v49, %v3030_v12 }
 0x857   : > { %10889 = vmatpush3.bf16.msra.mxu0 %v10888_v61  ;;  %10897 = vmatpush3.bf16.msra.mxu1 %v10894_v48  ;;  %v13735_v61 = vld [vmem:[#allocation4 + $0xb5] ss:$0 sm:$0xff] }
 0x858   : > { %v351_v46 = vpop.permute.xlu1 %350 }
 0x85a   : > { %8569 = vmatmul.mubr.msk.f32.vlgmr.msra.gmra.mrb[72].mxu0 %vm265_vm4, %v15524_v15 }
 0x85b   : > { %8570 = vmatprep.mubr.msk.f32.mxu0 %vm362_vm5, %v15524_v15  ;;  %vm367_vm5 = vcmp.eq.s32.totalorder %v15523_v60, %v333_v32 }
 0x85c   : > { %v357_v10 = vpop.permute.xlu1 %356 }
 0x85e   : > { %8571 = vmatmul.mubr.msk.f32.gmra.mrb[74].mxu0 %vm266_vm3, %v15524_v15 }
 0x85f   : > { %8572 = vmatprep.mubr.msk.f32.mxu0 %vm363_vm11, %v15524_v15  ;;  %vm368_vm11 = vcmp.eq.s32.totalorder %v15523_v60, %v336_v35 }
 0x860   : > { %v3026_v4 = vpop.permute.xlu1 %3025 }
 0x861   : > { %v3092_v18 = vmul.f32 %v13732_v49, %v3026_v4 }
 0x862   : > { %8573 = vmatmul.mubr.msk.f32.gmra.mrb[76].mxu0 %vm267_vm6, %v15524_v15 }
 0x863   : > { %8574 = vmatprep.mubr.msk.f32.mxu0 %vm364_vm2, %v15524_v15  ;;  %vm369_vm2 = vcmp.eq.s32.totalorder %v15523_v60, %v339_v9 }
 0x864   : > { %v3034_v19 = vpop.permute.xlu1 %3033 }
 0x866   : > { %8575 = vmatmul.mubr.msk.f32.gmra.mrb[78].mxu0 %vm268_vm7, %v15524_v15 }
 0x867   : > { %8576 = vmatprep.mubr.msk.f32.mxu0 %vm365_vm9, %v15524_v15  ;;  %vm15533_vm9 = vcmp.eq.s32.totalorder %v15523_v60, %v15532_v58 }
 0x86a   : > { %8577 = vmatmul.mubr.msk.f32.gmra.mrb[80].mxu0 %vm269_vm8, %v15524_v15 }
 0x86b   : > { %8578 = vmatprep.mubr.msk.f32.mxu0 %vm366_vm14, %v15524_v15  ;;  %vm370_vm14 = vcmp.eq.s32.totalorder %v15523_v60, %v342_v22  ;;  %v3094_v22 = vmul.f32 %v13732_v49, %v3034_v19 }
 0x86e   : > { %8579 = vmatmul.mubr.msk.f32.gmra.mrb[82].mxu0 %vm270_vm10, %v15524_v15 }
 0x86f   : > { %8580 = vmatprep.mubr.msk.f32.mxu0 %vm367_vm5, %v15524_v15  ;;  %vm15535_vm5 = vcmp.eq.s32.totalorder %v15523_v60, %v15534_v16 }
 0x872   : > { %8581 = vmatmul.mubr.msk.f32.gmra.mrb[84].mxu0 %vm15429_vm12, %v15524_v15  ;;  %vm15537_vm12 = vcmp.eq.s32.totalorder %v15523_v60, %v15536_v1 }
 0x873   : > { %8582 = vmatprep.mubr.msk.f32.mxu0 %vm368_vm11, %v15524_v15  ;;  %vm371_vm11 = vcmp.eq.s32.totalorder %v15523_v60, %v345_v7 }
 0x876   : > { %8583 = vmatmul.mubr.msk.f32.gmra.mrb[86].mxu0 %vm15533_vm9, %v15524_v15  ;;  %vm373_vm9 = vcmp.eq.s32.totalorder %v15523_v60, %v351_v46 }
 0x877   : > { %8584 = vmatprep.mubr.msk.f32.mxu0 %vm369_vm2, %v15524_v15  ;;  %vm372_vm2 = vcmp.eq.s32.totalorder %v15523_v60, %v348_v54 }
 0x87a   : > { %8585 = vmatmul.mubr.msk.f32.gmra.mrb[88].mxu0 %vm15535_vm5, %v15524_v15  ;;  %vm375_vm5 = vcmp.eq.s32.totalorder %v15523_v60, %v357_v10 }
 0x87b   : > { %8586 = vmatprep.mubr.msk.f32.mxu0 %vm370_vm14, %v15524_v15  ;;  %vm15540_vm14 = vcmp.eq.s32.totalorder %v15523_v60, %v15539_v47 }
 0x87e   : > { %8587 = vmatmul.mubr.msk.f32.gmra.mrb[90].mxu0 %vm15537_vm12, %v15524_v15  ;;  %vm374_vm12 = vcmp.eq.s32.totalorder %v15523_v60, %v354_v3 }
 0x87f   : > { %8588 = vmatprep.mubr.msk.f32.mxu0 %vm371_vm11, %v15524_v15  ;;  %vm15543_vm11 = vcmp.eq.s32.totalorder %v15523_v60, %v15542_v33 }
 0x882   : > { %8589 = vmatmul.mubr.msk.f32.gmra.mrb[92].mxu0 %vm275_vm0, %v15524_v15 }
 0x883   : > { %8590 = vmatprep.mubr.msk.f32.mxu0 %vm372_vm2, %v15524_v15  ;;  %vm376_vm2 = vcmp.eq.s32.totalorder %v15523_v60, %v360_v41 }
 0x886   : > { %8591 = vmatmul.mubr.msk.f32.gmra.mrb[94].mxu0 %vm15540_vm14, %v15524_v15  ;;  %vm15549_vm14 = vcmp.eq.s32.totalorder %v15547_v62, %v15548_v27  ;;  %v3038_v62 = vpop.permute.xlu1 %3037 }
 0x887   : > { %8592 = vmatprep.mubr.msk.f32.mxu0 %vm373_vm9, %v15524_v15  ;;  %vm15546_vm9 = vcmp.eq.s32.totalorder %v15523_v60, %v15545_v56  ;;  %v3095_v17 = vmul.f32 %v13732_v49, %v3038_v62 }
 0x88a   : > { %8593 = vmatmul.mubr.msk.f32.gmra.mrb[96].mxu0 %vm277_vm15, %v15524_v15  ;;  %v3046_v19 = vpop.permute.xlu1 %3045 }
 0x88b   : > { %8594 = vmatprep.mubr.msk.f32.mxu0 %vm374_vm12, %v15524_v15 }
 0x88e   : > { %8595 = vmatmul.mubr.msk.f32.gmra.mrb[98].mxu0 %vm15543_vm11, %v15524_v15 }
 0x88f   : > { %8596 = vmatprep.mubr.msk.f32.mxu0 %vm375_vm5, %v15524_v15 }
 0x892   : > { %8597 = vmatmul.mubr.msk.f32.gmra.mrb[100].mxu0 %vm279_vm13, %v15524_v15 }
 0x893   : > { %8598 = vmatprep.mubr.msk.f32.mxu0 %vm376_vm2, %v15524_v15 }
 0x896   : > { %8599 = vmatmul.mubr.msk.f32.gmra.mrb[102].mxu0 %vm15546_vm9, %v15524_v15 }
 0x897   : > { %10216 = vmatprep.mubr.msk.f32.mxu0 %vm15549_vm14, %v15524_v15 }
 0x92d   : > { %v9325_v26 = vpop.f32.mrb[72].mxu0 }
 0x92e   : > { %v9326_v39 = vpop.f32.mrb[73].mxu0 }
 0x92f   : > { %v9327_v57 = vadd.f32 %v9326_v39, %v9325_v26 }
 0x931   : > { %v3175_v25 = vadd.f32 %v9327_v57, %v3092_v18  ;;  %v9328_v38 = vpop.f32.mrb[74].mxu0  ;;  %v3042_v18 = vpop.permute.xlu0 %3041 }
 0x932   : > { %v9329_v32 = vpop.f32.mrb[75].mxu0  ;;  %v3096_v26 = vmul.f32 %v13732_v49, %v3042_v18 }
 0x933   : > { %v3257_v35 = vadd.f32 %v13735_v61, %v3175_v25  ;;  %v9330_v9 = vadd.f32 %v9329_v32, %v9328_v38 }
 0x935   : > { %v3289_v7 = vmul.f32 1.442695, %v3257_v35  ;;  %v3180_v54 = vadd.f32 %v9330_v9, %v3093_v53  ;;  %v9331_v46 = vpop.f32.mrb[76].mxu0  ;;  %v3097_v9 = vmul.f32 %v13732_v49, %v3046_v19  ;;  %vm3273_vm12 = vcmp.gt.f32.partialorder %v3257_v35, 0.0  ;;  %v3054_v19 = vpop.permute.xlu1 %3053 }
 0x936   : > { %v9332_v3 = vpop.f32.mrb[77].mxu0 }
 0x937   : > { %11444 = vpow2.f32 %v3289_v7  ;;  %v3258_v10 = vadd.f32 %v13735_v61, %v3180_v54  ;;  %v9333_v41 = vadd.f32 %v9332_v3, %v9331_v46 }
 0x939   : > { %v3291_v34 = vmul.f32 1.442695, %v3258_v10  ;;  %v3185_v52 = vadd.f32 %v9333_v41, %v3094_v22  ;;  %v9334_v30 = vpop.f32.mrb[78].mxu0  ;;  %vm3274_vm5 = vcmp.gt.f32.partialorder %v3258_v10, 0.0 }
 0x93a   : > { %v9335_v28 = vpop.f32.mrb[79].mxu0 }
 0x93b   : > { %11446 = vpow2.f32 %v3291_v34  ;;  %v13743_v48 = vadd.f32 %v13735_v61, %v3185_v52  ;;  %v9336_v4 = vadd.f32 %v9335_v28, %v9334_v30 }
 0x93d   : > { %v3293_v12 = vmul.f32 1.442695, %v13743_v48  ;;  %v3190_v39 = vadd.f32 %v9336_v4, %v3095_v17  ;;  %v9337_v57 = vpop.f32.mrb[80].mxu0  ;;  %v3050_v17 = vpop.permute.xlu0 %3049  ;;  %vm3275_vm11 = vcmp.gt.f32.partialorder %v13743_v48, 0.0 }
 0x93e   : > { %v9338_v53 = vpop.f32.mrb[81].mxu0  ;;  %v3098_v30 = vmul.f32 %v13732_v49, %v3050_v17 }
 0x93f   : > { %11448 = vpow2.f32 %v3293_v12  ;;  %v13748_v25 = vadd.f32 %v13735_v61, %v3190_v39  ;;  %v9339_v38 = vadd.f32 %v9338_v53, %v9337_v57 }
 0x941   : > { %v11445_v32 = vpop.eup %11444  ;;  %v3295_v22 = vmul.f32 1.442695, %v13748_v25  ;;  %v3195_v7 = vadd.f32 %v9339_v38, %v3096_v26  ;;  %v9340_v54 = vpop.f32.mrb[82].mxu0  ;;  %vm3276_vm2 = vcmp.gt.f32.partialorder %v13748_v25, 0.0 }
 0x942   : > { %v8601_v46 = vadd.f32 -1.0, %v11445_v32  ;;  %v9341_v3 = vpop.f32.mrb[83].mxu0 }
 0x943   : > { %11450 = vpow2.f32 %v3295_v22  ;;  %v13753_v41 = vadd.f32 %v13735_v61, %v3195_v7  ;;  %v9342_v62 = vadd.f32 %v9341_v3, %v9340_v54  ;;  %v3099_v7 = vmul.f32 %v13732_v49, %v3054_v19 }
 0x944   : > { %v3337_v34 = vmul.f32 1.6732632, %v8601_v46 }
 0x945   : > { %v11447_v52 = vpop.eup %11446  ;;  %v3297_v28 = vmul.f32 1.442695, %v13753_v41  ;;  %v3200_v4 = vadd.f32 %v9342_v62, %v3097_v9  ;;  %v9343_v18 = vpop.f32.mrb[84].mxu0  ;;  %vm3277_vm9 = vcmp.gt.f32.partialorder %v13753_v41, 0.0 }
 0x946   : > { %v8602_v12 = vadd.f32 -1.0, %v11447_v52  ;;  %v9344_v26 = vpop.f32.mrb[85].mxu0  ;;  %v3353_v39 = vsel %vm3273_vm12, %v3257_v35, %v3337_v34 }
 0x947   : > { %11452 = vpow2.f32 %v3297_v28  ;;  %v13758_v57 = vadd.f32 %v13735_v61, %v3200_v4  ;;  %v9345_v53 = vadd.f32 %v9344_v26, %v9343_v18  ;;  %v3369_v38 = vmul.f32 1.050701, %v3353_v39  ;;  %v3058_v28 = vpop.permute.xlu0 %3057 }
 0x948   : > { %v3338_v32 = vmul.f32 1.6732632, %v8602_v12  ;;  %v3100_v12 = vmul.f32 %v13732_v49, %v3058_v28 }
 0x949   : > { %v11449_v22 = vpop.eup %11448  ;;  %v3299_v54 = vmul.f32 1.442695, %v13758_v57  ;;  %v3205_v46 = vadd.f32 %v9345_v53, %v3098_v30  ;;  %v9346_v9 = vpop.f32.mrb[86].mxu0  ;;  %10128 = vmatprep.mubr.msk.f32.mxu1 %vm879_vm1, %v3369_v38  ;;  %vm3278_vm14 = vcmp.gt.f32.partialorder %v13758_v57, 0.0 }
 0x94a   : > { %v3354_v3 = vsel %vm3274_vm5, %v3258_v10, %v3338_v32  ;;  %v8603_v35 = vadd.f32 -1.0, %v11449_v22  ;;  %v9347_v62 = vpop.f32.mrb[87].mxu0 }
 0x94b   : > { %v3370_v17 = vmul.f32 1.050701, %v3354_v3  ;;  %11454 = vpow2.f32 %v3299_v54  ;;  %v13764_v34 = vadd.f32 %v13735_v61, %v3205_v46  ;;  %v9348_v52 = vadd.f32 %v9347_v62, %v9346_v9  ;;  %v3062_v9 = vpop.permute.xlu1 %3061 }
 0x94c   : > { %v3339_v4 = vmul.f32 1.6732632, %v8603_v35  ;;  %v3101_v62 = vmul.f32 %v13732_v49, %v3062_v9 }
 0x94d   : > { %v11451_v18 = vpop.eup %11450  ;;  %v3301_v30 = vmul.f32 1.442695, %v13764_v34  ;;  %v3210_v26 = vadd.f32 %v9348_v52, %v3099_v7  ;;  %v9349_v39 = vpop.f32.mrb[88].mxu0  ;;  %10129 = vmatmul.mubr.msk.f32.vlgmr.msra.gmra.mrb[88].mxu1 %vm879_vm1, %v3370_v17  ;;  %vm3279_vm12 = vcmp.gt.f32.partialorder %v13764_v34, 0.0 }
 0x94e   : > { %v8604_v10 = vadd.f32 -1.0, %v11451_v18  ;;  %v9350_v53 = vpop.f32.mrb[89].mxu0  ;;  %v3355_v38 = vsel %vm3275_vm11, %v13743_v48, %v3339_v4 }
 0x94f   : > { %11456 = vpow2.f32 %v3301_v30  ;;  %v13772_v19 = vadd.f32 %v13735_v61, %v3210_v26  ;;  %v9351_v32 = vadd.f32 %v9350_v53, %v9349_v39  ;;  %v3371_v22 = vmul.f32 1.050701, %v3355_v38  ;;  %v3066_v39 = vpop.permute.xlu0 %3065 }
 0x950   : > { %v3340_v54 = vmul.f32 1.6732632, %v8604_v10  ;;  %v3102_v38 = vmul.f32 %v13732_v49, %v3066_v39 }
 0x951   : > { %v11453_v46 = vpop.eup %11452  ;;  %v3303_v7 = vmul.f32 1.442695, %v13772_v19  ;;  %v3215_v3 = vadd.f32 %v9351_v32, %v3100_v12  ;;  %v9352_v35 = vpop.f32.mrb[90].mxu0  ;;  %10131 = vmatprep.mubr.msk.f32.mxu1 %vm879_vm1, %v3371_v22  ;;  %vm3280_vm5 = vcmp.gt.f32.partialorder %v13772_v19, 0.0 }
 0x952   : > { %v8605_v48 = vadd.f32 -1.0, %v11453_v46  ;;  %v9353_v17 = vpop.f32.mrb[91].mxu0  ;;  %v3356_v52 = vsel %vm3276_vm2, %v13748_v25, %v3340_v54 }
 0x953   : > { %11458 = vpow2.f32 %v3303_v7  ;;  %v13780_v28 = vadd.f32 %v13735_v61, %v3215_v3  ;;  %v9354_v4 = vadd.f32 %v9353_v17, %v9352_v35  ;;  %v3372_v18 = vmul.f32 1.050701, %v3356_v52  ;;  %v3070_v35 = vpop.permute.xlu1 %3069 }
 0x954   : > { %v3341_v30 = vmul.f32 1.6732632, %v8605_v48  ;;  %v3103_v52 = vmul.f32 %v13732_v49, %v3070_v35 }
 0x955   : > { %v11455_v26 = vpop.eup %11454  ;;  %v3305_v12 = vmul.f32 1.442695, %v13780_v28  ;;  %v3220_v10 = vadd.f32 %v9354_v4, %v3101_v62  ;;  %v9355_v53 = vpop.f32.mrb[92].mxu0  ;;  %10132 = vmatmul.mubr.msk.f32.gmra.mrb[90].mxu1 %vm879_vm1, %v3372_v18  ;;  %vm3281_vm11 = vcmp.gt.f32.partialorder %v13780_v28, 0.0 }
 0x956   : > { %v8606_v25 = vadd.f32 -1.0, %v11455_v26  ;;  %v9356_v32 = vpop.f32.mrb[93].mxu0  ;;  %v3357_v22 = vsel %vm3277_vm9, %v13753_v41, %v3341_v30 }
 0x957   : > { %11460 = vpow2.f32 %v3305_v12  ;;  %v13788_v54 = vadd.f32 %v13735_v61, %v3220_v10  ;;  %v9357_v46 = vadd.f32 %v9356_v32, %v9355_v53  ;;  %v3373_v9 = vmul.f32 1.050701, %v3357_v22  ;;  %v3074_v53 = vpop.permute.xlu0 %3073 }
 0x958   : > { %v3342_v7 = vmul.f32 1.6732632, %v8606_v25  ;;  %v3104_v22 = vmul.f32 %v13732_v49, %v3074_v53 }
 0x959   : > { %v11457_v3 = vpop.eup %11456  ;;  %v3307_v62 = vmul.f32 1.442695, %v13788_v54  ;;  %v3225_v48 = vadd.f32 %v9357_v46, %v3102_v38  ;;  %v9358_v17 = vpop.f32.mrb[94].mxu0  ;;  %10134 = vmatprep.mubr.msk.f32.mxu1 %vm879_vm1, %v3373_v9  ;;  %vm3282_vm2 = vcmp.gt.f32.partialorder %v13788_v54, 0.0 }
 0x95a   : > { %v8607_v41 = vadd.f32 -1.0, %v11457_v3  ;;  %v9359_v4 = vpop.f32.mrb[95].mxu0  ;;  %v3358_v18 = vsel %vm3278_vm14, %v13758_v57, %v3342_v7 }
 0x95b   : > { %11462 = vpow2.f32 %v3307_v62  ;;  %v13796_v30 = vadd.f32 %v13735_v61, %v3225_v48  ;;  %v9360_v26 = vadd.f32 %v9359_v4, %v9358_v17  ;;  %v3374_v39 = vmul.f32 1.050701, %v3358_v18  ;;  %v3078_v17 = vpop.permute.xlu1 %3077 }
 0x95c   : > { %v3343_v12 = vmul.f32 1.6732632, %v8607_v41  ;;  %v3105_v18 = vmul.f32 %v13732_v49, %v3078_v17 }
 0x95d   : > { %v11459_v10 = vpop.eup %11458  ;;  %v3309_v38 = vmul.f32 1.442695, %v13796_v30  ;;  %v3230_v25 = vadd.f32 %v9360_v26, %v3103_v52  ;;  %v9361_v32 = vpop.f32.mrb[96].mxu0  ;;  %10135 = vmatmul.mubr.msk.f32.gmra.mrb[92].mxu1 %vm879_vm1, %v3374_v39  ;;  %vm3283_vm9 = vcmp.gt.f32.partialorder %v13796_v30, 0.0 }
 0x95e   : > { %v8608_v57 = vadd.f32 -1.0, %v11459_v10  ;;  %v9362_v46 = vpop.f32.mrb[97].mxu0  ;;  %v3359_v9 = vsel %vm3279_vm12, %v13764_v34, %v3343_v12  ;;  %v3082_v12 = vpop.permute.xlu0 %3081 }
 0x95f   : > { %11464 = vpow2.f32 %v3309_v38  ;;  %v13804_v7 = vadd.f32 %v13735_v61, %v3230_v25  ;;  %v9363_v3 = vadd.f32 %v9362_v46, %v9361_v32  ;;  %v3375_v35 = vmul.f32 1.050701, %v3359_v9 }
 0x960   : > { %v3344_v62 = vmul.f32 1.6732632, %v8608_v57  ;;  %v3106_v9 = vmul.f32 %v13732_v49, %v3082_v12 }
 0x961   : > { %v11461_v48 = vpop.eup %11460  ;;  %v3311_v52 = vmul.f32 1.442695, %v13804_v7  ;;  %v3235_v41 = vadd.f32 %v9363_v3, %v3104_v22  ;;  %v9364_v4 = vpop.f32.mrb[98].mxu0  ;;  %10137 = vmatprep.mubr.msk.f32.mxu1 %vm879_vm1, %v3375_v35  ;;  %vm3284_vm14 = vcmp.gt.f32.partialorder %v13804_v7, 0.0 }
 0x962   : > { %v8609_v34 = vadd.f32 -1.0, %v11461_v48  ;;  %v9365_v26 = vpop.f32.mrb[99].mxu0  ;;  %v3360_v39 = vsel %vm3280_vm5, %v13772_v19, %v3344_v62  ;;  %v3086_v62 = vpop.permute.xlu1 %3085 }
 0x963   : > { %11466 = vpow2.f32 %v3311_v52  ;;  %v3269_v10 = vadd.f32 %v13735_v61, %v3235_v41  ;;  %v9366_v53 = vadd.f32 %v9365_v26, %v9364_v4  ;;  %v3376_v38 = vmul.f32 1.050701, %v3360_v39 }
 0x964   : > { %v3345_v25 = vmul.f32 1.6732632, %v8609_v34  ;;  %v3107_v39 = vmul.f32 %v13732_v49, %v3086_v62 }
 0x965   : > { %v11463_v32 = vpop.eup %11462  ;;  %v3313_v22 = vmul.f32 1.442695, %v3269_v10  ;;  %v3240_v57 = vadd.f32 %v9366_v53, %v3105_v18  ;;  %v9367_v46 = vpop.f32.mrb[100].mxu0  ;;  %10138 = vmatmul.mubr.msk.f32.gmra.mrb[94].mxu1 %vm879_vm1, %v3376_v38  ;;  %vm3285_vm12 = vcmp.gt.f32.partialorder %v3269_v10, 0.0 }
 0x966   : > { %v8610_v3 = vadd.f32 -1.0, %v11463_v32  ;;  %v9368_v35 = vpop.f32.mrb[101].mxu0  ;;  %v3361_v19 = vsel %vm3281_vm11, %v13780_v28, %v3345_v25 }
 0x967   : > { %11468 = vpow2.f32 %v3313_v22  ;;  %v3270_v48 = vadd.f32 %v13735_v61, %v3240_v57  ;;  %v9369_v17 = vadd.f32 %v9368_v35, %v9367_v46  ;;  %v3377_v52 = vmul.f32 1.050701, %v3361_v19 }
 0x968   : > { %v3346_v41 = vmul.f32 1.6732632, %v8610_v3 }
 0x969   : > { %v11465_v4 = vpop.eup %11464  ;;  %v3315_v18 = vmul.f32 1.442695, %v3270_v48  ;;  %v3245_v34 = vadd.f32 %v9369_v17, %v3106_v9  ;;  %v9370_v26 = vpop.f32.mrb[102].mxu0  ;;  %10140 = vmatprep.mubr.msk.f32.mxu1 %vm879_vm1, %v3377_v52  ;;  %vm3286_vm5 = vcmp.gt.f32.partialorder %v3270_v48, 0.0 }
 0x96a   : > { %v8611_v12 = vadd.f32 -1.0, %v11465_v4  ;;  %v9371_v53 = vpop.f32.mrb[103].mxu0  ;;  %v3362_v28 = vsel %vm3282_vm2, %v13788_v54, %v3346_v41 }
 0x96b   : > { %11470 = vpow2.f32 %v3315_v18  ;;  %v3271_v38 = vadd.f32 %v13735_v61, %v3245_v34  ;;  %v9372_v25 = vadd.f32 %v9371_v53, %v9370_v26  ;;  %v3378_v32 = vmul.f32 1.050701, %v3362_v28 }
 0x96c   : > { %v3347_v22 = vmul.f32 1.6732632, %v8611_v12 }
 0x96d   : > { %v11467_v57 = vpop.eup %11466  ;;  %v3317_v46 = vmul.f32 1.442695, %v3271_v38  ;;  %v3250_v9 = vadd.f32 %v9372_v25, %v3107_v39  ;;  %10141 = vmatmul.mubr.msk.f32.gmra.mrb[96].mxu1 %vm879_vm1, %v3378_v32  ;;  %vm3287_vm11 = vcmp.gt.f32.partialorder %v3271_v38, 0.0 }
 0x96e   : > { %v8612_v3 = vadd.f32 -1.0, %v11467_v57  ;;  %v3363_v49 = vsel %vm3283_vm9, %v13796_v30, %v3347_v22 }
 0x96f   : > { %11472 = vpow2.f32 %v3317_v46  ;;  %v3272_v35 = vadd.f32 %v13735_v61, %v3250_v9  ;;  %v3379_v54 = vmul.f32 1.050701, %v3363_v49  ;;  %v3699_v49 = vld [vmem:[#allocation4 + $0xe0] sm:$0xff] }
 0x970   : > { %v3348_v19 = vmul.f32 1.6732632, %v8612_v3 }
 0x971   : > { %v11469_v62 = vpop.eup %11468  ;;  %v3319_v17 = vmul.f32 1.442695, %v3272_v35  ;;  %10143 = vmatprep.mubr.msk.f32.mxu1 %vm879_vm1, %v3379_v54  ;;  %vm3288_vm2 = vcmp.gt.f32.partialorder %v3272_v35, 0.0  ;;  %v3700_v54 = vld [vmem:[#allocation4 + $0xe8] sm:$0xff] }
 0x972   : > { %v8613_v52 = vadd.f32 -1.0, %v11469_v62  ;;  %v3364_v41 = vsel %vm3284_vm14, %v13804_v7, %v3348_v19  ;;  %v3701_v19 = vld [vmem:[#allocation4 + $0xf0] sm:$0xff]  ;;  %v3702_v62 = vld [vmem:[#allocation4 + $0xf8] sm:$0xff] }
 0x973   : > { %11474 = vpow2.f32 %v3319_v17  ;;  %v3380_v4 = vmul.f32 1.050701, %v3364_v41  ;;  %v10902_v17 = vpack.c.bf16 %v3702_v62, %v3701_v19 }
 0x974   : > { %v3349_v18 = vmul.f32 1.6732632, %v8613_v52 }
 0x975   : > { %v11471_v34 = vpop.eup %11470  ;;  %10144 = vmatmul.mubr.msk.f32.gmra.mrb[98].mxu1 %vm879_vm1, %v3380_v4 }
 0x976   : > { %v8614_v30 = vadd.f32 -1.0, %v11471_v34  ;;  %v3365_v61 = vsel %vm3285_vm12, %v3269_v10, %v3349_v18 }
 0x977   : > { %v3381_v26 = vmul.f32 1.050701, %v3365_v61 }
 0x978   : > { %v3350_v39 = vmul.f32 1.6732632, %v8614_v30 }
 0x979   : > { %v11473_v12 = vpop.eup %11472  ;;  %10146 = vmatprep.mubr.msk.f32.mxu1 %vm879_vm1, %v3381_v26 }
 0x97a   : > { %v8615_v53 = vadd.f32 -1.0, %v11473_v12  ;;  %v3366_v28 = vsel %vm3286_vm5, %v3270_v48, %v3350_v39  ;;  %v10898_v48 = vpack.c.bf16 %v3700_v54, %v3699_v49 }
 0x97b   : > { %v3382_v25 = vmul.f32 1.050701, %v3366_v28 }
 0x97c   : > { %v3351_v32 = vmul.f32 1.6732632, %v8615_v53  ;;  %10899 = vmatprep.subr.bf16.mxu1 %v10898_v48 }
 0x97d   : > { %v11475_v7 = vpop.eup %11474  ;;  %10147 = vmatmul.mubr.msk.f32.gmra.mrb[100].mxu1 %vm879_vm1, %v3382_v25 }
 0x97e   : > { %v8616_v22 = vadd.f32 -1.0, %v11475_v7  ;;  %v3367_v57 = vsel %vm3287_vm11, %v3271_v38, %v3351_v32  ;;  %10901 = vmatpush3.bf16.msra.mxu1 %v10898_v48  ;;  %v13834_v38 = vld [vmem:[#allocation4 + $0xd8] ss:$0 sm:$0xff] }
 0x97f   : > { %v3383_v46 = vmul.f32 1.050701, %v3367_v57  ;;  %10903 = vmatprep.subr.bf16.mxu1 %v10902_v17 }
 0x980   : > { %v3352_v9 = vmul.f32 1.6732632, %v8616_v22 }
 0x981   : > { %10149 = vmatprep.mubr.msk.f32.mxu1 %vm879_vm1, %v3383_v46 }
 0x982   : > { %v3368_v10 = vsel %vm3288_vm2, %v3272_v35, %v3352_v9  ;;  %10905 = vmatpush3.bf16.msra.mxu1 %v10902_v17 }
 0x983   : > { %v3384_v3 = vmul.f32 1.050701, %v3368_v10 }
 0x985   : > { %10150 = vmatmul.mubr.msk.f32.gmra.mrb[102].mxu1 %vm879_vm1, %v3384_v3 }
 0xa20   : > { %v10130_v52 = vpop.f32.mrb[88].mxu1 }
 0xa21   : > { %v3514_v41 = vadd.f32 %v10130_v52, %v13834_v38  ;;  %v3508_v4 = vpop.f32.mrb[89].mxu1 }
 0xa22   : > { %v3509_v35 = vadd.f32 %v13834_v38, %v3508_v4 }
 0xa23   : > { %v3605_v18 = vmul.f32 1.442695, %v3514_v41  ;;  %vm3588_vm9 = vcmp.gt.f32.partialorder %v3514_v41, 0.0 }
 0xa24   : > { %v3603_v34 = vmul.f32 1.442695, %v3509_v35  ;;  %vm3587_vm14 = vcmp.gt.f32.partialorder %v3509_v35, 0.0 }
 0xa25   : > { %11476 = vpow2.f32 %v3605_v18 }
 0xa26   : > { %11478 = vpow2.f32 %v3603_v34 }
 0xa28   : > { %v10133_v30 = vpop.f32.mrb[90].mxu1 }
 0xa29   : > { %v3524_v61 = vadd.f32 %v10133_v30, %v13834_v38  ;;  %v3518_v26 = vpop.f32.mrb[91].mxu1 }
 0xa2a   : > { %v3519_v39 = vadd.f32 %v13834_v38, %v3518_v26 }
 0xa2b   : > { %v3609_v12 = vmul.f32 1.442695, %v3524_v61  ;;  %vm3590_vm12 = vcmp.gt.f32.partialorder %v3524_v61, 0.0 }
 0xa2c   : > { %v3607_v53 = vmul.f32 1.442695, %v3519_v39  ;;  %vm3589_vm5 = vcmp.gt.f32.partialorder %v3519_v39, 0.0 }
 0xa2d   : > { %11480 = vpow2.f32 %v3609_v12 }
 0xa2e   : > { %11482 = vpow2.f32 %v3607_v53 }
 0xa2f   : > { %v11477_v28 = vpop.eup %11476 }
 0xa30   : > { %v11479_v25 = vpop.eup %11478  ;;  %v8635_v32 = vadd.f32 -1.0, %v11477_v28  ;;  %v10136_v7 = vpop.f32.mrb[92].mxu1 }
 0xa31   : > { %v8634_v22 = vadd.f32 -1.0, %v11479_v25  ;;  %v3534_v57 = vadd.f32 %v10136_v7, %v13834_v38  ;;  %v3528_v46 = vpop.f32.mrb[93].mxu1 }
 0xa32   : > { %v3652_v9 = vmul.f32 1.6732632, %v8635_v32  ;;  %v3529_v10 = vadd.f32 %v13834_v38, %v3528_v46 }
 0xa33   : > { %v3651_v3 = vmul.f32 1.6732632, %v8634_v22  ;;  %v3613_v49 = vmul.f32 1.442695, %v3534_v57  ;;  %vm3592_vm11 = vcmp.gt.f32.partialorder %v3534_v57, 0.0 }
 0xa34   : > { %v3668_v54 = vsel %vm3588_vm9, %v3514_v41, %v3652_v9  ;;  %v3611_v48 = vmul.f32 1.442695, %v3529_v10  ;;  %vm3591_vm2 = vcmp.gt.f32.partialorder %v3529_v10, 0.0 }
 0xa35   : > { %v3667_v19 = vsel %vm3587_vm14, %v3509_v35, %v3651_v3  ;;  %11484 = vpow2.f32 %v3613_v49  ;;  %v3684_v52 = vmul.f32 1.050701, %v3668_v54 }
 0xa36   : > { %v3683_v62 = vmul.f32 1.050701, %v3667_v19  ;;  %11486 = vpow2.f32 %v3611_v48 }
 0xa37   : > { %v11481_v17 = vpop.eup %11480 }
 0xa38   : > { %v11483_v4 = vpop.eup %11482  ;;  %v8637_v18 = vadd.f32 -1.0, %v11481_v17  ;;  %v10139_v34 = vpop.f32.mrb[94].mxu1  ;;  %10160 = vmatprep.mubr.msk.f32.mxu1 %vm879_vm1, %v3683_v62 }
 0xa39   : > { %v8636_v30 = vadd.f32 -1.0, %v11483_v4  ;;  %v3544_v26 = vadd.f32 %v10139_v34, %v13834_v38  ;;  %v3538_v12 = vpop.f32.mrb[95].mxu1  ;;  %10161 = vmatmul.mubr.msk.f32.vlgmr.msra.gmra.mrb[104].mxu1 %vm879_vm1, %v3684_v52 }
 0xa3a   : > { %v3654_v41 = vmul.f32 1.6732632, %v8637_v18  ;;  %v3539_v53 = vadd.f32 %v13834_v38, %v3538_v12 }
 0xa3b   : > { %v3653_v35 = vmul.f32 1.6732632, %v8636_v30  ;;  %v3617_v28 = vmul.f32 1.442695, %v3544_v26  ;;  %vm3594_vm9 = vcmp.gt.f32.partialorder %v3544_v26, 0.0 }
 0xa3c   : > { %v3670_v25 = vsel %vm3590_vm12, %v3524_v61, %v3654_v41  ;;  %v3615_v32 = vmul.f32 1.442695, %v3539_v53  ;;  %vm3593_vm14 = vcmp.gt.f32.partialorder %v3539_v53, 0.0 }
 0xa3d   : > { %v3669_v7 = vsel %vm3589_vm5, %v3519_v39, %v3653_v35  ;;  %11488 = vpow2.f32 %v3617_v28  ;;  %v3686_v9 = vmul.f32 1.050701, %v3670_v25 }
 0xa3e   : > { %v3685_v22 = vmul.f32 1.050701, %v3669_v7  ;;  %11490 = vpow2.f32 %v3615_v32 }
 0xa3f   : > { %v11485_v46 = vpop.eup %11484 }
 0xa40   : > { %v11487_v3 = vpop.eup %11486  ;;  %v8639_v49 = vadd.f32 -1.0, %v11485_v46  ;;  %v10142_v54 = vpop.f32.mrb[96].mxu1  ;;  %10163 = vmatprep.mubr.msk.f32.mxu1 %vm879_vm1, %v3685_v22 }
 0xa41   : > { %v8638_v48 = vadd.f32 -1.0, %v11487_v3  ;;  %v3554_v19 = vadd.f32 %v10142_v54, %v13834_v38  ;;  %v3548_v62 = vpop.f32.mrb[97].mxu1  ;;  %10164 = vmatmul.mubr.msk.f32.gmra.mrb[106].mxu1 %vm879_vm1, %v3686_v9 }
 0xa42   : > { %v3656_v61 = vmul.f32 1.6732632, %v8639_v49  ;;  %v3549_v17 = vadd.f32 %v13834_v38, %v3548_v62 }
 0xa43   : > { %v3655_v39 = vmul.f32 1.6732632, %v8638_v48  ;;  %v3621_v52 = vmul.f32 1.442695, %v3554_v19  ;;  %vm3596_vm12 = vcmp.gt.f32.partialorder %v3554_v19, 0.0 }
 0xa44   : > { %v3672_v4 = vsel %vm3592_vm11, %v3534_v57, %v3656_v61  ;;  %v3619_v18 = vmul.f32 1.442695, %v3549_v17  ;;  %vm3595_vm5 = vcmp.gt.f32.partialorder %v3549_v17, 0.0 }
 0xa45   : > { %v3671_v34 = vsel %vm3591_vm2, %v3529_v10, %v3655_v39  ;;  %11492 = vpow2.f32 %v3621_v52  ;;  %v3688_v41 = vmul.f32 1.050701, %v3672_v4 }
 0xa46   : > { %v3687_v30 = vmul.f32 1.050701, %v3671_v34  ;;  %11494 = vpow2.f32 %v3619_v18 }
 0xa47   : > { %v11489_v12 = vpop.eup %11488 }
 0xa48   : > { %v11491_v35 = vpop.eup %11490  ;;  %v8641_v28 = vadd.f32 -1.0, %v11489_v12  ;;  %v10145_v25 = vpop.f32.mrb[98].mxu1  ;;  %10166 = vmatprep.mubr.msk.f32.mxu1 %vm879_vm1, %v3687_v30 }
 0xa49   : > { %v8640_v32 = vadd.f32 -1.0, %v11491_v35  ;;  %v3564_v7 = vadd.f32 %v10145_v25, %v13834_v38  ;;  %v3558_v22 = vpop.f32.mrb[99].mxu1  ;;  %10167 = vmatmul.mubr.msk.f32.gmra.mrb[108].mxu1 %vm879_vm1, %v3688_v41 }
 0xa4a   : > { %v3658_v57 = vmul.f32 1.6732632, %v8641_v28  ;;  %v3559_v46 = vadd.f32 %v13834_v38, %v3558_v22 }
 0xa4b   : > { %v3657_v10 = vmul.f32 1.6732632, %v8640_v32  ;;  %v3625_v9 = vmul.f32 1.442695, %v3564_v7  ;;  %vm3598_vm11 = vcmp.gt.f32.partialorder %v3564_v7, 0.0 }
 0xa4c   : > { %v3674_v3 = vsel %vm3594_vm9, %v3544_v26, %v3658_v57  ;;  %v3623_v49 = vmul.f32 1.442695, %v3559_v46  ;;  %vm3597_vm2 = vcmp.gt.f32.partialorder %v3559_v46, 0.0 }
 0xa4d   : > { %v3673_v54 = vsel %vm3593_vm14, %v3539_v53, %v3657_v10  ;;  %11496 = vpow2.f32 %v3625_v9  ;;  %v3690_v61 = vmul.f32 1.050701, %v3674_v3 }
 0xa4e   : > { %v3689_v48 = vmul.f32 1.050701, %v3673_v54  ;;  %11498 = vpow2.f32 %v3623_v49 }
 0xa4f   : > { %v11493_v62 = vpop.eup %11492 }
 0xa50   : > { %v11495_v39 = vpop.eup %11494  ;;  %v8643_v52 = vadd.f32 -1.0, %v11493_v62  ;;  %v10148_v4 = vpop.f32.mrb[100].mxu1  ;;  %10169 = vmatprep.mubr.msk.f32.mxu1 %vm879_vm1, %v3689_v48 }
 0xa51   : > { %v8642_v18 = vadd.f32 -1.0, %v11495_v39  ;;  %v3574_v34 = vadd.f32 %v10148_v4, %v13834_v38  ;;  %v3568_v30 = vpop.f32.mrb[101].mxu1  ;;  %10170 = vmatmul.mubr.msk.f32.gmra.mrb[110].mxu1 %vm879_vm1, %v3690_v61 }
 0xa52   : > { %v3660_v26 = vmul.f32 1.6732632, %v8643_v52  ;;  %v3569_v12 = vadd.f32 %v13834_v38, %v3568_v30 }
 0xa53   : > { %v3659_v53 = vmul.f32 1.6732632, %v8642_v18  ;;  %v3629_v41 = vmul.f32 1.442695, %v3574_v34  ;;  %vm3600_vm9 = vcmp.gt.f32.partialorder %v3574_v34, 0.0 }
 0xa54   : > { %v3676_v35 = vsel %vm3596_vm12, %v3554_v19, %v3660_v26  ;;  %v3627_v28 = vmul.f32 1.442695, %v3569_v12  ;;  %vm3599_vm14 = vcmp.gt.f32.partialorder %v3569_v12, 0.0 }
 0xa55   : > { %v3675_v25 = vsel %vm3595_vm5, %v3549_v17, %v3659_v53  ;;  %11500 = vpow2.f32 %v3629_v41  ;;  %v3692_v57 = vmul.f32 1.050701, %v3676_v35 }
 0xa56   : > { %v3691_v32 = vmul.f32 1.050701, %v3675_v25  ;;  %11502 = vpow2.f32 %v3627_v28 }
 0xa57   : > { %v11497_v22 = vpop.eup %11496 }
 0xa58   : > { %v11499_v10 = vpop.eup %11498  ;;  %v8645_v9 = vadd.f32 -1.0, %v11497_v22  ;;  %v10151_v3 = vpop.f32.mrb[102].mxu1  ;;  %10172 = vmatprep.mubr.msk.f32.mxu1 %vm879_vm1, %v3691_v32 }
 0xa59   : > { %v8644_v49 = vadd.f32 -1.0, %v11499_v10  ;;  %v3584_v54 = vadd.f32 %v10151_v3, %v13834_v38  ;;  %v3578_v48 = vpop.f32.mrb[103].mxu1  ;;  %10173 = vmatmul.mubr.msk.f32.gmra.mrb[112].mxu1 %vm879_vm1, %v3692_v57 }
 0xa5a   : > { %v3662_v19 = vmul.f32 1.6732632, %v8645_v9  ;;  %v3579_v62 = vadd.f32 %v13834_v38, %v3578_v48 }
 0xa5b   : > { %v3661_v17 = vmul.f32 1.6732632, %v8644_v49  ;;  %v3633_v61 = vmul.f32 1.442695, %v3584_v54  ;;  %vm3602_vm12 = vcmp.gt.f32.partialorder %v3584_v54, 0.0 }
 0xa5c   : > { %v3678_v39 = vsel %vm3598_vm11, %v3564_v7, %v3662_v19  ;;  %v3631_v52 = vmul.f32 1.442695, %v3579_v62  ;;  %vm3601_vm5 = vcmp.gt.f32.partialorder %v3579_v62, 0.0 }
 0xa5d   : > { %v3677_v4 = vsel %vm3597_vm2, %v3559_v46, %v3661_v17  ;;  %11504 = vpow2.f32 %v3633_v61  ;;  %v3694_v26 = vmul.f32 1.050701, %v3678_v39  ;;  %v13868_v61 = vld [vmem:[#allocation4 + $0x100] ss:$0 sm:$0xff] }
 0xa5e   : > { %v3693_v18 = vmul.f32 1.050701, %v3677_v4  ;;  %11506 = vpow2.f32 %v3631_v52 }
 0xa5f   : > { %v11501_v30 = vpop.eup %11500 }
 0xa60   : > { %v11503_v53 = vpop.eup %11502  ;;  %v8647_v41 = vadd.f32 -1.0, %v11501_v30  ;;  %10175 = vmatprep.mubr.msk.f32.mxu1 %vm879_vm1, %v3693_v18 }
 0xa61   : > { %v8646_v35 = vadd.f32 -1.0, %v11503_v53  ;;  %10176 = vmatmul.mubr.msk.f32.gmra.mrb[114].mxu1 %vm879_vm1, %v3694_v26 }
 0xa62   : > { %v3664_v38 = vmul.f32 1.6732632, %v8647_v41 }
 0xa63   : > { %v3663_v28 = vmul.f32 1.6732632, %v8646_v35 }
 0xa64   : > { %v3680_v25 = vsel %vm3600_vm9, %v3574_v34, %v3664_v38 }
 0xa65   : > { %v3679_v7 = vsel %vm3599_vm14, %v3569_v12, %v3663_v28  ;;  %v3696_v22 = vmul.f32 1.050701, %v3680_v25  ;;  %v12033_v12 = vmov 10  }
 0xa66   : > { %v3695_v32 = vmul.f32 1.050701, %v3679_v7  ;;  %11210 = vset.pattern.permute.xlu0 %v12033_v12  ;;  %11216 = vset.pattern.permute.xlu1 %v12033_v12 }
 0xa67   : > { %v11505_v46 = vpop.eup %11504 }
 0xa68   : > { %v11507_v57 = vpop.eup %11506  ;;  %v8649_v10 = vadd.f32 -1.0, %v11505_v46  ;;  %10178 = vmatprep.mubr.msk.f32.mxu1 %vm879_vm1, %v3695_v32 }
 0xa69   : > { %v8648_v9 = vadd.f32 -1.0, %v11507_v57  ;;  %10179 = vmatmul.mubr.msk.f32.gmra.mrb[116].mxu1 %vm879_vm1, %v3696_v22 }
 0xa6a   : > { %v3666_v3 = vmul.f32 1.6732632, %v8649_v10 }
 0xa6b   : > { %v3665_v49 = vmul.f32 1.6732632, %v8648_v9 }
 0xa6c   : > { %v3682_v48 = vsel %vm3602_vm12, %v3584_v54, %v3666_v3 }
 0xa6d   : > { %v3681_v19 = vsel %vm3601_vm5, %v3579_v62, %v3665_v49  ;;  %v3698_v34 = vmul.f32 1.050701, %v3682_v48 }
 0xa6e   : > { %v3697_v17 = vmul.f32 1.050701, %v3681_v19 }
 0xa70   : > { %10181 = vmatprep.mubr.msk.f32.mxu1 %vm879_vm1, %v3697_v17 }
 0xa71   : > { %10182 = vmatmul.mubr.msk.f32.gmra.mrb[118].mxu1 %vm879_vm1, %v3698_v34 }
 0xb0c   : > { %v10162_v39 = vpop.f32.mrb[104].mxu1 }
 0xb0d   : > { %v3828_v52 = vadd.f32 %v10162_v39, %v13868_v61  ;;  %v3822_v4 = vpop.f32.mrb[105].mxu1 }
 0xb0e   : > { %v3823_v18 = vadd.f32 %v13868_v61, %v3822_v4 }
 0xb0f   : > { %v8668_v54 = vmul.f32 -1.442695, %v3828_v52 }
 0xb10   : > { %v8667_v30 = vmul.f32 -1.442695, %v3823_v18 }
 0xb11   : > { %11508 = vpow2.f32 %v8668_v54 }
 0xb12   : > { %11510 = vpow2.f32 %v8667_v30 }
 0xb14   : > { %v10165_v62 = vpop.f32.mrb[106].mxu1 }
 0xb15   : > { %v3838_v26 = vadd.f32 %v10165_v62, %v13868_v61  ;;  %v3832_v53 = vpop.f32.mrb[107].mxu1  ;;  %v15550_v62 = vmov 0.0  }
 0xb16   : > { %v3833_v41 = vadd.f32 %v13868_v61, %v3832_v53  ;;  %v8275_v23 = vsel %vm268_vm7, 1.0, %v15550_v62  ;;  %v8277_v8 = vsel %vm270_vm10, 1.0, %v15550_v62  ;;  %vm15556_vm7 = vcmp.eq.s32.totalorder %v15523_v60, %v15536_v1 }
 0xb17   : > { %v8670_v35 = vmul.f32 -1.442695, %v3838_v26  ;;  %vm15558_vm10 = vcmp.eq.s32.totalorder %v15523_v60, %v15542_v33 }
 0xb18   : > { %v8669_v38 = vmul.f32 -1.442695, %v3833_v41  ;;  %v8285_v31 = vsel %vm15558_vm10, 1.0, %v15550_v62 }
 0xb19   : > { %11512 = vpow2.f32 %v8670_v35 }
 0xb1a   : > { %11514 = vpow2.f32 %v8669_v38 }
 0xb1b   : > { %v11509_v28 = vpop.eup %11508 }
 0xb1c   : > { %v11511_v25 = vpop.eup %11510  ;;  %v3950_v7 = vadd.f32 1.0, %v11509_v28  ;;  %v10168_v32 = vpop.f32.mrb[108].mxu1 }
 0xb1d   : > { %v3949_v46 = vadd.f32 1.0, %v11511_v25  ;;  %v3848_v22 = vadd.f32 %v10168_v32, %v13868_v61  ;;  %v3842_v57 = vpop.f32.mrb[109].mxu1 }
 0xb1e   : > { %11516 = vrcp.f32 %v3950_v7  ;;  %v3843_v10 = vadd.f32 %v13868_v61, %v3842_v57 }
 0xb1f   : > { %11518 = vrcp.f32 %v3949_v46  ;;  %v8672_v9 = vmul.f32 -1.442695, %v3848_v22 }
 0xb20   : > { %v8671_v3 = vmul.f32 -1.442695, %v3843_v10 }
 0xb21   : > { %11520 = vpow2.f32 %v8672_v9 }
 0xb22   : > { %11522 = vpow2.f32 %v8671_v3 }
 0xb23   : > { %v11513_v49 = vpop.eup %11512 }
 0xb24   : > { %v11515_v48 = vpop.eup %11514  ;;  %v3952_v19 = vadd.f32 1.0, %v11513_v49  ;;  %v10171_v17 = vpop.f32.mrb[110].mxu1 }
 0xb25   : > { %v3951_v34 = vadd.f32 1.0, %v11515_v48  ;;  %v3858_v12 = vadd.f32 %v10171_v17, %v13868_v61  ;;  %v3852_v39 = vpop.f32.mrb[111].mxu1 }
 0xb26   : > { %11524 = vrcp.f32 %v3952_v19  ;;  %v3853_v52 = vadd.f32 %v13868_v61, %v3852_v39 }
 0xb27   : > { %11526 = vrcp.f32 %v3951_v34  ;;  %v8674_v4 = vmul.f32 -1.442695, %v3858_v12 }
 0xb28   : > { %v13878_v18 = vpop.eup %11516  ;;  %v8673_v54 = vmul.f32 -1.442695, %v3853_v52 }
 0xb29   : > { %v13880_v30 = vpop.eup %11518  ;;  %11528 = vpow2.f32 %v8674_v4  ;;  %vm3998_vm11 = vcmp.gt.f32.partialorder %v13878_v18, 0.5 }
 0xb2a   : > { %11530 = vpow2.f32 %v8673_v54  ;;  %vm3997_vm2 = vcmp.gt.f32.partialorder %v13880_v30, 0.5  ;;  %v8684_v26 = vsel %vm3998_vm11, 1.0, %v15550_v62 }
 0xb2b   : > { %v11521_v53 = vpop.eup %11520  ;;  %v8683_v41 = vsel %vm3997_vm2, 1.0, %v15550_v62 }
 0xb2c   : > { %v11523_v35 = vpop.eup %11522  ;;  %v3954_v38 = vadd.f32 1.0, %v11521_v53  ;;  %v10174_v28 = vpop.f32.mrb[112].mxu1  ;;  %v11211_v25 = vpack.i.bf16 %v8684_v26, %v8683_v41 }
 0xb2d   : > { %v3953_v7 = vadd.f32 1.0, %v11523_v35  ;;  %v3868_v32 = vadd.f32 %v10174_v28, %v13868_v61  ;;  %v3862_v46 = vpop.f32.mrb[113].mxu1 }
 0xb2e   : > { %11532 = vrcp.f32 %v3954_v38  ;;  %v3863_v22 = vadd.f32 %v13868_v61, %v3862_v46  ;;  %11212 = vperm.xlu0 %11210, %v11211_v25  }
 0xb2f   : > { %11534 = vrcp.f32 %v3953_v7  ;;  %v8676_v57 = vmul.f32 -1.442695, %v3868_v32 }
 0xb30   : > { %v13888_v10 = vpop.eup %11524  ;;  %v8675_v9 = vmul.f32 -1.442695, %v3863_v22 }
 0xb31   : > { %v13890_v3 = vpop.eup %11526  ;;  %11536 = vpow2.f32 %v8676_v57  ;;  %vm4000_vm9 = vcmp.gt.f32.partialorder %v13888_v10, 0.5 }
 0xb32   : > { %11538 = vpow2.f32 %v8675_v9  ;;  %vm3999_vm14 = vcmp.gt.f32.partialorder %v13890_v3, 0.5  ;;  %v8686_v49 = vsel %vm4000_vm9, 1.0, %v15550_v62 }
 0xb33   : > { %v11529_v48 = vpop.eup %11528  ;;  %v8685_v19 = vsel %vm3999_vm14, 1.0, %v15550_v62 }
 0xb34   : > { %v11531_v17 = vpop.eup %11530  ;;  %v3956_v34 = vadd.f32 1.0, %v11529_v48  ;;  %v10177_v12 = vpop.f32.mrb[114].mxu1  ;;  %v11217_v39 = vpack.i.bf16 %v8686_v49, %v8685_v19 }
 0xb35   : > { %v3955_v52 = vadd.f32 1.0, %v11531_v17  ;;  %v3878_v4 = vadd.f32 %v10177_v12, %v13868_v61  ;;  %v3872_v54 = vpop.f32.mrb[115].mxu1 }
 0xb36   : > { %11540 = vrcp.f32 %v3956_v34  ;;  %v3873_v26 = vadd.f32 %v13868_v61, %v3872_v54  ;;  %11218 = vperm.xlu1 %11216, %v11217_v39  }
 0xb37   : > { %11542 = vrcp.f32 %v3955_v52  ;;  %v8678_v53 = vmul.f32 -1.442695, %v3878_v4 }
 0xb38   : > { %v13898_v41 = vpop.eup %11532  ;;  %v8677_v35 = vmul.f32 -1.442695, %v3873_v26 }
 0xb39   : > { %v13900_v38 = vpop.eup %11534  ;;  %11544 = vpow2.f32 %v8678_v53  ;;  %vm4002_vm12 = vcmp.gt.f32.partialorder %v13898_v41, 0.5 }
 0xb3a   : > { %11546 = vpow2.f32 %v8677_v35  ;;  %vm4001_vm5 = vcmp.gt.f32.partialorder %v13900_v38, 0.5  ;;  %v8688_v28 = vsel %vm4002_vm12, 1.0, %v15550_v62 }
 0xb3b   : > { %v11537_v25 = vpop.eup %11536  ;;  %v8687_v7 = vsel %vm4001_vm5, 1.0, %v15550_v62 }
 0xb3c   : > { %v11539_v32 = vpop.eup %11538  ;;  %v3958_v46 = vadd.f32 1.0, %v11537_v25  ;;  %v10180_v22 = vpop.f32.mrb[116].mxu1  ;;  %v11222_v57 = vpack.i.bf16 %v8688_v28, %v8687_v7 }
 0xb3d   : > { %v3957_v9 = vadd.f32 1.0, %v11539_v32  ;;  %v3888_v49 = vadd.f32 %v10180_v22, %v13868_v61  ;;  %v3882_v48 = vpop.f32.mrb[117].mxu1 }
 0xb3e   : > { %11548 = vrcp.f32 %v3958_v46  ;;  %v3883_v19 = vadd.f32 %v13868_v61, %v3882_v48  ;;  %11223 = vperm.xlu1 %11216, %v11222_v57  }
 0xb3f   : > { %11550 = vrcp.f32 %v3957_v9  ;;  %v8680_v17 = vmul.f32 -1.442695, %v3888_v49 }
 0xb40   : > { %v13908_v34 = vpop.eup %11540  ;;  %v8679_v12 = vmul.f32 -1.442695, %v3883_v19 }
 0xb41   : > { %v13910_v39 = vpop.eup %11542  ;;  %11552 = vpow2.f32 %v8680_v17  ;;  %vm4004_vm11 = vcmp.gt.f32.partialorder %v13908_v34, 0.5 }
 0xb42   : > { %11554 = vpow2.f32 %v8679_v12  ;;  %vm4003_vm2 = vcmp.gt.f32.partialorder %v13910_v39, 0.5  ;;  %v8690_v52 = vsel %vm4004_vm11, 1.0, %v15550_v62 }
 0xb43   : > { %v11545_v4 = vpop.eup %11544  ;;  %v8689_v54 = vsel %vm4003_vm2, 1.0, %v15550_v62 }
 0xb44   : > { %v11547_v26 = vpop.eup %11546  ;;  %v3960_v53 = vadd.f32 1.0, %v11545_v4  ;;  %v10183_v35 = vpop.f32.mrb[118].mxu1  ;;  %v11227_v28 = vpack.i.bf16 %v8690_v52, %v8689_v54 }
 0xb45   : > { %v3959_v25 = vadd.f32 1.0, %v11547_v26  ;;  %v3898_v7 = vadd.f32 %v10183_v35, %v13868_v61  ;;  %v3892_v32 = vpop.f32.mrb[119].mxu1 }
 0xb46   : > { %11556 = vrcp.f32 %v3960_v53  ;;  %v3893_v46 = vadd.f32 %v13868_v61, %v3892_v32  ;;  %11228 = vperm.xlu0 %11210, %v11227_v28  }
 0xb47   : > { %11558 = vrcp.f32 %v3959_v25  ;;  %v8682_v22 = vmul.f32 -1.442695, %v3898_v7 }
 0xb48   : > { %v13918_v57 = vpop.eup %11548  ;;  %v8681_v9 = vmul.f32 -1.442695, %v3893_v46 }
 0xb49   : > { %v13920_v49 = vpop.eup %11550  ;;  %11560 = vpow2.f32 %v8682_v22  ;;  %vm4006_vm9 = vcmp.gt.f32.partialorder %v13918_v57, 0.5 }
 0xb4a   : > { %11562 = vpow2.f32 %v8681_v9  ;;  %vm4005_vm14 = vcmp.gt.f32.partialorder %v13920_v49, 0.5  ;;  %v8692_v48 = vsel %vm4006_vm9, 1.0, %v15550_v62 }
 0xb4b   : > { %v11553_v19 = vpop.eup %11552  ;;  %v8691_v17 = vsel %vm4005_vm14, 1.0, %v15550_v62 }
 0xb4c   : > { %v11555_v61 = vpop.eup %11554  ;;  %v3962_v12 = vadd.f32 1.0, %v11553_v19  ;;  %v11232_v52 = vpack.i.bf16 %v8692_v48, %v8691_v17 }
 0xb4d   : > { %v3961_v4 = vadd.f32 1.0, %v11555_v61 }
 0xb4e   : > { %11564 = vrcp.f32 %v3962_v12  ;;  %11233 = vperm.xlu1 %11216, %v11232_v52  }
 0xb4f   : > { %11566 = vrcp.f32 %v3961_v4 }
 0xb50   : > { %v13926_v54 = vpop.eup %11556 }
 0xb51   : > { %v13928_v26 = vpop.eup %11558  ;;  %vm4008_vm12 = vcmp.gt.f32.partialorder %v13926_v54, 0.5 }
 0xb52   : > { %vm4007_vm5 = vcmp.gt.f32.partialorder %v13928_v26, 0.5  ;;  %v8694_v53 = vsel %vm4008_vm12, 1.0, %v15550_v62 }
 0xb53   : > { %v11561_v35 = vpop.eup %11560  ;;  %v8693_v28 = vsel %vm4007_vm5, 1.0, %v15550_v62 }
 0xb54   : > { %v11563_v25 = vpop.eup %11562  ;;  %v3964_v7 = vadd.f32 1.0, %v11561_v35  ;;  %v11237_v32 = vpack.i.bf16 %v8694_v53, %v8693_v28 }
 0xb55   : > { %v3963_v46 = vadd.f32 1.0, %v11563_v25 }
 0xb56   : > { %11568 = vrcp.f32 %v3964_v7  ;;  %11238 = vperm.xlu0 %11210, %v11237_v32   ;;  %v8273_v7 = vsel %vm266_vm3, 1.0, %v15550_v62  ;;  %v8272_v32 = vsel %vm265_vm4, 1.0, %v15550_v62  ;;  %vm15553_vm3 = vcmp.eq.s32.totalorder %v15523_v60, %v15531_v24 }
 0xb57   : > { %11570 = vrcp.f32 %v3963_v46  ;;  %vm15554_vm4 = vcmp.eq.s32.totalorder %v15523_v60, %v15532_v58  ;;  %v8281_v24 = vsel %vm15556_vm7, 1.0, %v15550_v62 }
 0xb58   : > { %v13934_v22 = vpop.eup %11564  ;;  %v8279_v55 = vsel %vm15554_vm4, 1.0, %v15550_v62 }
 0xb59   : > { %v13936_v9 = vpop.eup %11566  ;;  %vm4010_vm11 = vcmp.gt.f32.partialorder %v13934_v22, 0.5 }
 0xb5a   : > { %vm4009_vm2 = vcmp.gt.f32.partialorder %v13936_v9, 0.5  ;;  %v8696_v48 = vsel %vm4010_vm11, 1.0, %v15550_v62 }
 0xb5b   : > { %v8695_v19 = vsel %vm4009_vm2, 1.0, %v15550_v62 }
 0xb5c   : > { %v11242_v17 = vpack.i.bf16 %v8696_v48, %v8695_v19 }
 0xb5e   : > { %11243 = vperm.xlu1 %11216, %v11242_v17  }
 0xb60   : > { %v13942_v61 = vpop.eup %11568 }
 0xb61   : > { %15551 = vst [vmem:[#allocation8_spill] sm:$0xff] %v13942_v61  ;;  %v13944_v12 = vpop.eup %11570  ;;  %vm4012_vm9 = vcmp.gt.f32.partialorder %v13942_v61, 0.5 }
 0xb62   : > { %15552 = vst [vmem:[#allocation15_spill] sm:$0xff] %v13944_v12  ;;  %vm4011_vm14 = vcmp.gt.f32.partialorder %v13944_v12, 0.5  ;;  %v8698_v52 = vsel %vm4012_vm9, 1.0, %v15550_v62 }
 0xb63   : > { %v8697_v4 = vsel %vm4011_vm14, 1.0, %v15550_v62 }
 0xb64   : > { %v11247_v53 = vpack.i.bf16 %v8698_v52, %v8697_v4 }
 0xb66   : > { %11248 = vperm.xlu0 %11210, %v11247_v53   ;;  %v8274_v53 = vsel %vm267_vm6, 1.0, %v15550_v62  ;;  %vm15555_vm6 = vcmp.eq.s32.totalorder %v15523_v60, %v15534_v16 }
 0xbad   : > { %v11213_v35 = vpop.permute.xlu0 %11212 }
 0xbae   : > { %v11215_v28 = vunpack.i.h.bf16 %v11213_v35  ;;  %v11214_v25 = vunpack.i.l.bf16 %v11213_v35 }
 0xbb0   : > { %v4126_v46 = vmul.f32 %v11215_v28, %v8273_v7  ;;  %v4125_v48 = vmul.f32 %v11214_v25, %v8272_v32 }
 0xbb2   : > { %v10906_v19 = vpack.c.bf16 %v4126_v46, %v4125_v48  ;;  %v8276_v46 = vsel %vm269_vm8, 1.0, %v15550_v62  ;;  %vm15557_vm8 = vcmp.eq.s32.totalorder %v15523_v60, %v15539_v47 }
 0xbb3   : > { %v8283_v16 = vsel %vm15557_vm8, 1.0, %v15550_v62 }
 0xbb4   : > { %10907 = vmatprep.subr.bf16.mxu0 %v10906_v19 }
 0xbb5   : > { %v11219_v17 = vpop.permute.xlu1 %11218  ;;  %10909 = vmatpush3.bf16.msra.mxu0 %v10906_v19 }
 0xbb6   : > { %v11221_v52 = vunpack.i.h.bf16 %v11219_v17  ;;  %v11220_v4 = vunpack.i.l.bf16 %v11219_v17 }
 0xbb8   : > { %v4128_v20 = vmul.f32 %v11221_v52, %v8275_v23  ;;  %v4127_v35 = vmul.f32 %v11220_v4, %v8274_v53  ;;  %v8278_v53 = vsel %vm15553_vm3, 1.0, %v15550_v62 }
 0xbba   : > { %v10910_v28 = vpack.c.bf16 %v4128_v20, %v4127_v35 }
 0xbbc   : > { %10911 = vmatprep.subr.bf16.mxu0 %v10910_v28 }
 0xbbd   : > { %v11224_v25 = vpop.permute.xlu1 %11223  ;;  %10913 = vmatpush3.bf16.msra.mxu0 %v10910_v28 }
 0xbbe   : > { %v11226_v7 = vunpack.i.h.bf16 %v11224_v25  ;;  %v11225_v32 = vunpack.i.l.bf16 %v11224_v25 }
 0xbc0   : > { %v4130_v5 = vmul.f32 %v11226_v7, %v8277_v8  ;;  %v4129_v48 = vmul.f32 %v11225_v32, %v8276_v46  ;;  %v8280_v7 = vsel %vm15555_vm6, 1.0, %v15550_v62 }
 0xbc2   : > { %v10914_v19 = vpack.c.bf16 %v4130_v5, %v4129_v48 }
 0xbc4   : > { %10915 = vmatprep.subr.bf16.mxu0 %v10914_v19 }
 0xbc5   : > { %v11229_v17 = vpop.permute.xlu0 %11228  ;;  %10917 = vmatpush3.bf16.msra.mxu0 %v10914_v19  ;;  %v8282_v19 = vsel %vm275_vm0, 1.0, %v15550_v62 }
 0xbc6   : > { %v11231_v52 = vunpack.i.h.bf16 %v11229_v17  ;;  %v11230_v4 = vunpack.i.l.bf16 %v11229_v17 }
 0xbc8   : > { %v4132_v40 = vmul.f32 %v11231_v52, %v8279_v55  ;;  %v4131_v23 = vmul.f32 %v11230_v4, %v8278_v53 }
 0xbca   : > { %v10918_v20 = vpack.c.bf16 %v4132_v40, %v4131_v23  ;;  %v8284_v40 = vsel %vm277_vm15, 1.0, %v15550_v62  ;;  %vm15559_vm15 = vcmp.eq.s32.totalorder %v15523_v60, %v15545_v56  ;;  %v15566_v56 = vld [vmem:[#allocation38_spill] sm:$0xff] }
 0xbcb   : > { %v8287_v2 = vsel %vm15559_vm15, 1.0, %v15550_v62  ;;  %vm15567_vm5 = vcmp.eq.s32.totalorder %v15566_v56, %v15548_v27  ;;  %v15596_v56 = vld [vmem:[#allocation56_spill] sm:$0xff] }
 0xbcc   : > { %10919 = vmatprep.subr.bf16.mxu0 %v10918_v20 }
 0xbcd   : > { %v11234_v35 = vpop.permute.xlu1 %11233  ;;  %10921 = vmatpush3.bf16.msra.mxu0 %v10918_v20 }
 0xbce   : > { %v11236_v28 = vunpack.i.h.bf16 %v11234_v35  ;;  %v11235_v25 = vunpack.i.l.bf16 %v11234_v35 }
 0xbd0   : > { %v4134_v58 = vmul.f32 %v11236_v28, %v8281_v24  ;;  %v4133_v32 = vmul.f32 %v11235_v25, %v8280_v7  ;;  %v8286_v7 = vsel %vm279_vm13, 1.0, %v15550_v62  ;;  %vm15565_vm13 = vcmp.eq.s32.totalorder %v15564_v43, %v15548_v27  ;;  %v15568_v62 = vld [vmem:[#allocation39_spill] sm:$0xff] }
 0xbd1   : > { %vm15569_vm11 = vcmp.eq.s32.totalorder %v15568_v62, %v15548_v27 }
 0xbd2   : > { %v10922_v46 = vpack.c.bf16 %v4134_v58, %v4133_v32  ;;  %v15560_v32 = vld [vmem:[#allocation35_spill] sm:$0xff] }
 0xbd3   : > { %vm15561_vm0 = vcmp.eq.s32.totalorder %v15560_v32, %v15548_v27  ;;  %v15595_v32 = vld [vmem:[#allocation55_spill] sm:$0xff] }
 0xbd4   : > { %10923 = vmatprep.subr.bf16.mxu0 %v10922_v46 }
 0xbd5   : > { %v11239_v8 = vpop.permute.xlu0 %11238  ;;  %10925 = vmatpush3.bf16.msra.mxu0 %v10922_v46  ;;  %v15562_v46 = vld [vmem:[#allocation36_spill] sm:$0xff] }
 0xbd6   : > { %v11241_v5 = vunpack.i.h.bf16 %v11239_v8  ;;  %v11240_v48 = vunpack.i.l.bf16 %v11239_v8  ;;  %vm15563_vm12 = vcmp.eq.s32.totalorder %v15562_v46, %v15548_v27  ;;  %v15570_v8 = vld [vmem:[#allocation40_spill] sm:$0xff] }
 0xbd7   : > { %vm15571_vm2 = vcmp.eq.s32.totalorder %v15570_v8, %v15548_v27 }
 0xbd8   : > { %v4136_v1 = vmul.f32 %v11241_v5, %v8283_v16  ;;  %v4135_v17 = vmul.f32 %v11240_v48, %v8282_v19  ;;  %v15572_v5 = vld [vmem:[#allocation41_spill] sm:$0xff]  ;;  %v15574_v48 = vld [vmem:[#allocation42_spill] sm:$0xff]  ;;  %v15576_v19 = vld [vmem:[#allocation43_spill] sm:$0xff] }
 0xbd9   : > { %vm15573_vm9 = vcmp.eq.s32.totalorder %v15572_v5, %v15548_v27  ;;  %vm15575_vm14 = vcmp.eq.s32.totalorder %v15574_v48, %v15548_v27  ;;  %vm15577_vm3 = vcmp.eq.s32.totalorder %v15576_v19, %v15548_v27  ;;  %v15578_v16 = vld [vmem:[#allocation44_spill] sm:$0xff]  ;;  %v15597_v5 = vld [vmem:[#allocation57_spill] sm:$0xff] }
 0xbda   : > { %v10926_v52 = vpack.c.bf16 %v4136_v1, %v4135_v17  ;;  %vm15579_vm4 = vcmp.eq.s32.totalorder %v15578_v16, %v15548_v27  ;;  %v15580_v1 = vld [vmem:[#allocation45_spill] sm:$0xff]  ;;  %v15582_v17 = vld [vmem:[#allocation46_spill] sm:$0xff] }
 0xbdb   : > { %vm15581_vm6 = vcmp.eq.s32.totalorder %v15580_v1, %v15548_v27  ;;  %vm15583_vm7 = vcmp.eq.s32.totalorder %v15582_v17, %v15548_v27  ;;  %v15598_v16 = vld [vmem:[#allocation58_spill] sm:$0xff] }
 0xbdc   : > { %10927 = vmatprep.subr.bf16.mxu0 %v10926_v52 }
 0xbdd   : > { %v11244_v4 = vpop.permute.xlu1 %11243  ;;  %10929 = vmatpush3.bf16.msra.mxu0 %v10926_v52  ;;  %v15584_v52 = vld [vmem:[#allocation47_spill] sm:$0xff] }
 0xbde   : > { %v11246_v53 = vunpack.i.h.bf16 %v11244_v4  ;;  %v11245_v55 = vunpack.i.l.bf16 %v11244_v4  ;;  %vm15585_vm8 = vcmp.eq.s32.totalorder %v15584_v52, %v15548_v27  ;;  %v15586_v4 = vld [vmem:[#allocation48_spill] sm:$0xff]  ;;  %v15599_v52 = vld [vmem:[#allocation59_spill] sm:$0xff] }
 0xbdf   : > { %vm15587_vm10 = vcmp.eq.s32.totalorder %v15586_v4, %v15548_v27 }
 0xbe0   : > { %v4138_v47 = vmul.f32 %v11246_v53, %v8285_v31  ;;  %v4137_v23 = vmul.f32 %v11245_v55, %v8284_v40  ;;  %v15588_v53 = vld [vmem:[#allocation49_spill] sm:$0xff]  ;;  %v15590_v40 = vld [vmem:[#allocation50_spill] sm:$0xff] }
 0xbe1   : > { %vm15589_vm15 = vcmp.eq.s32.totalorder %v15588_v53, %v15548_v27 }
 0xbe2   : > { %v10930_v20 = vpack.c.bf16 %v4138_v47, %v4137_v23  ;;  %v15591_v23 = vld [vmem:[#allocation51_spill] sm:$0xff] }
 0xbe4   : > { %10931 = vmatprep.subr.bf16.mxu0 %v10930_v20 }
 0xbe5   : > { %v11249_v35 = vpop.permute.xlu0 %11248  ;;  %10933 = vmatpush3.bf16.msra.mxu0 %v10930_v20 }
 0xbe6   : > { %v11251_v28 = vunpack.i.h.bf16 %v11249_v35  ;;  %v11250_v25 = vunpack.i.l.bf16 %v11249_v35 }
 0xbe8   : > { %v4139_v33 = vmul.f32 %v11250_v25, %v8286_v7  ;;  %v4140_v24 = vmul.f32 %v11251_v28, %v8287_v2  ;;  %v15592_v28 = vld [vmem:[#allocation52_spill] sm:$0xff]  ;;  %v15593_v2 = vld [vmem:[#allocation53_spill] sm:$0xff] }
 0xbea   : > { %v10934_v58 = vpack.c.bf16 %v4140_v24, %v4139_v33  ;;  %v15594_v33 = vld [vmem:[#allocation54_spill] sm:$0xff] }
 0xbec   : > { %10935 = vmatprep.subr.bf16.mxu0 %v10934_v58 }
 0xbed   : > { %10937 = vmatpush3.bf16.msra.mxu0 %v10934_v58 }
 0xbf0   : > { %10217 = vmatmul.mubr.msk.f32.vlgmr.msra.gmra.mrb[104].mxu0 %vm15561_vm0, %v15524_v15 }
 0xbf1   : > { %10219 = vmatprep.mubr.msk.f32.mxu0 %vm15563_vm12, %v15524_v15 }
 0xbf4   : > { %10220 = vmatmul.mubr.msk.f32.gmra.mrb[106].mxu0 %vm15565_vm13, %v15524_v15 }
 0xbf5   : > { %10222 = vmatprep.mubr.msk.f32.mxu0 %vm15567_vm5, %v15524_v15 }
 0xbf8   : > { %10223 = vmatmul.mubr.msk.f32.gmra.mrb[108].mxu0 %vm15569_vm11, %v15524_v15 }
 0xbf9   : > { %10225 = vmatprep.mubr.msk.f32.mxu0 %vm15571_vm2, %v15524_v15 }
 0xbfc   : > { %10226 = vmatmul.mubr.msk.f32.gmra.mrb[110].mxu0 %vm15573_vm9, %v15524_v15 }
 0xbfd   : > { %10228 = vmatprep.mubr.msk.f32.mxu0 %vm15575_vm14, %v15524_v15 }
 0xc00   : > { %10229 = vmatmul.mubr.msk.f32.gmra.mrb[112].mxu0 %vm15577_vm3, %v15524_v15 }
 0xc01   : > { %10231 = vmatprep.mubr.msk.f32.mxu0 %vm15579_vm4, %v15524_v15 }
 0xc04   : > { %10232 = vmatmul.mubr.msk.f32.gmra.mrb[114].mxu0 %vm15581_vm6, %v15524_v15 }
 0xc05   : > { %10234 = vmatprep.mubr.msk.f32.mxu0 %vm15583_vm7, %v15524_v15 }
 0xc08   : > { %10235 = vmatmul.mubr.msk.f32.gmra.mrb[116].mxu0 %vm15585_vm8, %v15524_v15 }
 0xc09   : > { %10237 = vmatprep.mubr.msk.f32.mxu0 %vm15587_vm10, %v15524_v15 }
 0xc0c   : > { %10238 = vmatmul.mubr.msk.f32.gmra.mrb[118].mxu0 %vm15589_vm15, %v15524_v15 }
 0xcc3   : > { %v10218_v55 = vpop.f32.mrb[104].mxu0 }
 0xcc4   : > { %v14075_v31 = vadd.f32 %v10218_v55, %v15590_v40  ;;  %v4207_v47 = vpop.f32.mrb[105].mxu0  ;;  %v15600_v55 = vld [vmem:[#allocation60_spill] sm:$0xff] }
 0xcc5   : > { %v4208_v20 = vadd.f32 %v15591_v23, %v4207_v47  ;;  %v15601_v23 = vld [vmem:[#allocation61_spill] sm:$0xff] }
 0xcc6   : > { %4288 = vadd.xlane.f32.xlu0 %v14075_v31 }
 0xcc7   : > { %v10221_v35 = vpop.f32.mrb[106].mxu0  ;;  %4286 = vadd.xlane.f32.xlu1 %v4208_v20  ;;  %10272 = vmatprep.mubr.f32.mxu1 %v4208_v20 }
 0xcc8   : > { %v14080_v25 = vadd.f32 %v10221_v35, %v15592_v28  ;;  %v4217_v7 = vpop.f32.mrb[107].mxu0  ;;  %10328 = vmatprep.mubr.f32.mxu0 %v4208_v20  ;;  %v15602_v28 = vld [vmem:[#allocation62_spill] sm:$0xff] }
 0xcc9   : > { %v14083_v27 = vadd.f32 %v15593_v2, %v4217_v7 }
 0xccb   : > { %v10224_v15 = vpop.f32.mrb[108].mxu0  ;;  %4290 = vadd.xlane.f32.xlu0 %v14083_v27  ;;  %4292 = vadd.xlane.f32.xlu1 %v14080_v25 }
 0xccc   : > { %v14088_v24 = vadd.f32 %v10224_v15, %v15594_v33  ;;  %v4227_v58 = vpop.f32.mrb[109].mxu0  ;;  %v15603_v15 = vld [vmem:[#allocation63_spill] sm:$0xff] }
 0xccd   : > { %v14091_v46 = vadd.f32 %v15595_v32, %v4227_v58  ;;  %v15604_v32 = vld [vmem:[#allocation64_spill] sm:$0xff] }
 0xccf   : > { %v10227_v43 = vpop.f32.mrb[110].mxu0  ;;  %4294 = vadd.xlane.f32.xlu0 %v14091_v46  ;;  %4296 = vadd.xlane.f32.xlu1 %v14088_v24 }
 0xcd0   : > { %v14096_v62 = vadd.f32 %v10227_v43, %v15596_v56  ;;  %v4237_v8 = vpop.f32.mrb[111].mxu0 }
 0xcd1   : > { %v14099_v48 = vadd.f32 %v15597_v5, %v4237_v8  ;;  %v15605_v8 = vld [vmem:[#allocation65_spill] sm:$0xff] }
 0xcd3   : > { %v10230_v19 = vpop.f32.mrb[112].mxu0  ;;  %4298 = vadd.xlane.f32.xlu0 %v14099_v48  ;;  %4300 = vadd.xlane.f32.xlu1 %v14096_v62 }
 0xcd4   : > { %v14104_v1 = vadd.f32 %v10230_v19, %v15598_v16  ;;  %v4247_v17 = vpop.f32.mrb[113].mxu0 }
 0xcd5   : > { %v14107_v4 = vadd.f32 %v15599_v52, %v4247_v17 }
 0xcd7   : > { %v10233_v53 = vpop.f32.mrb[114].mxu0  ;;  %4302 = vadd.xlane.f32.xlu0 %v14107_v4  ;;  %4304 = vadd.xlane.f32.xlu1 %v14104_v1 }
 0xcd8   : > { %v14112_v40 = vadd.f32 %v10233_v53, %v15600_v55  ;;  %v4257_v47 = vpop.f32.mrb[115].mxu0 }
 0xcd9   : > { %v14115_v20 = vadd.f32 %v15601_v23, %v4257_v47 }
 0xcdb   : > { %v10236_v35 = vpop.f32.mrb[116].mxu0  ;;  %4306 = vadd.xlane.f32.xlu0 %v14115_v20  ;;  %4308 = vadd.xlane.f32.xlu1 %v14112_v40 }
 0xcdc   : > { %v14120_v7 = vadd.f32 %v10236_v35, %v15602_v28  ;;  %v4267_v2 = vpop.f32.mrb[117].mxu0 }
 0xcdd   : > { %v14123_v33 = vadd.f32 %v15603_v15, %v4267_v2 }
 0xcdf   : > { %v10239_v58 = vpop.f32.mrb[118].mxu0  ;;  %4310 = vadd.xlane.f32.xlu0 %v14123_v33  ;;  %4312 = vadd.xlane.f32.xlu1 %v14120_v7 }
 0xce0   : > { %v14128_v43 = vadd.f32 %v10239_v58, %v15604_v32  ;;  %v4277_v56 = vpop.f32.mrb[119].mxu0 }
 0xce1   : > { %v14131_v5 = vadd.f32 %v15605_v8, %v4277_v56 }
 0xce3   : > { %4314 = vadd.xlane.f32.xlu0 %v14131_v5  ;;  %4316 = vadd.xlane.f32.xlu1 %v14128_v43 }
 0xd53   : > { %v4289_v19 = vpop.xlane.xlu0 %4288 }
 0xd54   : > { %11572 = vrsqrt.f32 %v4289_v19  ;;  %v4287_v16 = vpop.xlane.xlu1 %4286 }
 0xd55   : > { %11574 = vrsqrt.f32 %v4287_v16 }
 0xd58   : > { %v4291_v17 = vpop.xlane.xlu0 %4290  ;;  %v4293_v52 = vpop.xlane.xlu1 %4292 }
 0xd59   : > { %11576 = vrsqrt.f32 %v4291_v17 }
 0xd5a   : > { %11578 = vrsqrt.f32 %v4293_v52 }
 0xd5c   : > { %v4295_v53 = vpop.xlane.xlu0 %4294  ;;  %v4297_v55 = vpop.xlane.xlu1 %4296 }
 0xd5d   : > { %11580 = vrsqrt.f32 %v4295_v53 }
 0xd5e   : > { %v14135_v47 = vpop.eup %11572  ;;  %11582 = vrsqrt.f32 %v4297_v55 }
 0xd5f   : > { %v14137_v23 = vpop.eup %11574  ;;  %v4351_v35 = vmul.f32 %v14135_v47, %v13475_v13 }
 0xd60   : > { %v4299_v28 = vpop.xlane.xlu0 %4298  ;;  %v4301_v2 = vpop.xlane.xlu1 %4300  ;;  %v4350_v15 = vmul.f32 %v14137_v23, %v13470_v29 }
 0xd61   : > { %11584 = vrsqrt.f32 %v4299_v28 }
 0xd62   : > { %11586 = vrsqrt.f32 %v4301_v2  ;;  %v10938_v58 = vpack.c.bf16 %v4351_v35, %v4350_v15 }
 0xd63   : > { %v14143_v32 = vpop.eup %11576 }
 0xd64   : > { %v14145_v56 = vpop.eup %11578  ;;  %v4303_v8 = vpop.xlane.xlu0 %4302  ;;  %10939 = vmatprep.subr.bf16.mxu1 %v10938_v58  ;;  %v4352_v16 = vmul.f32 %v14143_v32, %v13492_v45 }
 0xd65   : > { %v4305_v19 = vpop.xlane.xlu1 %4304  ;;  %11588 = vrsqrt.f32 %v4303_v8  ;;  %10941 = vmatpush3.bf16.msra.mxu1 %v10938_v58  ;;  %v4353_v13 = vmul.f32 %v14145_v56, %v13495_v50 }
 0xd66   : > { %11590 = vrsqrt.f32 %v4305_v19 }
 0xd67   : > { %v14151_v29 = vpop.eup %11580  ;;  %v10942_v17 = vpack.c.bf16 %v4353_v13, %v4352_v16 }
 0xd68   : > { %v14153_v52 = vpop.eup %11582  ;;  %v4307_v53 = vpop.xlane.xlu0 %4306  ;;  %v4354_v35 = vmul.f32 %v14151_v29, %v13515_v0 }
 0xd69   : > { %v4309_v55 = vpop.xlane.xlu1 %4308  ;;  %11592 = vrsqrt.f32 %v4307_v53  ;;  %10943 = vmatprep.subr.bf16.mxu1 %v10942_v17  ;;  %v4355_v45 = vmul.f32 %v14153_v52, %v13521_v14 }
 0xd6a   : > { %11594 = vrsqrt.f32 %v4309_v55  ;;  %10945 = vmatpush3.bf16.msra.mxu1 %v10942_v17 }
 0xd6b   : > { %v14159_v28 = vpop.eup %11584  ;;  %v10946_v50 = vpack.c.bf16 %v4355_v45, %v4354_v35 }
 0xd6c   : > { %v14161_v2 = vpop.eup %11586  ;;  %v4311_v15 = vpop.xlane.xlu0 %4310  ;;  %v4356_v8 = vmul.f32 %v14159_v28, %v13539_v63 }
 0xd6d   : > { %v4313_v58 = vpop.xlane.xlu1 %4312  ;;  %11596 = vrsqrt.f32 %v4311_v15  ;;  %10947 = vmatprep.subr.bf16.mxu1 %v10946_v50  ;;  %v4357_v0 = vmul.f32 %v14161_v2, %v13542_v21 }
 0xd6e   : > { %11598 = vrsqrt.f32 %v4313_v58  ;;  %10949 = vmatpush3.bf16.msra.mxu1 %v10946_v50 }
 0xd6f   : > { %v14167_v14 = vpop.eup %11588  ;;  %v10950_v19 = vpack.c.bf16 %v4357_v0, %v4356_v8 }
 0xd70   : > { %v14169_v16 = vpop.eup %11590  ;;  %v4315_v13 = vpop.xlane.xlu0 %4314  ;;  %v4358_v53 = vmul.f32 %v14167_v14, %v13556_v37 }
 0xd71   : > { %v4317_v17 = vpop.xlane.xlu1 %4316  ;;  %11600 = vrsqrt.f32 %v4315_v13  ;;  %10951 = vmatprep.subr.bf16.mxu1 %v10950_v19  ;;  %v4359_v63 = vmul.f32 %v14169_v16, %v13558_v11 }
 0xd72   : > { %11602 = vrsqrt.f32 %v4317_v17  ;;  %10953 = vmatpush3.bf16.msra.mxu1 %v10950_v19 }
 0xd73   : > { %v14175_v21 = vpop.eup %11592  ;;  %v10954_v55 = vpack.c.bf16 %v4359_v63, %v4358_v53  ;;  %v4691_v53 = vld [vmem:[#allocation4 + $0x120] sm:$0xff] }
 0xd74   : > { %v14177_v35 = vpop.eup %11594  ;;  %v4360_v45 = vmul.f32 %v14175_v21, %v13572_v51 }
 0xd75   : > { %10955 = vmatprep.subr.bf16.mxu1 %v10954_v55  ;;  %v4361_v50 = vmul.f32 %v14177_v35, %v13574_v6 }
 0xd76   : > { %10957 = vmatpush3.bf16.msra.mxu1 %v10954_v55  ;;  %v4335_v55 = vmul.f32 %v14135_v47, %v14135_v47 }
 0xd77   : > { %v14183_v37 = vpop.eup %11596  ;;  %v10958_v15 = vpack.c.bf16 %v4361_v50, %v4360_v45  ;;  %v4334_v50 = vmul.f32 %v14137_v23, %v14137_v23 }
 0xd78   : > { %v14185_v58 = vpop.eup %11598  ;;  %v4362_v11 = vmul.f32 %v14183_v37, %v13588_v44  ;;  %v4688_v44 = vld [vmem:[#allocation4 + $0x108] sm:$0xff] }
 0xd79   : > { %10959 = vmatprep.subr.bf16.mxu1 %v10958_v15  ;;  %v4363_v8 = vmul.f32 %v14185_v58, %v13590_v59  ;;  %v4689_v59 = vld [vmem:[#allocation4 + $0x110] sm:$0xff] }
 0xd7a   : > { %10961 = vmatpush3.bf16.msra.mxu1 %v10958_v15 }
 0xd7b   : > { %v14191_v0 = vpop.eup %11600  ;;  %v10962_v51 = vpack.c.bf16 %v4363_v8, %v4362_v11 }
 0xd7c   : > { %v14193_v19 = vpop.eup %11602  ;;  %v4364_v6 = vmul.f32 %v14191_v0, %v13604_v36  ;;  %v4690_v36 = vld [vmem:[#allocation4 + $0x118] sm:$0xff] }
 0xd7d   : > { %10963 = vmatprep.subr.bf16.mxu1 %v10962_v51  ;;  %v4365_v13 = vmul.f32 %v14193_v19, %v13606_v42  ;;  %v11002_v42 = vpack.c.bf16 %v4689_v59, %v4688_v44  ;;  %v11006_v63 = vpack.c.bf16 %v4691_v53, %v4690_v36 }
 0xd7e   : > { %10965 = vmatpush3.bf16.msra.mxu1 %v10962_v51  ;;  %v4337_v51 = vmul.f32 %v14145_v56, %v14145_v56 }
 0xd7f   : > { %v10966_v17 = vpack.c.bf16 %v4365_v13, %v4364_v6 }
 0xd81   : > { %10967 = vmatprep.subr.bf16.mxu1 %v10966_v17 }
 0xd82   : > { %10969 = vmatpush3.bf16.msra.mxu1 %v10966_v17  ;;  %v4336_v17 = vmul.f32 %v14143_v32, %v14143_v32 }
 0xd83   : > { %11003 = vmatprep.subr.bf16.mxu1 %v11002_v42 }
 0xd85   : > { %10273 = vmatmul.mubr.f32.vlgmr.msra.gmra.mrb[120].mxu1 %v14075_v31 }
 0xd86   : > { %10275 = vmatprep.mubr.f32.mxu1 %v14083_v27  ;;  %11005 = vmatpush3.bf16.msra.mxu1 %v11002_v42  ;;  %v4339_v42 = vmul.f32 %v14153_v52, %v14153_v52 }
 0xd87   : > { %11007 = vmatprep.subr.bf16.mxu1 %v11006_v63 }
 0xd89   : > { %10276 = vmatmul.mubr.f32.gmra.mrb[122].mxu1 %v14080_v25 }
 0xd8a   : > { %10278 = vmatprep.mubr.f32.mxu1 %v14091_v46  ;;  %11009 = vmatpush3.bf16.msra.mxu1 %v11006_v63 }
 0xd8d   : > { %10279 = vmatmul.mubr.f32.gmra.mrb[124].mxu1 %v14088_v24 }
 0xd8e   : > { %10281 = vmatprep.mubr.f32.mxu1 %v14099_v48 }
 0xd91   : > { %10282 = vmatmul.mubr.f32.gmra.mrb[126].mxu1 %v14096_v62 }
 0xd92   : > { %10284 = vmatprep.mubr.f32.mxu1 %v14107_v4 }
 0xd95   : > { %10285 = vmatmul.mubr.f32.gmra.mrb[128].mxu1 %v14104_v1 }
 0xd96   : > { %10287 = vmatprep.mubr.f32.mxu1 %v14115_v20 }
 0xd99   : > { %10288 = vmatmul.mubr.f32.gmra.mrb[130].mxu1 %v14112_v40 }
 0xd9a   : > { %10290 = vmatprep.mubr.f32.mxu1 %v14123_v33 }
 0xd9d   : > { %10291 = vmatmul.mubr.f32.gmra.mrb[132].mxu1 %v14120_v7 }
 0xd9e   : > { %10293 = vmatprep.mubr.f32.mxu1 %v14131_v5 }
 0xda1   : > { %10294 = vmatmul.mubr.f32.gmra.mrb[134].mxu1 %v14128_v43 }
 0xe58   : > { %v10274_v45 = vpop.f32.mrb[120].mxu1 }
 0xe59   : > { %v4512_v15 = vmul.f32 %v10274_v45, %v4335_v55  ;;  %v4432_v11 = vpop.f32.mrb[121].mxu1  ;;  %v4338_v55 = vmul.f32 %v14151_v29, %v14151_v29 }
 0xe5a   : > { %v4511_v8 = vmul.f32 %v4432_v11, %v4334_v50  ;;  %v4341_v11 = vmul.f32 %v14161_v2, %v14161_v2 }
 0xe5c   : > { %v10970_v6 = vpack.c.bf16 %v4512_v15, %v4511_v8  ;;  %v10277_v13 = vpop.f32.mrb[122].mxu1 }
 0xe5d   : > { %v4514_v44 = vmul.f32 %v10277_v13, %v4337_v51  ;;  %v4442_v59 = vpop.f32.mrb[123].mxu1 }
 0xe5e   : > { %v4513_v36 = vmul.f32 %v4442_v59, %v4336_v17  ;;  %10971 = vmatprep.subr.bf16.mxu0 %v10970_v6  ;;  %v4343_v59 = vmul.f32 %v14169_v16, %v14169_v16 }
 0xe5f   : > { %10973 = vmatpush3.bf16.msra.mxu0 %v10970_v6  ;;  %v4340_v6 = vmul.f32 %v14159_v28, %v14159_v28 }
 0xe60   : > { %v10974_v53 = vpack.c.bf16 %v4514_v44, %v4513_v36  ;;  %v10280_v63 = vpop.f32.mrb[124].mxu1 }
 0xe61   : > { %v4516_v45 = vmul.f32 %v10280_v63, %v4339_v42  ;;  %v4452_v50 = vpop.f32.mrb[125].mxu1 }
 0xe62   : > { %v4515_v15 = vmul.f32 %v4452_v50, %v4338_v55  ;;  %10975 = vmatprep.subr.bf16.mxu0 %v10974_v53  ;;  %v4345_v50 = vmul.f32 %v14177_v35, %v14177_v35 }
 0xe63   : > { %10977 = vmatpush3.bf16.msra.mxu0 %v10974_v53  ;;  %v4342_v53 = vmul.f32 %v14167_v14, %v14167_v14 }
 0xe64   : > { %v10978_v8 = vpack.c.bf16 %v4516_v45, %v4515_v15  ;;  %v10283_v51 = vpop.f32.mrb[126].mxu1 }
 0xe65   : > { %v4518_v13 = vmul.f32 %v10283_v51, %v4341_v11  ;;  %v4462_v17 = vpop.f32.mrb[127].mxu1 }
 0xe66   : > { %v4517_v44 = vmul.f32 %v4462_v17, %v4340_v6  ;;  %10979 = vmatprep.subr.bf16.mxu0 %v10978_v8  ;;  %v4347_v17 = vmul.f32 %v14185_v58, %v14185_v58 }
 0xe67   : > { %10981 = vmatpush3.bf16.msra.mxu0 %v10978_v8  ;;  %v4344_v8 = vmul.f32 %v14175_v21, %v14175_v21 }
 0xe68   : > { %v10982_v36 = vpack.c.bf16 %v4518_v13, %v4517_v44  ;;  %v10286_v42 = vpop.f32.mrb[128].mxu1 }
 0xe69   : > { %v4520_v63 = vmul.f32 %v10286_v42, %v4343_v59  ;;  %v4472_v55 = vpop.f32.mrb[129].mxu1 }
 0xe6a   : > { %v4519_v45 = vmul.f32 %v4472_v55, %v4342_v53  ;;  %10983 = vmatprep.subr.bf16.mxu0 %v10982_v36  ;;  %v4349_v55 = vmul.f32 %v14193_v19, %v14193_v19 }
 0xe6b   : > { %10985 = vmatpush3.bf16.msra.mxu0 %v10982_v36  ;;  %v4346_v36 = vmul.f32 %v14183_v37, %v14183_v37 }
 0xe6c   : > { %v10986_v15 = vpack.c.bf16 %v4520_v63, %v4519_v45  ;;  %v10289_v11 = vpop.f32.mrb[130].mxu1 }
 0xe6d   : > { %v4522_v51 = vmul.f32 %v10289_v11, %v4345_v50  ;;  %v4482_v6 = vpop.f32.mrb[131].mxu1 }
 0xe6e   : > { %v4521_v13 = vmul.f32 %v4482_v6, %v4344_v8  ;;  %10987 = vmatprep.subr.bf16.mxu0 %v10986_v15 }
 0xe6f   : > { %10989 = vmatpush3.bf16.msra.mxu0 %v10986_v15  ;;  %v4348_v15 = vmul.f32 %v14191_v0, %v14191_v0 }
 0xe70   : > { %v10990_v44 = vpack.c.bf16 %v4522_v51, %v4521_v13  ;;  %v10292_v59 = vpop.f32.mrb[132].mxu1 }
 0xe71   : > { %v4524_v42 = vmul.f32 %v10292_v59, %v4347_v17  ;;  %v4492_v53 = vpop.f32.mrb[133].mxu1 }
 0xe72   : > { %v4523_v63 = vmul.f32 %v4492_v53, %v4346_v36  ;;  %10991 = vmatprep.subr.bf16.mxu0 %v10990_v44 }
 0xe73   : > { %10993 = vmatpush3.bf16.msra.mxu0 %v10990_v44 }
 0xe74   : > { %v10994_v45 = vpack.c.bf16 %v4524_v42, %v4523_v63  ;;  %v10295_v50 = vpop.f32.mrb[134].mxu1 }
 0xe75   : > { %v4526_v11 = vmul.f32 %v10295_v50, %v4349_v55  ;;  %v4502_v8 = vpop.f32.mrb[135].mxu1  ;;  %v5004_v55 = vld [vmem:[#allocation4 + $0x140] sm:$0xff] }
 0xe76   : > { %v4525_v51 = vmul.f32 %v4502_v8, %v4348_v15  ;;  %10995 = vmatprep.subr.bf16.mxu0 %v10994_v45 }
 0xe77   : > { %10997 = vmatpush3.bf16.msra.mxu0 %v10994_v45  ;;  %v5005_v45 = vld [vmem:[#allocation4 + $0x148] sm:$0xff] }
 0xe78   : > { %v10998_v6 = vpack.c.bf16 %v4526_v11, %v4525_v51  ;;  %v11014_v50 = vpack.c.bf16 %v5005_v45, %v5004_v55  ;;  %v14293_v11 = vld [vmem:[#allocation4 + $0x128] ss:$0 sm:$0xff] }
 0xe7a   : > { %10999 = vmatprep.subr.bf16.mxu0 %v10998_v6 }
 0xe7b   : > { %11001 = vmatpush3.bf16.msra.mxu0 %v10998_v6 }
 0xe7e   : > { %10329 = vmatmul.mubr.f32.vlgmr.msra.gmra.mrb[120].mxu0 %v14075_v31  ;;  %v5002_v31 = vld [vmem:[#allocation4 + $0x130] sm:$0xff] }
 0xe7f   : > { %10331 = vmatprep.mubr.f32.mxu0 %v14083_v27 }
 0xe82   : > { %10332 = vmatmul.mubr.f32.gmra.mrb[122].mxu0 %v14080_v25  ;;  %v5003_v25 = vld [vmem:[#allocation4 + $0x138] sm:$0xff] }
 0xe83   : > { %10334 = vmatprep.mubr.f32.mxu0 %v14091_v46  ;;  %v11010_v27 = vpack.c.bf16 %v5003_v25, %v5002_v31 }
 0xe85   : > { %11011 = vmatprep.subr.bf16.mxu0 %v11010_v27 }
 0xe86   : > { %10335 = vmatmul.mubr.f32.gmra.mrb[124].mxu0 %v14088_v24 }
 0xe87   : > { %10337 = vmatprep.mubr.f32.mxu0 %v14099_v48  ;;  %11013 = vmatpush3.bf16.msra.mxu0 %v11010_v27 }
 0xe88   : > { %11015 = vmatprep.subr.bf16.mxu0 %v11014_v50 }
 0xe8a   : > { %10338 = vmatmul.mubr.f32.gmra.mrb[126].mxu0 %v14096_v62 }
 0xe8b   : > { %10340 = vmatprep.mubr.f32.mxu0 %v14107_v4  ;;  %11017 = vmatpush3.bf16.msra.mxu0 %v11014_v50 }
 0xe8e   : > { %10341 = vmatmul.mubr.f32.gmra.mrb[128].mxu0 %v14104_v1 }
 0xe8f   : > { %10343 = vmatprep.mubr.f32.mxu0 %v14115_v20 }
 0xe92   : > { %10344 = vmatmul.mubr.f32.gmra.mrb[130].mxu0 %v14112_v40 }
 0xe93   : > { %10346 = vmatprep.mubr.f32.mxu0 %v14123_v33 }
 0xe96   : > { %10347 = vmatmul.mubr.f32.gmra.mrb[132].mxu0 %v14120_v7 }
 0xe97   : > { %10349 = vmatprep.mubr.f32.mxu0 %v14131_v5 }
 0xe9a   : > { %10350 = vmatmul.mubr.f32.gmra.mrb[134].mxu0 %v14128_v43 }
 0xf51   : > { %v10330_v24 = vpop.f32.mrb[120].mxu0 }
 0xf52   : > { %v4593_v46 = vpop.f32.mrb[121].mxu0  ;;  %v4673_v48 = vmul.f32 %v14135_v47, %v10330_v24 }
 0xf53   : > { %v4672_v62 = vmul.f32 %v14137_v23, %v4593_v46 }
 0xf55   : > { %v10333_v1 = vpop.f32.mrb[122].mxu0  ;;  %10360 = vmatprep.mubr.msk.f32.mxu1 %vm879_vm1, %v4672_v62 }
 0xf56   : > { %v4603_v4 = vpop.f32.mrb[123].mxu0  ;;  %10361 = vmatmul.mubr.msk.f32.vlgmr.msra.gmra.mrb[136].mxu1 %vm879_vm1, %v4673_v48  ;;  %v4675_v20 = vmul.f32 %v14145_v56, %v10333_v1 }
 0xf57   : > { %v4674_v40 = vmul.f32 %v14143_v32, %v4603_v4 }
 0xf59   : > { %v10336_v7 = vpop.f32.mrb[124].mxu0  ;;  %10363 = vmatprep.mubr.msk.f32.mxu1 %vm879_vm1, %v4674_v40 }
 0xf5a   : > { %v4613_v33 = vpop.f32.mrb[125].mxu0  ;;  %10364 = vmatmul.mubr.msk.f32.gmra.mrb[138].mxu1 %vm879_vm1, %v4675_v20  ;;  %v4677_v5 = vmul.f32 %v14153_v52, %v10336_v7 }
 0xf5b   : > { %v4676_v43 = vmul.f32 %v14151_v29, %v4613_v33 }
 0xf5d   : > { %v10339_v47 = vpop.f32.mrb[126].mxu0  ;;  %10366 = vmatprep.mubr.msk.f32.mxu1 %vm879_vm1, %v4676_v43 }
 0xf5e   : > { %v4623_v23 = vpop.f32.mrb[127].mxu0  ;;  %10367 = vmatmul.mubr.msk.f32.gmra.mrb[140].mxu1 %vm879_vm1, %v4677_v5  ;;  %v4679_v56 = vmul.f32 %v14161_v2, %v10339_v47 }
 0xf5f   : > { %v4678_v32 = vmul.f32 %v14159_v28, %v4623_v23 }
 0xf61   : > { %v10342_v13 = vpop.f32.mrb[128].mxu0  ;;  %10369 = vmatprep.mubr.msk.f32.mxu1 %vm879_vm1, %v4678_v32 }
 0xf62   : > { %v4633_v17 = vpop.f32.mrb[129].mxu0  ;;  %10370 = vmatmul.mubr.msk.f32.gmra.mrb[142].mxu1 %vm879_vm1, %v4679_v56  ;;  %v4681_v52 = vmul.f32 %v14169_v16, %v10342_v13 }
 0xf63   : > { %v4680_v29 = vmul.f32 %v14167_v14, %v4633_v17 }
 0xf65   : > { %v10345_v44 = vpop.f32.mrb[130].mxu0  ;;  %10372 = vmatprep.mubr.msk.f32.mxu1 %vm879_vm1, %v4680_v29 }
 0xf66   : > { %v4643_v59 = vpop.f32.mrb[131].mxu0  ;;  %10373 = vmatmul.mubr.msk.f32.gmra.mrb[144].mxu1 %vm879_vm1, %v4681_v52  ;;  %v4683_v2 = vmul.f32 %v14177_v35, %v10345_v44 }
 0xf67   : > { %v4682_v28 = vmul.f32 %v14175_v21, %v4643_v59 }
 0xf69   : > { %v10348_v36 = vpop.f32.mrb[132].mxu0  ;;  %10375 = vmatprep.mubr.msk.f32.mxu1 %vm879_vm1, %v4682_v28 }
 0xf6a   : > { %v4653_v42 = vpop.f32.mrb[133].mxu0  ;;  %10376 = vmatmul.mubr.msk.f32.gmra.mrb[146].mxu1 %vm879_vm1, %v4683_v2  ;;  %v4685_v16 = vmul.f32 %v14185_v58, %v10348_v36  ;;  %v5317_v58 = vld [vmem:[#allocation4 + $0x160] sm:$0xff] }
 0xf6b   : > { %v4684_v14 = vmul.f32 %v14183_v37, %v4653_v42  ;;  %v5316_v37 = vld [vmem:[#allocation4 + $0x158] sm:$0xff] }
 0xf6c   : > { %v11018_v15 = vpack.c.bf16 %v5317_v58, %v5316_v37 }
 0xf6d   : > { %v10351_v53 = vpop.f32.mrb[134].mxu0  ;;  %10378 = vmatprep.mubr.msk.f32.mxu1 %vm879_vm1, %v4684_v14 }
 0xf6e   : > { %v4663_v63 = vpop.f32.mrb[135].mxu0  ;;  %10379 = vmatmul.mubr.msk.f32.gmra.mrb[148].mxu1 %vm879_vm1, %v4685_v16  ;;  %v4687_v35 = vmul.f32 %v14193_v19, %v10351_v53  ;;  %11019 = vmatprep.subr.bf16.mxu1 %v11018_v15 }
 0xf6f   : > { %v4686_v21 = vmul.f32 %v14191_v0, %v4663_v63  ;;  %11021 = vmatpush3.bf16.msra.mxu1 %v11018_v15 }
 0xf71   : > { %10381 = vmatprep.mubr.msk.f32.mxu1 %vm879_vm1, %v4686_v21 }
 0xf72   : > { %10382 = vmatmul.mubr.msk.f32.gmra.mrb[150].mxu1 %vm879_vm1, %v4687_v35 }
0x1029   : > { %v10362_v8 = vpop.f32.mrb[136].mxu1 }
0x102a   : > { %v4817_v0 = vadd.f32 %v10362_v8, %v14293_v11  ;;  %v4811_v19 = vpop.f32.mrb[137].mxu1 }
0x102b   : > { %v4812_v51 = vadd.f32 %v14293_v11, %v4811_v19 }
0x102c   : > { %v4908_v6 = vmul.f32 1.442695, %v4817_v0  ;;  %vm4891_vm0 = vcmp.gt.f32.partialorder %v4817_v0, 0.0 }
0x102d   : > { %v4906_v31 = vmul.f32 1.442695, %v4812_v51  ;;  %v10365_v25 = vpop.f32.mrb[138].mxu1  ;;  %vm4890_vm12 = vcmp.gt.f32.partialorder %v4812_v51, 0.0 }
0x102e   : > { %11604 = vpow2.f32 %v4908_v6  ;;  %v4827_v27 = vadd.f32 %v10365_v25, %v14293_v11  ;;  %v4821_v24 = vpop.f32.mrb[139].mxu1 }
0x102f   : > { %11606 = vpow2.f32 %v4906_v31  ;;  %v4822_v46 = vadd.f32 %v14293_v11, %v4821_v24 }
0x1030   : > { %v4912_v62 = vmul.f32 1.442695, %v4827_v27  ;;  %vm4893_vm13 = vcmp.gt.f32.partialorder %v4827_v27, 0.0 }
0x1031   : > { %v4910_v48 = vmul.f32 1.442695, %v4822_v46  ;;  %v10368_v1 = vpop.f32.mrb[140].mxu1  ;;  %vm4892_vm5 = vcmp.gt.f32.partialorder %v4822_v46, 0.0 }
0x1032   : > { %11608 = vpow2.f32 %v4912_v62  ;;  %v14300_v4 = vadd.f32 %v10368_v1, %v14293_v11  ;;  %v4831_v40 = vpop.f32.mrb[141].mxu1 }
0x1033   : > { %11610 = vpow2.f32 %v4910_v48  ;;  %v14303_v20 = vadd.f32 %v14293_v11, %v4831_v40 }
0x1034   : > { %v4916_v7 = vmul.f32 1.442695, %v14300_v4  ;;  %vm4895_vm11 = vcmp.gt.f32.partialorder %v14300_v4, 0.0 }
0x1035   : > { %v4914_v33 = vmul.f32 1.442695, %v14303_v20  ;;  %v10371_v43 = vpop.f32.mrb[142].mxu1  ;;  %vm4894_vm2 = vcmp.gt.f32.partialorder %v14303_v20, 0.0 }
0x1036   : > { %11612 = vpow2.f32 %v4916_v7  ;;  %v14308_v5 = vadd.f32 %v10371_v43, %v14293_v11  ;;  %v4841_v47 = vpop.f32.mrb[143].mxu1 }
0x1037   : > { %11614 = vpow2.f32 %v4914_v33  ;;  %v14311_v23 = vadd.f32 %v14293_v11, %v4841_v47 }
0x1038   : > { %v11605_v32 = vpop.eup %11604  ;;  %v4920_v56 = vmul.f32 1.442695, %v14308_v5  ;;  %vm4897_vm9 = vcmp.gt.f32.partialorder %v14308_v5, 0.0 }
0x1039   : > { %v11607_v13 = vpop.eup %11606  ;;  %v8733_v17 = vadd.f32 -1.0, %v11605_v32  ;;  %v4918_v29 = vmul.f32 1.442695, %v14311_v23  ;;  %v10374_v52 = vpop.f32.mrb[144].mxu1  ;;  %vm4896_vm14 = vcmp.gt.f32.partialorder %v14311_v23, 0.0 }
0x103a   : > { %v8732_v44 = vadd.f32 -1.0, %v11607_v13  ;;  %11616 = vpow2.f32 %v4920_v56  ;;  %v14316_v59 = vadd.f32 %v10374_v52, %v14293_v11  ;;  %v4851_v28 = vpop.f32.mrb[145].mxu1 }
0x103b   : > { %v4955_v2 = vmul.f32 1.6732632, %v8733_v17  ;;  %11618 = vpow2.f32 %v4918_v29  ;;  %v14319_v36 = vadd.f32 %v14293_v11, %v4851_v28 }
0x103c   : > { %v11609_v42 = vpop.eup %11608  ;;  %v4954_v14 = vmul.f32 1.6732632, %v8732_v44  ;;  %v4924_v16 = vmul.f32 1.442695, %v14316_v59  ;;  %vm4899_vm3 = vcmp.gt.f32.partialorder %v14316_v59, 0.0 }
0x103d   : > { %v11611_v53 = vpop.eup %11610  ;;  %v4971_v63 = vsel %vm4891_vm0, %v4817_v0, %v4955_v2  ;;  %v8735_v21 = vadd.f32 -1.0, %v11609_v42  ;;  %v4922_v35 = vmul.f32 1.442695, %v14319_v36  ;;  %v10377_v55 = vpop.f32.mrb[146].mxu1  ;;  %vm4898_vm4 = vcmp.gt.f32.partialorder %v14319_v36, 0.0 }
0x103e   : > { %v4970_v45 = vsel %vm4890_vm12, %v4812_v51, %v4954_v14  ;;  %v8734_v50 = vadd.f32 -1.0, %v11611_v53  ;;  %11620 = vpow2.f32 %v4924_v16  ;;  %v4861_v37 = vpop.f32.mrb[147].mxu1  ;;  %v14326_v8 = vadd.f32 %v10377_v55, %v14293_v11 }
0x103f   : > { %v14323_v58 = vmul.f32 1.050701, %v4970_v45  ;;  %v4957_v15 = vmul.f32 1.6732632, %v8735_v21  ;;  %11622 = vpow2.f32 %v4922_v35  ;;  %v14328_v6 = vmul.f32 1.050701, %v4971_v63 }
0x1040   : > { %v11613_v19 = vpop.eup %11612  ;;  %v4956_v0 = vmul.f32 1.6732632, %v8734_v50  ;;  %v14331_v31 = vadd.f32 %v14293_v11, %v4861_v37  ;;  %v4928_v62 = vmul.f32 1.442695, %v14326_v8  ;;  %vm4901_vm6 = vcmp.gt.f32.partialorder %v14326_v8, 0.0 }
0x1041   : > { %v11615_v25 = vpop.eup %11614  ;;  %v4973_v51 = vsel %vm4893_vm13, %v4827_v27, %v4957_v15  ;;  %v8737_v24 = vadd.f32 -1.0, %v11613_v19  ;;  %v10380_v48 = vpop.f32.mrb[148].mxu1  ;;  %10392 = vmatprep.mubr.msk.f32.mxu0 %vm879_vm1, %v14323_v58 }
0x1042   : > { %v4972_v1 = vsel %vm4892_vm5, %v4822_v46, %v4956_v0  ;;  %v8736_v40 = vadd.f32 -1.0, %v11615_v25  ;;  %v4871_v7 = vpop.f32.mrb[149].mxu1  ;;  %10393 = vmatmul.mubr.msk.f32.vlgmr.msra.gmra.mrb[136].mxu0 %vm879_vm1, %v14328_v6  ;;  %11624 = vpow2.f32 %v4928_v62  ;;  %v4926_v27 = vmul.f32 1.442695, %v14331_v31 }
0x1043   : > { %v14339_v33 = vmul.f32 1.050701, %v4972_v1  ;;  %v4959_v43 = vmul.f32 1.6732632, %v8737_v24  ;;  %v14342_v32 = vmul.f32 1.050701, %v4973_v51  ;;  %v14345_v13 = vadd.f32 %v10380_v48, %v14293_v11 }
0x1044   : > { %v11617_v47 = vpop.eup %11616  ;;  %v4958_v56 = vmul.f32 1.6732632, %v8736_v40  ;;  %v14348_v46 = vadd.f32 %v14293_v11, %v4871_v7  ;;  %11626 = vpow2.f32 %v4926_v27  ;;  %vm4900_vm7 = vcmp.gt.f32.partialorder %v14331_v31, 0.0 }
0x1045   : > { %v11619_v17 = vpop.eup %11618  ;;  %v4975_v29 = vsel %vm4895_vm11, %v14300_v4, %v4959_v43  ;;  %v8739_v52 = vadd.f32 -1.0, %v11617_v47  ;;  %v10383_v44 = vpop.f32.mrb[150].mxu1  ;;  %10395 = vmatprep.mubr.msk.f32.mxu0 %vm879_vm1, %v14339_v33  ;;  %v4932_v16 = vmul.f32 1.442695, %v14345_v13  ;;  %vm4903_vm8 = vcmp.gt.f32.partialorder %v14345_v13, 0.0 }
0x1046   : > { %v4974_v28 = vsel %vm4894_vm2, %v14303_v20, %v4958_v56  ;;  %v8738_v2 = vadd.f32 -1.0, %v11619_v17  ;;  %v4881_v42 = vpop.f32.mrb[151].mxu1  ;;  %10396 = vmatmul.mubr.msk.f32.gmra.mrb[138].mxu0 %vm879_vm1, %v14342_v32  ;;  %v14362_v53 = vadd.f32 %v10383_v44, %v14293_v11  ;;  %v14364_v21 = vmul.f32 1.050701, %v4975_v29 }
0x1047   : > { %v14358_v14 = vmul.f32 1.050701, %v4974_v28  ;;  %v4961_v4 = vmul.f32 1.6732632, %v8739_v52  ;;  %v4930_v20 = vmul.f32 1.442695, %v14348_v46  ;;  %v14368_v55 = vadd.f32 %v14293_v11, %v4881_v42 }
0x1048   : > { %v11621_v63 = vpop.eup %11620  ;;  %v4960_v35 = vmul.f32 1.6732632, %v8738_v2  ;;  %11628 = vpow2.f32 %v4932_v16  ;;  %vm4902_vm10 = vcmp.gt.f32.partialorder %v14348_v46, 0.0  ;;  %vm4905_vm15 = vcmp.gt.f32.partialorder %v14362_v53, 0.0 }
0x1049   : > { %v11623_v45 = vpop.eup %11622  ;;  %v4977_v50 = vsel %vm4897_vm9, %v14308_v5, %v4961_v4  ;;  %v8741_v37 = vadd.f32 -1.0, %v11621_v63  ;;  %10398 = vmatprep.mubr.msk.f32.mxu0 %vm879_vm1, %v14358_v14  ;;  %11630 = vpow2.f32 %v4930_v20  ;;  %v4936_v5 = vmul.f32 1.442695, %v14362_v53 }
0x104a   : > { %v4976_v15 = vsel %vm4896_vm14, %v14311_v23, %v4960_v35  ;;  %v8740_v19 = vadd.f32 -1.0, %v11623_v45  ;;  %10399 = vmatmul.mubr.msk.f32.gmra.mrb[140].mxu0 %vm879_vm1, %v14364_v21  ;;  %v14381_v25 = vmul.f32 1.050701, %v4977_v50  ;;  %v4934_v24 = vmul.f32 1.442695, %v14368_v55 }
0x104b   : > { %v14378_v11 = vmul.f32 1.050701, %v4976_v15  ;;  %v4963_v0 = vmul.f32 1.6732632, %v8741_v37  ;;  %11632 = vpow2.f32 %v4936_v5  ;;  %vm4904_vm0 = vcmp.gt.f32.partialorder %v14368_v55, 0.0  ;;  %v5319_v5 = vld [vmem:[#allocation4 + $0x170] sm:$0xff] }
0x104c   : > { %v4962_v51 = vmul.f32 1.6732632, %v8740_v19  ;;  %v11625_v62 = vpop.eup %11624  ;;  %11634 = vpow2.f32 %v4934_v24  ;;  %v5630_v24 = vld [vmem:[#allocation4 + $0x180] sm:$0xff] }
0x104d   : > { %v4979_v23 = vsel %vm4899_vm3, %v14316_v59, %v4963_v0  ;;  %10401 = vmatprep.mubr.msk.f32.mxu0 %vm879_vm1, %v14378_v11  ;;  %v8743_v1 = vadd.f32 -1.0, %v11625_v62 }
0x104e   : > { %v4978_v48 = vsel %vm4898_vm4, %v14319_v36, %v4962_v51  ;;  %10402 = vmatmul.mubr.msk.f32.gmra.mrb[142].mxu0 %vm879_vm1, %v14381_v25  ;;  %v11627_v40 = vpop.eup %11626  ;;  %v14393_v43 = vmul.f32 1.050701, %v4979_v23  ;;  %v14435_v23 = vld [vmem:[#allocation4 + $0x150] ss:$0 sm:$0xff] }
0x104f   : > { %v14391_v7 = vmul.f32 1.050701, %v4978_v48  ;;  %v4965_v27 = vmul.f32 1.6732632, %v8743_v1  ;;  %v8742_v59 = vadd.f32 -1.0, %v11627_v40 }
0x1051   : > { %10404 = vmatprep.mubr.msk.f32.mxu0 %vm879_vm1, %v14391_v7  ;;  %v4964_v47 = vmul.f32 1.6732632, %v8742_v59  ;;  %v4981_v56 = vsel %vm4901_vm6, %v14326_v8, %v4965_v27 }
0x1052   : > { %10405 = vmatmul.mubr.msk.f32.gmra.mrb[144].mxu0 %vm879_vm1, %v14393_v43  ;;  %v11629_v36 = vpop.eup %11628  ;;  %v14405_v2 = vmul.f32 1.050701, %v4981_v56 }
0x1053   : > { %v11631_v17 = vpop.eup %11630  ;;  %v4980_v29 = vsel %vm4900_vm7, %v14331_v31, %v4964_v47  ;;  %v8745_v52 = vadd.f32 -1.0, %v11629_v36 }
0x1054   : > { %v14403_v44 = vmul.f32 1.050701, %v4980_v29  ;;  %v8744_v28 = vadd.f32 -1.0, %v11631_v17 }
0x1055   : > { %v4967_v42 = vmul.f32 1.6732632, %v8745_v52  ;;  %v11633_v4 = vpop.eup %11632 }
0x1056   : > { %v4966_v16 = vmul.f32 1.6732632, %v8744_v28  ;;  %10407 = vmatprep.mubr.msk.f32.mxu0 %vm879_vm1, %v14403_v44  ;;  %v11635_v8 = vpop.eup %11634  ;;  %v8747_v31 = vadd.f32 -1.0, %v11633_v4 }
0x1057   : > { %v4983_v63 = vsel %vm4903_vm8, %v14345_v13, %v4967_v42  ;;  %10408 = vmatmul.mubr.msk.f32.gmra.mrb[146].mxu0 %vm879_vm1, %v14405_v2  ;;  %v8746_v20 = vadd.f32 -1.0, %v11635_v8 }
0x1058   : > { %v4982_v35 = vsel %vm4902_vm10, %v14348_v46, %v4966_v16  ;;  %v4969_v50 = vmul.f32 1.6732632, %v8747_v31  ;;  %v14417_v37 = vmul.f32 1.050701, %v4983_v63 }
0x1059   : > { %v14415_v45 = vmul.f32 1.050701, %v4982_v35  ;;  %v4968_v15 = vmul.f32 1.6732632, %v8746_v20 }
0x105a   : > { %v4985_v19 = vsel %vm4905_vm15, %v14362_v53, %v4969_v50  ;;  %v5318_v53 = vld [vmem:[#allocation4 + $0x168] sm:$0xff] }
0x105b   : > { %10410 = vmatprep.mubr.msk.f32.mxu0 %vm879_vm1, %v14415_v45  ;;  %v4984_v13 = vsel %vm4904_vm0, %v14368_v55, %v4968_v15  ;;  %v14429_v0 = vmul.f32 1.050701, %v4985_v19  ;;  %v11022_v51 = vpack.c.bf16 %v5319_v5, %v5318_v53  ;;  %v5631_v55 = vld [vmem:[#allocation4 + $0x188] sm:$0xff] }
0x105c   : > { %10411 = vmatmul.mubr.msk.f32.gmra.mrb[148].mxu0 %vm879_vm1, %v14417_v37  ;;  %v14427_v46 = vmul.f32 1.050701, %v4984_v13  ;;  %v11026_v62 = vpack.c.bf16 %v5631_v55, %v5630_v24 }
0x105d   : > { %11023 = vmatprep.subr.bf16.mxu1 %v11022_v51 }
0x105e   : > { %10413 = vmatprep.mubr.msk.f32.mxu0 %vm879_vm1, %v14427_v46  ;;  %11025 = vmatpush3.bf16.msra.mxu1 %v11022_v51 }
0x105f   : > { %11027 = vmatprep.subr.bf16.mxu0 %v11026_v62 }
0x1060   : > { %10414 = vmatmul.mubr.msk.f32.gmra.mrb[150].mxu0 %vm879_vm1, %v14429_v0 }
0x1061   : > { %11029 = vmatpush3.bf16.msra.mxu0 %v11026_v62 }
0x1115   : > { %v10394_v48 = vpop.f32.mrb[136].mxu0 }
0x1116   : > { %v5131_v1 = vadd.f32 %v10394_v48, %v14435_v23  ;;  %v5125_v40 = vpop.f32.mrb[137].mxu0 }
0x1117   : > { %v5126_v27 = vadd.f32 %v14435_v23, %v5125_v40 }
0x1118   : > { %v5222_v59 = vmul.f32 1.442695, %v5131_v1  ;;  %vm5205_vm12 = vcmp.gt.f32.partialorder %v5131_v1, 0.0 }
0x1119   : > { %v5220_v47 = vmul.f32 1.442695, %v5126_v27  ;;  %v10397_v36 = vpop.f32.mrb[138].mxu0  ;;  %vm5204_vm13 = vcmp.gt.f32.partialorder %v5126_v27, 0.0 }
0x111a   : > { %11636 = vpow2.f32 %v5222_v59  ;;  %v5141_v56 = vadd.f32 %v10397_v36, %v14435_v23  ;;  %v5135_v17 = vpop.f32.mrb[139].mxu0 }
0x111b   : > { %11638 = vpow2.f32 %v5220_v47  ;;  %v5136_v29 = vadd.f32 %v14435_v23, %v5135_v17 }
0x111c   : > { %v5226_v52 = vmul.f32 1.442695, %v5141_v56  ;;  %vm5207_vm5 = vcmp.gt.f32.partialorder %v5141_v56, 0.0 }
0x111d   : > { %v5224_v28 = vmul.f32 1.442695, %v5136_v29  ;;  %v10400_v42 = vpop.f32.mrb[140].mxu0  ;;  %vm5206_vm11 = vcmp.gt.f32.partialorder %v5136_v29, 0.0 }
0x111e   : > { %11640 = vpow2.f32 %v5226_v52  ;;  %v14442_v4 = vadd.f32 %v10400_v42, %v14435_v23  ;;  %v5145_v16 = vpop.f32.mrb[141].mxu0 }
0x111f   : > { %11642 = vpow2.f32 %v5224_v28  ;;  %v14445_v8 = vadd.f32 %v14435_v23, %v5145_v16 }
0x1120   : > { %v5230_v63 = vmul.f32 1.442695, %v14442_v4  ;;  %vm5209_vm2 = vcmp.gt.f32.partialorder %v14442_v4, 0.0 }
0x1121   : > { %v5228_v31 = vmul.f32 1.442695, %v14445_v8  ;;  %v10403_v35 = vpop.f32.mrb[142].mxu0  ;;  %vm5208_vm9 = vcmp.gt.f32.partialorder %v14445_v8, 0.0 }
0x1122   : > { %11644 = vpow2.f32 %v5230_v63  ;;  %v14450_v20 = vadd.f32 %v10403_v35, %v14435_v23  ;;  %v5155_v50 = vpop.f32.mrb[143].mxu0 }
0x1123   : > { %11646 = vpow2.f32 %v5228_v31  ;;  %v14453_v15 = vadd.f32 %v14435_v23, %v5155_v50 }
0x1124   : > { %v11637_v19 = vpop.eup %11636  ;;  %v5234_v13 = vmul.f32 1.442695, %v14450_v20  ;;  %vm5211_vm14 = vcmp.gt.f32.partialorder %v14450_v20, 0.0 }
0x1125   : > { %v11639_v53 = vpop.eup %11638  ;;  %v8766_v5 = vadd.f32 -1.0, %v11637_v19  ;;  %v5232_v51 = vmul.f32 1.442695, %v14453_v15  ;;  %v10406_v24 = vpop.f32.mrb[144].mxu0  ;;  %vm5210_vm3 = vcmp.gt.f32.partialorder %v14453_v15, 0.0 }
0x1126   : > { %v8765_v55 = vadd.f32 -1.0, %v11639_v53  ;;  %11648 = vpow2.f32 %v5234_v13  ;;  %v14458_v62 = vadd.f32 %v10406_v24, %v14435_v23  ;;  %v5165_v48 = vpop.f32.mrb[145].mxu0 }
0x1127   : > { %v5269_v40 = vmul.f32 1.6732632, %v8766_v5  ;;  %11650 = vpow2.f32 %v5232_v51  ;;  %v14461_v59 = vadd.f32 %v14435_v23, %v5165_v48 }
0x1128   : > { %v11641_v47 = vpop.eup %11640  ;;  %v5268_v36 = vmul.f32 1.6732632, %v8765_v55  ;;  %v5238_v17 = vmul.f32 1.442695, %v14458_v62  ;;  %vm5213_vm4 = vcmp.gt.f32.partialorder %v14458_v62, 0.0 }
0x1129   : > { %v11643_v52 = vpop.eup %11642  ;;  %v5285_v28 = vsel %vm5205_vm12, %v5131_v1, %v5269_v40  ;;  %v8768_v42 = vadd.f32 -1.0, %v11641_v47  ;;  %v5236_v16 = vmul.f32 1.442695, %v14461_v59  ;;  %vm5212_vm6 = vcmp.gt.f32.partialorder %v14461_v59, 0.0 }
0x112a   : > { %v5284_v63 = vsel %vm5204_vm13, %v5126_v27, %v5268_v36  ;;  %v8767_v31 = vadd.f32 -1.0, %v11643_v52  ;;  %11652 = vpow2.f32 %v5238_v17  ;;  %v10409_v19 = vpop.f32.mrb[146].mxu0  ;;  %v5301_v53 = vmul.f32 1.050701, %v5285_v28 }
0x112b   : > { %v5300_v35 = vmul.f32 1.050701, %v5284_v63  ;;  %v5271_v50 = vmul.f32 1.6732632, %v8768_v42  ;;  %11654 = vpow2.f32 %v5236_v16  ;;  %v14466_v51 = vadd.f32 %v10409_v19, %v14435_v23  ;;  %v5175_v24 = vpop.f32.mrb[147].mxu0 }
0x112c   : > { %v11645_v13 = vpop.eup %11644  ;;  %v5270_v5 = vmul.f32 1.6732632, %v8767_v31  ;;  %v14469_v27 = vadd.f32 %v14435_v23, %v5175_v24 }
0x112d   : > { %v11647_v1 = vpop.eup %11646  ;;  %v5287_v55 = vsel %vm5207_vm5, %v5141_v56, %v5271_v50  ;;  %v8770_v48 = vadd.f32 -1.0, %v11645_v13  ;;  %10424 = vmatprep.mubr.msk.f32.mxu1 %vm879_vm1, %v5300_v35  ;;  %v5242_v28 = vmul.f32 1.442695, %v14466_v51  ;;  %vm5215_vm7 = vcmp.gt.f32.partialorder %v14466_v51, 0.0 }
0x112e   : > { %v5303_v40 = vmul.f32 1.050701, %v5287_v55  ;;  %v5286_v47 = vsel %vm5206_vm11, %v5136_v29, %v5270_v5  ;;  %v8769_v36 = vadd.f32 -1.0, %v11647_v1  ;;  %10425 = vmatmul.mubr.msk.f32.vlgmr.msra.gmra.mrb[152].mxu1 %vm879_vm1, %v5301_v53  ;;  %v5240_v16 = vmul.f32 1.442695, %v14469_v27 }
0x112f   : > { %v5302_v17 = vmul.f32 1.050701, %v5286_v47  ;;  %v5273_v52 = vmul.f32 1.6732632, %v8770_v48  ;;  %v10412_v63 = vpop.f32.mrb[148].mxu0  ;;  %11656 = vpow2.f32 %v5242_v28  ;;  %vm5214_vm8 = vcmp.gt.f32.partialorder %v14469_v27, 0.0 }
0x1130   : > { %v11649_v42 = vpop.eup %11648  ;;  %v5272_v56 = vmul.f32 1.6732632, %v8769_v36  ;;  %v14479_v50 = vadd.f32 %v10412_v63, %v14435_v23  ;;  %v5185_v19 = vpop.f32.mrb[149].mxu0  ;;  %11658 = vpow2.f32 %v5240_v16 }
0x1131   : > { %v11651_v31 = vpop.eup %11650  ;;  %v5289_v35 = vsel %vm5209_vm2, %v14442_v4, %v5273_v52  ;;  %v8772_v29 = vadd.f32 -1.0, %v11649_v42  ;;  %10427 = vmatprep.mubr.msk.f32.mxu1 %vm879_vm1, %v5302_v17  ;;  %v14485_v55 = vadd.f32 %v14435_v23, %v5185_v19 }
0x1132   : > { %v5288_v13 = vsel %vm5208_vm9, %v14445_v8, %v5272_v56  ;;  %v8771_v53 = vadd.f32 -1.0, %v11651_v31  ;;  %10428 = vmatmul.mubr.msk.f32.gmra.mrb[154].mxu1 %vm879_vm1, %v5303_v40  ;;  %v5305_v5 = vmul.f32 1.050701, %v5289_v35  ;;  %v5246_v47 = vmul.f32 1.442695, %v14479_v50 }
0x1133   : > { %v5304_v24 = vmul.f32 1.050701, %v5288_v13  ;;  %v5275_v1 = vmul.f32 1.6732632, %v8772_v29  ;;  %v10415_v36 = vpop.f32.mrb[150].mxu0  ;;  %vm5217_vm10 = vcmp.gt.f32.partialorder %v14479_v50, 0.0 }
0x1134   : > { %v11653_v4 = vpop.eup %11652  ;;  %v5274_v48 = vmul.f32 1.6732632, %v8771_v53  ;;  %v5244_v40 = vmul.f32 1.442695, %v14485_v55  ;;  %v5195_v28 = vpop.f32.mrb[151].mxu0  ;;  %11660 = vpow2.f32 %v5246_v47  ;;  %v5201_v31 = vadd.f32 %v10415_v36, %v14435_v23 }
0x1135   : > { %v11655_v17 = vpop.eup %11654  ;;  %v5291_v8 = vsel %vm5211_vm14, %v14450_v20, %v5275_v1  ;;  %v8774_v52 = vadd.f32 -1.0, %v11653_v4  ;;  %10430 = vmatprep.mubr.msk.f32.mxu1 %vm879_vm1, %v5304_v24  ;;  %v5196_v29 = vadd.f32 %v14435_v23, %v5195_v28  ;;  %vm5216_vm15 = vcmp.gt.f32.partialorder %v14485_v55, 0.0 }
0x1136   : > { %v5290_v42 = vsel %vm5210_vm3, %v14453_v15, %v5274_v48  ;;  %v8773_v56 = vadd.f32 -1.0, %v11655_v17  ;;  %10431 = vmatmul.mubr.msk.f32.gmra.mrb[156].mxu1 %vm879_vm1, %v5305_v5  ;;  %11662 = vpow2.f32 %v5244_v40  ;;  %v5307_v20 = vmul.f32 1.050701, %v5291_v8 }
0x1137   : > { %v5306_v16 = vmul.f32 1.050701, %v5290_v42  ;;  %v5277_v63 = vmul.f32 1.6732632, %v8774_v52  ;;  %v5250_v15 = vmul.f32 1.442695, %v5201_v31 }
0x1138   : > { %v5276_v35 = vmul.f32 1.6732632, %v8773_v56  ;;  %v5248_v53 = vmul.f32 1.442695, %v5196_v29  ;;  %vm5219_vm0 = vcmp.gt.f32.partialorder %v5201_v31, 0.0  ;;  %vm5218_vm12 = vcmp.gt.f32.partialorder %v5196_v29, 0.0 }
0x1139   : > { %v5293_v19 = vsel %vm5213_vm4, %v14458_v62, %v5277_v63  ;;  %10433 = vmatprep.mubr.msk.f32.mxu1 %vm879_vm1, %v5306_v16  ;;  %v11657_v5 = vpop.eup %11656  ;;  %11664 = vpow2.f32 %v5250_v15 }
0x113a   : > { %v5292_v13 = vsel %vm5212_vm6, %v14461_v59, %v5276_v35  ;;  %10434 = vmatmul.mubr.msk.f32.gmra.mrb[158].mxu1 %vm879_vm1, %v5307_v20  ;;  %v11659_v1 = vpop.eup %11658  ;;  %v5309_v4 = vmul.f32 1.050701, %v5293_v19  ;;  %v8776_v48 = vadd.f32 -1.0, %v11657_v5  ;;  %11666 = vpow2.f32 %v5248_v53 }
0x113b   : > { %v5308_v24 = vmul.f32 1.050701, %v5292_v13  ;;  %v8775_v23 = vadd.f32 -1.0, %v11659_v1 }
0x113c   : > { %v5279_v62 = vmul.f32 1.6732632, %v8776_v48  ;;  %v5633_v48 = vld [vmem:[#allocation4 + $0x198] sm:$0xff] }
0x113d   : > { %10436 = vmatprep.mubr.msk.f32.mxu1 %vm879_vm1, %v5308_v24  ;;  %v5278_v47 = vmul.f32 1.6732632, %v8775_v23 }
0x113e   : > { %10437 = vmatmul.mubr.msk.f32.gmra.mrb[160].mxu1 %vm879_vm1, %v5309_v4  ;;  %v11661_v59 = vpop.eup %11660  ;;  %v5295_v36 = vsel %vm5215_vm7, %v14466_v51, %v5279_v62  ;;  %v5944_v62 = vld [vmem:[#allocation4 + $0x1a8] sm:$0xff] }
0x113f   : > { %v5294_v8 = vsel %vm5214_vm8, %v14469_v27, %v5278_v47  ;;  %v8778_v52 = vadd.f32 -1.0, %v11661_v59  ;;  %v5311_v42 = vmul.f32 1.050701, %v5295_v36  ;;  %v5945_v47 = vld [vmem:[#allocation4 + $0x1b0] sm:$0xff] }
0x1140   : > { %v11663_v17 = vpop.eup %11662  ;;  %v5310_v40 = vmul.f32 1.050701, %v5294_v8  ;;  %v11034_v59 = vpack.c.bf16 %v5945_v47, %v5944_v62 }
0x1141   : > { %v8777_v28 = vadd.f32 -1.0, %v11663_v17  ;;  %v5281_v56 = vmul.f32 1.6732632, %v8778_v52 }
0x1142   : > { %10439 = vmatprep.mubr.msk.f32.mxu1 %vm879_vm1, %v5310_v40  ;;  %11035 = vmatprep.subr.bf16.mxu1 %v11034_v59 }
0x1143   : > { %v5280_v16 = vmul.f32 1.6732632, %v8777_v28  ;;  %v11665_v63 = vpop.eup %11664  ;;  %v5297_v20 = vsel %vm5217_vm10, %v14479_v50, %v5281_v56  ;;  %10440 = vmatmul.mubr.msk.f32.gmra.mrb[162].mxu1 %vm879_vm1, %v5311_v42 }
0x1144   : > { %v11667_v51 = vpop.eup %11666  ;;  %v8780_v35 = vadd.f32 -1.0, %v11665_v63  ;;  %v5313_v13 = vmul.f32 1.050701, %v5297_v20  ;;  %11037 = vmatpush3.bf16.msra.mxu1 %v11034_v59 }
0x1145   : > { %v5296_v27 = vsel %vm5216_vm15, %v14485_v55, %v5280_v16  ;;  %v8779_v15 = vadd.f32 -1.0, %v11667_v51  ;;  %v5632_v55 = vld [vmem:[#allocation4 + $0x190] sm:$0xff] }
0x1146   : > { %v5312_v19 = vmul.f32 1.050701, %v5296_v27  ;;  %v5283_v53 = vmul.f32 1.6732632, %v8780_v35  ;;  %v11030_v23 = vpack.c.bf16 %v5633_v48, %v5632_v55 }
0x1147   : > { %v5282_v5 = vmul.f32 1.6732632, %v8779_v15 }
0x1148   : > { %10442 = vmatprep.mubr.msk.f32.mxu1 %vm879_vm1, %v5312_v19  ;;  %v5299_v24 = vsel %vm5219_vm0, %v5201_v31, %v5283_v53  ;;  %11031 = vmatprep.subr.bf16.mxu0 %v11030_v23  ;;  %v14519_v31 = vld [vmem:[#allocation4 + $0x178] ss:$0 sm:$0xff] }
0x1149   : > { %10443 = vmatmul.mubr.msk.f32.gmra.mrb[164].mxu1 %vm879_vm1, %v5313_v13  ;;  %v5298_v50 = vsel %vm5218_vm12, %v5196_v29, %v5282_v5  ;;  %v5315_v4 = vmul.f32 1.050701, %v5299_v24  ;;  %11033 = vmatpush3.bf16.msra.mxu0 %v11030_v23 }
0x114a   : > { %v5314_v1 = vmul.f32 1.050701, %v5298_v50 }
0x114c   : > { %10445 = vmatprep.mubr.msk.f32.mxu1 %vm879_vm1, %v5314_v1 }
0x114d   : > { %10446 = vmatmul.mubr.msk.f32.gmra.mrb[166].mxu1 %vm879_vm1, %v5315_v4 }
0x1201   : > { %v10426_v36 = vpop.f32.mrb[152].mxu1 }
0x1202   : > { %v5445_v29 = vadd.f32 %v10426_v36, %v14519_v31  ;;  %v5439_v17 = vpop.f32.mrb[153].mxu1 }
0x1203   : > { %v5440_v8 = vadd.f32 %v14519_v31, %v5439_v17 }
0x1204   : > { %v5536_v52 = vmul.f32 1.442695, %v5445_v29  ;;  %vm5519_vm13 = vcmp.gt.f32.partialorder %v5445_v29, 0.0 }
0x1205   : > { %v5534_v40 = vmul.f32 1.442695, %v5440_v8  ;;  %v10429_v28 = vpop.f32.mrb[154].mxu1  ;;  %vm5518_vm5 = vcmp.gt.f32.partialorder %v5440_v8, 0.0 }
0x1206   : > { %11668 = vpow2.f32 %v5536_v52  ;;  %v5455_v42 = vadd.f32 %v10429_v28, %v14519_v31  ;;  %v5449_v56 = vpop.f32.mrb[155].mxu1 }
0x1207   : > { %11670 = vpow2.f32 %v5534_v40  ;;  %v5450_v16 = vadd.f32 %v14519_v31, %v5449_v56 }
0x1208   : > { %v5540_v63 = vmul.f32 1.442695, %v5455_v42  ;;  %vm5521_vm11 = vcmp.gt.f32.partialorder %v5455_v42, 0.0 }
0x1209   : > { %v5538_v20 = vmul.f32 1.442695, %v5450_v16  ;;  %v10432_v51 = vpop.f32.mrb[156].mxu1  ;;  %vm5520_vm2 = vcmp.gt.f32.partialorder %v5450_v16, 0.0 }
0x120a   : > { %11672 = vpow2.f32 %v5540_v63  ;;  %v14526_v27 = vadd.f32 %v10432_v51, %v14519_v31  ;;  %v5459_v35 = vpop.f32.mrb[157].mxu1 }
0x120b   : > { %11674 = vpow2.f32 %v5538_v20  ;;  %v14529_v19 = vadd.f32 %v14519_v31, %v5459_v35 }
0x120c   : > { %v5544_v15 = vmul.f32 1.442695, %v14526_v27  ;;  %vm5523_vm9 = vcmp.gt.f32.partialorder %v14526_v27, 0.0 }
0x120d   : > { %v5542_v13 = vmul.f32 1.442695, %v14529_v19  ;;  %v10435_v53 = vpop.f32.mrb[158].mxu1  ;;  %vm5522_vm14 = vcmp.gt.f32.partialorder %v14529_v19, 0.0 }
0x120e   : > { %11676 = vpow2.f32 %v5544_v15  ;;  %v14534_v5 = vadd.f32 %v10435_v53, %v14519_v31  ;;  %v5469_v24 = vpop.f32.mrb[159].mxu1 }
0x120f   : > { %11678 = vpow2.f32 %v5542_v13  ;;  %v14537_v50 = vadd.f32 %v14519_v31, %v5469_v24 }
0x1210   : > { %v11669_v1 = vpop.eup %11668  ;;  %v5548_v4 = vmul.f32 1.442695, %v14534_v5  ;;  %vm5525_vm3 = vcmp.gt.f32.partialorder %v14534_v5, 0.0 }
0x1211   : > { %v11671_v55 = vpop.eup %11670  ;;  %v8799_v48 = vadd.f32 -1.0, %v11669_v1  ;;  %v5546_v23 = vmul.f32 1.442695, %v14537_v50  ;;  %v10438_v62 = vpop.f32.mrb[160].mxu1  ;;  %vm5524_vm4 = vcmp.gt.f32.partialorder %v14537_v50, 0.0 }
0x1212   : > { %v8798_v47 = vadd.f32 -1.0, %v11671_v55  ;;  %11680 = vpow2.f32 %v5548_v4  ;;  %v14542_v59 = vadd.f32 %v10438_v62, %v14519_v31  ;;  %v5479_v36 = vpop.f32.mrb[161].mxu1 }
0x1213   : > { %v5583_v17 = vmul.f32 1.6732632, %v8799_v48  ;;  %11682 = vpow2.f32 %v5546_v23  ;;  %v14545_v52 = vadd.f32 %v14519_v31, %v5479_v36 }
0x1214   : > { %v11673_v40 = vpop.eup %11672  ;;  %v5582_v28 = vmul.f32 1.6732632, %v8798_v47  ;;  %v5552_v56 = vmul.f32 1.442695, %v14542_v59  ;;  %vm5527_vm6 = vcmp.gt.f32.partialorder %v14542_v59, 0.0 }
0x1215   : > { %v11675_v63 = vpop.eup %11674  ;;  %v5599_v20 = vsel %vm5519_vm13, %v5445_v29, %v5583_v17  ;;  %v8801_v51 = vadd.f32 -1.0, %v11673_v40  ;;  %v5550_v35 = vmul.f32 1.442695, %v14545_v52  ;;  %vm5526_vm7 = vcmp.gt.f32.partialorder %v14545_v52, 0.0 }
0x1216   : > { %v5598_v15 = vsel %vm5518_vm5, %v5440_v8, %v5582_v28  ;;  %v8800_v13 = vadd.f32 -1.0, %v11675_v63  ;;  %11684 = vpow2.f32 %v5552_v56  ;;  %v5615_v4 = vmul.f32 1.050701, %v5599_v20  ;;  %v10441_v48 = vpop.f32.mrb[162].mxu1 }
0x1217   : > { %v5614_v53 = vmul.f32 1.050701, %v5598_v15  ;;  %v5585_v24 = vmul.f32 1.6732632, %v8801_v51  ;;  %11686 = vpow2.f32 %v5550_v35  ;;  %v14550_v29 = vadd.f32 %v10441_v48, %v14519_v31  ;;  %v5489_v36 = vpop.f32.mrb[163].mxu1 }
0x1218   : > { %v11677_v1 = vpop.eup %11676  ;;  %v5584_v55 = vmul.f32 1.6732632, %v8800_v13  ;;  %v14554_v40 = vadd.f32 %v14519_v31, %v5489_v36 }
0x1219   : > { %v11679_v23 = vpop.eup %11678  ;;  %v5601_v62 = vsel %vm5521_vm11, %v5455_v42, %v5585_v24  ;;  %v8803_v47 = vadd.f32 -1.0, %v11677_v1  ;;  %10456 = vmatprep.mubr.msk.f32.mxu0 %vm879_vm1, %v5614_v53  ;;  %v5556_v51 = vmul.f32 1.442695, %v14550_v29  ;;  %vm5529_vm8 = vcmp.gt.f32.partialorder %v14550_v29, 0.0 }
0x121a   : > { %v5600_v8 = vsel %vm5520_vm2, %v5450_v16, %v5584_v55  ;;  %v8802_v17 = vadd.f32 -1.0, %v11679_v23  ;;  %10457 = vmatmul.mubr.msk.f32.vlgmr.msra.gmra.mrb[152].mxu0 %vm879_vm1, %v5615_v4  ;;  %v5617_v63 = vmul.f32 1.050701, %v5601_v62  ;;  %v5554_v13 = vmul.f32 1.442695, %v14554_v40 }
0x121b   : > { %v5616_v28 = vmul.f32 1.050701, %v5600_v8  ;;  %v5587_v56 = vmul.f32 1.6732632, %v8803_v47  ;;  %11688 = vpow2.f32 %v5556_v51  ;;  %vm5528_vm10 = vcmp.gt.f32.partialorder %v14554_v40, 0.0 }
0x121c   : > { %v11681_v42 = vpop.eup %11680  ;;  %v5586_v20 = vmul.f32 1.6732632, %v8802_v17  ;;  %v10444_v53 = vpop.f32.mrb[164].mxu1  ;;  %11690 = vpow2.f32 %v5554_v13 }
0x121d   : > { %v11683_v35 = vpop.eup %11682  ;;  %v5603_v15 = vsel %vm5523_vm9, %v14526_v27, %v5587_v56  ;;  %v8805_v16 = vadd.f32 -1.0, %v11681_v42  ;;  %10459 = vmatprep.mubr.msk.f32.mxu0 %vm879_vm1, %v5616_v28  ;;  %v5499_v4 = vpop.f32.mrb[165].mxu1  ;;  %v14566_v27 = vadd.f32 %v10444_v53, %v14519_v31 }
0x121e   : > { %v5602_v24 = vsel %vm5522_vm14, %v14529_v19, %v5586_v20  ;;  %v8804_v1 = vadd.f32 -1.0, %v11683_v35  ;;  %10460 = vmatmul.mubr.msk.f32.gmra.mrb[154].mxu0 %vm879_vm1, %v5617_v63  ;;  %v5619_v62 = vmul.f32 1.050701, %v5603_v15  ;;  %v5500_v36 = vadd.f32 %v14519_v31, %v5499_v4 }
0x121f   : > { %v5618_v55 = vmul.f32 1.050701, %v5602_v24  ;;  %v5589_v48 = vmul.f32 1.6732632, %v8805_v16  ;;  %v5560_v28 = vmul.f32 1.442695, %v14566_v27 }
0x1220   : > { %v11685_v23 = vpop.eup %11684  ;;  %v5588_v47 = vmul.f32 1.6732632, %v8804_v1  ;;  %v10447_v63 = vpop.f32.mrb[166].mxu1  ;;  %v5558_v35 = vmul.f32 1.442695, %v5500_v36  ;;  %vm5531_vm15 = vcmp.gt.f32.partialorder %v14566_v27, 0.0 }
0x1221   : > { %v11687_v8 = vpop.eup %11686  ;;  %v5605_v19 = vsel %vm5525_vm3, %v14534_v5, %v5589_v48  ;;  %v8807_v17 = vadd.f32 -1.0, %v11685_v23  ;;  %10462 = vmatprep.mubr.msk.f32.mxu0 %vm879_vm1, %v5618_v55  ;;  %11692 = vpow2.f32 %v5560_v28  ;;  %v5515_v16 = vadd.f32 %v10447_v63, %v14519_v31  ;;  %v5509_v13 = vpop.f32.mrb[167].mxu1 }
0x1222   : > { %v5604_v56 = vsel %vm5524_vm4, %v14537_v50, %v5588_v47  ;;  %v8806_v42 = vadd.f32 -1.0, %v11687_v8  ;;  %10463 = vmatmul.mubr.msk.f32.gmra.mrb[156].mxu0 %vm879_vm1, %v5619_v62  ;;  %v5621_v15 = vmul.f32 1.050701, %v5605_v19  ;;  %11694 = vpow2.f32 %v5558_v35 }
0x1223   : > { %v5620_v20 = vmul.f32 1.050701, %v5604_v56  ;;  %v5591_v51 = vmul.f32 1.6732632, %v8807_v17  ;;  %v5510_v50 = vadd.f32 %v14519_v31, %v5509_v13  ;;  %v5564_v1 = vmul.f32 1.442695, %v5515_v16 }
0x1224   : > { %v5590_v5 = vmul.f32 1.6732632, %v8806_v42  ;;  %vm5530_vm0 = vcmp.gt.f32.partialorder %v5500_v36, 0.0  ;;  %vm5533_vm12 = vcmp.gt.f32.partialorder %v5515_v16, 0.0 }
0x1225   : > { %v5607_v53 = vsel %vm5527_vm6, %v14542_v59, %v5591_v51  ;;  %10465 = vmatprep.mubr.msk.f32.mxu0 %vm879_vm1, %v5620_v20  ;;  %v5562_v55 = vmul.f32 1.442695, %v5510_v50  ;;  %v11689_v48 = vpop.eup %11688  ;;  %11696 = vpow2.f32 %v5564_v1  ;;  %vm5532_vm13 = vcmp.gt.f32.partialorder %v5510_v50, 0.0 }
0x1226   : > { %v5606_v24 = vsel %vm5526_vm7, %v14545_v52, %v5590_v5  ;;  %10466 = vmatmul.mubr.msk.f32.gmra.mrb[158].mxu0 %vm879_vm1, %v5621_v15  ;;  %v5623_v23 = vmul.f32 1.050701, %v5607_v53  ;;  %v11691_v62 = vpop.eup %11690  ;;  %v8809_v47 = vadd.f32 -1.0, %v11689_v48 }
0x1227   : > { %v5622_v4 = vmul.f32 1.050701, %v5606_v24  ;;  %11698 = vpow2.f32 %v5562_v55  ;;  %v8808_v59 = vadd.f32 -1.0, %v11691_v62 }
0x1228   : > { %v5593_v31 = vmul.f32 1.6732632, %v8809_v47 }
0x1229   : > { %10468 = vmatprep.mubr.msk.f32.mxu0 %vm879_vm1, %v5622_v4  ;;  %v5592_v52 = vmul.f32 1.6732632, %v8808_v59 }
0x122a   : > { %10469 = vmatmul.mubr.msk.f32.gmra.mrb[160].mxu0 %vm879_vm1, %v5623_v23  ;;  %v5609_v19 = vsel %vm5529_vm8, %v14550_v29, %v5593_v31  ;;  %v6461_v31 = vld [vmem:[#allocation4 + $0x1fe] sm:$0xff] }
0x122b   : > { %v11693_v8 = vpop.eup %11692  ;;  %v5608_v17 = vsel %vm5528_vm10, %v14554_v40, %v5592_v52  ;;  %v5625_v63 = vmul.f32 1.050701, %v5609_v19  ;;  %v6462_v52 = vld [vmem:[#allocation4 + $0x206] sm:$0xff] }
0x122c   : > { %v8811_v28 = vadd.f32 -1.0, %v11693_v8  ;;  %v11695_v56 = vpop.eup %11694  ;;  %v5624_v42 = vmul.f32 1.050701, %v5608_v17  ;;  %v6259_v8 = vld [vmem:[#allocation4 + $0x1d8] sm:$0xff]  ;;  %v14601_v17 = vld [vmem:[#allocation4 + $0x1a0] ss:$0 sm:$0xff] }
0x122d   : > { %v8810_v51 = vadd.f32 -1.0, %v11695_v56 }
0x122e   : > { %v5595_v20 = vmul.f32 1.6732632, %v8811_v28  ;;  %10471 = vmatprep.mubr.msk.f32.mxu0 %vm879_vm1, %v5624_v42 }
0x122f   : > { %v11697_v35 = vpop.eup %11696  ;;  %v5594_v15 = vmul.f32 1.6732632, %v8810_v51  ;;  %10472 = vmatmul.mubr.msk.f32.gmra.mrb[162].mxu0 %vm879_vm1, %v5625_v63 }
0x1230   : > { %v5611_v29 = vsel %vm5531_vm15, %v14566_v27, %v5595_v20  ;;  %v8813_v13 = vadd.f32 -1.0, %v11697_v35  ;;  %v5946_v27 = vld [vmem:[#allocation4 + $0x1b8] sm:$0xff] }
0x1231   : > { %v11699_v5 = vpop.eup %11698  ;;  %v5610_v40 = vsel %vm5530_vm0, %v5500_v36, %v5594_v15  ;;  %v5627_v4 = vmul.f32 1.050701, %v5611_v29  ;;  %v5947_v36 = vld [vmem:[#allocation4 + $0x1c0] sm:$0xff] }
0x1232   : > { %v8812_v53 = vadd.f32 -1.0, %v11699_v5  ;;  %v5626_v24 = vmul.f32 1.050701, %v5610_v40  ;;  %v5597_v1 = vmul.f32 1.6732632, %v8813_v13  ;;  %v11038_v59 = vpack.c.bf16 %v5947_v36, %v5946_v27 }
0x1234   : > { %v5596_v55 = vmul.f32 1.6732632, %v8812_v53  ;;  %v5613_v48 = vsel %vm5533_vm12, %v5515_v16, %v5597_v1  ;;  %10474 = vmatprep.mubr.msk.f32.mxu0 %vm879_vm1, %v5626_v24  ;;  %11039 = vmatprep.subr.bf16.mxu1 %v11038_v59  ;;  %v14598_v16 = vpack.c.bf16 %v6462_v52, %v6461_v31 }
0x1235   : > { %10475 = vmatmul.mubr.msk.f32.gmra.mrb[164].mxu0 %vm879_vm1, %v5627_v4  ;;  %v5629_v47 = vmul.f32 1.050701, %v5613_v48  ;;  %11041 = vmatpush3.bf16.msra.mxu1 %v11038_v59 }
0x1236   : > { %v5612_v23 = vsel %vm5532_vm13, %v5510_v50, %v5596_v55  ;;  %11051 = vmatprep.subr.bf16.mxu1 %v14598_v16  ;;  %v6258_v50 = vld [vmem:[#allocation4 + $0x1d0] sm:$0xff] }
0x1237   : > { %v5628_v62 = vmul.f32 1.050701, %v5612_v23  ;;  %v11042_v19 = vpack.c.bf16 %v6259_v8, %v6258_v50 }
0x1239   : > { %10477 = vmatprep.mubr.msk.f32.mxu0 %vm879_vm1, %v5628_v62  ;;  %11043 = vmatprep.subr.bf16.mxu0 %v11042_v19 }
0x123a   : > { %10478 = vmatmul.mubr.msk.f32.gmra.mrb[166].mxu0 %vm879_vm1, %v5629_v47 }
0x123b   : > { %11045 = vmatpush3.bf16.msra.mxu0 %v11042_v19 }
0x12ed   : > { %v10458_v28 = vpop.f32.mrb[152].mxu0 }
0x12ee   : > { %v5759_v56 = vadd.f32 %v10458_v28, %v14601_v17  ;;  %v5753_v42 = vpop.f32.mrb[153].mxu0 }
0x12ef   : > { %v5754_v63 = vadd.f32 %v14601_v17, %v5753_v42 }
0x12f0   : > { %v5850_v20 = vmul.f32 1.442695, %v5759_v56  ;;  %vm5833_vm5 = vcmp.gt.f32.partialorder %v5759_v56, 0.0 }
0x12f1   : > { %v5848_v51 = vmul.f32 1.442695, %v5754_v63  ;;  %v10461_v35 = vpop.f32.mrb[154].mxu0  ;;  %vm5832_vm11 = vcmp.gt.f32.partialorder %v5754_v63, 0.0 }
0x12f2   : > { %11700 = vpow2.f32 %v5850_v20  ;;  %v5769_v15 = vadd.f32 %v10461_v35, %v14601_v17  ;;  %v5763_v5 = vpop.f32.mrb[155].mxu0 }
0x12f3   : > { %11702 = vpow2.f32 %v5848_v51  ;;  %v5764_v29 = vadd.f32 %v14601_v17, %v5763_v5 }
0x12f4   : > { %v5854_v13 = vmul.f32 1.442695, %v5769_v15  ;;  %vm5835_vm2 = vcmp.gt.f32.partialorder %v5769_v15, 0.0 }
0x12f5   : > { %v5852_v40 = vmul.f32 1.442695, %v5764_v29  ;;  %v10464_v53 = vpop.f32.mrb[156].mxu0  ;;  %vm5834_vm9 = vcmp.gt.f32.partialorder %v5764_v29, 0.0 }
0x12f6   : > { %11704 = vpow2.f32 %v5854_v13  ;;  %v14608_v24 = vadd.f32 %v10464_v53, %v14601_v17  ;;  %v5773_v1 = vpop.f32.mrb[157].mxu0 }
0x12f7   : > { %11706 = vpow2.f32 %v5852_v40  ;;  %v14611_v4 = vadd.f32 %v14601_v17, %v5773_v1 }
0x12f8   : > { %v5858_v55 = vmul.f32 1.442695, %v14608_v24  ;;  %vm5837_vm14 = vcmp.gt.f32.partialorder %v14608_v24, 0.0 }
0x12f9   : > { %v5856_v48 = vmul.f32 1.442695, %v14611_v4  ;;  %v10467_v23 = vpop.f32.mrb[158].mxu0  ;;  %vm5836_vm3 = vcmp.gt.f32.partialorder %v14611_v4, 0.0 }
0x12fa   : > { %11708 = vpow2.f32 %v5858_v55  ;;  %v14616_v62 = vadd.f32 %v10467_v23, %v14601_v17  ;;  %v5783_v47 = vpop.f32.mrb[159].mxu0  ;;  %v6464_v23 = vld [vmem:[#allocation4 + $0x216] sm:$0xff] }
0x12fb   : > { %11710 = vpow2.f32 %v5856_v48  ;;  %v14619_v27 = vadd.f32 %v14601_v17, %v5783_v47  ;;  %v6463_v48 = vld [vmem:[#allocation4 + $0x20e] sm:$0xff] }
0x12fc   : > { %v11701_v36 = vpop.eup %11700  ;;  %v5862_v59 = vmul.f32 1.442695, %v14616_v62  ;;  %vm5839_vm4 = vcmp.gt.f32.partialorder %v14616_v62, 0.0 }
0x12fd   : > { %v11703_v31 = vpop.eup %11702  ;;  %v8832_v52 = vadd.f32 -1.0, %v11701_v36  ;;  %v5860_v50 = vmul.f32 1.442695, %v14619_v27  ;;  %v10470_v8 = vpop.f32.mrb[160].mxu0  ;;  %vm5838_vm6 = vcmp.gt.f32.partialorder %v14619_v27, 0.0 }
0x12fe   : > { %v8831_v19 = vadd.f32 -1.0, %v11703_v31  ;;  %11712 = vpow2.f32 %v5862_v59  ;;  %v14624_v28 = vadd.f32 %v10470_v8, %v14601_v17  ;;  %v5793_v42 = vpop.f32.mrb[161].mxu0 }
0x12ff   : > { %v5897_v20 = vmul.f32 1.6732632, %v8832_v52  ;;  %11714 = vpow2.f32 %v5860_v50  ;;  %v14627_v51 = vadd.f32 %v14601_v17, %v5793_v42 }
0x1300   : > { %v11705_v35 = vpop.eup %11704  ;;  %v5896_v5 = vmul.f32 1.6732632, %v8831_v19  ;;  %v5866_v13 = vmul.f32 1.442695, %v14624_v28  ;;  %v11054_v19 = vpack.c.bf16 %v6464_v23, %v6463_v48  ;;  %vm5841_vm7 = vcmp.gt.f32.partialorder %v14624_v28, 0.0 }
0x1301   : > { %v11707_v40 = vpop.eup %11706  ;;  %v5913_v53 = vsel %vm5833_vm5, %v5759_v56, %v5897_v20  ;;  %v8834_v1 = vadd.f32 -1.0, %v11705_v35  ;;  %v5864_v55 = vmul.f32 1.442695, %v14627_v51  ;;  %vm5840_vm8 = vcmp.gt.f32.partialorder %v14627_v51, 0.0 }
0x1302   : > { %v5912_v47 = vsel %vm5832_vm11, %v5754_v63, %v5896_v5  ;;  %v8833_v36 = vadd.f32 -1.0, %v11707_v40  ;;  %11716 = vpow2.f32 %v5866_v13  ;;  %v5929_v50 = vmul.f32 1.050701, %v5913_v53  ;;  %v10473_v20 = vpop.f32.mrb[162].mxu0 }
0x1303   : > { %v5928_v59 = vmul.f32 1.050701, %v5912_v47  ;;  %v5899_v31 = vmul.f32 1.6732632, %v8834_v1  ;;  %11718 = vpow2.f32 %v5864_v55  ;;  %v14633_v63 = vadd.f32 %v10473_v20, %v14601_v17  ;;  %v5803_v5 = vpop.f32.mrb[163].mxu0 }
0x1304   : > { %v11709_v52 = vpop.eup %11708  ;;  %v5898_v8 = vmul.f32 1.6732632, %v8833_v36  ;;  %v14638_v53 = vadd.f32 %v14601_v17, %v5803_v5  ;;  %vm6660_vm11 = vcmask 1045504  }
0x1305   : > { %v11711_v42 = vpop.eup %11710  ;;  %v5915_v12 = vsel %vm5835_vm2, %v5769_v15, %v5899_v31  ;;  %v8836_v56 = vadd.f32 -1.0, %v11709_v52  ;;  %10488 = vmatprep.mubr.msk.f32.mxu1 %vm879_vm1, %v5928_v59  ;;  %vm5843_vm10 = vcmp.gt.f32.partialorder %v14633_v63, 0.0 }
0x1306   : > { %v5914_v35 = vsel %vm5834_vm9, %v5764_v29, %v5898_v8  ;;  %v8835_v61 = vadd.f32 -1.0, %v11711_v42  ;;  %10489 = vmatmul.mubr.msk.f32.vlgmr.msra.gmra.mrb[168].mxu1 %vm879_vm1, %v5929_v50  ;;  %v5931_v1 = vmul.f32 1.050701, %v5915_v12  ;;  %v5870_v29 = vmul.f32 1.442695, %v14633_v63 }
0x1307   : > { %v5930_v13 = vmul.f32 1.050701, %v5914_v35  ;;  %v5901_v40 = vmul.f32 1.6732632, %v8836_v56  ;;  %11053 = vmatpush3.bf16.msra.mxu1 %v14598_v16  ;;  %v5868_v36 = vmul.f32 1.442695, %v14638_v53 }
0x1308   : > { %v11713_v15 = vpop.eup %11712  ;;  %v5900_v55 = vmul.f32 1.6732632, %v8835_v61  ;;  %11055 = vmatprep.subr.bf16.mxu1 %v11054_v19  ;;  %11720 = vpow2.f32 %v5870_v29  ;;  %v10476_v16 = vpop.f32.mrb[164].mxu0  ;;  %vm5842_vm15 = vcmp.gt.f32.partialorder %v14638_v53, 0.0 }
0x1309   : > { %v11715_v48 = vpop.eup %11714  ;;  %v5917_v23 = vsel %vm5837_vm14, %v14608_v24, %v5901_v40  ;;  %v8838_v47 = vadd.f32 -1.0, %v11713_v15  ;;  %10491 = vmatprep.mubr.msk.f32.mxu1 %vm879_vm1, %v5930_v13  ;;  %11722 = vpow2.f32 %v5868_v36  ;;  %v5819_v8 = vadd.f32 %v10476_v16, %v14601_v17  ;;  %v5813_v42 = vpop.f32.mrb[165].mxu0 }
0x130a   : > { %v5916_v59 = vsel %vm5836_vm3, %v14611_v4, %v5900_v55  ;;  %v8837_v31 = vadd.f32 -1.0, %v11715_v48  ;;  %10492 = vmatmul.mubr.msk.f32.gmra.mrb[170].mxu1 %vm879_vm1, %v5931_v1  ;;  %v5933_v24 = vmul.f32 1.050701, %v5917_v23  ;;  %v5814_v35 = vadd.f32 %v14601_v17, %v5813_v42 }
0x130b   : > { %v5932_v61 = vmul.f32 1.050701, %v5916_v59  ;;  %v5903_v12 = vmul.f32 1.6732632, %v8838_v47  ;;  %11057 = vmatpush3.bf16.msra.mxu1 %v11054_v19  ;;  %v5874_v1 = vmul.f32 1.442695, %v5819_v8 }
0x130c   : > { %v11717_v52 = vpop.eup %11716  ;;  %v5902_v50 = vmul.f32 1.6732632, %v8837_v31  ;;  %vm5845_vm0 = vcmp.gt.f32.partialorder %v5819_v8, 0.0  ;;  %vm5844_vm12 = vcmp.gt.f32.partialorder %v5814_v35, 0.0 }
0x130d   : > { %v11719_v56 = vpop.eup %11718  ;;  %v5919_v4 = vsel %vm5839_vm4, %v14616_v62, %v5903_v12  ;;  %v8840_v20 = vadd.f32 -1.0, %v11717_v52  ;;  %10494 = vmatprep.mubr.msk.f32.mxu1 %vm879_vm1, %v5932_v61  ;;  %v5872_v62 = vmul.f32 1.442695, %v5814_v35  ;;  %v10479_v29 = vpop.f32.mrb[166].mxu0  ;;  %11724 = vpow2.f32 %v5874_v1 }
0x130e   : > { %v5935_v5 = vmul.f32 1.050701, %v5919_v4  ;;  %v5918_v19 = vsel %vm5838_vm6, %v14619_v27, %v5902_v50  ;;  %v8839_v13 = vadd.f32 -1.0, %v11719_v56  ;;  %10495 = vmatmul.mubr.msk.f32.gmra.mrb[172].mxu1 %vm879_vm1, %v5933_v24  ;;  %v5829_v23 = vadd.f32 %v10479_v29, %v14601_v17  ;;  %v5823_v47 = vpop.f32.mrb[167].mxu0 }
0x130f   : > { %v5934_v40 = vmul.f32 1.050701, %v5918_v19  ;;  %v5905_v15 = vmul.f32 1.6732632, %v8840_v20  ;;  %11726 = vpow2.f32 %v5872_v62  ;;  %v5824_v36 = vadd.f32 %v14601_v17, %v5823_v47 }
0x1310   : > { %v5904_v55 = vmul.f32 1.6732632, %v8839_v13  ;;  %v5878_v31 = vmul.f32 1.442695, %v5829_v23  ;;  %vm5847_vm13 = vcmp.gt.f32.partialorder %v5829_v23, 0.0 }
0x1311   : > { %v5921_v48 = vsel %vm5841_vm7, %v14624_v28, %v5905_v15  ;;  %10497 = vmatprep.mubr.msk.f32.mxu1 %vm879_vm1, %v5934_v40  ;;  %v5876_v28 = vmul.f32 1.442695, %v5824_v36  ;;  %vm5846_vm5 = vcmp.gt.f32.partialorder %v5824_v36, 0.0 }
0x1312   : > { %v5920_v27 = vsel %vm5840_vm8, %v14627_v51, %v5904_v55  ;;  %10498 = vmatmul.mubr.msk.f32.gmra.mrb[174].mxu1 %vm879_vm1, %v5935_v5  ;;  %v11721_v61 = vpop.eup %11720  ;;  %v5937_v12 = vmul.f32 1.050701, %v5921_v48  ;;  %11728 = vpow2.f32 %v5878_v31 }
0x1313   : > { %v5936_v59 = vmul.f32 1.050701, %v5920_v27  ;;  %v11723_v16 = vpop.eup %11722  ;;  %v8842_v52 = vadd.f32 -1.0, %v11721_v61  ;;  %11730 = vpow2.f32 %v5876_v28 }
0x1314   : > { %v8841_v24 = vadd.f32 -1.0, %v11723_v16 }
0x1315   : > { %10500 = vmatprep.mubr.msk.f32.mxu1 %vm879_vm1, %v5936_v59  ;;  %v5907_v51 = vmul.f32 1.6732632, %v8842_v52 }
0x1316   : > { %10501 = vmatmul.mubr.msk.f32.gmra.mrb[176].mxu1 %vm879_vm1, %v5937_v12  ;;  %v5906_v17 = vmul.f32 1.6732632, %v8841_v24 }
0x1317   : > { %v5923_v50 = vsel %vm5843_vm10, %v14633_v63, %v5907_v51  ;;  %v11725_v56 = vpop.eup %11724 }
0x1318   : > { %v5922_v42 = vsel %vm5842_vm15, %v14638_v53, %v5906_v17  ;;  %v5939_v5 = vmul.f32 1.050701, %v5923_v50  ;;  %v8844_v19 = vadd.f32 -1.0, %v11725_v56 }
0x1319   : > { %v5938_v4 = vmul.f32 1.050701, %v5922_v42  ;;  %v11727_v20 = vpop.eup %11726 }
0x131a   : > { %v8843_v13 = vadd.f32 -1.0, %v11727_v20  ;;  %v5909_v40 = vmul.f32 1.6732632, %v8844_v19 }
0x131b   : > { %10503 = vmatprep.mubr.msk.f32.mxu1 %vm879_vm1, %v5938_v4 }
0x131c   : > { %10504 = vmatmul.mubr.msk.f32.gmra.mrb[178].mxu1 %vm879_vm1, %v5939_v5  ;;  %v11729_v15 = vpop.eup %11728  ;;  %v5908_v1 = vmul.f32 1.6732632, %v8843_v13  ;;  %v5925_v63 = vsel %vm5845_vm0, %v5819_v8, %v5909_v40 }
0x131d   : > { %v11731_v55 = vpop.eup %11730  ;;  %v8846_v62 = vadd.f32 -1.0, %v11729_v15  ;;  %v5941_v27 = vmul.f32 1.050701, %v5925_v63 }
0x131e   : > { %v5924_v29 = vsel %vm5844_vm12, %v5814_v35, %v5908_v1  ;;  %v8845_v53 = vadd.f32 -1.0, %v11731_v55 }
0x131f   : > { %v5940_v48 = vmul.f32 1.050701, %v5924_v29  ;;  %v5911_v47 = vmul.f32 1.6732632, %v8846_v62 }
0x1320   : > { %v5910_v59 = vmul.f32 1.6732632, %v8845_v53 }
0x1321   : > { %v5927_v31 = vsel %vm5847_vm13, %v5829_v23, %v5911_v47  ;;  %10506 = vmatprep.mubr.msk.f32.mxu1 %vm879_vm1, %v5940_v48 }
0x1322   : > { %v5926_v61 = vsel %vm5846_vm5, %v5824_v36, %v5910_v59  ;;  %10507 = vmatmul.mubr.msk.f32.gmra.mrb[180].mxu1 %vm879_vm1, %v5941_v27  ;;  %v5943_v28 = vmul.f32 1.050701, %v5927_v31 }
0x1323   : > { %v5942_v12 = vmul.f32 1.050701, %v5926_v61 }
0x1325   : > { %10509 = vmatprep.mubr.msk.f32.mxu1 %vm879_vm1, %v5942_v12 }
0x1326   : > { %10510 = vmatmul.mubr.msk.f32.gmra.mrb[182].mxu1 %vm879_vm1, %v5943_v28 }
0x1327   : > { %10552 = vmatprep.mubr.msk.f32.mxu1 %vm879_vm1, %v14323_v58  ;;  %v6260_v58 = vld [vmem:[#allocation4 + $0x1e0] sm:$0xff] }
0x132a   : > { %10553 = vmatmul.mubr.msk.f32.vlgmr.msra.gmra.mrb[184].mxu1 %vm879_vm1, %v14328_v6  ;;  %v6261_v6 = vld [vmem:[#allocation4 + $0x1e8] sm:$0xff] }
0x132b   : > { %10555 = vmatprep.mubr.msk.f32.mxu1 %vm879_vm1, %v14339_v33  ;;  %v11046_v33 = vpack.c.bf16 %v6261_v6, %v6260_v58 }
0x132d   : > { %11047 = vmatprep.subr.bf16.mxu0 %v11046_v33 }
0x132e   : > { %10556 = vmatmul.mubr.msk.f32.gmra.mrb[186].mxu1 %vm879_vm1, %v14342_v32  ;;  %11049 = vmatpush3.bf16.msra.mxu0 %v11046_v33  ;;  %v6460_v32 = vld [vmem:[#allocation4 + $0x1f8] sm:$0x3f] }
0x132f   : > { %10558 = vmatprep.mubr.msk.f32.mxu1 %vm879_vm1, %v14358_v14  ;;  %10576 = vmatprep.subr.msk.mxu1 %vm6660_vm11, %v6460_v32  ;;  %v14708_v14 = vld [vmem:[#allocation4 + $0x1c8] ss:$0 sm:$0xff] }
0x1330   : > { %10577 = vmatpush3.msk.msra.mxu1 %vm6660_vm11, %v6460_v32 }
0x1332   : > { %10559 = vmatmul.mubr.msk.f32.gmra.mrb[188].mxu1 %vm879_vm1, %v14364_v21 }
0x1333   : > { %10561 = vmatprep.mubr.msk.f32.mxu1 %vm879_vm1, %v14378_v11 }
0x1336   : > { %10562 = vmatmul.mubr.msk.f32.gmra.mrb[190].mxu1 %vm879_vm1, %v14381_v25 }
0x1337   : > { %10564 = vmatprep.mubr.msk.f32.mxu1 %vm879_vm1, %v14391_v7 }
0x133a   : > { %10565 = vmatmul.mubr.msk.f32.gmra.mrb[192].mxu1 %vm879_vm1, %v14393_v43 }
0x133b   : > { %10567 = vmatprep.mubr.msk.f32.mxu1 %vm879_vm1, %v14403_v44 }
0x133e   : > { %10568 = vmatmul.mubr.msk.f32.gmra.mrb[194].mxu1 %vm879_vm1, %v14405_v2 }
0x133f   : > { %10570 = vmatprep.mubr.msk.f32.mxu1 %vm879_vm1, %v14415_v45 }
0x1342   : > { %10571 = vmatmul.mubr.msk.f32.gmra.mrb[196].mxu1 %vm879_vm1, %v14417_v37 }
0x1343   : > { %10573 = vmatprep.mubr.msk.f32.mxu1 %vm879_vm1, %v14427_v46 }
0x1346   : > { %10574 = vmatmul.mubr.msk.f32.gmra.mrb[198].mxu1 %vm879_vm1, %v14429_v0 }
0x13d9   : > { %v10490_v21 = vpop.f32.mrb[168].mxu1 }
0x13da   : > { %v6073_v11 = vadd.f32 %v10490_v21, %v14708_v14  ;;  %v6067_v25 = vpop.f32.mrb[169].mxu1 }
0x13db   : > { %v6068_v7 = vadd.f32 %v14708_v14, %v6067_v25 }
0x13dc   : > { %v6164_v43 = vmul.f32 1.442695, %v6073_v11  ;;  %vm6147_vm2 = vcmp.gt.f32.partialorder %v6073_v11, 0.0 }
0x13dd   : > { %v6162_v44 = vmul.f32 1.442695, %v6068_v7  ;;  %v10493_v2 = vpop.f32.mrb[170].mxu1  ;;  %vm6146_vm9 = vcmp.gt.f32.partialorder %v6068_v7, 0.0 }
0x13de   : > { %11732 = vpow2.f32 %v6164_v43  ;;  %v6083_v45 = vadd.f32 %v10493_v2, %v14708_v14  ;;  %v6077_v37 = vpop.f32.mrb[171].mxu1 }
0x13df   : > { %11734 = vpow2.f32 %v6162_v44  ;;  %v6078_v46 = vadd.f32 %v14708_v14, %v6077_v37 }
0x13e0   : > { %v6168_v0 = vmul.f32 1.442695, %v6083_v45  ;;  %vm6149_vm14 = vcmp.gt.f32.partialorder %v6083_v45, 0.0 }
0x13e1   : > { %v6166_v8 = vmul.f32 1.442695, %v6078_v46  ;;  %v10496_v35 = vpop.f32.mrb[172].mxu1  ;;  %vm6148_vm3 = vcmp.gt.f32.partialorder %v6078_v46, 0.0 }
0x13e2   : > { %11736 = vpow2.f32 %v6168_v0  ;;  %v14715_v23 = vadd.f32 %v10496_v35, %v14708_v14  ;;  %v6087_v36 = vpop.f32.mrb[173].mxu1 }
0x13e3   : > { %11738 = vpow2.f32 %v6166_v8  ;;  %v14718_v16 = vadd.f32 %v14708_v14, %v6087_v36 }
0x13e4   : > { %v6172_v52 = vmul.f32 1.442695, %v14715_v23  ;;  %vm6151_vm4 = vcmp.gt.f32.partialorder %v14715_v23, 0.0 }
0x13e5   : > { %v6170_v24 = vmul.f32 1.442695, %v14718_v16  ;;  %v10499_v51 = vpop.f32.mrb[174].mxu1  ;;  %vm6150_vm6 = vcmp.gt.f32.partialorder %v14718_v16, 0.0 }
0x13e6   : > { %11740 = vpow2.f32 %v6172_v52  ;;  %v14723_v17 = vadd.f32 %v10499_v51, %v14708_v14  ;;  %v6097_v50 = vpop.f32.mrb[175].mxu1 }
0x13e7   : > { %11742 = vpow2.f32 %v6170_v24  ;;  %v14726_v42 = vadd.f32 %v14708_v14, %v6097_v50 }
0x13e8   : > { %v11733_v56 = vpop.eup %11732  ;;  %v6176_v4 = vmul.f32 1.442695, %v14723_v17  ;;  %vm6153_vm7 = vcmp.gt.f32.partialorder %v14723_v17, 0.0 }
0x13e9   : > { %v11735_v20 = vpop.eup %11734  ;;  %v8865_v5 = vadd.f32 -1.0, %v11733_v56  ;;  %v6174_v19 = vmul.f32 1.442695, %v14726_v42  ;;  %v10502_v13 = vpop.f32.mrb[176].mxu1  ;;  %vm6152_vm8 = vcmp.gt.f32.partialorder %v14726_v42, 0.0 }
0x13ea   : > { %v8864_v40 = vadd.f32 -1.0, %v11735_v20  ;;  %11744 = vpow2.f32 %v6176_v4  ;;  %v14731_v15 = vadd.f32 %v10502_v13, %v14708_v14  ;;  %v6107_v1 = vpop.f32.mrb[177].mxu1 }
0x13eb   : > { %v6211_v55 = vmul.f32 1.6732632, %v8865_v5  ;;  %11746 = vpow2.f32 %v6174_v19  ;;  %v14734_v63 = vadd.f32 %v14708_v14, %v6107_v1 }
0x13ec   : > { %v11737_v62 = vpop.eup %11736  ;;  %v6210_v29 = vmul.f32 1.6732632, %v8864_v40  ;;  %v6180_v53 = vmul.f32 1.442695, %v14731_v15  ;;  %vm6155_vm10 = vcmp.gt.f32.partialorder %v14731_v15, 0.0 }
0x13ed   : > { %v11739_v48 = vpop.eup %11738  ;;  %v6227_v47 = vsel %vm6147_vm2, %v6073_v11, %v6211_v55  ;;  %v8867_v27 = vadd.f32 -1.0, %v11737_v62  ;;  %v6178_v59 = vmul.f32 1.442695, %v14734_v63  ;;  %vm6154_vm15 = vcmp.gt.f32.partialorder %v14734_v63, 0.0 }
0x13ee   : > { %v6226_v31 = vsel %vm6146_vm9, %v6068_v7, %v6210_v29  ;;  %v8866_v61 = vadd.f32 -1.0, %v11739_v48  ;;  %11748 = vpow2.f32 %v6180_v53  ;;  %v6243_v6 = vmul.f32 1.050701, %v6227_v47 }
0x13ef   : > { %v6242_v12 = vmul.f32 1.050701, %v6226_v31  ;;  %v6213_v28 = vmul.f32 1.6732632, %v8867_v27  ;;  %11750 = vpow2.f32 %v6178_v59  ;;  %v10505_v43 = vpop.f32.mrb[178].mxu1  ;;  %vm6611_vm9 = vcmask 48128  }
0x13f0   : > { %v11741_v58 = vpop.eup %11740  ;;  %v6212_v33 = vmul.f32 1.6732632, %v8866_v61  ;;  %v14740_v7 = vadd.f32 %v10505_v43, %v14708_v14  ;;  %v6117_v2 = vpop.f32.mrb[179].mxu1 }
0x13f1   : > { %v11743_v32 = vpop.eup %11742  ;;  %v6229_v21 = vsel %vm6149_vm14, %v6083_v45, %v6213_v28  ;;  %v8869_v25 = vadd.f32 -1.0, %v11741_v58  ;;  %10520 = vmatprep.mubr.msk.f32.mxu0 %vm879_vm1, %v6242_v12  ;;  %v14745_v8 = vadd.f32 %v14708_v14, %v6117_v2 }
0x13f2   : > { %v6228_v11 = vsel %vm6148_vm3, %v6078_v46, %v6212_v33  ;;  %v8868_v44 = vadd.f32 -1.0, %v11743_v32  ;;  %10521 = vmatmul.mubr.msk.f32.vlgmr.msra.gmra.mrb[168].mxu0 %vm879_vm1, %v6243_v6  ;;  %v6245_v35 = vmul.f32 1.050701, %v6229_v21  ;;  %v6184_v52 = vmul.f32 1.442695, %v14740_v7 }
0x13f3   : > { %v6244_v37 = vmul.f32 1.050701, %v6228_v11  ;;  %v6215_v0 = vmul.f32 1.6732632, %v8869_v25  ;;  %v6182_v50 = vmul.f32 1.442695, %v14745_v8 }
0x13f4   : > { %v11745_v45 = vpop.eup %11744  ;;  %v6214_v36 = vmul.f32 1.6732632, %v8868_v44  ;;  %11752 = vpow2.f32 %v6184_v52  ;;  %vm6157_vm0 = vcmp.gt.f32.partialorder %v14740_v7, 0.0  ;;  %vm6156_vm12 = vcmp.gt.f32.partialorder %v14745_v8, 0.0 }
0x13f5   : > { %v11747_v46 = vpop.eup %11746  ;;  %v6231_v24 = vsel %vm6151_vm4, %v14715_v23, %v6215_v0  ;;  %v8871_v51 = vadd.f32 -1.0, %v11745_v45  ;;  %10523 = vmatprep.mubr.msk.f32.mxu0 %vm879_vm1, %v6244_v37  ;;  %11754 = vpow2.f32 %v6182_v50  ;;  %v10508_v40 = vpop.f32.mrb[180].mxu1 }
0x13f6   : > { %v6230_v56 = vsel %vm6150_vm6, %v14718_v16, %v6214_v36  ;;  %v8870_v4 = vadd.f32 -1.0, %v11747_v46  ;;  %10524 = vmatmul.mubr.msk.f32.gmra.mrb[170].mxu0 %vm879_vm1, %v6245_v35  ;;  %v6247_v13 = vmul.f32 1.050701, %v6231_v24  ;;  %v6133_v16 = vadd.f32 %v10508_v40, %v14708_v14  ;;  %v6127_v29 = vpop.f32.mrb[181].mxu1 }
0x13f7   : > { %v6246_v20 = vmul.f32 1.050701, %v6230_v56  ;;  %v6217_v5 = vmul.f32 1.6732632, %v8871_v51  ;;  %v6128_v47 = vadd.f32 %v14708_v14, %v6127_v29 }
0x13f8   : > { %v11749_v19 = vpop.eup %11748  ;;  %v6216_v23 = vmul.f32 1.6732632, %v8870_v4  ;;  %v6188_v61 = vmul.f32 1.442695, %v6133_v16  ;;  %vm6159_vm13 = vcmp.gt.f32.partialorder %v6133_v16, 0.0 }
0x13f9   : > { %v11751_v1 = vpop.eup %11750  ;;  %v6233_v55 = vsel %vm6153_vm7, %v14723_v17, %v6217_v5  ;;  %v8873_v62 = vadd.f32 -1.0, %v11749_v19  ;;  %10526 = vmatprep.mubr.msk.f32.mxu0 %vm879_vm1, %v6246_v20  ;;  %v10511_v12 = vpop.f32.mrb[182].mxu1  ;;  %v6186_v58 = vmul.f32 1.442695, %v6128_v47  ;;  %vm6158_vm5 = vcmp.gt.f32.partialorder %v6128_v47, 0.0 }
0x13fa   : > { %v6232_v53 = vsel %vm6152_vm8, %v14726_v42, %v6216_v23  ;;  %v8872_v48 = vadd.f32 -1.0, %v11751_v1  ;;  %10527 = vmatmul.mubr.msk.f32.gmra.mrb[172].mxu0 %vm879_vm1, %v6247_v13  ;;  %v6249_v27 = vmul.f32 1.050701, %v6233_v55  ;;  %v6143_v42 = vadd.f32 %v10511_v12, %v14708_v14  ;;  %v6137_v6 = vpop.f32.mrb[183].mxu1 }
0x13fb   : > { %v6248_v59 = vmul.f32 1.050701, %v6232_v53  ;;  %v6219_v31 = vmul.f32 1.6732632, %v8873_v62  ;;  %11756 = vpow2.f32 %v6188_v61  ;;  %v6138_v32 = vadd.f32 %v14708_v14, %v6137_v6 }
0x13fc   : > { %v6218_v17 = vmul.f32 1.6732632, %v8872_v48  ;;  %11758 = vpow2.f32 %v6186_v58  ;;  %v6192_v25 = vmul.f32 1.442695, %v6143_v42  ;;  %vm6161_vm11 = vcmp.gt.f32.partialorder %v6143_v42, 0.0  ;;  %v6942_v48 = vld [vmem:[#allocation4 + $0x228] sm:$0xff] }
0x13fd   : > { %v6235_v28 = vsel %vm6155_vm10, %v14731_v15, %v6219_v31  ;;  %10529 = vmatprep.mubr.msk.f32.mxu0 %vm879_vm1, %v6248_v59  ;;  %v6190_v11 = vmul.f32 1.442695, %v6138_v32  ;;  %vm6160_vm2 = vcmp.gt.f32.partialorder %v6138_v32, 0.0 }
0x13fe   : > { %v6234_v33 = vsel %vm6154_vm15, %v14734_v63, %v6218_v17  ;;  %10530 = vmatmul.mubr.msk.f32.gmra.mrb[174].mxu0 %vm879_vm1, %v6249_v27  ;;  %v11753_v43 = vpop.eup %11752  ;;  %v6251_v15 = vmul.f32 1.050701, %v6235_v28  ;;  %11760 = vpow2.f32 %v6192_v25  ;;  %v8880_v27 = vld [vmem:[#allocation4 + $0x1f0] ss:$0 sm:$0xff] }
0x13ff   : > { %v6250_v21 = vmul.f32 1.050701, %v6234_v33  ;;  %v11755_v44 = vpop.eup %11754  ;;  %v8875_v2 = vadd.f32 -1.0, %v11753_v43  ;;  %11762 = vpow2.f32 %v6190_v11 }
0x1400   : > { %v8874_v37 = vadd.f32 -1.0, %v11755_v44 }
0x1401   : > { %10532 = vmatprep.mubr.msk.f32.mxu0 %vm879_vm1, %v6250_v21  ;;  %v6221_v63 = vmul.f32 1.6732632, %v8875_v2 }
0x1402   : > { %10533 = vmatmul.mubr.msk.f32.gmra.mrb[176].mxu0 %vm879_vm1, %v6251_v15  ;;  %v6220_v14 = vmul.f32 1.6732632, %v8874_v37 }
0x1403   : > { %v6237_v0 = vsel %vm6157_vm0, %v14740_v7, %v6221_v63 }
0x1404   : > { %v6236_v45 = vsel %vm6156_vm12, %v14745_v8, %v6220_v14  ;;  %v6253_v52 = vmul.f32 1.050701, %v6237_v0 }
0x1405   : > { %v6252_v35 = vmul.f32 1.050701, %v6236_v45  ;;  %v11757_v36 = vpop.eup %11756 }
0x1406   : > { %v11759_v46 = vpop.eup %11758  ;;  %v8877_v24 = vadd.f32 -1.0, %v11757_v36 }
0x1407   : > { %10535 = vmatprep.mubr.msk.f32.mxu0 %vm879_vm1, %v6252_v35  ;;  %v8876_v51 = vadd.f32 -1.0, %v11759_v46 }
0x1408   : > { %10536 = vmatmul.mubr.msk.f32.gmra.mrb[178].mxu0 %vm879_vm1, %v6253_v52  ;;  %v11761_v50 = vpop.eup %11760  ;;  %v6223_v56 = vmul.f32 1.6732632, %v8877_v24 }
0x1409   : > { %v11763_v4 = vpop.eup %11762  ;;  %v6222_v20 = vmul.f32 1.6732632, %v8876_v51  ;;  %v8879_v7 = vadd.f32 -1.0, %v11761_v50 }
0x140a   : > { %v6239_v5 = vsel %vm6159_vm13, %v6133_v16, %v6223_v56  ;;  %v8878_v19 = vadd.f32 -1.0, %v11763_v4  ;;  %v6941_v16 = vld [vmem:[#allocation4 + $0x220] sm:$0xff] }
0x140b   : > { %v6238_v8 = vsel %vm6158_vm5, %v6128_v47, %v6222_v20  ;;  %v6225_v13 = vmul.f32 1.6732632, %v8879_v7  ;;  %v6255_v1 = vmul.f32 1.050701, %v6239_v5  ;;  %v11058_v47 = vpack.c.bf16 %v6942_v48, %v6941_v16  ;;  %v6943_v20 = vld [vmem:[#allocation4 + $0x230] sm:$0xff]  ;;  %v6944_v7 = vld [vmem:[#allocation4 + $0x238] sm:$0xff] }
0x140c   : > { %v6254_v23 = vmul.f32 1.050701, %v6238_v8  ;;  %v6224_v40 = vmul.f32 1.6732632, %v8878_v19  ;;  %v11062_v5 = vpack.c.bf16 %v6944_v7, %v6943_v20  ;;  %v7255_v19 = vld [vmem:[#allocation4 + $0x248] sm:$0xff]  ;;  %v7256_v8 = vld [vmem:[#allocation4 + $0x250] sm:$0xff] }
0x140d   : > { %v6241_v55 = vsel %vm6161_vm11, %v6143_v42, %v6225_v13  ;;  %11059 = vmatprep.subr.bf16.mxu0 %v11058_v47  ;;  %v14846_v13 = vpack.c.bf16 %v7256_v8, %v7255_v19 }
0x140e   : > { %v6240_v62 = vsel %vm6160_vm2, %v6138_v32, %v6224_v40  ;;  %10538 = vmatprep.mubr.msk.f32.mxu0 %vm879_vm1, %v6254_v23  ;;  %v6257_v53 = vmul.f32 1.050701, %v6241_v55  ;;  %11061 = vmatpush3.bf16.msra.mxu0 %v11058_v47  ;;  %v14849_v23 = vld [vmem:[#allocation4 + $0x21e] ss:$0 sm:$0xff] }
0x140f   : > { %v6256_v29 = vmul.f32 1.050701, %v6240_v62  ;;  %10539 = vmatmul.mubr.msk.f32.gmra.mrb[180].mxu0 %vm879_vm1, %v6255_v1  ;;  %11063 = vmatprep.subr.bf16.mxu0 %v11062_v5 }
0x1411   : > { %10541 = vmatprep.mubr.msk.f32.mxu0 %vm879_vm1, %v6256_v29 }
0x1412   : > { %11065 = vmatpush3.bf16.msra.mxu0 %v11062_v5 }
0x1413   : > { %10542 = vmatmul.mubr.msk.f32.gmra.mrb[182].mxu0 %vm879_vm1, %v6257_v53  ;;  %11067 = vmatprep.subr.bf16.mxu0 %v14846_v13 }
0x14c5   : > { %v10522_v59 = vpop.f32.mrb[168].mxu0 }
0x14c6   : > { %v6381_v31 = vpop.f32.mrb[169].mxu0  ;;  %v14784_v61 = vadd.f32 %v10522_v59, %v8880_v27 }
0x14c7   : > { %v14782_v17 = vadd.f32 %v8880_v27, %v6381_v31 }
0x14c9   : > { %v10525_v12 = vpop.f32.mrb[170].mxu0  ;;  %10578 = vmatprep.mubr.msk.f32.mxu1 %vm6611_vm9, %v14782_v17 }
0x14ca   : > { %v6391_v28 = vpop.f32.mrb[171].mxu0  ;;  %10579 = vmatmul.mubr.msk.f32.vlgmr.msra.gmra.mrb[184].mxu1 %vm6611_vm9, %v14784_v61  ;;  %v14792_v42 = vadd.f32 %v10525_v12, %v8880_v27 }
0x14cb   : > { %v14790_v58 = vadd.f32 %v8880_v27, %v6391_v28 }
0x14cd   : > { %v10528_v6 = vpop.f32.mrb[172].mxu0  ;;  %10581 = vmatprep.mubr.msk.f32.mxu1 %vm6611_vm9, %v14790_v58 }
0x14ce   : > { %v6401_v33 = vpop.f32.mrb[173].mxu0  ;;  %10582 = vmatmul.mubr.msk.f32.gmra.mrb[186].mxu1 %vm6611_vm9, %v14792_v42  ;;  %v14800_v21 = vadd.f32 %v10528_v6, %v8880_v27 }
0x14cf   : > { %v14798_v32 = vadd.f32 %v8880_v27, %v6401_v33 }
0x14d1   : > { %v10531_v25 = vpop.f32.mrb[174].mxu0  ;;  %10584 = vmatprep.mubr.msk.f32.mxu1 %vm6611_vm9, %v14798_v32 }
0x14d2   : > { %v6411_v43 = vpop.f32.mrb[175].mxu0  ;;  %10585 = vmatmul.mubr.msk.f32.gmra.mrb[188].mxu1 %vm6611_vm9, %v14800_v21  ;;  %v14808_v11 = vadd.f32 %v10531_v25, %v8880_v27 }
0x14d3   : > { %v14806_v15 = vadd.f32 %v8880_v27, %v6411_v43 }
0x14d5   : > { %v10534_v44 = vpop.f32.mrb[176].mxu0  ;;  %10587 = vmatprep.mubr.msk.f32.mxu1 %vm6611_vm9, %v14806_v15 }
0x14d6   : > { %v6421_v2 = vpop.f32.mrb[177].mxu0  ;;  %10588 = vmatmul.mubr.msk.f32.gmra.mrb[190].mxu1 %vm6611_vm9, %v14808_v11  ;;  %v14816_v63 = vadd.f32 %v10534_v44, %v8880_v27 }
0x14d7   : > { %v14814_v37 = vadd.f32 %v8880_v27, %v6421_v2 }
0x14d9   : > { %10590 = vmatprep.mubr.msk.f32.mxu1 %vm6611_vm9, %v14814_v37 }
0x14da   : > { %10591 = vmatmul.mubr.msk.f32.gmra.mrb[192].mxu1 %vm6611_vm9, %v14816_v63 }
0x14db   : > { %v10537_v14 = vpop.f32.mrb[178].mxu0 }
0x14dc   : > { %v6431_v0 = vpop.f32.mrb[179].mxu0  ;;  %v14824_v35 = vadd.f32 %v10537_v14, %v8880_v27 }
0x14dd   : > { %v14822_v45 = vadd.f32 %v8880_v27, %v6431_v0 }
0x14df   : > { %10593 = vmatprep.mubr.msk.f32.mxu1 %vm6611_vm9, %v14822_v45 }
0x14e0   : > { %10594 = vmatmul.mubr.msk.f32.gmra.mrb[194].mxu1 %vm6611_vm9, %v14824_v35 }
0x14e2   : > { %v10540_v36 = vpop.f32.mrb[180].mxu0 }
0x14e3   : > { %v6441_v52 = vpop.f32.mrb[181].mxu0  ;;  %v14832_v24 = vadd.f32 %v10540_v36, %v8880_v27 }
0x14e4   : > { %v14830_v46 = vadd.f32 %v8880_v27, %v6441_v52 }
0x14e6   : > { %v10543_v51 = vpop.f32.mrb[182].mxu0  ;;  %10596 = vmatprep.mubr.msk.f32.mxu1 %vm6611_vm9, %v14830_v46 }
0x14e7   : > { %v6451_v50 = vpop.f32.mrb[183].mxu0  ;;  %10597 = vmatmul.mubr.msk.f32.gmra.mrb[196].mxu1 %vm6611_vm9, %v14832_v24  ;;  %v14840_v4 = vadd.f32 %v10543_v51, %v8880_v27 }
0x14e8   : > { %v14838_v56 = vadd.f32 %v8880_v27, %v6451_v50 }
0x14ea   : > { %10599 = vmatprep.mubr.msk.f32.mxu1 %vm6611_vm9, %v14838_v56 }
0x14eb   : > { %10600 = vmatmul.mubr.msk.f32.gmra.mrb[198].mxu1 %vm6611_vm9, %v14840_v4 }
0x159d   : > { %v10580_v40 = vpop.f32.mrb[184].mxu1 }
0x159e   : > { %v6814_v1 = vadd.f32 %v10580_v40, %v14849_v23  ;;  %v6730_v55 = vpop.f32.mrb[185].mxu1 }
0x159f   : > { %v6813_v62 = vadd.f32 %v14849_v23, %v6730_v55 }
0x15a0   : > { %v6847_v29 = vmul.f32 1.442695, %v6814_v1  ;;  %vm6830_vm14 = vcmp.gt.f32.partialorder %v6814_v1, 0.0 }
0x15a1   : > { %v6845_v53 = vmul.f32 1.442695, %v6813_v62  ;;  %v10583_v16 = vpop.f32.mrb[186].mxu1  ;;  %vm6829_vm3 = vcmp.gt.f32.partialorder %v6813_v62, 0.0 }
0x15a2   : > { %11764 = vpow2.f32 %v6847_v29  ;;  %v6816_v48 = vadd.f32 %v10583_v16, %v14849_v23  ;;  %v6740_v47 = vpop.f32.mrb[187].mxu1 }
0x15a3   : > { %11766 = vpow2.f32 %v6845_v53  ;;  %v6815_v27 = vadd.f32 %v14849_v23, %v6740_v47 }
0x15a4   : > { %v6851_v59 = vmul.f32 1.442695, %v6816_v48  ;;  %vm6832_vm4 = vcmp.gt.f32.partialorder %v6816_v48, 0.0 }
0x15a5   : > { %v6849_v31 = vmul.f32 1.442695, %v6815_v27  ;;  %v10586_v12 = vpop.f32.mrb[188].mxu1  ;;  %vm6831_vm6 = vcmp.gt.f32.partialorder %v6815_v27, 0.0 }
0x15a6   : > { %11768 = vpow2.f32 %v6851_v59  ;;  %v14856_v28 = vadd.f32 %v10586_v12, %v14849_v23  ;;  %v6750_v6 = vpop.f32.mrb[189].mxu1 }
0x15a7   : > { %11770 = vpow2.f32 %v6849_v31  ;;  %v14859_v33 = vadd.f32 %v14849_v23, %v6750_v6 }
0x15a8   : > { %v6855_v25 = vmul.f32 1.442695, %v14856_v28  ;;  %vm6834_vm7 = vcmp.gt.f32.partialorder %v14856_v28, 0.0 }
0x15a9   : > { %v6853_v43 = vmul.f32 1.442695, %v14859_v33  ;;  %v10589_v44 = vpop.f32.mrb[190].mxu1  ;;  %vm6833_vm8 = vcmp.gt.f32.partialorder %v14859_v33, 0.0 }
0x15aa   : > { %11772 = vpow2.f32 %v6855_v25  ;;  %v14864_v2 = vadd.f32 %v10589_v44, %v14849_v23  ;;  %v6760_v14 = vpop.f32.mrb[191].mxu1 }
0x15ab   : > { %11774 = vpow2.f32 %v6853_v43  ;;  %v14867_v0 = vadd.f32 %v14849_v23, %v6760_v14 }
0x15ac   : > { %v11765_v36 = vpop.eup %11764  ;;  %v6859_v52 = vmul.f32 1.442695, %v14864_v2  ;;  %vm6836_vm10 = vcmp.gt.f32.partialorder %v14864_v2, 0.0 }
0x15ad   : > { %v11767_v51 = vpop.eup %11766  ;;  %v8932_v50 = vadd.f32 -1.0, %v11765_v36  ;;  %v6857_v20 = vmul.f32 1.442695, %v14867_v0  ;;  %v10592_v7 = vpop.f32.mrb[192].mxu1  ;;  %vm6835_vm15 = vcmp.gt.f32.partialorder %v14867_v0, 0.0 }
0x15ae   : > { %v8931_v5 = vadd.f32 -1.0, %v11767_v51  ;;  %11776 = vpow2.f32 %v6859_v52  ;;  %v14872_v19 = vadd.f32 %v10592_v7, %v14849_v23  ;;  %v6770_v8 = vpop.f32.mrb[193].mxu1 }
0x15af   : > { %v6894_v40 = vmul.f32 1.6732632, %v8932_v50  ;;  %11778 = vpow2.f32 %v6857_v20  ;;  %v14875_v55 = vadd.f32 %v14849_v23, %v6770_v8 }
0x15b0   : > { %v11769_v29 = vpop.eup %11768  ;;  %v6893_v53 = vmul.f32 1.6732632, %v8931_v5  ;;  %v6863_v16 = vmul.f32 1.442695, %v14872_v19  ;;  %vm6838_vm0 = vcmp.gt.f32.partialorder %v14872_v19, 0.0 }
0x15b1   : > { %v11771_v47 = vpop.eup %11770  ;;  %v6910_v59 = vsel %vm6830_vm14, %v6814_v1, %v6894_v40  ;;  %v8934_v31 = vadd.f32 -1.0, %v11769_v29  ;;  %v6861_v12 = vmul.f32 1.442695, %v14875_v55  ;;  %vm6837_vm12 = vcmp.gt.f32.partialorder %v14875_v55, 0.0 }
0x15b2   : > { %v6909_v6 = vsel %vm6829_vm3, %v6813_v62, %v6893_v53  ;;  %v8933_v25 = vadd.f32 -1.0, %v11771_v47  ;;  %11780 = vpow2.f32 %v6863_v16  ;;  %v6926_v36 = vmul.f32 1.050701, %v6910_v59 }
0x15b3   : > { %v6925_v43 = vmul.f32 1.050701, %v6909_v6  ;;  %v6896_v44 = vmul.f32 1.6732632, %v8934_v31  ;;  %11782 = vpow2.f32 %v6861_v12  ;;  %v10595_v7 = vpop.f32.mrb[194].mxu1 }
0x15b4   : > { %v11773_v14 = vpop.eup %11772  ;;  %v6895_v52 = vmul.f32 1.6732632, %v8933_v25  ;;  %v14881_v62 = vadd.f32 %v10595_v7, %v14849_v23  ;;  %v6780_v8 = vpop.f32.mrb[195].mxu1 }
0x15b5   : > { %v11775_v51 = vpop.eup %11774  ;;  %v6912_v50 = vsel %vm6832_vm4, %v6816_v48, %v6896_v44  ;;  %v8936_v20 = vadd.f32 -1.0, %v11773_v14  ;;  %10610 = vmatprep.mubr.msk.f32.mxu0 %vm879_vm1, %v6925_v43  ;;  %v14886_v53 = vadd.f32 %v14849_v23, %v6780_v8 }
0x15b6   : > { %v6911_v1 = vsel %vm6831_vm6, %v6815_v27, %v6895_v52  ;;  %v8935_v5 = vadd.f32 -1.0, %v11775_v51  ;;  %10611 = vmatmul.mubr.msk.f32.vlgmr.msra.gmra.mrb[184].mxu0 %vm879_vm1, %v6926_v36  ;;  %v6928_v16 = vmul.f32 1.050701, %v6912_v50  ;;  %v6867_v27 = vmul.f32 1.442695, %v14881_v62 }
0x15b7   : > { %v6927_v40 = vmul.f32 1.050701, %v6911_v1  ;;  %v6898_v29 = vmul.f32 1.6732632, %v8936_v20  ;;  %11069 = vmatpush3.bf16.msra.mxu0 %v14846_v13  ;;  %v6865_v6 = vmul.f32 1.442695, %v14886_v53 }
0x15b8   : > { %v11777_v48 = vpop.eup %11776  ;;  %v6897_v47 = vmul.f32 1.6732632, %v8935_v5  ;;  %11784 = vpow2.f32 %v6867_v27  ;;  %vm6840_vm13 = vcmp.gt.f32.partialorder %v14881_v62, 0.0  ;;  %vm6839_vm5 = vcmp.gt.f32.partialorder %v14886_v53, 0.0 }
0x15b9   : > { %v11779_v59 = vpop.eup %11778  ;;  %v6914_v31 = vsel %vm6834_vm7, %v14856_v28, %v6898_v29  ;;  %v8938_v12 = vadd.f32 -1.0, %v11777_v48  ;;  %10613 = vmatprep.mubr.msk.f32.mxu0 %vm879_vm1, %v6927_v40  ;;  %11786 = vpow2.f32 %v6865_v6 }
0x15ba   : > { %v6913_v25 = vsel %vm6833_vm8, %v14859_v33, %v6897_v47  ;;  %v8937_v43 = vadd.f32 -1.0, %v11779_v59  ;;  %10614 = vmatmul.mubr.msk.f32.gmra.mrb[186].mxu0 %vm879_vm1, %v6928_v16  ;;  %v6930_v36 = vmul.f32 1.050701, %v6914_v31  ;;  %v10598_v20 = vpop.f32.mrb[196].mxu1 }
0x15bb   : > { %v6929_v13 = vmul.f32 1.050701, %v6913_v25  ;;  %v6900_v44 = vmul.f32 1.6732632, %v8938_v12  ;;  %v6826_v1 = vadd.f32 %v10598_v20, %v14849_v23  ;;  %v6790_v5 = vpop.f32.mrb[197].mxu1 }
0x15bc   : > { %v11781_v14 = vpop.eup %11780  ;;  %v6899_v28 = vmul.f32 1.6732632, %v8937_v43 }
0x15bd   : > { %v11783_v52 = vpop.eup %11782  ;;  %v6916_v51 = vsel %vm6836_vm10, %v14864_v2, %v6900_v44  ;;  %v8940_v50 = vadd.f32 -1.0, %v11781_v14  ;;  %10616 = vmatprep.mubr.msk.f32.mxu0 %vm879_vm1, %v6929_v13  ;;  %v6825_v2 = vadd.f32 %v14849_v23, %v6790_v5  ;;  %v6871_v16 = vmul.f32 1.442695, %v6826_v1 }
0x15be   : > { %v6915_v33 = vsel %vm6835_vm15, %v14867_v0, %v6899_v28  ;;  %v8939_v7 = vadd.f32 -1.0, %v11783_v52  ;;  %10617 = vmatmul.mubr.msk.f32.gmra.mrb[188].mxu0 %vm879_vm1, %v6930_v36  ;;  %v6932_v29 = vmul.f32 1.050701, %v6916_v51  ;;  %v10601_v27 = vpop.f32.mrb[198].mxu1  ;;  %vm6842_vm11 = vcmp.gt.f32.partialorder %v6826_v1, 0.0 }
0x15bf   : > { %v6931_v8 = vmul.f32 1.050701, %v6915_v33  ;;  %v6902_v40 = vmul.f32 1.6732632, %v8940_v50  ;;  %v6869_v0 = vmul.f32 1.442695, %v6825_v2  ;;  %11788 = vpow2.f32 %v6871_v16 }
0x15c0   : > { %v6901_v48 = vmul.f32 1.6732632, %v8939_v7  ;;  %v6828_v31 = vadd.f32 %v10601_v27, %v14849_v23  ;;  %v6800_v12 = vpop.f32.mrb[199].mxu1  ;;  %vm6841_vm2 = vcmp.gt.f32.partialorder %v6825_v2, 0.0 }
0x15c1   : > { %v6918_v47 = vsel %vm6838_vm0, %v14872_v19, %v6902_v40  ;;  %10619 = vmatprep.mubr.msk.f32.mxu0 %vm879_vm1, %v6931_v8  ;;  %11790 = vpow2.f32 %v6869_v0  ;;  %v6827_v25 = vadd.f32 %v14849_v23, %v6800_v12 }
0x15c2   : > { %v6917_v59 = vsel %vm6837_vm12, %v14875_v55, %v6901_v48  ;;  %10620 = vmatmul.mubr.msk.f32.gmra.mrb[190].mxu0 %vm879_vm1, %v6932_v29  ;;  %v11785_v43 = vpop.eup %11784  ;;  %v6934_v19 = vmul.f32 1.050701, %v6918_v47  ;;  %v6875_v13 = vmul.f32 1.442695, %v6828_v31  ;;  %vm6844_vm9 = vcmp.gt.f32.partialorder %v6828_v31, 0.0 }
0x15c3   : > { %v6933_v6 = vmul.f32 1.050701, %v6917_v59  ;;  %v11787_v44 = vpop.eup %11786  ;;  %v8942_v14 = vadd.f32 -1.0, %v11785_v43  ;;  %v6873_v36 = vmul.f32 1.442695, %v6827_v25  ;;  %vm6843_vm14 = vcmp.gt.f32.partialorder %v6827_v25, 0.0 }
0x15c4   : > { %v8941_v28 = vadd.f32 -1.0, %v11787_v44  ;;  %11792 = vpow2.f32 %v6875_v13 }
0x15c5   : > { %10622 = vmatprep.mubr.msk.f32.mxu0 %vm879_vm1, %v6933_v6  ;;  %v6904_v55 = vmul.f32 1.6732632, %v8942_v14  ;;  %11794 = vpow2.f32 %v6873_v36  ;;  %v7569_v36 = vld [vmem:[#allocation4 + $0x270] sm:$0xff] }
0x15c6   : > { %10623 = vmatmul.mubr.msk.f32.gmra.mrb[192].mxu0 %vm879_vm1, %v6934_v19  ;;  %v6903_v52 = vmul.f32 1.6732632, %v8941_v28  ;;  %v7570_v28 = vld [vmem:[#allocation4 + $0x278] sm:$0xff] }
0x15c7   : > { %v6920_v51 = vsel %vm6840_vm13, %v14881_v62, %v6904_v55  ;;  %v14924_v55 = vld [vmem:[#allocation4 + $0x240] ss:$0 sm:$0xff] }
0x15c8   : > { %v6919_v23 = vsel %vm6839_vm5, %v14886_v53, %v6903_v52  ;;  %v6936_v33 = vmul.f32 1.050701, %v6920_v51 }
0x15c9   : > { %v6935_v50 = vmul.f32 1.050701, %v6919_v23  ;;  %v11789_v20 = vpop.eup %11788 }
0x15ca   : > { %v8944_v5 = vadd.f32 -1.0, %v11789_v20 }
0x15cb   : > { %v11791_v7 = vpop.eup %11790  ;;  %10625 = vmatprep.mubr.msk.f32.mxu0 %vm879_vm1, %v6935_v50 }
0x15cc   : > { %v8943_v8 = vadd.f32 -1.0, %v11791_v7  ;;  %10626 = vmatmul.mubr.msk.f32.gmra.mrb[194].mxu0 %vm879_vm1, %v6936_v33  ;;  %v6906_v40 = vmul.f32 1.6732632, %v8944_v5 }
0x15ce   : > { %v11793_v29 = vpop.eup %11792  ;;  %v6905_v48 = vmul.f32 1.6732632, %v8943_v8  ;;  %v6922_v62 = vsel %vm6842_vm11, %v6826_v1, %v6906_v40  ;;  %v7257_v1 = vld [vmem:[#allocation4 + $0x258] sm:$0xff] }
0x15cf   : > { %v11795_v16 = vpop.eup %11794  ;;  %v8946_v47 = vadd.f32 -1.0, %v11793_v29  ;;  %v6938_v12 = vmul.f32 1.050701, %v6922_v62 }
0x15d0   : > { %v6921_v0 = vsel %vm6841_vm2, %v6825_v2, %v6905_v48  ;;  %v8945_v53 = vadd.f32 -1.0, %v11795_v16  ;;  %v7258_v2 = vld [vmem:[#allocation4 + $0x260] sm:$0xff] }
0x15d1   : > { %v6937_v27 = vmul.f32 1.050701, %v6921_v0  ;;  %v6908_v59 = vmul.f32 1.6732632, %v8946_v47  ;;  %v11070_v14 = vpack.c.bf16 %v7258_v2, %v7257_v1 }
0x15d2   : > { %v6907_v6 = vmul.f32 1.6732632, %v8945_v53 }
0x15d3   : > { %v6924_v43 = vsel %vm6844_vm9, %v6828_v31, %v6908_v59  ;;  %10628 = vmatprep.mubr.msk.f32.mxu0 %vm879_vm1, %v6937_v27  ;;  %11071 = vmatprep.subr.bf16.mxu0 %v11070_v14  ;;  %v11074_v31 = vpack.c.bf16 %v7570_v28, %v7569_v36 }
0x15d4   : > { %v6923_v19 = vsel %vm6843_vm14, %v6827_v25, %v6907_v6  ;;  %10629 = vmatmul.mubr.msk.f32.gmra.mrb[196].mxu0 %vm879_vm1, %v6938_v12  ;;  %v6940_v44 = vmul.f32 1.050701, %v6924_v43 }
0x15d5   : > { %v6939_v13 = vmul.f32 1.050701, %v6923_v19  ;;  %11073 = vmatpush3.bf16.msra.mxu0 %v11070_v14  ;;  %11075 = vmatprep.subr.bf16.mxu1 %v11074_v31 }
0x15d6   : > { %11077 = vmatpush3.bf16.msra.mxu1 %v11074_v31 }
0x15d7   : > { %10631 = vmatprep.mubr.msk.f32.mxu0 %vm879_vm1, %v6939_v13 }
0x15d8   : > { %10632 = vmatmul.mubr.msk.f32.gmra.mrb[198].mxu0 %vm879_vm1, %v6940_v44 }
0x1689   : > { %v10612_v25 = vpop.f32.mrb[184].mxu0 }
0x168a   : > { %v7070_v52 = vadd.f32 %v10612_v25, %v14924_v55  ;;  %v7064_v51 = vpop.f32.mrb[185].mxu0 }
0x168b   : > { %v7065_v23 = vadd.f32 %v14924_v55, %v7064_v51 }
0x168c   : > { %v7161_v50 = vmul.f32 1.442695, %v7070_v52  ;;  %vm7144_vm3 = vcmp.gt.f32.partialorder %v7070_v52, 0.0 }
0x168d   : > { %v7159_v20 = vmul.f32 1.442695, %v7065_v23  ;;  %v10615_v33 = vpop.f32.mrb[186].mxu0  ;;  %vm7143_vm4 = vcmp.gt.f32.partialorder %v7065_v23, 0.0 }
0x168e   : > { %11796 = vpow2.f32 %v7161_v50  ;;  %v7080_v7 = vadd.f32 %v10615_v33, %v14924_v55  ;;  %v7074_v5 = vpop.f32.mrb[187].mxu0 }
0x168f   : > { %11798 = vpow2.f32 %v7159_v20  ;;  %v7075_v8 = vadd.f32 %v14924_v55, %v7074_v5 }
0x1690   : > { %v7165_v40 = vmul.f32 1.442695, %v7080_v7  ;;  %vm7146_vm6 = vcmp.gt.f32.partialorder %v7080_v7, 0.0 }
0x1691   : > { %v7163_v29 = vmul.f32 1.442695, %v7075_v8  ;;  %v10618_v48 = vpop.f32.mrb[188].mxu0  ;;  %vm7145_vm7 = vcmp.gt.f32.partialorder %v7075_v8, 0.0 }
0x1692   : > { %11800 = vpow2.f32 %v7165_v40  ;;  %v14931_v16 = vadd.f32 %v10618_v48, %v14924_v55  ;;  %v7084_v62 = vpop.f32.mrb[189].mxu0 }
0x1693   : > { %11802 = vpow2.f32 %v7163_v29  ;;  %v14934_v47 = vadd.f32 %v14924_v55, %v7084_v62 }
0x1694   : > { %v7169_v0 = vmul.f32 1.442695, %v14931_v16  ;;  %vm7148_vm8 = vcmp.gt.f32.partialorder %v14931_v16, 0.0 }
0x1695   : > { %v7167_v53 = vmul.f32 1.442695, %v14934_v47  ;;  %v10621_v27 = vpop.f32.mrb[190].mxu0  ;;  %vm7147_vm10 = vcmp.gt.f32.partialorder %v14934_v47, 0.0 }
0x1696   : > { %11804 = vpow2.f32 %v7169_v0  ;;  %v14939_v59 = vadd.f32 %v10621_v27, %v14924_v55  ;;  %v7094_v12 = vpop.f32.mrb[191].mxu0 }
0x1697   : > { %11806 = vpow2.f32 %v7167_v53  ;;  %v14942_v6 = vadd.f32 %v14924_v55, %v7094_v12 }
0x1698   : > { %v11797_v43 = vpop.eup %11796  ;;  %v7173_v19 = vmul.f32 1.442695, %v14939_v59  ;;  %vm7150_vm15 = vcmp.gt.f32.partialorder %v14939_v59, 0.0 }
0x1699   : > { %v11799_v13 = vpop.eup %11798  ;;  %v8965_v44 = vadd.f32 -1.0, %v11797_v43  ;;  %v7171_v1 = vmul.f32 1.442695, %v14942_v6  ;;  %v10624_v2 = vpop.f32.mrb[192].mxu0  ;;  %vm7149_vm0 = vcmp.gt.f32.partialorder %v14942_v6, 0.0 }
0x169a   : > { %v8964_v14 = vadd.f32 -1.0, %v11799_v13  ;;  %11808 = vpow2.f32 %v7173_v19  ;;  %v14947_v36 = vadd.f32 %v10624_v2, %v14924_v55  ;;  %v7104_v28 = vpop.f32.mrb[193].mxu0 }
0x169b   : > { %v7208_v31 = vmul.f32 1.6732632, %v8965_v44  ;;  %11810 = vpow2.f32 %v7171_v1  ;;  %v14950_v25 = vadd.f32 %v14924_v55, %v7104_v28 }
0x169c   : > { %v11801_v51 = vpop.eup %11800  ;;  %v7207_v50 = vmul.f32 1.6732632, %v8964_v14  ;;  %v7177_v20 = vmul.f32 1.442695, %v14947_v36  ;;  %vm7152_vm12 = vcmp.gt.f32.partialorder %v14947_v36, 0.0 }
0x169d   : > { %v11803_v33 = vpop.eup %11802  ;;  %v7224_v5 = vsel %vm7144_vm3, %v7070_v52, %v7208_v31  ;;  %v8967_v40 = vadd.f32 -1.0, %v11801_v51  ;;  %v7175_v29 = vmul.f32 1.442695, %v14950_v25  ;;  %vm7151_vm13 = vcmp.gt.f32.partialorder %v14950_v25, 0.0 }
0x169e   : > { %v7223_v48 = vsel %vm7143_vm4, %v7065_v23, %v7207_v50  ;;  %v8966_v62 = vadd.f32 -1.0, %v11803_v33  ;;  %11812 = vpow2.f32 %v7177_v20  ;;  %v7240_v12 = vmul.f32 1.050701, %v7224_v5 }
0x169f   : > { %v7239_v0 = vmul.f32 1.050701, %v7223_v48  ;;  %v7210_v53 = vmul.f32 1.6732632, %v8967_v40  ;;  %11814 = vpow2.f32 %v7175_v29  ;;  %v10627_v1 = vpop.f32.mrb[194].mxu0 }
0x16a0   : > { %v11805_v27 = vpop.eup %11804  ;;  %v7209_v43 = vmul.f32 1.6732632, %v8966_v62  ;;  %v14956_v23 = vadd.f32 %v10627_v1, %v14924_v55  ;;  %v7114_v14 = vpop.f32.mrb[195].mxu0 }
0x16a1   : > { %v11807_v19 = vpop.eup %11806  ;;  %v7226_v13 = vsel %vm7146_vm6, %v7080_v7, %v7210_v53  ;;  %v8969_v44 = vadd.f32 -1.0, %v11805_v27  ;;  %10642 = vmatprep.mubr.msk.f32.mxu0 %vm879_vm1, %v7239_v0  ;;  %v14961_v51 = vadd.f32 %v14924_v55, %v7114_v14 }
0x16a2   : > { %v7225_v52 = vsel %vm7145_vm7, %v7075_v8, %v7209_v43  ;;  %v8968_v2 = vadd.f32 -1.0, %v11807_v19  ;;  %10643 = vmatmul.mubr.msk.f32.vlgmr.msra.gmra.mrb[200].mxu0 %vm879_vm1, %v7240_v12  ;;  %v7242_v50 = vmul.f32 1.050701, %v7226_v13  ;;  %v7181_v33 = vmul.f32 1.442695, %v14956_v23 }
0x16a3   : > { %v7241_v28 = vmul.f32 1.050701, %v7225_v52  ;;  %v7212_v31 = vmul.f32 1.6732632, %v8969_v44  ;;  %v7179_v29 = vmul.f32 1.442695, %v14961_v51 }
0x16a4   : > { %v11809_v7 = vpop.eup %11808  ;;  %v7211_v20 = vmul.f32 1.6732632, %v8968_v2  ;;  %11816 = vpow2.f32 %v7181_v33  ;;  %vm7154_vm5 = vcmp.gt.f32.partialorder %v14956_v23, 0.0  ;;  %vm7153_vm11 = vcmp.gt.f32.partialorder %v14961_v51, 0.0 }
0x16a5   : > { %v11811_v8 = vpop.eup %11810  ;;  %v7228_v5 = vsel %vm7148_vm8, %v14931_v16, %v7212_v31  ;;  %v8971_v40 = vadd.f32 -1.0, %v11809_v7  ;;  %10645 = vmatprep.mubr.msk.f32.mxu0 %vm879_vm1, %v7241_v28  ;;  %11818 = vpow2.f32 %v7179_v29 }
0x16a6   : > { %v7227_v48 = vsel %vm7147_vm10, %v14934_v47, %v7211_v20  ;;  %v8970_v62 = vadd.f32 -1.0, %v11811_v8  ;;  %10646 = vmatmul.mubr.msk.f32.gmra.mrb[202].mxu0 %vm879_vm1, %v7242_v50  ;;  %v7244_v12 = vmul.f32 1.050701, %v7228_v5 }
0x16a7   : > { %v7243_v0 = vmul.f32 1.050701, %v7227_v48  ;;  %v7214_v53 = vmul.f32 1.6732632, %v8971_v40  ;;  %v10630_v44 = vpop.f32.mrb[196].mxu0 }
0x16a8   : > { %v11813_v27 = vpop.eup %11812  ;;  %v7213_v16 = vmul.f32 1.6732632, %v8970_v62  ;;  %v7130_v52 = vadd.f32 %v10630_v44, %v14924_v55  ;;  %v7124_v2 = vpop.f32.mrb[197].mxu0 }
0x16a9   : > { %v11815_v43 = vpop.eup %11814  ;;  %v7230_v19 = vsel %vm7150_vm15, %v14939_v59, %v7214_v53  ;;  %v8973_v13 = vadd.f32 -1.0, %v11813_v27  ;;  %10648 = vmatprep.mubr.msk.f32.mxu0 %vm879_vm1, %v7243_v0  ;;  %v7125_v59 = vadd.f32 %v14924_v55, %v7124_v2 }
0x16aa   : > { %v7229_v47 = vsel %vm7149_vm0, %v14942_v6, %v7213_v16  ;;  %v8972_v1 = vadd.f32 -1.0, %v11815_v43  ;;  %10649 = vmatmul.mubr.msk.f32.gmra.mrb[204].mxu0 %vm879_vm1, %v7244_v12  ;;  %v7246_v31 = vmul.f32 1.050701, %v7230_v19  ;;  %v7185_v50 = vmul.f32 1.442695, %v7130_v52 }
0x16ab   : > { %v7245_v14 = vmul.f32 1.050701, %v7229_v47  ;;  %v7216_v28 = vmul.f32 1.6732632, %v8973_v13  ;;  %v7183_v6 = vmul.f32 1.442695, %v7125_v59 }
0x16ac   : > { %v7215_v7 = vmul.f32 1.6732632, %v8972_v1  ;;  %v10633_v33 = vpop.f32.mrb[198].mxu0  ;;  %11820 = vpow2.f32 %v7185_v50  ;;  %vm7156_vm2 = vcmp.gt.f32.partialorder %v7130_v52, 0.0  ;;  %vm7155_vm9 = vcmp.gt.f32.partialorder %v7125_v59, 0.0 }
0x16ad   : > { %v7232_v20 = vsel %vm7152_vm12, %v14947_v36, %v7216_v28  ;;  %10651 = vmatprep.mubr.msk.f32.mxu0 %vm879_vm1, %v7245_v14  ;;  %v7140_v5 = vadd.f32 %v10633_v33, %v14924_v55  ;;  %v7134_v40 = vpop.f32.mrb[199].mxu0  ;;  %11822 = vpow2.f32 %v7183_v6 }
0x16ae   : > { %v7231_v8 = vsel %vm7151_vm13, %v14950_v25, %v7215_v7  ;;  %10652 = vmatmul.mubr.msk.f32.gmra.mrb[206].mxu0 %vm879_vm1, %v7246_v31  ;;  %v7135_v48 = vadd.f32 %v14924_v55, %v7134_v40  ;;  %v11817_v62 = vpop.eup %11816  ;;  %v7248_v36 = vmul.f32 1.050701, %v7232_v20 }
0x16af   : > { %v7247_v29 = vmul.f32 1.050701, %v7231_v8  ;;  %v7189_v0 = vmul.f32 1.442695, %v7140_v5  ;;  %v11819_v53 = vpop.eup %11818  ;;  %v8975_v27 = vadd.f32 -1.0, %v11817_v62  ;;  %vm7158_vm14 = vcmp.gt.f32.partialorder %v7140_v5, 0.0 }
0x16b0   : > { %v7187_v12 = vmul.f32 1.442695, %v7135_v48  ;;  %v8974_v16 = vadd.f32 -1.0, %v11819_v53  ;;  %vm7157_vm3 = vcmp.gt.f32.partialorder %v7135_v48, 0.0 }
0x16b1   : > { %10654 = vmatprep.mubr.msk.f32.mxu0 %vm879_vm1, %v7247_v29  ;;  %11824 = vpow2.f32 %v7189_v0  ;;  %v7218_v25 = vmul.f32 1.6732632, %v8975_v27 }
0x16b2   : > { %10655 = vmatmul.mubr.msk.f32.gmra.mrb[208].mxu0 %vm879_vm1, %v7248_v36  ;;  %11826 = vpow2.f32 %v7187_v12  ;;  %v7217_v43 = vmul.f32 1.6732632, %v8974_v16  ;;  %v7883_v12 = vld [vmem:[#allocation4 + $0x298] sm:$0xff]  ;;  %v7884_v16 = vld [vmem:[#allocation4 + $0x2a0] sm:$0xff] }
0x16b3   : > { %v7234_v19 = vsel %vm7154_vm5, %v14956_v23, %v7218_v25  ;;  %v14998_v25 = vld [vmem:[#allocation4 + $0x268] ss:$0 sm:$0xff] }
0x16b4   : > { %v7233_v55 = vsel %vm7153_vm11, %v14961_v51, %v7217_v43  ;;  %v7250_v47 = vmul.f32 1.050701, %v7234_v19 }
0x16b5   : > { %v7249_v13 = vmul.f32 1.050701, %v7233_v55 }
0x16b6   : > { %v11821_v44 = vpop.eup %11820 }
0x16b7   : > { %v11823_v1 = vpop.eup %11822  ;;  %v8977_v2 = vadd.f32 -1.0, %v11821_v44  ;;  %10657 = vmatprep.mubr.msk.f32.mxu0 %vm879_vm1, %v7249_v13 }
0x16b8   : > { %v8976_v14 = vadd.f32 -1.0, %v11823_v1  ;;  %10658 = vmatmul.mubr.msk.f32.gmra.mrb[210].mxu0 %vm879_vm1, %v7250_v47 }
0x16b9   : > { %v7220_v28 = vmul.f32 1.6732632, %v8977_v2 }
0x16ba   : > { %v7219_v7 = vmul.f32 1.6732632, %v8976_v14 }
0x16bb   : > { %v11825_v31 = vpop.eup %11824  ;;  %v7236_v23 = vsel %vm7156_vm2, %v7130_v52, %v7220_v28  ;;  %v7571_v52 = vld [vmem:[#allocation4 + $0x280] sm:$0xff] }
0x16bc   : > { %v11827_v50 = vpop.eup %11826  ;;  %v8979_v20 = vadd.f32 -1.0, %v11825_v31  ;;  %v7235_v6 = vsel %vm7155_vm9, %v7125_v59, %v7219_v7  ;;  %v7252_v40 = vmul.f32 1.050701, %v7236_v23  ;;  %v7572_v59 = vld [vmem:[#allocation4 + $0x288] sm:$0xff] }
0x16bd   : > { %v8978_v51 = vadd.f32 -1.0, %v11827_v50  ;;  %v7251_v33 = vmul.f32 1.050701, %v7235_v6  ;;  %v11078_v27 = vpack.c.bf16 %v7572_v59, %v7571_v52 }
0x16be   : > { %v7222_v8 = vmul.f32 1.6732632, %v8979_v20 }
0x16bf   : > { %v7221_v29 = vmul.f32 1.6732632, %v8978_v51  ;;  %10660 = vmatprep.mubr.msk.f32.mxu0 %vm879_vm1, %v7251_v33  ;;  %11079 = vmatprep.subr.bf16.mxu1 %v11078_v27 }
0x16c0   : > { %v7238_v62 = vsel %vm7158_vm14, %v7140_v5, %v7222_v8  ;;  %10661 = vmatmul.mubr.msk.f32.gmra.mrb[212].mxu0 %vm879_vm1, %v7252_v40  ;;  %11081 = vmatpush3.bf16.msra.mxu1 %v11078_v27  ;;  %v11082_v5 = vpack.c.bf16 %v7884_v16, %v7883_v12 }
0x16c1   : > { %v7237_v36 = vsel %vm7157_vm3, %v7135_v48, %v7221_v29  ;;  %v7254_v53 = vmul.f32 1.050701, %v7238_v62 }
0x16c2   : > { %v7253_v0 = vmul.f32 1.050701, %v7237_v36  ;;  %11083 = vmatprep.subr.bf16.mxu0 %v11082_v5 }
0x16c3   : > { %11085 = vmatpush3.bf16.msra.mxu0 %v11082_v5 }
0x16c4   : > { %10663 = vmatprep.mubr.msk.f32.mxu0 %vm879_vm1, %v7253_v0 }
0x16c5   : > { %10664 = vmatmul.mubr.msk.f32.gmra.mrb[214].mxu0 %vm879_vm1, %v7254_v53 }
0x1775   : > { %v10644_v48 = vpop.f32.mrb[200].mxu0 }
0x1776   : > { %v7384_v43 = vadd.f32 %v10644_v48, %v14998_v25  ;;  %v7378_v19 = vpop.f32.mrb[201].mxu0 }
0x1777   : > { %v7379_v55 = vadd.f32 %v14998_v25, %v7378_v19 }
0x1778   : > { %v7475_v13 = vmul.f32 1.442695, %v7384_v43  ;;  %vm7458_vm4 = vcmp.gt.f32.partialorder %v7384_v43, 0.0 }
0x1779   : > { %v7473_v44 = vmul.f32 1.442695, %v7379_v55  ;;  %v10647_v47 = vpop.f32.mrb[202].mxu0  ;;  %vm7457_vm6 = vcmp.gt.f32.partialorder %v7379_v55, 0.0 }
0x177a   : > { %11828 = vpow2.f32 %v7475_v13  ;;  %v7394_v1 = vadd.f32 %v10647_v47, %v14998_v25  ;;  %v7388_v2 = vpop.f32.mrb[203].mxu0 }
0x177b   : > { %11830 = vpow2.f32 %v7473_v44  ;;  %v7389_v14 = vadd.f32 %v14998_v25, %v7388_v2 }
0x177c   : > { %v7479_v28 = vmul.f32 1.442695, %v7394_v1  ;;  %vm7460_vm7 = vcmp.gt.f32.partialorder %v7394_v1, 0.0 }
0x177d   : > { %v7477_v31 = vmul.f32 1.442695, %v7389_v14  ;;  %v10650_v7 = vpop.f32.mrb[204].mxu0  ;;  %vm7459_vm8 = vcmp.gt.f32.partialorder %v7389_v14, 0.0 }
0x177e   : > { %11832 = vpow2.f32 %v7479_v28  ;;  %v15005_v50 = vadd.f32 %v10650_v7, %v14998_v25  ;;  %v7398_v23 = vpop.f32.mrb[205].mxu0 }
0x177f   : > { %11834 = vpow2.f32 %v7477_v31  ;;  %v15008_v20 = vadd.f32 %v14998_v25, %v7398_v23 }
0x1780   : > { %v7483_v6 = vmul.f32 1.442695, %v15005_v50  ;;  %vm7462_vm10 = vcmp.gt.f32.partialorder %v15005_v50, 0.0 }
0x1781   : > { %v7481_v51 = vmul.f32 1.442695, %v15008_v20  ;;  %v10653_v33 = vpop.f32.mrb[206].mxu0  ;;  %vm7461_vm15 = vcmp.gt.f32.partialorder %v15008_v20, 0.0 }
0x1782   : > { %11836 = vpow2.f32 %v7483_v6  ;;  %v15013_v8 = vadd.f32 %v10653_v33, %v14998_v25  ;;  %v7408_v40 = vpop.f32.mrb[207].mxu0 }
0x1783   : > { %11838 = vpow2.f32 %v7481_v51  ;;  %v15016_v29 = vadd.f32 %v14998_v25, %v7408_v40 }
0x1784   : > { %v11829_v62 = vpop.eup %11828  ;;  %v7487_v36 = vmul.f32 1.442695, %v15013_v8  ;;  %vm7464_vm0 = vcmp.gt.f32.partialorder %v15013_v8, 0.0 }
0x1785   : > { %v11831_v0 = vpop.eup %11830  ;;  %v8998_v53 = vadd.f32 -1.0, %v11829_v62  ;;  %v7485_v52 = vmul.f32 1.442695, %v15016_v29  ;;  %v10656_v59 = vpop.f32.mrb[208].mxu0  ;;  %vm7463_vm12 = vcmp.gt.f32.partialorder %v15016_v29, 0.0 }
0x1786   : > { %v8997_v27 = vadd.f32 -1.0, %v11831_v0  ;;  %11840 = vpow2.f32 %v7487_v36  ;;  %v15021_v12 = vadd.f32 %v10656_v59, %v14998_v25  ;;  %v7418_v16 = vpop.f32.mrb[209].mxu0 }
0x1787   : > { %v7522_v5 = vmul.f32 1.6732632, %v8998_v53  ;;  %11842 = vpow2.f32 %v7485_v52  ;;  %v15024_v48 = vadd.f32 %v14998_v25, %v7418_v16 }
0x1788   : > { %v11833_v19 = vpop.eup %11832  ;;  %v7521_v13 = vmul.f32 1.6732632, %v8997_v27  ;;  %v7491_v44 = vmul.f32 1.442695, %v15021_v12  ;;  %vm7466_vm13 = vcmp.gt.f32.partialorder %v15021_v12, 0.0 }
0x1789   : > { %v11835_v47 = vpop.eup %11834  ;;  %v7538_v2 = vsel %vm7458_vm4, %v7384_v43, %v7522_v5  ;;  %v9000_v28 = vadd.f32 -1.0, %v11833_v19  ;;  %v7489_v31 = vmul.f32 1.442695, %v15024_v48  ;;  %vm7465_vm5 = vcmp.gt.f32.partialorder %v15024_v48, 0.0 }
0x178a   : > { %v7537_v7 = vsel %vm7457_vm6, %v7379_v55, %v7521_v13  ;;  %v8999_v23 = vadd.f32 -1.0, %v11835_v47  ;;  %11844 = vpow2.f32 %v7491_v44  ;;  %v7554_v40 = vmul.f32 1.050701, %v7538_v2 }
0x178b   : > { %v7553_v6 = vmul.f32 1.050701, %v7537_v7  ;;  %v7524_v51 = vmul.f32 1.6732632, %v9000_v28  ;;  %11846 = vpow2.f32 %v7489_v31  ;;  %v10659_v52 = vpop.f32.mrb[210].mxu0 }
0x178c   : > { %v11837_v33 = vpop.eup %11836  ;;  %v7523_v62 = vmul.f32 1.6732632, %v8999_v23  ;;  %v15030_v55 = vadd.f32 %v10659_v52, %v14998_v25  ;;  %v7428_v27 = vpop.f32.mrb[211].mxu0 }
0x178d   : > { %v11839_v36 = vpop.eup %11838  ;;  %v7540_v0 = vsel %vm7460_vm7, %v7394_v1, %v7524_v51  ;;  %v9002_v53 = vadd.f32 -1.0, %v11837_v33  ;;  %10674 = vmatprep.mubr.msk.f32.mxu1 %vm879_vm1, %v7553_v6  ;;  %v15035_v19 = vadd.f32 %v14998_v25, %v7428_v27 }
0x178e   : > { %v7539_v43 = vsel %vm7459_vm8, %v7389_v14, %v7523_v62  ;;  %v9001_v59 = vadd.f32 -1.0, %v11839_v36  ;;  %10675 = vmatmul.mubr.msk.f32.vlgmr.msra.gmra.mrb[200].mxu1 %vm879_vm1, %v7554_v40  ;;  %v7556_v13 = vmul.f32 1.050701, %v7540_v0  ;;  %v7495_v47 = vmul.f32 1.442695, %v15030_v55 }
0x178f   : > { %v7555_v16 = vmul.f32 1.050701, %v7539_v43  ;;  %v7526_v5 = vmul.f32 1.6732632, %v9002_v53  ;;  %v7493_v31 = vmul.f32 1.442695, %v15035_v19 }
0x1790   : > { %v11841_v1 = vpop.eup %11840  ;;  %v7525_v44 = vmul.f32 1.6732632, %v9001_v59  ;;  %11848 = vpow2.f32 %v7495_v47  ;;  %vm7468_vm11 = vcmp.gt.f32.partialorder %v15030_v55, 0.0  ;;  %vm7467_vm2 = vcmp.gt.f32.partialorder %v15035_v19, 0.0 }
0x1791   : > { %v11843_v14 = vpop.eup %11842  ;;  %v7542_v2 = vsel %vm7462_vm10, %v15005_v50, %v7526_v5  ;;  %v9004_v28 = vadd.f32 -1.0, %v11841_v1  ;;  %10677 = vmatprep.mubr.msk.f32.mxu1 %vm879_vm1, %v7555_v16  ;;  %11850 = vpow2.f32 %v7493_v31 }
0x1792   : > { %v7541_v7 = vsel %vm7461_vm15, %v15008_v20, %v7525_v44  ;;  %v9003_v23 = vadd.f32 -1.0, %v11843_v14  ;;  %10678 = vmatmul.mubr.msk.f32.gmra.mrb[202].mxu1 %vm879_vm1, %v7556_v13  ;;  %v7558_v40 = vmul.f32 1.050701, %v7542_v2 }
0x1793   : > { %v7557_v6 = vmul.f32 1.050701, %v7541_v7  ;;  %v7528_v51 = vmul.f32 1.6732632, %v9004_v28  ;;  %v10662_v53 = vpop.f32.mrb[212].mxu0 }
0x1794   : > { %v11845_v33 = vpop.eup %11844  ;;  %v7527_v50 = vmul.f32 1.6732632, %v9003_v23  ;;  %v7444_v43 = vadd.f32 %v10662_v53, %v14998_v25  ;;  %v7438_v59 = vpop.f32.mrb[213].mxu0 }
0x1795   : > { %v11847_v62 = vpop.eup %11846  ;;  %v7544_v36 = vsel %vm7464_vm0, %v15013_v8, %v7528_v51  ;;  %v9006_v0 = vadd.f32 -1.0, %v11845_v33  ;;  %10680 = vmatprep.mubr.msk.f32.mxu1 %vm879_vm1, %v7557_v6  ;;  %v7439_v8 = vadd.f32 %v14998_v25, %v7438_v59 }
0x1796   : > { %v7543_v20 = vsel %vm7463_vm12, %v15016_v29, %v7527_v50  ;;  %v9005_v52 = vadd.f32 -1.0, %v11847_v62  ;;  %10681 = vmatmul.mubr.msk.f32.gmra.mrb[204].mxu1 %vm879_vm1, %v7558_v40  ;;  %v7560_v5 = vmul.f32 1.050701, %v7544_v36  ;;  %v7499_v13 = vmul.f32 1.442695, %v7444_v43 }
0x1797   : > { %v7559_v27 = vmul.f32 1.050701, %v7543_v20  ;;  %v7530_v16 = vmul.f32 1.6732632, %v9006_v0  ;;  %v7497_v29 = vmul.f32 1.442695, %v7439_v8 }
0x1798   : > { %v7529_v1 = vmul.f32 1.6732632, %v9005_v52  ;;  %v10665_v47 = vpop.f32.mrb[214].mxu0  ;;  %11852 = vpow2.f32 %v7499_v13  ;;  %vm7470_vm9 = vcmp.gt.f32.partialorder %v7444_v43, 0.0  ;;  %vm7469_vm14 = vcmp.gt.f32.partialorder %v7439_v8, 0.0 }
0x1799   : > { %v7546_v44 = vsel %vm7466_vm13, %v15021_v12, %v7530_v16  ;;  %10683 = vmatprep.mubr.msk.f32.mxu1 %vm879_vm1, %v7559_v27  ;;  %v7454_v2 = vadd.f32 %v10665_v47, %v14998_v25  ;;  %v7448_v28 = vpop.f32.mrb[215].mxu0  ;;  %11854 = vpow2.f32 %v7497_v29 }
0x179a   : > { %v7545_v14 = vsel %vm7465_vm5, %v15024_v48, %v7529_v1  ;;  %10684 = vmatmul.mubr.msk.f32.gmra.mrb[206].mxu1 %vm879_vm1, %v7560_v5  ;;  %v7449_v7 = vadd.f32 %v14998_v25, %v7448_v28  ;;  %v11849_v23 = vpop.eup %11848  ;;  %v7562_v12 = vmul.f32 1.050701, %v7546_v44 }
0x179b   : > { %v7561_v31 = vmul.f32 1.050701, %v7545_v14  ;;  %v7503_v6 = vmul.f32 1.442695, %v7454_v2  ;;  %v11851_v51 = vpop.eup %11850  ;;  %v9008_v33 = vadd.f32 -1.0, %v11849_v23  ;;  %vm7472_vm3 = vcmp.gt.f32.partialorder %v7454_v2, 0.0 }
0x179c   : > { %v7501_v40 = vmul.f32 1.442695, %v7449_v7  ;;  %v9007_v50 = vadd.f32 -1.0, %v11851_v51  ;;  %vm7471_vm4 = vcmp.gt.f32.partialorder %v7449_v7, 0.0 }
0x179d   : > { %10686 = vmatprep.mubr.msk.f32.mxu1 %vm879_vm1, %v7561_v31  ;;  %11856 = vpow2.f32 %v7503_v6  ;;  %v7532_v48 = vmul.f32 1.6732632, %v9008_v33 }
0x179e   : > { %10687 = vmatmul.mubr.msk.f32.gmra.mrb[208].mxu1 %vm879_vm1, %v7562_v12  ;;  %11858 = vpow2.f32 %v7501_v40  ;;  %v7531_v62 = vmul.f32 1.6732632, %v9007_v50  ;;  %v15072_v40 = vld [vmem:[#allocation4 + $0x290] ss:$0 sm:$0xff] }
0x179f   : > { %v7548_v36 = vsel %vm7468_vm11, %v15030_v55, %v7532_v48 }
0x17a0   : > { %v7547_v25 = vsel %vm7467_vm2, %v15035_v19, %v7531_v62  ;;  %v7564_v20 = vmul.f32 1.050701, %v7548_v36 }
0x17a1   : > { %v7563_v0 = vmul.f32 1.050701, %v7547_v25 }
0x17a2   : > { %v11853_v53 = vpop.eup %11852 }
0x17a3   : > { %v11855_v52 = vpop.eup %11854  ;;  %v9010_v59 = vadd.f32 -1.0, %v11853_v53  ;;  %10689 = vmatprep.mubr.msk.f32.mxu1 %vm879_vm1, %v7563_v0 }
0x17a4   : > { %v9009_v27 = vadd.f32 -1.0, %v11855_v52  ;;  %10690 = vmatmul.mubr.msk.f32.gmra.mrb[210].mxu1 %vm879_vm1, %v7564_v20 }
0x17a5   : > { %v7534_v16 = vmul.f32 1.6732632, %v9010_v59 }
0x17a6   : > { %v7533_v1 = vmul.f32 1.6732632, %v9009_v27 }
0x17a7   : > { %v11857_v5 = vpop.eup %11856  ;;  %v7550_v55 = vsel %vm7470_vm9, %v7444_v43, %v7534_v16  ;;  %v7885_v43 = vld [vmem:[#allocation4 + $0x2a8] sm:$0xff] }
0x17a8   : > { %v11859_v13 = vpop.eup %11858  ;;  %v9012_v44 = vadd.f32 -1.0, %v11857_v5  ;;  %v7549_v29 = vsel %vm7469_vm14, %v7439_v8, %v7533_v1  ;;  %v7566_v28 = vmul.f32 1.050701, %v7550_v55  ;;  %v7886_v8 = vld [vmem:[#allocation4 + $0x2b0] sm:$0xff] }
0x17a9   : > { %v9011_v19 = vadd.f32 -1.0, %v11859_v13  ;;  %v7565_v47 = vmul.f32 1.050701, %v7549_v29  ;;  %v11086_v33 = vpack.c.bf16 %v7886_v8, %v7885_v43 }
0x17aa   : > { %v7536_v14 = vmul.f32 1.6732632, %v9012_v44 }
0x17ab   : > { %v7535_v31 = vmul.f32 1.6732632, %v9011_v19  ;;  %10692 = vmatprep.mubr.msk.f32.mxu1 %vm879_vm1, %v7565_v47  ;;  %11087 = vmatprep.subr.bf16.mxu0 %v11086_v33 }
0x17ac   : > { %v7552_v23 = vsel %vm7472_vm3, %v7454_v2, %v7536_v14  ;;  %10693 = vmatmul.mubr.msk.f32.gmra.mrb[212].mxu1 %vm879_vm1, %v7566_v28  ;;  %11089 = vmatpush3.bf16.msra.mxu0 %v11086_v33 }
0x17ad   : > { %v7551_v12 = vsel %vm7471_vm4, %v7449_v7, %v7535_v31  ;;  %v7568_v51 = vmul.f32 1.050701, %v7552_v23 }
0x17ae   : > { %v7567_v6 = vmul.f32 1.050701, %v7551_v12 }
0x17b0   : > { %10695 = vmatprep.mubr.msk.f32.mxu1 %vm879_vm1, %v7567_v6 }
0x17b1   : > { %10696 = vmatmul.mubr.msk.f32.gmra.mrb[214].mxu1 %vm879_vm1, %v7568_v51 }
0x1861   : > { %v10676_v2 = vpop.f32.mrb[200].mxu1 }
0x1862   : > { %v7698_v50 = vadd.f32 %v10676_v2, %v15072_v40  ;;  %v7692_v48 = vpop.f32.mrb[201].mxu1 }
0x1863   : > { %v7693_v7 = vadd.f32 %v15072_v40, %v7692_v48 }
0x1864   : > { %v7789_v62 = vmul.f32 1.442695, %v7698_v50  ;;  %vm7772_vm6 = vcmp.gt.f32.partialorder %v7698_v50, 0.0 }
0x1865   : > { %v7787_v36 = vmul.f32 1.442695, %v7693_v7  ;;  %v10679_v25 = vpop.f32.mrb[202].mxu1  ;;  %vm7771_vm7 = vcmp.gt.f32.partialorder %v7693_v7, 0.0 }
0x1866   : > { %11860 = vpow2.f32 %v7789_v62  ;;  %v7708_v0 = vadd.f32 %v10679_v25, %v15072_v40  ;;  %v7702_v53 = vpop.f32.mrb[203].mxu1 }
0x1867   : > { %11862 = vpow2.f32 %v7787_v36  ;;  %v7703_v20 = vadd.f32 %v15072_v40, %v7702_v53 }
0x1868   : > { %v7793_v52 = vmul.f32 1.442695, %v7708_v0  ;;  %vm7774_vm8 = vcmp.gt.f32.partialorder %v7708_v0, 0.0 }
0x1869   : > { %v7791_v59 = vmul.f32 1.442695, %v7703_v20  ;;  %v10682_v27 = vpop.f32.mrb[204].mxu1  ;;  %vm7773_vm10 = vcmp.gt.f32.partialorder %v7703_v20, 0.0 }
0x186a   : > { %11864 = vpow2.f32 %v7793_v52  ;;  %v15079_v16 = vadd.f32 %v10682_v27, %v15072_v40  ;;  %v7712_v5 = vpop.f32.mrb[205].mxu1 }
0x186b   : > { %11866 = vpow2.f32 %v7791_v59  ;;  %v15082_v1 = vadd.f32 %v15072_v40, %v7712_v5 }
0x186c   : > { %v7797_v13 = vmul.f32 1.442695, %v15079_v16  ;;  %vm7776_vm15 = vcmp.gt.f32.partialorder %v15079_v16, 0.0 }
0x186d   : > { %v7795_v55 = vmul.f32 1.442695, %v15082_v1  ;;  %v10685_v44 = vpop.f32.mrb[206].mxu1  ;;  %vm7775_vm0 = vcmp.gt.f32.partialorder %v15082_v1, 0.0 }
0x186e   : > { %11868 = vpow2.f32 %v7797_v13  ;;  %v15087_v29 = vadd.f32 %v10685_v44, %v15072_v40  ;;  %v7722_v19 = vpop.f32.mrb[207].mxu1 }
0x186f   : > { %11870 = vpow2.f32 %v7795_v55  ;;  %v15090_v47 = vadd.f32 %v15072_v40, %v7722_v19 }
0x1870   : > { %v11861_v14 = vpop.eup %11860  ;;  %v7801_v28 = vmul.f32 1.442695, %v15087_v29  ;;  %vm7778_vm12 = vcmp.gt.f32.partialorder %v15087_v29, 0.0 }
0x1871   : > { %v11863_v31 = vpop.eup %11862  ;;  %v9031_v23 = vadd.f32 -1.0, %v11861_v14  ;;  %v7799_v12 = vmul.f32 1.442695, %v15090_v47  ;;  %v10688_v6 = vpop.f32.mrb[208].mxu1  ;;  %vm7777_vm13 = vcmp.gt.f32.partialorder %v15090_v47, 0.0 }
0x1872   : > { %v9030_v51 = vadd.f32 -1.0, %v11863_v31  ;;  %11872 = vpow2.f32 %v7801_v28  ;;  %v15095_v43 = vadd.f32 %v10688_v6, %v15072_v40  ;;  %v7732_v8 = vpop.f32.mrb[209].mxu1 }
0x1873   : > { %v7836_v33 = vmul.f32 1.6732632, %v9031_v23  ;;  %11874 = vpow2.f32 %v7799_v12  ;;  %v15098_v2 = vadd.f32 %v15072_v40, %v7732_v8 }
0x1874   : > { %v11865_v48 = vpop.eup %11864  ;;  %v7835_v62 = vmul.f32 1.6732632, %v9030_v51  ;;  %v7805_v36 = vmul.f32 1.442695, %v15095_v43  ;;  %vm7780_vm5 = vcmp.gt.f32.partialorder %v15095_v43, 0.0 }
0x1875   : > { %v11867_v25 = vpop.eup %11866  ;;  %v7852_v53 = vsel %vm7772_vm6, %v7698_v50, %v7836_v33  ;;  %v9033_v52 = vadd.f32 -1.0, %v11865_v48  ;;  %v7803_v59 = vmul.f32 1.442695, %v15098_v2  ;;  %vm7779_vm11 = vcmp.gt.f32.partialorder %v15098_v2, 0.0 }
0x1876   : > { %v7851_v27 = vsel %vm7771_vm7, %v7693_v7, %v7835_v62  ;;  %v9032_v5 = vadd.f32 -1.0, %v11867_v25  ;;  %11876 = vpow2.f32 %v7805_v36  ;;  %v7868_v19 = vmul.f32 1.050701, %v7852_v53 }
0x1877   : > { %v7867_v13 = vmul.f32 1.050701, %v7851_v27  ;;  %v7838_v55 = vmul.f32 1.6732632, %v9033_v52  ;;  %11878 = vpow2.f32 %v7803_v59  ;;  %v10691_v12 = vpop.f32.mrb[210].mxu1  ;;  %vm8085_vm7 = vcmp.ge.s32.totalorder %v15523_v60, 6 }
0x1878   : > { %v11869_v44 = vpop.eup %11868  ;;  %v7837_v14 = vmul.f32 1.6732632, %v9032_v5  ;;  %v15104_v7 = vadd.f32 %v10691_v12, %v15072_v40  ;;  %v7742_v51 = vpop.f32.mrb[211].mxu1 }
0x1879   : > { %v11871_v28 = vpop.eup %11870  ;;  %v7854_v31 = vsel %vm7774_vm8, %v7708_v0, %v7838_v55  ;;  %v9035_v23 = vadd.f32 -1.0, %v11869_v44  ;;  %10706 = vmatprep.mubr.msk.f32.mxu0 %vm879_vm1, %v7867_v13  ;;  %v15109_v48 = vadd.f32 %v15072_v40, %v7742_v51  ;;  %vm8086_vm8 = vcmp.lt.s32.totalorder %v15523_v60, 10 }
0x187a   : > { %v7853_v50 = vsel %vm7773_vm10, %v7703_v20, %v7837_v14  ;;  %v9034_v6 = vadd.f32 -1.0, %v11871_v28  ;;  %10707 = vmatmul.mubr.msk.f32.vlgmr.msra.gmra.mrb[216].mxu0 %vm879_vm1, %v7868_v19  ;;  %v7870_v62 = vmul.f32 1.050701, %v7854_v31  ;;  %v7809_v25 = vmul.f32 1.442695, %v15104_v7  ;;  %vm15150_vm10 = vmand %vm8085_vm7, %vm8086_vm8 }
0x187b   : > { %v7869_v8 = vmul.f32 1.050701, %v7853_v50  ;;  %v7840_v33 = vmul.f32 1.6732632, %v9035_v23  ;;  %v7807_v59 = vmul.f32 1.442695, %v15109_v48 }
0x187c   : > { %v11873_v0 = vpop.eup %11872  ;;  %v7839_v36 = vmul.f32 1.6732632, %v9034_v6  ;;  %11880 = vpow2.f32 %v7809_v25  ;;  %vm7782_vm2 = vcmp.gt.f32.partialorder %v15104_v7, 0.0  ;;  %vm7781_vm9 = vcmp.gt.f32.partialorder %v15109_v48, 0.0 }
0x187d   : > { %v11875_v20 = vpop.eup %11874  ;;  %v7856_v53 = vsel %vm7776_vm15, %v15079_v16, %v7840_v33  ;;  %v9037_v52 = vadd.f32 -1.0, %v11873_v0  ;;  %10709 = vmatprep.mubr.msk.f32.mxu0 %vm879_vm1, %v7869_v8  ;;  %11882 = vpow2.f32 %v7807_v59 }
0x187e   : > { %v7855_v27 = vsel %vm7775_vm0, %v15082_v1, %v7839_v36  ;;  %v9036_v5 = vadd.f32 -1.0, %v11875_v20  ;;  %10710 = vmatmul.mubr.msk.f32.gmra.mrb[218].mxu0 %vm879_vm1, %v7870_v62  ;;  %v7872_v19 = vmul.f32 1.050701, %v7856_v53 }
0x187f   : > { %v7871_v13 = vmul.f32 1.050701, %v7855_v27  ;;  %v7842_v55 = vmul.f32 1.6732632, %v9037_v52  ;;  %v10694_v23 = vpop.f32.mrb[212].mxu1 }
0x1880   : > { %v11877_v44 = vpop.eup %11876  ;;  %v7841_v16 = vmul.f32 1.6732632, %v9036_v5  ;;  %v7758_v50 = vadd.f32 %v10694_v23, %v15072_v40  ;;  %v7752_v6 = vpop.f32.mrb[213].mxu1 }
0x1881   : > { %v11879_v14 = vpop.eup %11878  ;;  %v7858_v28 = vsel %vm7778_vm12, %v15087_v29, %v7842_v55  ;;  %v9039_v31 = vadd.f32 -1.0, %v11877_v44  ;;  %10712 = vmatprep.mubr.msk.f32.mxu0 %vm879_vm1, %v7871_v13  ;;  %v7753_v29 = vadd.f32 %v15072_v40, %v7752_v6 }
0x1882   : > { %v7857_v1 = vsel %vm7777_vm13, %v15090_v47, %v7841_v16  ;;  %v9038_v12 = vadd.f32 -1.0, %v11879_v14  ;;  %10713 = vmatmul.mubr.msk.f32.gmra.mrb[220].mxu0 %vm879_vm1, %v7872_v19  ;;  %v7874_v33 = vmul.f32 1.050701, %v7858_v28  ;;  %v7813_v62 = vmul.f32 1.442695, %v7758_v50 }
0x1883   : > { %v7873_v51 = vmul.f32 1.050701, %v7857_v1  ;;  %v7844_v8 = vmul.f32 1.6732632, %v9039_v31  ;;  %v7811_v47 = vmul.f32 1.442695, %v7753_v29 }
0x1884   : > { %v7843_v0 = vmul.f32 1.6732632, %v9038_v12  ;;  %v10697_v25 = vpop.f32.mrb[214].mxu1  ;;  %11884 = vpow2.f32 %v7813_v62  ;;  %vm7784_vm14 = vcmp.gt.f32.partialorder %v7758_v50, 0.0  ;;  %vm7783_vm3 = vcmp.gt.f32.partialorder %v7753_v29, 0.0 }
0x1885   : > { %v7860_v36 = vsel %vm7780_vm5, %v15095_v43, %v7844_v8  ;;  %10715 = vmatprep.mubr.msk.f32.mxu0 %vm879_vm1, %v7873_v51  ;;  %v7768_v53 = vadd.f32 %v10697_v25, %v15072_v40  ;;  %v7762_v52 = vpop.f32.mrb[215].mxu1  ;;  %11886 = vpow2.f32 %v7811_v47 }
0x1886   : > { %v7859_v20 = vsel %vm7779_vm11, %v15098_v2, %v7843_v0  ;;  %10716 = vmatmul.mubr.msk.f32.gmra.mrb[222].mxu0 %vm879_vm1, %v7874_v33  ;;  %v7763_v27 = vadd.f32 %v15072_v40, %v7762_v52  ;;  %v11881_v5 = vpop.eup %11880  ;;  %v7876_v43 = vmul.f32 1.050701, %v7860_v36 }
0x1887   : > { %v7875_v59 = vmul.f32 1.050701, %v7859_v20  ;;  %v7817_v13 = vmul.f32 1.442695, %v7768_v53  ;;  %v11883_v55 = vpop.eup %11882  ;;  %v9041_v44 = vadd.f32 -1.0, %v11881_v5  ;;  %vm7786_vm4 = vcmp.gt.f32.partialorder %v7768_v53, 0.0 }
0x1888   : > { %v7815_v19 = vmul.f32 1.442695, %v7763_v27  ;;  %v9040_v16 = vadd.f32 -1.0, %v11883_v55  ;;  %vm7785_vm6 = vcmp.gt.f32.partialorder %v7763_v27, 0.0  ;;  %v11908_v55 = vld [vmem:[%s12174_s26 + $0x8] sm:$0xff] }
0x1889   : > { %10718 = vmatprep.mubr.msk.f32.mxu0 %vm879_vm1, %v7875_v59  ;;  %11888 = vpow2.f32 %v7817_v13  ;;  %v7846_v2 = vmul.f32 1.6732632, %v9041_v44  ;;  %v8089_v44 = vsel %vm15150_vm10, %v11908_v55, 0.0 }
0x188a   : > { %10719 = vmatmul.mubr.msk.f32.gmra.mrb[224].mxu0 %vm879_vm1, %v7876_v43  ;;  %11890 = vpow2.f32 %v7815_v19  ;;  %v7845_v14 = vmul.f32 1.6732632, %v9040_v16 }
0x188b   : > { %v7862_v28 = vsel %vm7782_vm2, %v15104_v7, %v7846_v2  ;;  %v11909_v2 = vld [vmem:[%s12174_s26] sm:$0xff] }
0x188c   : > { %v7861_v40 = vsel %vm7781_vm9, %v15109_v48, %v7845_v14  ;;  %v7878_v1 = vmul.f32 1.050701, %v7862_v28  ;;  %v8088_v14 = vsel %vm15150_vm10, %v11909_v2, 0.0 }
0x188d   : > { %v7877_v31 = vmul.f32 1.050701, %v7861_v40 }
0x188e   : > { %v11885_v23 = vpop.eup %11884 }
0x188f   : > { %v11887_v12 = vpop.eup %11886  ;;  %v9043_v6 = vadd.f32 -1.0, %v11885_v23  ;;  %10721 = vmatprep.mubr.msk.f32.mxu0 %vm879_vm1, %v7877_v31 }
0x1890   : > { %v9042_v51 = vadd.f32 -1.0, %v11887_v12  ;;  %10722 = vmatmul.mubr.msk.f32.gmra.mrb[226].mxu0 %vm879_vm1, %v7878_v1  ;;  %v11910_v1 = vld [vmem:[%s12174_s26 + $0x18] sm:$0xff] }
0x1891   : > { %v7848_v8 = vmul.f32 1.6732632, %v9043_v6  ;;  %v8091_v12 = vsel %vm15150_vm10, %v11910_v1, 0.0 }
0x1892   : > { %v7847_v0 = vmul.f32 1.6732632, %v9042_v51 }
0x1893   : > { %v11889_v33 = vpop.eup %11888  ;;  %v7864_v7 = vsel %vm7784_vm14, %v7758_v50, %v7848_v8 }
0x1894   : > { %v11891_v62 = vpop.eup %11890  ;;  %v9045_v36 = vadd.f32 -1.0, %v11889_v33  ;;  %v7863_v47 = vsel %vm7783_vm3, %v7753_v29, %v7847_v0  ;;  %v7880_v52 = vmul.f32 1.050701, %v7864_v7  ;;  %v11911_v33 = vld [vmem:[%s12174_s26 + $0x10] sm:$0xff] }
0x1895   : > { %v9044_v48 = vadd.f32 -1.0, %v11891_v62  ;;  %v7879_v25 = vmul.f32 1.050701, %v7863_v47  ;;  %v8090_v0 = vsel %vm15150_vm10, %v11911_v33, 0.0 }
0x1896   : > { %v7850_v20 = vmul.f32 1.6732632, %v9045_v36 }
0x1897   : > { %v7849_v59 = vmul.f32 1.6732632, %v9044_v48  ;;  %10724 = vmatprep.mubr.msk.f32.mxu0 %vm879_vm1, %v7879_v25 }
0x1898   : > { %v7866_v5 = vsel %vm7786_vm4, %v7768_v53, %v7850_v20  ;;  %10725 = vmatmul.mubr.msk.f32.gmra.mrb[228].mxu0 %vm879_vm1, %v7880_v52  ;;  %v15154_v53 = vld [vmem:[#allocation4 + $0x2b8] ss:$0 sm:$0xff] }
0x1899   : > { %v7865_v43 = vsel %vm7785_vm6, %v7763_v27, %v7849_v59  ;;  %v7882_v50 = vmul.f32 1.050701, %v7866_v5  ;;  %v11912_v59 = vld [vmem:[%s12174_s26 + $0x28] sm:$0xff] }
0x189a   : > { %v7881_v13 = vmul.f32 1.050701, %v7865_v43  ;;  %v8093_v5 = vsel %vm15150_vm10, %v11912_v59, 0.0 }
0x189c   : > { %10727 = vmatprep.mubr.msk.f32.mxu0 %vm879_vm1, %v7881_v13  ;;  %v11913_v13 = vld [vmem:[%s12174_s26 + $0x20] sm:$0xff] }
0x189d   : > { %10728 = vmatmul.mubr.msk.f32.gmra.mrb[230].mxu0 %vm879_vm1, %v7882_v50  ;;  %vm8104_vm1 = vcmp.eq.s32.totalorder %v15523_v60, 10 }
0x189e   : > { %v8106_v62 = vsel %vm8104_vm1, %v13878_v18, 0.0  ;;  %v8105_v47 = vsel %vm8104_vm1, %v13880_v30, 0.0  ;;  %v8092_v30 = vsel %vm15150_vm10, %v11913_v13, 0.0  ;;  %v8108_v50 = vsel %vm8104_vm1, %v13888_v10, 0.0 }
0x189f   : > { %v8110_v1 = vsel %vm8104_vm1, %v13898_v41, 0.0 }
0x194d   : > { %v10708_v27 = vpop.f32.mrb[216].mxu0 }
0x194e   : > { %v8012_v19 = vadd.f32 %v10708_v27, %v15154_v53  ;;  %v8006_v16 = vpop.f32.mrb[217].mxu0 }
0x194f   : > { %v8007_v28 = vadd.f32 %v15154_v53, %v8006_v16 }
0x1950   : > { %v8122_v40 = vadd.f32 %v8089_v44, %v8012_v19  ;;  %v8107_v44 = vsel %vm8104_vm1, %v13890_v3, 0.0 }
0x1951   : > { %v8121_v31 = vadd.f32 %v8088_v14, %v8007_v28  ;;  %v10711_v23 = vpop.f32.mrb[218].mxu0  ;;  %v11914_v28 = vld [vmem:[%s12174_s26 + $0x38] sm:$0xff] }
0x1952   : > { %v8138_v6 = vadd.f32 %v8122_v40, %v14784_v61  ;;  %v8022_v51 = vadd.f32 %v10711_v23, %v15154_v53  ;;  %v8016_v8 = vpop.f32.mrb[219].mxu0  ;;  %v8095_v40 = vsel %vm15150_vm10, %v11914_v28, 0.0  ;;  %v11915_v23 = vld [vmem:[%s12174_s26 + $0x30] sm:$0xff]  ;;  %v8115_v28 = vsel %vm8104_vm1, %v13928_v26, 0.0 }
0x1953   : > { %v8137_v61 = vadd.f32 %v8121_v31, %v14782_v17  ;;  %v8017_v7 = vadd.f32 %v15154_v53, %v8016_v8  ;;  %v8094_v3 = vsel %vm15150_vm10, %v11915_v23, 0.0 }
0x1954   : > { %v8154_v36 = vadd.f32 %v8138_v6, %v8106_v62  ;;  %v8124_v48 = vadd.f32 %v8091_v12, %v8022_v51  ;;  %v8109_v51 = vsel %vm8104_vm1, %v13900_v38, 0.0 }
0x1955   : > { %v8153_v25 = vadd.f32 %v8137_v61, %v8105_v47  ;;  %v8123_v20 = vadd.f32 %v8090_v0, %v8017_v7  ;;  %v10714_v52 = vpop.f32.mrb[220].mxu0  ;;  %v11916_v61 = vld [vmem:[%s12174_s26 + $0x48] sm:$0xff]  ;;  %v11917_v47 = vld [vmem:[%s12174_s26 + $0x40] sm:$0xff] }
0x1956   : > { %8170 = vst [vmem:[%s15176_s3 + $0x8] sm:$0xff] %v8154_v36  ;;  %v8140_v18 = vadd.f32 %v8124_v48, %v14792_v42  ;;  %v8032_v17 = vadd.f32 %v10714_v52, %v15154_v53  ;;  %v8026_v43 = vpop.f32.mrb[221].mxu0  ;;  %v8097_v7 = vsel %vm15150_vm10, %v11916_v61, 0.0  ;;  %v8096_v38 = vsel %vm15150_vm10, %v11917_v47, 0.0 }
0x1957   : > { %8169 = vst [vmem:[%s15176_s3] sm:$0xff] %v8153_v25  ;;  %v8139_v27 = vadd.f32 %v8123_v20, %v14790_v58  ;;  %v8027_v55 = vadd.f32 %v15154_v53, %v8026_v43  ;;  %v8112_v48 = vsel %vm8104_vm1, %v13908_v34, 0.0  ;;  %v8114_v34 = vsel %vm8104_vm1, %v13918_v57, 0.0  ;;  %v11919_v57 = vld [vmem:[%s12174_s26 + $0x50] sm:$0xff] }
0x1958   : > { %v8156_v42 = vadd.f32 %v8140_v18, %v8108_v50  ;;  %v8126_v19 = vadd.f32 %v8093_v5, %v8032_v17  ;;  %v11918_v50 = vld [vmem:[%s12174_s26 + $0x58] sm:$0xff]  ;;  %v8118_v61 = vsel %vm8104_vm1, %v13934_v22, 0.0 }
0x1959   : > { %v8155_v16 = vadd.f32 %v8139_v27, %v8107_v44  ;;  %v8125_v2 = vadd.f32 %v8092_v30, %v8027_v55  ;;  %v10717_v14 = vpop.f32.mrb[222].mxu0  ;;  %v8099_v27 = vsel %vm15150_vm10, %v11918_v50, 0.0 }
0x195a   : > { %8172 = vst [vmem:[%s15176_s3 + $0x18] sm:$0xff] %v8156_v42  ;;  %v8142_v10 = vadd.f32 %v8126_v19, %v14800_v21  ;;  %v8042_v58 = vadd.f32 %v10717_v14, %v15154_v53  ;;  %v8036_v31 = vpop.f32.mrb[223].mxu0 }
0x195b   : > { %8171 = vst [vmem:[%s15176_s3 + $0x10] sm:$0xff] %v8155_v16  ;;  %v8141_v12 = vadd.f32 %v8125_v2, %v14798_v32  ;;  %v8037_v6 = vadd.f32 %v15154_v53, %v8036_v31  ;;  %v8116_v16 = vsel %vm8104_vm1, %v13926_v54, 0.0  ;;  %v11921_v54 = vld [vmem:[%s12174_s26 + $0x60] sm:$0xff] }
0x195c   : > { %v8158_v21 = vadd.f32 %v8142_v10, %v8110_v1  ;;  %v8128_v8 = vadd.f32 %v8095_v40, %v8042_v58  ;;  %v11920_v58 = vld [vmem:[%s12174_s26 + $0x68] sm:$0xff] }
0x195d   : > { %v8157_v33 = vadd.f32 %v8141_v12, %v8109_v51  ;;  %v8127_v0 = vadd.f32 %v8094_v3, %v8037_v6  ;;  %v10720_v62 = vpop.f32.mrb[224].mxu0  ;;  %v8101_v31 = vsel %vm15150_vm10, %v11920_v58, 0.0  ;;  %v11922_v6 = vld [vmem:[%s12174_s26 + $0x78] sm:$0xff] }
0x195e   : > { %8174 = vst [vmem:[%s15176_s3 + $0x28] sm:$0xff] %v8158_v21  ;;  %v8144_v41 = vadd.f32 %v8128_v8, %v14808_v11  ;;  %v8052_v32 = vadd.f32 %v10720_v62, %v15154_v53  ;;  %v8046_v36 = vpop.f32.mrb[225].mxu0  ;;  %v8111_v11 = vsel %vm8104_vm1, %v13910_v39, 0.0  ;;  %v8113_v39 = vsel %vm8104_vm1, %v13920_v49, 0.0 }
0x195f   : > { %8173 = vst [vmem:[%s15176_s3 + $0x20] sm:$0xff] %v8157_v33  ;;  %v8143_v25 = vadd.f32 %v8127_v0, %v14806_v15  ;;  %v8047_v20 = vadd.f32 %v15154_v53, %v8046_v36  ;;  %v8103_v21 = vsel %vm15150_vm10, %v11922_v6, 0.0  ;;  %v11923_v0 = vld [vmem:[%s12174_s26 + $0x70] sm:$0xff] }
0x1960   : > { %v8160_v52 = vadd.f32 %v8144_v41, %v8112_v48  ;;  %v8130_v59 = vadd.f32 %v8097_v7, %v8052_v32  ;;  %v8102_v62 = vsel %vm15150_vm10, %v11923_v0, 0.0  ;;  %v15608_v48 = vld [vmem:[#allocation8_spill] sm:$0xff] }
0x1961   : > { %v8159_v5 = vadd.f32 %v8143_v25, %v8111_v11  ;;  %v8129_v18 = vadd.f32 %v8096_v38, %v8047_v20  ;;  %v8120_v22 = vsel %vm8104_vm1, %v15608_v48, 0.0 }
0x1962   : > { %8176 = vst [vmem:[%s15176_s3 + $0x38] sm:$0xff] %v8160_v52  ;;  %v8146_v17 = vadd.f32 %v8130_v59, %v14816_v63 }
0x1963   : > { %8175 = vst [vmem:[%s15176_s3 + $0x30] sm:$0xff] %v8159_v5  ;;  %v8145_v15 = vadd.f32 %v8129_v18, %v14814_v37  ;;  %v10723_v30 = vpop.f32.mrb[226].mxu0  ;;  %v8098_v37 = vsel %vm15150_vm10, %v11919_v57, 0.0 }
0x1964   : > { %v8162_v43 = vadd.f32 %v8146_v17, %v8114_v34  ;;  %v8062_v63 = vadd.f32 %v10723_v30, %v15154_v53  ;;  %v8056_v55 = vpop.f32.mrb[227].mxu0 }
0x1965   : > { %v8161_v13 = vadd.f32 %v8145_v15, %v8113_v39  ;;  %v8057_v49 = vadd.f32 %v15154_v53, %v8056_v55 }
0x1966   : > { %8178 = vst [vmem:[%s15176_s3 + $0x48] sm:$0xff] %v8162_v43  ;;  %v8132_v42 = vadd.f32 %v8099_v27, %v8062_v63 }
0x1967   : > { %8177 = vst [vmem:[%s15176_s3 + $0x40] sm:$0xff] %v8161_v13  ;;  %v8131_v44 = vadd.f32 %v8098_v37, %v8057_v49 }
0x1968   : > { %v8148_v19 = vadd.f32 %v8132_v42, %v14824_v35 }
0x1969   : > { %v8147_v2 = vadd.f32 %v8131_v44, %v14822_v45  ;;  %v8100_v45 = vsel %vm15150_vm10, %v11921_v54, 0.0 }
0x196a   : > { %v8164_v14 = vadd.f32 %v8148_v19, %v8116_v16 }
0x196b   : > { %v8163_v40 = vadd.f32 %v8147_v2, %v8115_v28  ;;  %v10726_v10 = vpop.f32.mrb[228].mxu0 }
0x196c   : > { %8180 = vst [vmem:[%s15176_s3 + $0x58] sm:$0xff] %v8164_v14  ;;  %v8072_v35 = vadd.f32 %v10726_v10, %v15154_v53  ;;  %v8066_v23 = vpop.f32.mrb[229].mxu0 }
0x196d   : > { %8179 = vst [vmem:[%s15176_s3 + $0x50] sm:$0xff] %v8163_v40  ;;  %v8067_v3 = vadd.f32 %v15154_v53, %v8066_v23 }
0x196e   : > { %v8134_v1 = vadd.f32 %v8101_v31, %v8072_v35 }
0x196f   : > { %v8133_v26 = vadd.f32 %v8100_v45, %v8067_v3 }
0x1970   : > { %v10729_v12 = vpop.f32.mrb[230].mxu0  ;;  %v8150_v51 = vadd.f32 %v8134_v1, %v14832_v24  ;;  %v8117_v24 = vsel %vm8104_vm1, %v13936_v9, 0.0 }
0x1971   : > { %v8082_v8 = vadd.f32 %v10729_v12, %v15154_v53  ;;  %v8076_v33 = vpop.f32.mrb[231].mxu0  ;;  %v8149_v7 = vadd.f32 %v8133_v26, %v14830_v46 }
0x1972   : > { %v8077_v41 = vadd.f32 %v15154_v53, %v8076_v33  ;;  %v8166_v32 = vadd.f32 %v8150_v51, %v8118_v61  ;;  %v15609_v53 = vld [vmem:[#allocation15_spill] sm:$0xff] }
0x1973   : > { %v8136_v36 = vadd.f32 %v8103_v21, %v8082_v8  ;;  %v8165_v47 = vadd.f32 %v8149_v7, %v8117_v24  ;;  %v8119_v20 = vsel %vm8104_vm1, %v15609_v53, 0.0 }
0x1974   : > { %v8135_v38 = vadd.f32 %v8102_v62, %v8077_v41  ;;  %8182 = vst [vmem:[%s15176_s3 + $0x68] sm:$0xff] %v8166_v32 }
0x1975   : > { %v8152_v29 = vadd.f32 %v8136_v36, %v14840_v4  ;;  %8181 = vst [vmem:[%s15176_s3 + $0x60] sm:$0xff] %v8165_v47 }
0x1976   : > { %v8151_v46 = vadd.f32 %v8135_v38, %v14838_v56 }
0x1977   : > { %v8168_v25 = vadd.f32 %v8152_v29, %v8120_v22 }
0x1978   : > { %v8167_v52 = vadd.f32 %v8151_v46, %v8119_v20 }
0x1979   : > { %8184 = vst [vmem:[%s15176_s3 + $0x78] sm:$0xff] %v8168_v25 }
0x197a   : > { %8183 = vst [vmem:[%s15176_s3 + $0x70] sm:$0xff] %v8167_v52 }
0x197b PF: > { %p13_p6 = scmp.ge.s32.totalorder %s12096_s20, 4   ;;  %s15610_s9 = smov %s12012_s10 }
0x197c   : > { %s15611_s10 = smov %s12016_s11  ;;  %s15612_s11 = smov %s12125_s7 }
0x197d   : > { %s15613_s12 = smov %s12096_s20  ;;  %15 = sbr.rel (!%p13_p6) target bundleno = 4 (0x4), region = 72 }
0x1984   :  { %8207 = vsyncpa [#allocation3], 1 }
0x1985   :  { %8209 = vsyncpa [#allocation3 + $0x1], 1 }
0x1986   :  { %8210 = vsyncpa [#allocation5], 1 }

</bundles_post_ra>
